<compile_context>
chip_gen: v7x
topology: tpu7x:2x2x1
jax: 0.10.0
libtpu: 0.0.40
codegen_flags: <defaults>
</compile_context>

<pallas_src>
import jax
import jax.numpy as jnp
from jax import lax
from jax.experimental import pallas as pl
from jax.experimental.pallas import tpu as pltpu

# ----------------------------- configuration -----------------------------
IMG_SIZE = 16
PATCH_SIZES = [4, 8]                      # -> 16 and 4 patches per scale
IN_CHANS = 3
EMBED_DIM = 32
NUM_HEADS = 4
DEPTH = 2
NUM_CLASSES = 7
MLP_RATIO = 4.0

NUM_PATCHES = [(IMG_SIZE // p) ** 2 for p in PATCH_SIZES]     # [16, 4]
N_SCALES = len(PATCH_SIZES)
K_SIZES = [IN_CHANS * p * p for p in PATCH_SIZES]             # [48, 192]
S_REAL = [n + 1 for n in NUM_PATCHES]                         # [17, 5] (incl. CLS)
S_PADS = [((s + 7) // 8) * 8 for s in S_REAL]                 # [24, 8] sublane aligned
HIDDEN = int(EMBED_DIM * MLP_RATIO)                           # 128
FDIM = N_SCALES * EMBED_DIM                                   # 64
NEG_INF = -1e9

# rows inside the per-layer packed vector slab (DEPTH, 12, 128)
_LV_ROWS = ["norm0_g", "norm0_b", "norm1_g", "norm1_b", "norm2_g", "norm2_b",
            "in_proj_b", "out_proj_b", "fc1_b", "mlp_ln_g", "mlp_ln_b", "fc2_b"]
# rows inside the head-stage packed vector slab (8, 64)
_HV_ROWS = ["norm_g", "norm_b", "fusion_norm_g", "fusion_norm_b",
            "fusion_head_b", "head_norm_g", "head_norm_b", "head_b"]


# ------------------------- in-kernel math helpers -------------------------
def _ln(x, g, b, eps=1e-5):
    mu = jnp.mean(x, axis=-1, keepdims=True)
    xc = x - mu
    var = jnp.mean(xc * xc, axis=-1, keepdims=True)
    return xc * lax.rsqrt(var + eps) * g + b


def _gelu(x):
    # exact (erf) GELU, matching torch.nn.GELU default
    return 0.5 * x * (1.0 + lax.erf(x * jnp.float32(0.7071067811865476)))


def _encode_scale(patches, pw, tok, n_valid, layers, ng, nb):
    """One scale's encoder.  patches: (B, S_pad, K) zero-padded slab whose row 0
    is the CLS slot (zero input); tok already holds cls+pos / pos+conv-bias.
    Returns the final-LayerNormed CLS vector, shape (B, EMBED_DIM)."""
    B, S, K = patches.shape
    D = EMBED_DIM
    H = NUM_HEADS
    dh = D // H
    scale = 1.0 / float(dh) ** 0.5

    # patch embedding (matmul form of the stride-p conv) + token bias
    x = jnp.dot(patches.reshape(B * S, K), pw, preferred_element_type=jnp.float32)
    x = (x.reshape(B, S, D) + tok[None, :, :]).reshape(B * S, D)

    # additive bias disabling padded key tokens (compile-time constant)
    key_mask = jnp.where(
        lax.broadcasted_iota(jnp.int32, (1, 1, S), 2) < n_valid,
        jnp.float32(0.0), jnp.float32(NEG_INF))

    for lp in layers:
        # norm0 (this IS the residual base in the reference layer)
        x = _ln(x, lp["n0g"], lp["n0b"])

        # fused QKV projection
        qkv = (jnp.dot(x, lp["ipw"], preferred_element_type=jnp.float32)
               + lp["ipb"]).reshape(B, S, 3 * D)

        # multi-head attention, batched over B per head; masked softmax
        heads = []
        for h in range(H):
            q = qkv[:, :, h * dh:(h + 1) * dh]
            k = qkv[:, :, D + h * dh:D + (h + 1) * dh]
            v = qkv[:, :, 2 * D + h * dh:2 * D + (h + 1) * dh]
            s = jnp.einsum('bqd,bkd->bqk', q, k,
                           preferred_element_type=jnp.float32) * scale + key_mask
            s = s - jnp.max(s, axis=-1, keepdims=True)
            p = jnp.exp(s)
            p = p * pl.reciprocal(jnp.sum(p, axis=-1, keepdims=True), approx=True)
            heads.append(jnp.einsum('bqk,bkd->bqd', p, v,
                                    preferred_element_type=jnp.float32))
        ctx = jnp.concatenate(heads, axis=-1).reshape(B * S, D)

        attn_out = (jnp.dot(ctx, lp["opw"], preferred_element_type=jnp.float32)
                    + lp["opb"])
        x = _ln(x + attn_out, lp["n1g"], lp["n1b"])          # norm1

        # MLP: Linear -> LayerNorm -> GELU -> Linear  (dropouts are identity)
        hid = (jnp.dot(x, lp["f1w"], preferred_element_type=jnp.float32)
               + lp["f1b"])
        hid = _gelu(_ln(hid, lp["mlg"], lp["mlb"]))
        mlp_out = (jnp.dot(hid, lp["f2w"], preferred_element_type=jnp.float32)
                   + lp["f2b"])
        x = _ln(x + mlp_out, lp["n2g"], lp["n2b"])           # norm2

    # final LayerNorm on the CLS token only (LN is per-token => equivalent)
    cls_tok = x.reshape(B, S, D)[:, 0, :]                    # (B, D)
    return _ln(cls_tok, ng, nb)


# --------------------------- single fused kernel ---------------------------
def _hvt_kernel(p0_ref, p1_ref, tok0_ref, tok1_ref, pw0_ref, pw1_ref,
                ipw_ref, opw_ref, f1w_ref, f2w_ref,
                lvec_ref, hvec_ref, fhw_ref, hw_ref, out_ref):
    D = EMBED_DIM

    # unpack per-layer parameters once (statically unrolled; DEPTH is tiny)
    layers = []
    for l in range(DEPTH):
        lv = lvec_ref[l]                                     # (12, 128)
        layers.append({
            "n0g": lv[0:1, :D], "n0b": lv[1:2, :D],
            "n1g": lv[2:3, :D], "n1b": lv[3:4, :D],
            "n2g": lv[4:5, :D], "n2b": lv[5:6, :D],
            "ipb": lv[6:7, :3 * D], "opb": lv[7:8, :D],
            "f1b": lv[8:9, :HIDDEN], "mlg": lv[9:10, :HIDDEN],
            "mlb": lv[10:11, :HIDDEN], "f2b": lv[11:12, :D],
            "ipw": ipw_ref[l], "opw": opw_ref[l],
            "f1w": f1w_ref[l], "f2w": f2w_ref[l],
        })
    hv = hvec_ref[...]                                       # (8, 64)
    ng, nb = hv[0:1, :D], hv[1:2, :D]

    # both scales, fully in VMEM/vregs
    cls0 = _encode_scale(p0_ref[...], pw0_ref[...], tok0_ref[...],
                         S_REAL[0], layers, ng, nb)
    cls1 = _encode_scale(p1_ref[...], pw1_ref[...], tok1_ref[...],
                         S_REAL[1], layers, ng, nb)

    # fusion head: fusion_norm -> fusion_head -> head_norm -> head
    combined = jnp.concatenate([cls0, cls1], axis=-1)        # (B, FDIM)
    combined = _ln(combined, hv[2:3, :FDIM], hv[3:4, :FDIM])
    fused = (jnp.dot(combined, fhw_ref[...], preferred_element_type=jnp.float32)
             + hv[4:5, :D])
    fused = _ln(fused, hv[5:6, :D], hv[6:7, :D])
    out_ref[...] = (jnp.dot(fused, hw_ref[...], preferred_element_type=jnp.float32)
                    + hv[7:8, :NUM_CLASSES]).astype(out_ref.dtype)


# ------------------------------ model (glue) -------------------------------
def extract_patches(x, p):
    """NCHW [B,C,H,W] -> [B, N, C*p*p] with (c,i,j) flatten order; equivalent
    to Conv2d(kernel=p, stride=p) followed by flatten(2).transpose(1,2)."""
    B, C, H, W = x.shape
    gh, gw = H // p, W // p
    x = x.reshape(B, C, gh, p, gw, p)
    x = x.transpose(0, 2, 4, 1, 3, 5)            # [B, gh, gw, C, p, p]
    return x.reshape(B, gh * gw, C * p * p)


def hvt_forward(packed, rgb):
    B = rgb.shape[0]

    # per-scale patch slabs: row 0 is the CLS slot (zero input), rows 1..n are
    # the flattened patches, remaining rows are sublane padding.
    slabs = []
    for i, p in enumerate(PATCH_SIZES):
        pp = extract_patches(rgb, p)                           # (B, n, K_i)
        pp = jnp.pad(pp, ((0, 0), (1, S_PADS[i] - 1 - pp.shape[1]), (0, 0)))
        slabs.append(pp)                                       # (B, S_PADS[i], K_i)
    p0, p1 = slabs

    i3 = lambda i: (0, 0, 0)
    i2 = lambda i: (0, 0)

    logits = pl.pallas_call(
        _hvt_kernel,
        out_shape=jax.ShapeDtypeStruct((B, NUM_CLASSES), jnp.float32),
        grid=(1,),
        in_specs=[
            pl.BlockSpec((B, S_PADS[0], K_SIZES[0]), i3),      # patches scale 0
            pl.BlockSpec((B, S_PADS[1], K_SIZES[1]), i3),      # patches scale 1
            pl.BlockSpec((S_PADS[0], EMBED_DIM), i2),          # tok bias scale 0
            pl.BlockSpec((S_PADS[1], EMBED_DIM), i2),          # tok bias scale 1
            pl.BlockSpec((K_SIZES[0], EMBED_DIM), i2),         # patch proj scale 0
            pl.BlockSpec((K_SIZES[1], EMBED_DIM), i2),         # patch proj scale 1
            pl.BlockSpec((DEPTH, EMBED_DIM, 3 * EMBED_DIM), i3),   # in_proj_w
            pl.BlockSpec((DEPTH, EMBED_DIM, EMBED_DIM), i3),       # out_proj_w
            pl.BlockSpec((DEPTH, EMBED_DIM, HIDDEN), i3),          # fc1_w
            pl.BlockSpec((DEPTH, HIDDEN, EMBED_DIM), i3),          # fc2_w
            pl.BlockSpec((DEPTH, len(_LV_ROWS), 128), i3),         # packed layer vecs
            pl.BlockSpec((len(_HV_ROWS), FDIM), i2),               # packed head vecs
            pl.BlockSpec((FDIM, EMBED_DIM), i2),                   # fusion_head_w
            pl.BlockSpec((EMBED_DIM, NUM_CLASSES), i2),            # head_w
        ],
        out_specs=pl.BlockSpec((B, NUM_CLASSES), i2),
        compiler_params=pltpu.CompilerParams(
            dimension_semantics=("arbitrary",)),
    )(p0, p1,
      packed["tok0"], packed["tok1"], packed["pw0"], packed["pw1"],
      packed["in_proj_w"], packed["out_proj_w"], packed["fc1_w"], packed["fc2_w"],
      packed["layer_vecs"], packed["head_vecs"],
      packed["fusion_head_w"], packed["head_w"])
    return logits


# --------------------------- deterministic init ----------------------------
def init_params(key):
    keys = iter(jax.random.split(key, 256))
    nk = lambda: next(keys)
    nrm = lambda k, shape, std=0.02: std * jax.random.normal(k, shape, jnp.float32)

    params = {
        "cls_tokens": nrm(nk(), (N_SCALES, 1, EMBED_DIM)),
        "pos_embeds": [nrm(nk(), (1, n + 1, EMBED_DIM)) for n in NUM_PATCHES],
        "patch_proj": [
            {"w": nrm(nk(), (IN_CHANS * p * p, EMBED_DIM)),
             "b": jnp.zeros((EMBED_DIM,), jnp.float32)}
            for p in PATCH_SIZES
        ],
        "layers": [],
        "norm_g": jnp.ones((EMBED_DIM,), jnp.float32),
        "norm_b": jnp.zeros((EMBED_DIM,), jnp.float32),
    }
    for _ in range(DEPTH):
        params["layers"].append({
            "norm0_g": jnp.ones((EMBED_DIM,), jnp.float32),
            "norm0_b": jnp.zeros((EMBED_DIM,), jnp.float32),
            "in_proj_w": nrm(nk(), (EMBED_DIM, 3 * EMBED_DIM)),
            "in_proj_b": jnp.zeros((3 * EMBED_DIM,), jnp.float32),
            "out_proj_w": nrm(nk(), (EMBED_DIM, EMBED_DIM)),
            "out_proj_b": jnp.zeros((EMBED_DIM,), jnp.float32),
            "norm1_g": jnp.ones((EMBED_DIM,), jnp.float32),
            "norm1_b": jnp.zeros((EMBED_DIM,), jnp.float32),
            "fc1_w": nrm(nk(), (EMBED_DIM, HIDDEN)),
            "fc1_b": jnp.zeros((HIDDEN,), jnp.float32),
            "mlp_ln_g": jnp.ones((HIDDEN,), jnp.float32),
            "mlp_ln_b": jnp.zeros((HIDDEN,), jnp.float32),
            "fc2_w": nrm(nk(), (HIDDEN, EMBED_DIM)),
            "fc2_b": jnp.zeros((EMBED_DIM,), jnp.float32),
            "norm2_g": jnp.ones((EMBED_DIM,), jnp.float32),
            "norm2_b": jnp.zeros((EMBED_DIM,), jnp.float32),
        })
    params["fusion_norm_g"] = jnp.ones((FDIM,), jnp.float32)
    params["fusion_norm_b"] = jnp.zeros((FDIM,), jnp.float32)
    params["fusion_head_w"] = nrm(nk(), (FDIM, EMBED_DIM))
    params["fusion_head_b"] = jnp.zeros((EMBED_DIM,), jnp.float32)
    params["head_norm_g"] = jnp.ones((EMBED_DIM,), jnp.float32)
    params["head_norm_b"] = jnp.zeros((EMBED_DIM,), jnp.float32)
    params["head_w"] = nrm(nk(), (EMBED_DIM, NUM_CLASSES))
    params["head_b"] = jnp.zeros((NUM_CLASSES,), jnp.float32)
    return params


def pack_params(params):
    """Pad / stack parameters into the kernel-ready layout (done once)."""
    D = EMBED_DIM
    packed = {}

    # per-scale token bias (row 0: cls+pos, patch rows: pos+conv-bias, pad: 0)
    for i in range(N_SCALES):
        n = NUM_PATCHES[i]
        pos_i = params["pos_embeds"][i][0]                       # (n+1, D)
        tok = jnp.zeros((S_PADS[i], D), jnp.float32)
        tok = tok.at[0, :].set(params["cls_tokens"][i, 0] + pos_i[0])
        tok = tok.at[1:1 + n, :].set(
            pos_i[1:] + params["patch_proj"][i]["b"][None, :])
        packed[f"tok{i}"] = tok
        packed[f"pw{i}"] = params["patch_proj"][i]["w"]          # (K_i, D) exact

    # stacked per-layer matmul weights
    for name in ("in_proj_w", "out_proj_w", "fc1_w", "fc2_w"):
        packed[name] = jnp.stack([lp[name] for lp in params["layers"]], axis=0)

    # packed per-layer vector params (gammas / betas / biases), zero-padded lanes
    lvec = jnp.zeros((DEPTH, len(_LV_ROWS), 128), jnp.float32)
    for l, lp in enumerate(params["layers"]):
        for r, name in enumerate(_LV_ROWS):
            v = lp[name]
            lvec = lvec.at[l, r, :v.shape[0]].set(v)
    packed["layer_vecs"] = lvec

    # packed head-stage vector params
    hvec = jnp.zeros((len(_HV_ROWS), FDIM), jnp.float32)
    for r, name in enumerate(_HV_ROWS):
        v = params[name]
        hvec = hvec.at[r, :v.shape[0]].set(v)
    packed["head_vecs"] = hvec

    packed["fusion_head_w"] = params["fusion_head_w"]
    packed["head_w"] = params["head_w"]
    return packed


# TODO(synk): spectral branch / CrossAttentionFusion not implemented (the
# reference forward skips it when spectral=None, which is the path modeled here).

# ---------------------------------- main -----------------------------------
if __name__ == "__main__":
    key = jax.random.PRNGKey(0)
    pkey, xkey = jax.random.split(key)
    packed = pack_params(init_params(pkey))

    # NCHW input, matching the PyTorch module's conv layout.
    rgb = jax.random.normal(xkey, (2, IN_CHANS, IMG_SIZE, IMG_SIZE), jnp.float32)

    logits = jax.jit(hvt_forward)(packed, rgb)
    jax.block_until_ready(logits)
    assert logits.shape == (2, NUM_CLASSES), logits.shape
    assert bool(jnp.all(jnp.isfinite(logits)))
    print("KERNEL_OK")
</pallas_src>

<mosaic_0001>
module attributes {stable_mosaic.version = 11 : i64} {
  func.func @_hvt_kernel(%arg0: i32, %arg1: memref<2x24x48xf32, #tpu.memory_space<vmem>>, %arg2: memref<2x8x192xf32, #tpu.memory_space<vmem>>, %arg3: memref<24x32xf32, #tpu.memory_space<vmem>>, %arg4: memref<8x32xf32, #tpu.memory_space<vmem>>, %arg5: memref<48x32xf32, #tpu.memory_space<vmem>>, %arg6: memref<192x32xf32, #tpu.memory_space<vmem>>, %arg7: memref<2x32x96xf32, #tpu.memory_space<vmem>>, %arg8: memref<2x32x32xf32, #tpu.memory_space<vmem>>, %arg9: memref<2x32x128xf32, #tpu.memory_space<vmem>>, %arg10: memref<2x128x32xf32, #tpu.memory_space<vmem>>, %arg11: memref<2x12x128xf32, #tpu.memory_space<vmem>>, %arg12: memref<8x64xf32, #tpu.memory_space<vmem>>, %arg13: memref<64x32xf32, #tpu.memory_space<vmem>>, %arg14: memref<32x7xf32, #tpu.memory_space<vmem>>, %arg15: memref<2x7xf32, #tpu.memory_space<vmem>>) attributes {dimension_semantics = [#tpu.dimension_semantics<arbitrary>], iteration_bounds = array<i64: 1>, scalar_prefetch = 0 : i64, scratch_operands = 0 : i64, tpu.core_type = #tpu.core_type<tc>, window_params = [{pipeline_mode = #tpu.pipeline_mode<synchronous>, transform_indices = @transform_0, window_bounds = array<i64: 2, 24, 48>}, {pipeline_mode = #tpu.pipeline_mode<synchronous>, transform_indices = @transform_1, window_bounds = array<i64: 2, 8, 192>}, {pipeline_mode = #tpu.pipeline_mode<synchronous>, transform_indices = @transform_2, window_bounds = array<i64: 24, 32>}, {pipeline_mode = #tpu.pipeline_mode<synchronous>, transform_indices = @transform_3, window_bounds = array<i64: 8, 32>}, {pipeline_mode = #tpu.pipeline_mode<synchronous>, transform_indices = @transform_4, window_bounds = array<i64: 48, 32>}, {pipeline_mode = #tpu.pipeline_mode<synchronous>, transform_indices = @transform_5, window_bounds = array<i64: 192, 32>}, {pipeline_mode = #tpu.pipeline_mode<synchronous>, transform_indices = @transform_6, window_bounds = array<i64: 2, 32, 96>}, {pipeline_mode = #tpu.pipeline_mode<synchronous>, transform_indices = @transform_7, window_bounds = array<i64: 2, 32, 32>}, {pipeline_mode = #tpu.pipeline_mode<synchronous>, transform_indices = @transform_8, window_bounds = array<i64: 2, 32, 128>}, {pipeline_mode = #tpu.pipeline_mode<synchronous>, transform_indices = @transform_9, window_bounds = array<i64: 2, 128, 32>}, {pipeline_mode = #tpu.pipeline_mode<synchronous>, transform_indices = @transform_10, window_bounds = array<i64: 2, 12, 128>}, {pipeline_mode = #tpu.pipeline_mode<synchronous>, transform_indices = @transform_11, window_bounds = array<i64: 8, 64>}, {pipeline_mode = #tpu.pipeline_mode<synchronous>, transform_indices = @transform_12, window_bounds = array<i64: 64, 32>}, {pipeline_mode = #tpu.pipeline_mode<synchronous>, transform_indices = @transform_13, window_bounds = array<i64: 32, 7>}, {pipeline_mode = #tpu.pipeline_mode<synchronous>, transform_indices = @transform_14, window_bounds = array<i64: 2, 7>}]} {
    %c0 = arith.constant 0 : index
    %c0_0 = arith.constant 0 : index
    %c0_1 = arith.constant 0 : index
    %0 = vector.load %arg11[%c0, %c0_0, %c0_1] : memref<2x12x128xf32, #tpu.memory_space<vmem>>, vector<1x12x128xf32>
    %1 = vector.shape_cast %0 : vector<1x12x128xf32> to vector<12x128xf32>
    %2 = vector.extract_strided_slice %1 {offsets = [0, 0], sizes = [1, 32], strides = [1, 1]} : vector<12x128xf32> to vector<1x32xf32>
    %3 = vector.extract_strided_slice %1 {offsets = [1, 0], sizes = [1, 32], strides = [1, 1]} : vector<12x128xf32> to vector<1x32xf32>
    %4 = vector.extract_strided_slice %1 {offsets = [2, 0], sizes = [1, 32], strides = [1, 1]} : vector<12x128xf32> to vector<1x32xf32>
    %5 = vector.extract_strided_slice %1 {offsets = [3, 0], sizes = [1, 32], strides = [1, 1]} : vector<12x128xf32> to vector<1x32xf32>
    %6 = vector.extract_strided_slice %1 {offsets = [4, 0], sizes = [1, 32], strides = [1, 1]} : vector<12x128xf32> to vector<1x32xf32>
    %7 = vector.extract_strided_slice %1 {offsets = [5, 0], sizes = [1, 32], strides = [1, 1]} : vector<12x128xf32> to vector<1x32xf32>
    %8 = vector.extract_strided_slice %1 {offsets = [6, 0], sizes = [1, 96], strides = [1, 1]} : vector<12x128xf32> to vector<1x96xf32>
    %9 = vector.extract_strided_slice %1 {offsets = [7, 0], sizes = [1, 32], strides = [1, 1]} : vector<12x128xf32> to vector<1x32xf32>
    %10 = vector.extract_strided_slice %1 {offsets = [8, 0], sizes = [1, 128], strides = [1, 1]} : vector<12x128xf32> to vector<1x128xf32>
    %11 = vector.extract_strided_slice %1 {offsets = [9, 0], sizes = [1, 128], strides = [1, 1]} : vector<12x128xf32> to vector<1x128xf32>
    %12 = vector.extract_strided_slice %1 {offsets = [10, 0], sizes = [1, 128], strides = [1, 1]} : vector<12x128xf32> to vector<1x128xf32>
    %13 = vector.extract_strided_slice %1 {offsets = [11, 0], sizes = [1, 32], strides = [1, 1]} : vector<12x128xf32> to vector<1x32xf32>
    %c0_2 = arith.constant 0 : index
    %c0_3 = arith.constant 0 : index
    %c0_4 = arith.constant 0 : index
    %14 = vector.load %arg7[%c0_2, %c0_3, %c0_4] : memref<2x32x96xf32, #tpu.memory_space<vmem>>, vector<1x32x96xf32>
    %15 = vector.shape_cast %14 : vector<1x32x96xf32> to vector<32x96xf32>
    %c0_5 = arith.constant 0 : index
    %c0_6 = arith.constant 0 : index
    %c0_7 = arith.constant 0 : index
    %16 = vector.load %arg8[%c0_5, %c0_6, %c0_7] : memref<2x32x32xf32, #tpu.memory_space<vmem>>, vector<1x32x32xf32>
    %17 = vector.shape_cast %16 : vector<1x32x32xf32> to vector<32x32xf32>
    %c0_8 = arith.constant 0 : index
    %c0_9 = arith.constant 0 : index
    %c0_10 = arith.constant 0 : index
    %18 = vector.load %arg9[%c0_8, %c0_9, %c0_10] : memref<2x32x128xf32, #tpu.memory_space<vmem>>, vector<1x32x128xf32>
    %19 = vector.shape_cast %18 : vector<1x32x128xf32> to vector<32x128xf32>
    %c0_11 = arith.constant 0 : index
    %c0_12 = arith.constant 0 : index
    %c0_13 = arith.constant 0 : index
    %20 = vector.load %arg10[%c0_11, %c0_12, %c0_13] : memref<2x128x32xf32, #tpu.memory_space<vmem>>, vector<1x128x32xf32>
    %21 = vector.shape_cast %20 : vector<1x128x32xf32> to vector<128x32xf32>
    %c1 = arith.constant 1 : index
    %c0_14 = arith.constant 0 : index
    %c0_15 = arith.constant 0 : index
    %22 = vector.load %arg11[%c1, %c0_14, %c0_15] : memref<2x12x128xf32, #tpu.memory_space<vmem>>, vector<1x12x128xf32>
    %23 = vector.shape_cast %22 : vector<1x12x128xf32> to vector<12x128xf32>
    %24 = vector.extract_strided_slice %23 {offsets = [0, 0], sizes = [1, 32], strides = [1, 1]} : vector<12x128xf32> to vector<1x32xf32>
    %25 = vector.extract_strided_slice %23 {offsets = [1, 0], sizes = [1, 32], strides = [1, 1]} : vector<12x128xf32> to vector<1x32xf32>
    %26 = vector.extract_strided_slice %23 {offsets = [2, 0], sizes = [1, 32], strides = [1, 1]} : vector<12x128xf32> to vector<1x32xf32>
    %27 = vector.extract_strided_slice %23 {offsets = [3, 0], sizes = [1, 32], strides = [1, 1]} : vector<12x128xf32> to vector<1x32xf32>
    %28 = vector.extract_strided_slice %23 {offsets = [4, 0], sizes = [1, 32], strides = [1, 1]} : vector<12x128xf32> to vector<1x32xf32>
    %29 = vector.extract_strided_slice %23 {offsets = [5, 0], sizes = [1, 32], strides = [1, 1]} : vector<12x128xf32> to vector<1x32xf32>
    %30 = vector.extract_strided_slice %23 {offsets = [6, 0], sizes = [1, 96], strides = [1, 1]} : vector<12x128xf32> to vector<1x96xf32>
    %31 = vector.extract_strided_slice %23 {offsets = [7, 0], sizes = [1, 32], strides = [1, 1]} : vector<12x128xf32> to vector<1x32xf32>
    %32 = vector.extract_strided_slice %23 {offsets = [8, 0], sizes = [1, 128], strides = [1, 1]} : vector<12x128xf32> to vector<1x128xf32>
    %33 = vector.extract_strided_slice %23 {offsets = [9, 0], sizes = [1, 128], strides = [1, 1]} : vector<12x128xf32> to vector<1x128xf32>
    %34 = vector.extract_strided_slice %23 {offsets = [10, 0], sizes = [1, 128], strides = [1, 1]} : vector<12x128xf32> to vector<1x128xf32>
    %35 = vector.extract_strided_slice %23 {offsets = [11, 0], sizes = [1, 32], strides = [1, 1]} : vector<12x128xf32> to vector<1x32xf32>
    %c1_16 = arith.constant 1 : index
    %c0_17 = arith.constant 0 : index
    %c0_18 = arith.constant 0 : index
    %36 = vector.load %arg7[%c1_16, %c0_17, %c0_18] : memref<2x32x96xf32, #tpu.memory_space<vmem>>, vector<1x32x96xf32>
    %37 = vector.shape_cast %36 : vector<1x32x96xf32> to vector<32x96xf32>
    %c1_19 = arith.constant 1 : index
    %c0_20 = arith.constant 0 : index
    %c0_21 = arith.constant 0 : index
    %38 = vector.load %arg8[%c1_19, %c0_20, %c0_21] : memref<2x32x32xf32, #tpu.memory_space<vmem>>, vector<1x32x32xf32>
    %39 = vector.shape_cast %38 : vector<1x32x32xf32> to vector<32x32xf32>
    %c1_22 = arith.constant 1 : index
    %c0_23 = arith.constant 0 : index
    %c0_24 = arith.constant 0 : index
    %40 = vector.load %arg9[%c1_22, %c0_23, %c0_24] : memref<2x32x128xf32, #tpu.memory_space<vmem>>, vector<1x32x128xf32>
    %41 = vector.shape_cast %40 : vector<1x32x128xf32> to vector<32x128xf32>
    %c1_25 = arith.constant 1 : index
    %c0_26 = arith.constant 0 : index
    %c0_27 = arith.constant 0 : index
    %42 = vector.load %arg10[%c1_25, %c0_26, %c0_27] : memref<2x128x32xf32, #tpu.memory_space<vmem>>, vector<1x128x32xf32>
    %43 = vector.shape_cast %42 : vector<1x128x32xf32> to vector<128x32xf32>
    %c0_28 = arith.constant 0 : index
    %c0_29 = arith.constant 0 : index
    %44 = vector.load %arg12[%c0_28, %c0_29] : memref<8x64xf32, #tpu.memory_space<vmem>>, vector<8x64xf32>
    %45 = vector.extract_strided_slice %44 {offsets = [0, 0], sizes = [1, 32], strides = [1, 1]} : vector<8x64xf32> to vector<1x32xf32>
    %46 = vector.extract_strided_slice %44 {offsets = [1, 0], sizes = [1, 32], strides = [1, 1]} : vector<8x64xf32> to vector<1x32xf32>
    %c0_30 = arith.constant 0 : index
    %c0_31 = arith.constant 0 : index
    %c0_32 = arith.constant 0 : index
    %47 = vector.load %arg1[%c0_30, %c0_31, %c0_32] : memref<2x24x48xf32, #tpu.memory_space<vmem>>, vector<2x24x48xf32>
    %c0_33 = arith.constant 0 : index
    %c0_34 = arith.constant 0 : index
    %48 = vector.load %arg5[%c0_33, %c0_34] : memref<48x32xf32, #tpu.memory_space<vmem>>, vector<48x32xf32>
    %c0_35 = arith.constant 0 : index
    %c0_36 = arith.constant 0 : index
    %49 = vector.load %arg3[%c0_35, %c0_36] : memref<24x32xf32, #tpu.memory_space<vmem>>, vector<24x32xf32>
    %50 = vector.shape_cast %47 : vector<2x24x48xf32> to vector<48x48xf32>
    %cst = arith.constant dense<0.000000e+00> : vector<48x32xf32>
    %51 = tpu.matmul %50, %48, %cst {dimension_numbers = #tpu.dot_dimension_numbers<[1], [0], [0], [1], [0, 0, 1, 1], [], []>} : vector<48x48xf32>, vector<48x32xf32>, vector<48x32xf32> -> vector<48x32xf32>
    %52 = vector.shape_cast %51 : vector<48x32xf32> to vector<2x24x32xf32>
    %53 = vector.shape_cast %49 : vector<24x32xf32> to vector<1x24x32xf32>
    %54 = vector.broadcast %53 : vector<1x24x32xf32> to vector<2x24x32xf32>
    %55 = arith.addf %52, %54 : vector<2x24x32xf32>
    %56 = vector.shape_cast %55 : vector<2x24x32xf32> to vector<48x32xf32>
    %57 = tpu.iota {dimensions = array<i32: 2>} : vector<1x1x24xi32>
    %c17_i32 = arith.constant 17 : i32
    %58 = vector.broadcast %c17_i32 : i32 to vector<1x1x24xi32>
    %59 = arith.cmpi slt, %57, %58 : vector<1x1x24xi32>
    %cst_37 = arith.constant 0.000000e+00 : f32
    %cst_38 = arith.constant -1.000000e+09 : f32
    %60 = vector.broadcast %cst_37 : f32 to vector<1x1x24xf32>
    %61 = vector.broadcast %cst_38 : f32 to vector<1x1x24xf32>
    %62 = arith.select %59, %60, %61 : vector<1x1x24xi1>, vector<1x1x24xf32>
    %cst_39 = arith.constant dense<0.000000e+00> : vector<48xf32>
    %63 = vector.multi_reduction <add>, %56, %cst_39 [1] : vector<48x32xf32> to vector<48xf32>
    %64 = vector.shape_cast %63 : vector<48xf32> to vector<48x1xf32>
    %cst_40 = arith.constant 3.200000e+01 : f32
    %65 = vector.broadcast %cst_40 : f32 to vector<48x1xf32>
    %66 = arith.divf %64, %65 : vector<48x1xf32>
    %67 = vector.broadcast %66 : vector<48x1xf32> to vector<48x32xf32>
    %68 = arith.subf %56, %67 : vector<48x32xf32>
    %69 = arith.mulf %68, %68 : vector<48x32xf32>
    %cst_41 = arith.constant dense<0.000000e+00> : vector<48xf32>
    %70 = vector.multi_reduction <add>, %69, %cst_41 [1] : vector<48x32xf32> to vector<48xf32>
    %71 = vector.shape_cast %70 : vector<48xf32> to vector<48x1xf32>
    %cst_42 = arith.constant 3.200000e+01 : f32
    %72 = vector.broadcast %cst_42 : f32 to vector<48x1xf32>
    %73 = arith.divf %71, %72 : vector<48x1xf32>
    %cst_43 = arith.constant 9.99999974E-6 : f32
    %74 = vector.broadcast %cst_43 : f32 to vector<48x1xf32>
    %75 = arith.addf %73, %74 : vector<48x1xf32>
    %76 = math.rsqrt %75 : vector<48x1xf32>
    %77 = vector.broadcast %76 : vector<48x1xf32> to vector<48x32xf32>
    %78 = arith.mulf %68, %77 : vector<48x32xf32>
    %79 = vector.broadcast %2 : vector<1x32xf32> to vector<48x32xf32>
    %80 = arith.mulf %78, %79 : vector<48x32xf32>
    %81 = vector.broadcast %3 : vector<1x32xf32> to vector<48x32xf32>
    %82 = arith.addf %80, %81 : vector<48x32xf32>
    %cst_44 = arith.constant dense<0.000000e+00> : vector<48x96xf32>
    %83 = tpu.matmul %82, %15, %cst_44 {dimension_numbers = #tpu.dot_dimension_numbers<[1], [0], [0], [1], [0, 0, 1, 1], [], []>} : vector<48x32xf32>, vector<32x96xf32>, vector<48x96xf32> -> vector<48x96xf32>
    %84 = vector.broadcast %8 : vector<1x96xf32> to vector<48x96xf32>
    %85 = arith.addf %83, %84 : vector<48x96xf32>
    %86 = vector.shape_cast %85 : vector<48x96xf32> to vector<2x24x96xf32>
    %87 = vector.extract_strided_slice %86 {offsets = [0, 0, 0], sizes = [2, 24, 8], strides = [1, 1, 1]} : vector<2x24x96xf32> to vector<2x24x8xf32>
    %88 = vector.extract_strided_slice %86 {offsets = [0, 0, 32], sizes = [2, 24, 8], strides = [1, 1, 1]} : vector<2x24x96xf32> to vector<2x24x8xf32>
    %89 = vector.extract_strided_slice %86 {offsets = [0, 0, 64], sizes = [2, 24, 8], strides = [1, 1, 1]} : vector<2x24x96xf32> to vector<2x24x8xf32>
    "tpu.trace_start"() <{level = 10 : i32, message = "bqd,bkd->bqk"}> : () -> ()
    %cst_45 = arith.constant dense<0.000000e+00> : vector<2x24x24xf32>
    %90 = tpu.matmul %87, %88, %cst_45 {dimension_numbers = #tpu.dot_dimension_numbers<[2], [2], [1], [1], [0, 0, 0, 1, 1, 1], [0], [0]>} : vector<2x24x8xf32>, vector<2x24x8xf32>, vector<2x24x24xf32> -> vector<2x24x24xf32>
    "tpu.trace_stop"() : () -> ()
    %cst_46 = arith.constant 0.353553385 : f32
    %91 = vector.broadcast %cst_46 : f32 to vector<2x24x24xf32>
    %92 = arith.mulf %90, %91 : vector<2x24x24xf32>
    %93 = vector.broadcast %62 : vector<1x1x24xf32> to vector<2x24x24xf32>
    %94 = arith.addf %92, %93 : vector<2x24x24xf32>
    %cst_47 = arith.constant dense<0xFF800000> : vector<2x24xf32>
    %95 = vector.multi_reduction <maximumf>, %94, %cst_47 [2] : vector<2x24x24xf32> to vector<2x24xf32>
    %96 = vector.shape_cast %95 : vector<2x24xf32> to vector<2x24x1xf32>
    %97 = vector.broadcast %96 : vector<2x24x1xf32> to vector<2x24x24xf32>
    %98 = arith.subf %94, %97 : vector<2x24x24xf32>
    %99 = math.exp %98 : vector<2x24x24xf32>
    %cst_48 = arith.constant dense<0.000000e+00> : vector<2x24xf32>
    %100 = vector.multi_reduction <add>, %99, %cst_48 [2] : vector<2x24x24xf32> to vector<2x24xf32>
    %101 = vector.shape_cast %100 : vector<2x24xf32> to vector<2x24x1xf32>
    %102 = tpu.reciprocal %101 {approx = true} : vector<2x24x1xf32> -> vector<2x24x1xf32>
    %103 = vector.broadcast %102 : vector<2x24x1xf32> to vector<2x24x24xf32>
    %104 = arith.mulf %99, %103 : vector<2x24x24xf32>
    "tpu.trace_start"() <{level = 10 : i32, message = "bqk,bkd->bqd"}> : () -> ()
    %cst_49 = arith.constant dense<0.000000e+00> : vector<2x24x8xf32>
    %105 = tpu.matmul %104, %89, %cst_49 {dimension_numbers = #tpu.dot_dimension_numbers<[2], [1], [1], [2], [0, 0, 0, 1, 1, 2], [0], [0]>} : vector<2x24x24xf32>, vector<2x24x8xf32>, vector<2x24x8xf32> -> vector<2x24x8xf32>
    "tpu.trace_stop"() : () -> ()
    %106 = vector.extract_strided_slice %86 {offsets = [0, 0, 8], sizes = [2, 24, 8], strides = [1, 1, 1]} : vector<2x24x96xf32> to vector<2x24x8xf32>
    %107 = vector.extract_strided_slice %86 {offsets = [0, 0, 40], sizes = [2, 24, 8], strides = [1, 1, 1]} : vector<2x24x96xf32> to vector<2x24x8xf32>
    %108 = vector.extract_strided_slice %86 {offsets = [0, 0, 72], sizes = [2, 24, 8], strides = [1, 1, 1]} : vector<2x24x96xf32> to vector<2x24x8xf32>
    "tpu.trace_start"() <{level = 10 : i32, message = "bqd,bkd->bqk"}> : () -> ()
    %cst_50 = arith.constant dense<0.000000e+00> : vector<2x24x24xf32>
    %109 = tpu.matmul %106, %107, %cst_50 {dimension_numbers = #tpu.dot_dimension_numbers<[2], [2], [1], [1], [0, 0, 0, 1, 1, 1], [0], [0]>} : vector<2x24x8xf32>, vector<2x24x8xf32>, vector<2x24x24xf32> -> vector<2x24x24xf32>
    "tpu.trace_stop"() : () -> ()
    %cst_51 = arith.constant 0.353553385 : f32
    %110 = vector.broadcast %cst_51 : f32 to vector<2x24x24xf32>
    %111 = arith.mulf %109, %110 : vector<2x24x24xf32>
    %112 = vector.broadcast %62 : vector<1x1x24xf32> to vector<2x24x24xf32>
    %113 = arith.addf %111, %112 : vector<2x24x24xf32>
    %cst_52 = arith.constant dense<0xFF800000> : vector<2x24xf32>
    %114 = vector.multi_reduction <maximumf>, %113, %cst_52 [2] : vector<2x24x24xf32> to vector<2x24xf32>
    %115 = vector.shape_cast %114 : vector<2x24xf32> to vector<2x24x1xf32>
    %116 = vector.broadcast %115 : vector<2x24x1xf32> to vector<2x24x24xf32>
    %117 = arith.subf %113, %116 : vector<2x24x24xf32>
    %118 = math.exp %117 : vector<2x24x24xf32>
    %cst_53 = arith.constant dense<0.000000e+00> : vector<2x24xf32>
    %119 = vector.multi_reduction <add>, %118, %cst_53 [2] : vector<2x24x24xf32> to vector<2x24xf32>
    %120 = vector.shape_cast %119 : vector<2x24xf32> to vector<2x24x1xf32>
    %121 = tpu.reciprocal %120 {approx = true} : vector<2x24x1xf32> -> vector<2x24x1xf32>
    %122 = vector.broadcast %121 : vector<2x24x1xf32> to vector<2x24x24xf32>
    %123 = arith.mulf %118, %122 : vector<2x24x24xf32>
    "tpu.trace_start"() <{level = 10 : i32, message = "bqk,bkd->bqd"}> : () -> ()
    %cst_54 = arith.constant dense<0.000000e+00> : vector<2x24x8xf32>
    %124 = tpu.matmul %123, %108, %cst_54 {dimension_numbers = #tpu.dot_dimension_numbers<[2], [1], [1], [2], [0, 0, 0, 1, 1, 2], [0], [0]>} : vector<2x24x24xf32>, vector<2x24x8xf32>, vector<2x24x8xf32> -> vector<2x24x8xf32>
    "tpu.trace_stop"() : () -> ()
    %125 = vector.extract_strided_slice %86 {offsets = [0, 0, 16], sizes = [2, 24, 8], strides = [1, 1, 1]} : vector<2x24x96xf32> to vector<2x24x8xf32>
    %126 = vector.extract_strided_slice %86 {offsets = [0, 0, 48], sizes = [2, 24, 8], strides = [1, 1, 1]} : vector<2x24x96xf32> to vector<2x24x8xf32>
    %127 = vector.extract_strided_slice %86 {offsets = [0, 0, 80], sizes = [2, 24, 8], strides = [1, 1, 1]} : vector<2x24x96xf32> to vector<2x24x8xf32>
    "tpu.trace_start"() <{level = 10 : i32, message = "bqd,bkd->bqk"}> : () -> ()
    %cst_55 = arith.constant dense<0.000000e+00> : vector<2x24x24xf32>
    %128 = tpu.matmul %125, %126, %cst_55 {dimension_numbers = #tpu.dot_dimension_numbers<[2], [2], [1], [1], [0, 0, 0, 1, 1, 1], [0], [0]>} : vector<2x24x8xf32>, vector<2x24x8xf32>, vector<2x24x24xf32> -> vector<2x24x24xf32>
    "tpu.trace_stop"() : () -> ()
    %cst_56 = arith.constant 0.353553385 : f32
    %129 = vector.broadcast %cst_56 : f32 to vector<2x24x24xf32>
    %130 = arith.mulf %128, %129 : vector<2x24x24xf32>
    %131 = vector.broadcast %62 : vector<1x1x24xf32> to vector<2x24x24xf32>
    %132 = arith.addf %130, %131 : vector<2x24x24xf32>
    %cst_57 = arith.constant dense<0xFF800000> : vector<2x24xf32>
    %133 = vector.multi_reduction <maximumf>, %132, %cst_57 [2] : vector<2x24x24xf32> to vector<2x24xf32>
    %134 = vector.shape_cast %133 : vector<2x24xf32> to vector<2x24x1xf32>
    %135 = vector.broadcast %134 : vector<2x24x1xf32> to vector<2x24x24xf32>
    %136 = arith.subf %132, %135 : vector<2x24x24xf32>
    %137 = math.exp %136 : vector<2x24x24xf32>
    %cst_58 = arith.constant dense<0.000000e+00> : vector<2x24xf32>
    %138 = vector.multi_reduction <add>, %137, %cst_58 [2] : vector<2x24x24xf32> to vector<2x24xf32>
    %139 = vector.shape_cast %138 : vector<2x24xf32> to vector<2x24x1xf32>
    %140 = tpu.reciprocal %139 {approx = true} : vector<2x24x1xf32> -> vector<2x24x1xf32>
    %141 = vector.broadcast %140 : vector<2x24x1xf32> to vector<2x24x24xf32>
    %142 = arith.mulf %137, %141 : vector<2x24x24xf32>
    "tpu.trace_start"() <{level = 10 : i32, message = "bqk,bkd->bqd"}> : () -> ()
    %cst_59 = arith.constant dense<0.000000e+00> : vector<2x24x8xf32>
    %143 = tpu.matmul %142, %127, %cst_59 {dimension_numbers = #tpu.dot_dimension_numbers<[2], [1], [1], [2], [0, 0, 0, 1, 1, 2], [0], [0]>} : vector<2x24x24xf32>, vector<2x24x8xf32>, vector<2x24x8xf32> -> vector<2x24x8xf32>
    "tpu.trace_stop"() : () -> ()
    %144 = vector.extract_strided_slice %86 {offsets = [0, 0, 24], sizes = [2, 24, 8], strides = [1, 1, 1]} : vector<2x24x96xf32> to vector<2x24x8xf32>
    %145 = vector.extract_strided_slice %86 {offsets = [0, 0, 56], sizes = [2, 24, 8], strides = [1, 1, 1]} : vector<2x24x96xf32> to vector<2x24x8xf32>
    %146 = vector.extract_strided_slice %86 {offsets = [0, 0, 88], sizes = [2, 24, 8], strides = [1, 1, 1]} : vector<2x24x96xf32> to vector<2x24x8xf32>
    "tpu.trace_start"() <{level = 10 : i32, message = "bqd,bkd->bqk"}> : () -> ()
    %cst_60 = arith.constant dense<0.000000e+00> : vector<2x24x24xf32>
    %147 = tpu.matmul %144, %145, %cst_60 {dimension_numbers = #tpu.dot_dimension_numbers<[2], [2], [1], [1], [0, 0, 0, 1, 1, 1], [0], [0]>} : vector<2x24x8xf32>, vector<2x24x8xf32>, vector<2x24x24xf32> -> vector<2x24x24xf32>
    "tpu.trace_stop"() : () -> ()
    %cst_61 = arith.constant 0.353553385 : f32
    %148 = vector.broadcast %cst_61 : f32 to vector<2x24x24xf32>
    %149 = arith.mulf %147, %148 : vector<2x24x24xf32>
    %150 = vector.broadcast %62 : vector<1x1x24xf32> to vector<2x24x24xf32>
    %151 = arith.addf %149, %150 : vector<2x24x24xf32>
    %cst_62 = arith.constant dense<0xFF800000> : vector<2x24xf32>
    %152 = vector.multi_reduction <maximumf>, %151, %cst_62 [2] : vector<2x24x24xf32> to vector<2x24xf32>
    %153 = vector.shape_cast %152 : vector<2x24xf32> to vector<2x24x1xf32>
    %154 = vector.broadcast %153 : vector<2x24x1xf32> to vector<2x24x24xf32>
    %155 = arith.subf %151, %154 : vector<2x24x24xf32>
    %156 = math.exp %155 : vector<2x24x24xf32>
    %cst_63 = arith.constant dense<0.000000e+00> : vector<2x24xf32>
    %157 = vector.multi_reduction <add>, %156, %cst_63 [2] : vector<2x24x24xf32> to vector<2x24xf32>
    %158 = vector.shape_cast %157 : vector<2x24xf32> to vector<2x24x1xf32>
    %159 = tpu.reciprocal %158 {approx = true} : vector<2x24x1xf32> -> vector<2x24x1xf32>
    %160 = vector.broadcast %159 : vector<2x24x1xf32> to vector<2x24x24xf32>
    %161 = arith.mulf %156, %160 : vector<2x24x24xf32>
    "tpu.trace_start"() <{level = 10 : i32, message = "bqk,bkd->bqd"}> : () -> ()
    %cst_64 = arith.constant dense<0.000000e+00> : vector<2x24x8xf32>
    %162 = tpu.matmul %161, %146, %cst_64 {dimension_numbers = #tpu.dot_dimension_numbers<[2], [1], [1], [2], [0, 0, 0, 1, 1, 2], [0], [0]>} : vector<2x24x24xf32>, vector<2x24x8xf32>, vector<2x24x8xf32> -> vector<2x24x8xf32>
    "tpu.trace_stop"() : () -> ()
    %163 = tpu.concatenate %105, %124, %143, %162 in 2 : vector<2x24x8xf32>, vector<2x24x8xf32>, vector<2x24x8xf32>, vector<2x24x8xf32> -> vector<2x24x32xf32>
    %164 = vector.shape_cast %163 : vector<2x24x32xf32> to vector<48x32xf32>
    %cst_65 = arith.constant dense<0.000000e+00> : vector<48x32xf32>
    %165 = tpu.matmul %164, %17, %cst_65 {dimension_numbers = #tpu.dot_dimension_numbers<[1], [0], [0], [1], [0, 0, 1, 1], [], []>} : vector<48x32xf32>, vector<32x32xf32>, vector<48x32xf32> -> vector<48x32xf32>
    %166 = vector.broadcast %9 : vector<1x32xf32> to vector<48x32xf32>
    %167 = arith.addf %165, %166 : vector<48x32xf32>
    %168 = arith.addf %82, %167 : vector<48x32xf32>
    %cst_66 = arith.constant dense<0.000000e+00> : vector<48xf32>
    %169 = vector.multi_reduction <add>, %168, %cst_66 [1] : vector<48x32xf32> to vector<48xf32>
    %170 = vector.shape_cast %169 : vector<48xf32> to vector<48x1xf32>
    %cst_67 = arith.constant 3.200000e+01 : f32
    %171 = vector.broadcast %cst_67 : f32 to vector<48x1xf32>
    %172 = arith.divf %170, %171 : vector<48x1xf32>
    %173 = vector.broadcast %172 : vector<48x1xf32> to vector<48x32xf32>
    %174 = arith.subf %168, %173 : vector<48x32xf32>
    %175 = arith.mulf %174, %174 : vector<48x32xf32>
    %cst_68 = arith.constant dense<0.000000e+00> : vector<48xf32>
    %176 = vector.multi_reduction <add>, %175, %cst_68 [1] : vector<48x32xf32> to vector<48xf32>
    %177 = vector.shape_cast %176 : vector<48xf32> to vector<48x1xf32>
    %cst_69 = arith.constant 3.200000e+01 : f32
    %178 = vector.broadcast %cst_69 : f32 to vector<48x1xf32>
    %179 = arith.divf %177, %178 : vector<48x1xf32>
    %cst_70 = arith.constant 9.99999974E-6 : f32
    %180 = vector.broadcast %cst_70 : f32 to vector<48x1xf32>
    %181 = arith.addf %179, %180 : vector<48x1xf32>
    %182 = math.rsqrt %181 : vector<48x1xf32>
    %183 = vector.broadcast %182 : vector<48x1xf32> to vector<48x32xf32>
    %184 = arith.mulf %174, %183 : vector<48x32xf32>
    %185 = vector.broadcast %4 : vector<1x32xf32> to vector<48x32xf32>
    %186 = arith.mulf %184, %185 : vector<48x32xf32>
    %187 = vector.broadcast %5 : vector<1x32xf32> to vector<48x32xf32>
    %188 = arith.addf %186, %187 : vector<48x32xf32>
    %cst_71 = arith.constant dense<0.000000e+00> : vector<48x128xf32>
    %189 = tpu.matmul %188, %19, %cst_71 {dimension_numbers = #tpu.dot_dimension_numbers<[1], [0], [0], [1], [0, 0, 1, 1], [], []>} : vector<48x32xf32>, vector<32x128xf32>, vector<48x128xf32> -> vector<48x128xf32>
    %190 = vector.broadcast %10 : vector<1x128xf32> to vector<48x128xf32>
    %191 = arith.addf %189, %190 : vector<48x128xf32>
    %cst_72 = arith.constant dense<0.000000e+00> : vector<48xf32>
    %192 = vector.multi_reduction <add>, %191, %cst_72 [1] : vector<48x128xf32> to vector<48xf32>
    %193 = vector.shape_cast %192 : vector<48xf32> to vector<48x1xf32>
    %cst_73 = arith.constant 1.280000e+02 : f32
    %194 = vector.broadcast %cst_73 : f32 to vector<48x1xf32>
    %195 = arith.divf %193, %194 : vector<48x1xf32>
    %196 = vector.broadcast %195 : vector<48x1xf32> to vector<48x128xf32>
    %197 = arith.subf %191, %196 : vector<48x128xf32>
    %198 = arith.mulf %197, %197 : vector<48x128xf32>
    %cst_74 = arith.constant dense<0.000000e+00> : vector<48xf32>
    %199 = vector.multi_reduction <add>, %198, %cst_74 [1] : vector<48x128xf32> to vector<48xf32>
    %200 = vector.shape_cast %199 : vector<48xf32> to vector<48x1xf32>
    %cst_75 = arith.constant 1.280000e+02 : f32
    %201 = vector.broadcast %cst_75 : f32 to vector<48x1xf32>
    %202 = arith.divf %200, %201 : vector<48x1xf32>
    %cst_76 = arith.constant 9.99999974E-6 : f32
    %203 = vector.broadcast %cst_76 : f32 to vector<48x1xf32>
    %204 = arith.addf %202, %203 : vector<48x1xf32>
    %205 = math.rsqrt %204 : vector<48x1xf32>
    %206 = vector.broadcast %205 : vector<48x1xf32> to vector<48x128xf32>
    %207 = arith.mulf %197, %206 : vector<48x128xf32>
    %208 = vector.broadcast %11 : vector<1x128xf32> to vector<48x128xf32>
    %209 = arith.mulf %207, %208 : vector<48x128xf32>
    %210 = vector.broadcast %12 : vector<1x128xf32> to vector<48x128xf32>
    %211 = arith.addf %209, %210 : vector<48x128xf32>
    %cst_77 = arith.constant 5.000000e-01 : f32
    %212 = vector.broadcast %cst_77 : f32 to vector<48x128xf32>
    %213 = arith.mulf %212, %211 : vector<48x128xf32>
    %cst_78 = arith.constant 0.707106769 : f32
    %214 = vector.broadcast %cst_78 : f32 to vector<48x128xf32>
    %215 = arith.mulf %211, %214 : vector<48x128xf32>
    %216 = math.erf %215 : vector<48x128xf32>
    %cst_79 = arith.constant 1.000000e+00 : f32
    %217 = vector.broadcast %cst_79 : f32 to vector<48x128xf32>
    %218 = arith.addf %217, %216 : vector<48x128xf32>
    %219 = arith.mulf %213, %218 : vector<48x128xf32>
    %cst_80 = arith.constant dense<0.000000e+00> : vector<48x32xf32>
    %220 = tpu.matmul %219, %21, %cst_80 {dimension_numbers = #tpu.dot_dimension_numbers<[1], [0], [0], [1], [0, 0, 1, 1], [], []>} : vector<48x128xf32>, vector<128x32xf32>, vector<48x32xf32> -> vector<48x32xf32>
    %221 = vector.broadcast %13 : vector<1x32xf32> to vector<48x32xf32>
    %222 = arith.addf %220, %221 : vector<48x32xf32>
    %223 = arith.addf %188, %222 : vector<48x32xf32>
    %cst_81 = arith.constant dense<0.000000e+00> : vector<48xf32>
    %224 = vector.multi_reduction <add>, %223, %cst_81 [1] : vector<48x32xf32> to vector<48xf32>
    %225 = vector.shape_cast %224 : vector<48xf32> to vector<48x1xf32>
    %cst_82 = arith.constant 3.200000e+01 : f32
    %226 = vector.broadcast %cst_82 : f32 to vector<48x1xf32>
    %227 = arith.divf %225, %226 : vector<48x1xf32>
    %228 = vector.broadcast %227 : vector<48x1xf32> to vector<48x32xf32>
    %229 = arith.subf %223, %228 : vector<48x32xf32>
    %230 = arith.mulf %229, %229 : vector<48x32xf32>
    %cst_83 = arith.constant dense<0.000000e+00> : vector<48xf32>
    %231 = vector.multi_reduction <add>, %230, %cst_83 [1] : vector<48x32xf32> to vector<48xf32>
    %232 = vector.shape_cast %231 : vector<48xf32> to vector<48x1xf32>
    %cst_84 = arith.constant 3.200000e+01 : f32
    %233 = vector.broadcast %cst_84 : f32 to vector<48x1xf32>
    %234 = arith.divf %232, %233 : vector<48x1xf32>
    %cst_85 = arith.constant 9.99999974E-6 : f32
    %235 = vector.broadcast %cst_85 : f32 to vector<48x1xf32>
    %236 = arith.addf %234, %235 : vector<48x1xf32>
    %237 = math.rsqrt %236 : vector<48x1xf32>
    %238 = vector.broadcast %237 : vector<48x1xf32> to vector<48x32xf32>
    %239 = arith.mulf %229, %238 : vector<48x32xf32>
    %240 = vector.broadcast %6 : vector<1x32xf32> to vector<48x32xf32>
    %241 = arith.mulf %239, %240 : vector<48x32xf32>
    %242 = vector.broadcast %7 : vector<1x32xf32> to vector<48x32xf32>
    %243 = arith.addf %241, %242 : vector<48x32xf32>
    %cst_86 = arith.constant dense<0.000000e+00> : vector<48xf32>
    %244 = vector.multi_reduction <add>, %243, %cst_86 [1] : vector<48x32xf32> to vector<48xf32>
    %245 = vector.shape_cast %244 : vector<48xf32> to vector<48x1xf32>
    %cst_87 = arith.constant 3.200000e+01 : f32
    %246 = vector.broadcast %cst_87 : f32 to vector<48x1xf32>
    %247 = arith.divf %245, %246 : vector<48x1xf32>
    %248 = vector.broadcast %247 : vector<48x1xf32> to vector<48x32xf32>
    %249 = arith.subf %243, %248 : vector<48x32xf32>
    %250 = arith.mulf %249, %249 : vector<48x32xf32>
    %cst_88 = arith.constant dense<0.000000e+00> : vector<48xf32>
    %251 = vector.multi_reduction <add>, %250, %cst_88 [1] : vector<48x32xf32> to vector<48xf32>
    %252 = vector.shape_cast %251 : vector<48xf32> to vector<48x1xf32>
    %cst_89 = arith.constant 3.200000e+01 : f32
    %253 = vector.broadcast %cst_89 : f32 to vector<48x1xf32>
    %254 = arith.divf %252, %253 : vector<48x1xf32>
    %cst_90 = arith.constant 9.99999974E-6 : f32
    %255 = vector.broadcast %cst_90 : f32 to vector<48x1xf32>
    %256 = arith.addf %254, %255 : vector<48x1xf32>
    %257 = math.rsqrt %256 : vector<48x1xf32>
    %258 = vector.broadcast %257 : vector<48x1xf32> to vector<48x32xf32>
    %259 = arith.mulf %249, %258 : vector<48x32xf32>
    %260 = vector.broadcast %24 : vector<1x32xf32> to vector<48x32xf32>
    %261 = arith.mulf %259, %260 : vector<48x32xf32>
    %262 = vector.broadcast %25 : vector<1x32xf32> to vector<48x32xf32>
    %263 = arith.addf %261, %262 : vector<48x32xf32>
    %cst_91 = arith.constant dense<0.000000e+00> : vector<48x96xf32>
    %264 = tpu.matmul %263, %37, %cst_91 {dimension_numbers = #tpu.dot_dimension_numbers<[1], [0], [0], [1], [0, 0, 1, 1], [], []>} : vector<48x32xf32>, vector<32x96xf32>, vector<48x96xf32> -> vector<48x96xf32>
    %265 = vector.broadcast %30 : vector<1x96xf32> to vector<48x96xf32>
    %266 = arith.addf %264, %265 : vector<48x96xf32>
    %267 = vector.shape_cast %266 : vector<48x96xf32> to vector<2x24x96xf32>
    %268 = vector.extract_strided_slice %267 {offsets = [0, 0, 0], sizes = [2, 24, 8], strides = [1, 1, 1]} : vector<2x24x96xf32> to vector<2x24x8xf32>
    %269 = vector.extract_strided_slice %267 {offsets = [0, 0, 32], sizes = [2, 24, 8], strides = [1, 1, 1]} : vector<2x24x96xf32> to vector<2x24x8xf32>
    %270 = vector.extract_strided_slice %267 {offsets = [0, 0, 64], sizes = [2, 24, 8], strides = [1, 1, 1]} : vector<2x24x96xf32> to vector<2x24x8xf32>
    "tpu.trace_start"() <{level = 10 : i32, message = "bqd,bkd->bqk"}> : () -> ()
    %cst_92 = arith.constant dense<0.000000e+00> : vector<2x24x24xf32>
    %271 = tpu.matmul %268, %269, %cst_92 {dimension_numbers = #tpu.dot_dimension_numbers<[2], [2], [1], [1], [0, 0, 0, 1, 1, 1], [0], [0]>} : vector<2x24x8xf32>, vector<2x24x8xf32>, vector<2x24x24xf32> -> vector<2x24x24xf32>
    "tpu.trace_stop"() : () -> ()
    %cst_93 = arith.constant 0.353553385 : f32
    %272 = vector.broadcast %cst_93 : f32 to vector<2x24x24xf32>
    %273 = arith.mulf %271, %272 : vector<2x24x24xf32>
    %274 = vector.broadcast %62 : vector<1x1x24xf32> to vector<2x24x24xf32>
    %275 = arith.addf %273, %274 : vector<2x24x24xf32>
    %cst_94 = arith.constant dense<0xFF800000> : vector<2x24xf32>
    %276 = vector.multi_reduction <maximumf>, %275, %cst_94 [2] : vector<2x24x24xf32> to vector<2x24xf32>
    %277 = vector.shape_cast %276 : vector<2x24xf32> to vector<2x24x1xf32>
    %278 = vector.broadcast %277 : vector<2x24x1xf32> to vector<2x24x24xf32>
    %279 = arith.subf %275, %278 : vector<2x24x24xf32>
    %280 = math.exp %279 : vector<2x24x24xf32>
    %cst_95 = arith.constant dense<0.000000e+00> : vector<2x24xf32>
    %281 = vector.multi_reduction <add>, %280, %cst_95 [2] : vector<2x24x24xf32> to vector<2x24xf32>
    %282 = vector.shape_cast %281 : vector<2x24xf32> to vector<2x24x1xf32>
    %283 = tpu.reciprocal %282 {approx = true} : vector<2x24x1xf32> -> vector<2x24x1xf32>
    %284 = vector.broadcast %283 : vector<2x24x1xf32> to vector<2x24x24xf32>
    %285 = arith.mulf %280, %284 : vector<2x24x24xf32>
    "tpu.trace_start"() <{level = 10 : i32, message = "bqk,bkd->bqd"}> : () -> ()
    %cst_96 = arith.constant dense<0.000000e+00> : vector<2x24x8xf32>
    %286 = tpu.matmul %285, %270, %cst_96 {dimension_numbers = #tpu.dot_dimension_numbers<[2], [1], [1], [2], [0, 0, 0, 1, 1, 2], [0], [0]>} : vector<2x24x24xf32>, vector<2x24x8xf32>, vector<2x24x8xf32> -> vector<2x24x8xf32>
    "tpu.trace_stop"() : () -> ()
    %287 = vector.extract_strided_slice %267 {offsets = [0, 0, 8], sizes = [2, 24, 8], strides = [1, 1, 1]} : vector<2x24x96xf32> to vector<2x24x8xf32>
    %288 = vector.extract_strided_slice %267 {offsets = [0, 0, 40], sizes = [2, 24, 8], strides = [1, 1, 1]} : vector<2x24x96xf32> to vector<2x24x8xf32>
    %289 = vector.extract_strided_slice %267 {offsets = [0, 0, 72], sizes = [2, 24, 8], strides = [1, 1, 1]} : vector<2x24x96xf32> to vector<2x24x8xf32>
    "tpu.trace_start"() <{level = 10 : i32, message = "bqd,bkd->bqk"}> : () -> ()
    %cst_97 = arith.constant dense<0.000000e+00> : vector<2x24x24xf32>
    %290 = tpu.matmul %287, %288, %cst_97 {dimension_numbers = #tpu.dot_dimension_numbers<[2], [2], [1], [1], [0, 0, 0, 1, 1, 1], [0], [0]>} : vector<2x24x8xf32>, vector<2x24x8xf32>, vector<2x24x24xf32> -> vector<2x24x24xf32>
    "tpu.trace_stop"() : () -> ()
    %cst_98 = arith.constant 0.353553385 : f32
    %291 = vector.broadcast %cst_98 : f32 to vector<2x24x24xf32>
    %292 = arith.mulf %290, %291 : vector<2x24x24xf32>
    %293 = vector.broadcast %62 : vector<1x1x24xf32> to vector<2x24x24xf32>
    %294 = arith.addf %292, %293 : vector<2x24x24xf32>
    %cst_99 = arith.constant dense<0xFF800000> : vector<2x24xf32>
    %295 = vector.multi_reduction <maximumf>, %294, %cst_99 [2] : vector<2x24x24xf32> to vector<2x24xf32>
    %296 = vector.shape_cast %295 : vector<2x24xf32> to vector<2x24x1xf32>
    %297 = vector.broadcast %296 : vector<2x24x1xf32> to vector<2x24x24xf32>
    %298 = arith.subf %294, %297 : vector<2x24x24xf32>
    %299 = math.exp %298 : vector<2x24x24xf32>
    %cst_100 = arith.constant dense<0.000000e+00> : vector<2x24xf32>
    %300 = vector.multi_reduction <add>, %299, %cst_100 [2] : vector<2x24x24xf32> to vector<2x24xf32>
    %301 = vector.shape_cast %300 : vector<2x24xf32> to vector<2x24x1xf32>
    %302 = tpu.reciprocal %301 {approx = true} : vector<2x24x1xf32> -> vector<2x24x1xf32>
    %303 = vector.broadcast %302 : vector<2x24x1xf32> to vector<2x24x24xf32>
    %304 = arith.mulf %299, %303 : vector<2x24x24xf32>
    "tpu.trace_start"() <{level = 10 : i32, message = "bqk,bkd->bqd"}> : () -> ()
    %cst_101 = arith.constant dense<0.000000e+00> : vector<2x24x8xf32>
    %305 = tpu.matmul %304, %289, %cst_101 {dimension_numbers = #tpu.dot_dimension_numbers<[2], [1], [1], [2], [0, 0, 0, 1, 1, 2], [0], [0]>} : vector<2x24x24xf32>, vector<2x24x8xf32>, vector<2x24x8xf32> -> vector<2x24x8xf32>
    "tpu.trace_stop"() : () -> ()
    %306 = vector.extract_strided_slice %267 {offsets = [0, 0, 16], sizes = [2, 24, 8], strides = [1, 1, 1]} : vector<2x24x96xf32> to vector<2x24x8xf32>
    %307 = vector.extract_strided_slice %267 {offsets = [0, 0, 48], sizes = [2, 24, 8], strides = [1, 1, 1]} : vector<2x24x96xf32> to vector<2x24x8xf32>
    %308 = vector.extract_strided_slice %267 {offsets = [0, 0, 80], sizes = [2, 24, 8], strides = [1, 1, 1]} : vector<2x24x96xf32> to vector<2x24x8xf32>
    "tpu.trace_start"() <{level = 10 : i32, message = "bqd,bkd->bqk"}> : () -> ()
    %cst_102 = arith.constant dense<0.000000e+00> : vector<2x24x24xf32>
    %309 = tpu.matmul %306, %307, %cst_102 {dimension_numbers = #tpu.dot_dimension_numbers<[2], [2], [1], [1], [0, 0, 0, 1, 1, 1], [0], [0]>} : vector<2x24x8xf32>, vector<2x24x8xf32>, vector<2x24x24xf32> -> vector<2x24x24xf32>
    "tpu.trace_stop"() : () -> ()
    %cst_103 = arith.constant 0.353553385 : f32
    %310 = vector.broadcast %cst_103 : f32 to vector<2x24x24xf32>
    %311 = arith.mulf %309, %310 : vector<2x24x24xf32>
    %312 = vector.broadcast %62 : vector<1x1x24xf32> to vector<2x24x24xf32>
    %313 = arith.addf %311, %312 : vector<2x24x24xf32>
    %cst_104 = arith.constant dense<0xFF800000> : vector<2x24xf32>
    %314 = vector.multi_reduction <maximumf>, %313, %cst_104 [2] : vector<2x24x24xf32> to vector<2x24xf32>
    %315 = vector.shape_cast %314 : vector<2x24xf32> to vector<2x24x1xf32>
    %316 = vector.broadcast %315 : vector<2x24x1xf32> to vector<2x24x24xf32>
    %317 = arith.subf %313, %316 : vector<2x24x24xf32>
    %318 = math.exp %317 : vector<2x24x24xf32>
    %cst_105 = arith.constant dense<0.000000e+00> : vector<2x24xf32>
    %319 = vector.multi_reduction <add>, %318, %cst_105 [2] : vector<2x24x24xf32> to vector<2x24xf32>
    %320 = vector.shape_cast %319 : vector<2x24xf32> to vector<2x24x1xf32>
    %321 = tpu.reciprocal %320 {approx = true} : vector<2x24x1xf32> -> vector<2x24x1xf32>
    %322 = vector.broadcast %321 : vector<2x24x1xf32> to vector<2x24x24xf32>
    %323 = arith.mulf %318, %322 : vector<2x24x24xf32>
    "tpu.trace_start"() <{level = 10 : i32, message = "bqk,bkd->bqd"}> : () -> ()
    %cst_106 = arith.constant dense<0.000000e+00> : vector<2x24x8xf32>
    %324 = tpu.matmul %323, %308, %cst_106 {dimension_numbers = #tpu.dot_dimension_numbers<[2], [1], [1], [2], [0, 0, 0, 1, 1, 2], [0], [0]>} : vector<2x24x24xf32>, vector<2x24x8xf32>, vector<2x24x8xf32> -> vector<2x24x8xf32>
    "tpu.trace_stop"() : () -> ()
    %325 = vector.extract_strided_slice %267 {offsets = [0, 0, 24], sizes = [2, 24, 8], strides = [1, 1, 1]} : vector<2x24x96xf32> to vector<2x24x8xf32>
    %326 = vector.extract_strided_slice %267 {offsets = [0, 0, 56], sizes = [2, 24, 8], strides = [1, 1, 1]} : vector<2x24x96xf32> to vector<2x24x8xf32>
    %327 = vector.extract_strided_slice %267 {offsets = [0, 0, 88], sizes = [2, 24, 8], strides = [1, 1, 1]} : vector<2x24x96xf32> to vector<2x24x8xf32>
    "tpu.trace_start"() <{level = 10 : i32, message = "bqd,bkd->bqk"}> : () -> ()
    %cst_107 = arith.constant dense<0.000000e+00> : vector<2x24x24xf32>
    %328 = tpu.matmul %325, %326, %cst_107 {dimension_numbers = #tpu.dot_dimension_numbers<[2], [2], [1], [1], [0, 0, 0, 1, 1, 1], [0], [0]>} : vector<2x24x8xf32>, vector<2x24x8xf32>, vector<2x24x24xf32> -> vector<2x24x24xf32>
    "tpu.trace_stop"() : () -> ()
    %cst_108 = arith.constant 0.353553385 : f32
    %329 = vector.broadcast %cst_108 : f32 to vector<2x24x24xf32>
    %330 = arith.mulf %328, %329 : vector<2x24x24xf32>
    %331 = vector.broadcast %62 : vector<1x1x24xf32> to vector<2x24x24xf32>
    %332 = arith.addf %330, %331 : vector<2x24x24xf32>
    %cst_109 = arith.constant dense<0xFF800000> : vector<2x24xf32>
    %333 = vector.multi_reduction <maximumf>, %332, %cst_109 [2] : vector<2x24x24xf32> to vector<2x24xf32>
    %334 = vector.shape_cast %333 : vector<2x24xf32> to vector<2x24x1xf32>
    %335 = vector.broadcast %334 : vector<2x24x1xf32> to vector<2x24x24xf32>
    %336 = arith.subf %332, %335 : vector<2x24x24xf32>
    %337 = math.exp %336 : vector<2x24x24xf32>
    %cst_110 = arith.constant dense<0.000000e+00> : vector<2x24xf32>
    %338 = vector.multi_reduction <add>, %337, %cst_110 [2] : vector<2x24x24xf32> to vector<2x24xf32>
    %339 = vector.shape_cast %338 : vector<2x24xf32> to vector<2x24x1xf32>
    %340 = tpu.reciprocal %339 {approx = true} : vector<2x24x1xf32> -> vector<2x24x1xf32>
    %341 = vector.broadcast %340 : vector<2x24x1xf32> to vector<2x24x24xf32>
    %342 = arith.mulf %337, %341 : vector<2x24x24xf32>
    "tpu.trace_start"() <{level = 10 : i32, message = "bqk,bkd->bqd"}> : () -> ()
    %cst_111 = arith.constant dense<0.000000e+00> : vector<2x24x8xf32>
    %343 = tpu.matmul %342, %327, %cst_111 {dimension_numbers = #tpu.dot_dimension_numbers<[2], [1], [1], [2], [0, 0, 0, 1, 1, 2], [0], [0]>} : vector<2x24x24xf32>, vector<2x24x8xf32>, vector<2x24x8xf32> -> vector<2x24x8xf32>
    "tpu.trace_stop"() : () -> ()
    %344 = tpu.concatenate %286, %305, %324, %343 in 2 : vector<2x24x8xf32>, vector<2x24x8xf32>, vector<2x24x8xf32>, vector<2x24x8xf32> -> vector<2x24x32xf32>
    %345 = vector.shape_cast %344 : vector<2x24x32xf32> to vector<48x32xf32>
    %cst_112 = arith.constant dense<0.000000e+00> : vector<48x32xf32>
    %346 = tpu.matmul %345, %39, %cst_112 {dimension_numbers = #tpu.dot_dimension_numbers<[1], [0], [0], [1], [0, 0, 1, 1], [], []>} : vector<48x32xf32>, vector<32x32xf32>, vector<48x32xf32> -> vector<48x32xf32>
    %347 = vector.broadcast %31 : vector<1x32xf32> to vector<48x32xf32>
    %348 = arith.addf %346, %347 : vector<48x32xf32>
    %349 = arith.addf %263, %348 : vector<48x32xf32>
    %cst_113 = arith.constant dense<0.000000e+00> : vector<48xf32>
    %350 = vector.multi_reduction <add>, %349, %cst_113 [1] : vector<48x32xf32> to vector<48xf32>
    %351 = vector.shape_cast %350 : vector<48xf32> to vector<48x1xf32>
    %cst_114 = arith.constant 3.200000e+01 : f32
    %352 = vector.broadcast %cst_114 : f32 to vector<48x1xf32>
    %353 = arith.divf %351, %352 : vector<48x1xf32>
    %354 = vector.broadcast %353 : vector<48x1xf32> to vector<48x32xf32>
    %355 = arith.subf %349, %354 : vector<48x32xf32>
    %356 = arith.mulf %355, %355 : vector<48x32xf32>
    %cst_115 = arith.constant dense<0.000000e+00> : vector<48xf32>
    %357 = vector.multi_reduction <add>, %356, %cst_115 [1] : vector<48x32xf32> to vector<48xf32>
    %358 = vector.shape_cast %357 : vector<48xf32> to vector<48x1xf32>
    %cst_116 = arith.constant 3.200000e+01 : f32
    %359 = vector.broadcast %cst_116 : f32 to vector<48x1xf32>
    %360 = arith.divf %358, %359 : vector<48x1xf32>
    %cst_117 = arith.constant 9.99999974E-6 : f32
    %361 = vector.broadcast %cst_117 : f32 to vector<48x1xf32>
    %362 = arith.addf %360, %361 : vector<48x1xf32>
    %363 = math.rsqrt %362 : vector<48x1xf32>
    %364 = vector.broadcast %363 : vector<48x1xf32> to vector<48x32xf32>
    %365 = arith.mulf %355, %364 : vector<48x32xf32>
    %366 = vector.broadcast %26 : vector<1x32xf32> to vector<48x32xf32>
    %367 = arith.mulf %365, %366 : vector<48x32xf32>
    %368 = vector.broadcast %27 : vector<1x32xf32> to vector<48x32xf32>
    %369 = arith.addf %367, %368 : vector<48x32xf32>
    %cst_118 = arith.constant dense<0.000000e+00> : vector<48x128xf32>
    %370 = tpu.matmul %369, %41, %cst_118 {dimension_numbers = #tpu.dot_dimension_numbers<[1], [0], [0], [1], [0, 0, 1, 1], [], []>} : vector<48x32xf32>, vector<32x128xf32>, vector<48x128xf32> -> vector<48x128xf32>
    %371 = vector.broadcast %32 : vector<1x128xf32> to vector<48x128xf32>
    %372 = arith.addf %370, %371 : vector<48x128xf32>
    %cst_119 = arith.constant dense<0.000000e+00> : vector<48xf32>
    %373 = vector.multi_reduction <add>, %372, %cst_119 [1] : vector<48x128xf32> to vector<48xf32>
    %374 = vector.shape_cast %373 : vector<48xf32> to vector<48x1xf32>
    %cst_120 = arith.constant 1.280000e+02 : f32
    %375 = vector.broadcast %cst_120 : f32 to vector<48x1xf32>
    %376 = arith.divf %374, %375 : vector<48x1xf32>
    %377 = vector.broadcast %376 : vector<48x1xf32> to vector<48x128xf32>
    %378 = arith.subf %372, %377 : vector<48x128xf32>
    %379 = arith.mulf %378, %378 : vector<48x128xf32>
    %cst_121 = arith.constant dense<0.000000e+00> : vector<48xf32>
    %380 = vector.multi_reduction <add>, %379, %cst_121 [1] : vector<48x128xf32> to vector<48xf32>
    %381 = vector.shape_cast %380 : vector<48xf32> to vector<48x1xf32>
    %cst_122 = arith.constant 1.280000e+02 : f32
    %382 = vector.broadcast %cst_122 : f32 to vector<48x1xf32>
    %383 = arith.divf %381, %382 : vector<48x1xf32>
    %cst_123 = arith.constant 9.99999974E-6 : f32
    %384 = vector.broadcast %cst_123 : f32 to vector<48x1xf32>
    %385 = arith.addf %383, %384 : vector<48x1xf32>
    %386 = math.rsqrt %385 : vector<48x1xf32>
    %387 = vector.broadcast %386 : vector<48x1xf32> to vector<48x128xf32>
    %388 = arith.mulf %378, %387 : vector<48x128xf32>
    %389 = vector.broadcast %33 : vector<1x128xf32> to vector<48x128xf32>
    %390 = arith.mulf %388, %389 : vector<48x128xf32>
    %391 = vector.broadcast %34 : vector<1x128xf32> to vector<48x128xf32>
    %392 = arith.addf %390, %391 : vector<48x128xf32>
    %cst_124 = arith.constant 5.000000e-01 : f32
    %393 = vector.broadcast %cst_124 : f32 to vector<48x128xf32>
    %394 = arith.mulf %393, %392 : vector<48x128xf32>
    %cst_125 = arith.constant 0.707106769 : f32
    %395 = vector.broadcast %cst_125 : f32 to vector<48x128xf32>
    %396 = arith.mulf %392, %395 : vector<48x128xf32>
    %397 = math.erf %396 : vector<48x128xf32>
    %cst_126 = arith.constant 1.000000e+00 : f32
    %398 = vector.broadcast %cst_126 : f32 to vector<48x128xf32>
    %399 = arith.addf %398, %397 : vector<48x128xf32>
    %400 = arith.mulf %394, %399 : vector<48x128xf32>
    %cst_127 = arith.constant dense<0.000000e+00> : vector<48x32xf32>
    %401 = tpu.matmul %400, %43, %cst_127 {dimension_numbers = #tpu.dot_dimension_numbers<[1], [0], [0], [1], [0, 0, 1, 1], [], []>} : vector<48x128xf32>, vector<128x32xf32>, vector<48x32xf32> -> vector<48x32xf32>
    %402 = vector.broadcast %35 : vector<1x32xf32> to vector<48x32xf32>
    %403 = arith.addf %401, %402 : vector<48x32xf32>
    %404 = arith.addf %369, %403 : vector<48x32xf32>
    %cst_128 = arith.constant dense<0.000000e+00> : vector<48xf32>
    %405 = vector.multi_reduction <add>, %404, %cst_128 [1] : vector<48x32xf32> to vector<48xf32>
    %406 = vector.shape_cast %405 : vector<48xf32> to vector<48x1xf32>
    %cst_129 = arith.constant 3.200000e+01 : f32
    %407 = vector.broadcast %cst_129 : f32 to vector<48x1xf32>
    %408 = arith.divf %406, %407 : vector<48x1xf32>
    %409 = vector.broadcast %408 : vector<48x1xf32> to vector<48x32xf32>
    %410 = arith.subf %404, %409 : vector<48x32xf32>
    %411 = arith.mulf %410, %410 : vector<48x32xf32>
    %cst_130 = arith.constant dense<0.000000e+00> : vector<48xf32>
    %412 = vector.multi_reduction <add>, %411, %cst_130 [1] : vector<48x32xf32> to vector<48xf32>
    %413 = vector.shape_cast %412 : vector<48xf32> to vector<48x1xf32>
    %cst_131 = arith.constant 3.200000e+01 : f32
    %414 = vector.broadcast %cst_131 : f32 to vector<48x1xf32>
    %415 = arith.divf %413, %414 : vector<48x1xf32>
    %cst_132 = arith.constant 9.99999974E-6 : f32
    %416 = vector.broadcast %cst_132 : f32 to vector<48x1xf32>
    %417 = arith.addf %415, %416 : vector<48x1xf32>
    %418 = math.rsqrt %417 : vector<48x1xf32>
    %419 = vector.broadcast %418 : vector<48x1xf32> to vector<48x32xf32>
    %420 = arith.mulf %410, %419 : vector<48x32xf32>
    %421 = vector.broadcast %28 : vector<1x32xf32> to vector<48x32xf32>
    %422 = arith.mulf %420, %421 : vector<48x32xf32>
    %423 = vector.broadcast %29 : vector<1x32xf32> to vector<48x32xf32>
    %424 = arith.addf %422, %423 : vector<48x32xf32>
    %425 = vector.shape_cast %424 : vector<48x32xf32> to vector<2x24x32xf32>
    %426 = vector.extract_strided_slice %425 {offsets = [0, 0, 0], sizes = [2, 1, 32], strides = [1, 1, 1]} : vector<2x24x32xf32> to vector<2x1x32xf32>
    %427 = vector.shape_cast %426 : vector<2x1x32xf32> to vector<2x32xf32>
    %cst_133 = arith.constant dense<0.000000e+00> : vector<2xf32>
    %428 = vector.multi_reduction <add>, %427, %cst_133 [1] : vector<2x32xf32> to vector<2xf32>
    %429 = vector.shape_cast %428 : vector<2xf32> to vector<2x1xf32>
    %cst_134 = arith.constant 3.200000e+01 : f32
    %430 = vector.broadcast %cst_134 : f32 to vector<2x1xf32>
    %431 = arith.divf %429, %430 : vector<2x1xf32>
    %432 = vector.broadcast %431 : vector<2x1xf32> to vector<2x32xf32>
    %433 = arith.subf %427, %432 : vector<2x32xf32>
    %434 = arith.mulf %433, %433 : vector<2x32xf32>
    %cst_135 = arith.constant dense<0.000000e+00> : vector<2xf32>
    %435 = vector.multi_reduction <add>, %434, %cst_135 [1] : vector<2x32xf32> to vector<2xf32>
    %436 = vector.shape_cast %435 : vector<2xf32> to vector<2x1xf32>
    %cst_136 = arith.constant 3.200000e+01 : f32
    %437 = vector.broadcast %cst_136 : f32 to vector<2x1xf32>
    %438 = arith.divf %436, %437 : vector<2x1xf32>
    %cst_137 = arith.constant 9.99999974E-6 : f32
    %439 = vector.broadcast %cst_137 : f32 to vector<2x1xf32>
    %440 = arith.addf %438, %439 : vector<2x1xf32>
    %441 = math.rsqrt %440 : vector<2x1xf32>
    %442 = vector.broadcast %441 : vector<2x1xf32> to vector<2x32xf32>
    %443 = arith.mulf %433, %442 : vector<2x32xf32>
    %444 = vector.broadcast %45 : vector<1x32xf32> to vector<2x32xf32>
    %445 = arith.mulf %443, %444 : vector<2x32xf32>
    %446 = vector.broadcast %46 : vector<1x32xf32> to vector<2x32xf32>
    %447 = arith.addf %445, %446 : vector<2x32xf32>
    %c0_138 = arith.constant 0 : index
    %c0_139 = arith.constant 0 : index
    %c0_140 = arith.constant 0 : index
    %448 = vector.load %arg2[%c0_138, %c0_139, %c0_140] : memref<2x8x192xf32, #tpu.memory_space<vmem>>, vector<2x8x192xf32>
    %c0_141 = arith.constant 0 : index
    %c0_142 = arith.constant 0 : index
    %449 = vector.load %arg6[%c0_141, %c0_142] : memref<192x32xf32, #tpu.memory_space<vmem>>, vector<192x32xf32>
    %c0_143 = arith.constant 0 : index
    %c0_144 = arith.constant 0 : index
    %450 = vector.load %arg4[%c0_143, %c0_144] : memref<8x32xf32, #tpu.memory_space<vmem>>, vector<8x32xf32>
    %451 = vector.shape_cast %448 : vector<2x8x192xf32> to vector<16x192xf32>
    %cst_145 = arith.constant dense<0.000000e+00> : vector<16x32xf32>
    %452 = tpu.matmul %451, %449, %cst_145 {dimension_numbers = #tpu.dot_dimension_numbers<[1], [0], [0], [1], [0, 0, 1, 1], [], []>} : vector<16x192xf32>, vector<192x32xf32>, vector<16x32xf32> -> vector<16x32xf32>
    %453 = vector.shape_cast %452 : vector<16x32xf32> to vector<2x8x32xf32>
    %454 = vector.shape_cast %450 : vector<8x32xf32> to vector<1x8x32xf32>
    %455 = vector.broadcast %454 : vector<1x8x32xf32> to vector<2x8x32xf32>
    %456 = arith.addf %453, %455 : vector<2x8x32xf32>
    %457 = vector.shape_cast %456 : vector<2x8x32xf32> to vector<16x32xf32>
    %458 = tpu.iota {dimensions = array<i32: 2>} : vector<1x1x8xi32>
    %c5_i32 = arith.constant 5 : i32
    %459 = vector.broadcast %c5_i32 : i32 to vector<1x1x8xi32>
    %460 = arith.cmpi slt, %458, %459 : vector<1x1x8xi32>
    %cst_146 = arith.constant 0.000000e+00 : f32
    %cst_147 = arith.constant -1.000000e+09 : f32
    %461 = vector.broadcast %cst_146 : f32 to vector<1x1x8xf32>
    %462 = vector.broadcast %cst_147 : f32 to vector<1x1x8xf32>
    %463 = arith.select %460, %461, %462 : vector<1x1x8xi1>, vector<1x1x8xf32>
    %cst_148 = arith.constant dense<0.000000e+00> : vector<16xf32>
    %464 = vector.multi_reduction <add>, %457, %cst_148 [1] : vector<16x32xf32> to vector<16xf32>
    %465 = vector.shape_cast %464 : vector<16xf32> to vector<16x1xf32>
    %cst_149 = arith.constant 3.200000e+01 : f32
    %466 = vector.broadcast %cst_149 : f32 to vector<16x1xf32>
    %467 = arith.divf %465, %466 : vector<16x1xf32>
    %468 = vector.broadcast %467 : vector<16x1xf32> to vector<16x32xf32>
    %469 = arith.subf %457, %468 : vector<16x32xf32>
    %470 = arith.mulf %469, %469 : vector<16x32xf32>
    %cst_150 = arith.constant dense<0.000000e+00> : vector<16xf32>
    %471 = vector.multi_reduction <add>, %470, %cst_150 [1] : vector<16x32xf32> to vector<16xf32>
    %472 = vector.shape_cast %471 : vector<16xf32> to vector<16x1xf32>
    %cst_151 = arith.constant 3.200000e+01 : f32
    %473 = vector.broadcast %cst_151 : f32 to vector<16x1xf32>
    %474 = arith.divf %472, %473 : vector<16x1xf32>
    %cst_152 = arith.constant 9.99999974E-6 : f32
    %475 = vector.broadcast %cst_152 : f32 to vector<16x1xf32>
    %476 = arith.addf %474, %475 : vector<16x1xf32>
    %477 = math.rsqrt %476 : vector<16x1xf32>
    %478 = vector.broadcast %477 : vector<16x1xf32> to vector<16x32xf32>
    %479 = arith.mulf %469, %478 : vector<16x32xf32>
    %480 = vector.broadcast %2 : vector<1x32xf32> to vector<16x32xf32>
    %481 = arith.mulf %479, %480 : vector<16x32xf32>
    %482 = vector.broadcast %3 : vector<1x32xf32> to vector<16x32xf32>
    %483 = arith.addf %481, %482 : vector<16x32xf32>
    %cst_153 = arith.constant dense<0.000000e+00> : vector<16x96xf32>
    %484 = tpu.matmul %483, %15, %cst_153 {dimension_numbers = #tpu.dot_dimension_numbers<[1], [0], [0], [1], [0, 0, 1, 1], [], []>} : vector<16x32xf32>, vector<32x96xf32>, vector<16x96xf32> -> vector<16x96xf32>
    %485 = vector.broadcast %8 : vector<1x96xf32> to vector<16x96xf32>
    %486 = arith.addf %484, %485 : vector<16x96xf32>
    %487 = vector.shape_cast %486 : vector<16x96xf32> to vector<2x8x96xf32>
    %488 = vector.extract_strided_slice %487 {offsets = [0, 0, 0], sizes = [2, 8, 8], strides = [1, 1, 1]} : vector<2x8x96xf32> to vector<2x8x8xf32>
    %489 = vector.extract_strided_slice %487 {offsets = [0, 0, 32], sizes = [2, 8, 8], strides = [1, 1, 1]} : vector<2x8x96xf32> to vector<2x8x8xf32>
    %490 = vector.extract_strided_slice %487 {offsets = [0, 0, 64], sizes = [2, 8, 8], strides = [1, 1, 1]} : vector<2x8x96xf32> to vector<2x8x8xf32>
    "tpu.trace_start"() <{level = 10 : i32, message = "bqd,bkd->bqk"}> : () -> ()
    %cst_154 = arith.constant dense<0.000000e+00> : vector<2x8x8xf32>
    %491 = tpu.matmul %488, %489, %cst_154 {dimension_numbers = #tpu.dot_dimension_numbers<[2], [2], [1], [1], [0, 0, 0, 1, 1, 1], [0], [0]>} : vector<2x8x8xf32>, vector<2x8x8xf32>, vector<2x8x8xf32> -> vector<2x8x8xf32>
    "tpu.trace_stop"() : () -> ()
    %cst_155 = arith.constant 0.353553385 : f32
    %492 = vector.broadcast %cst_155 : f32 to vector<2x8x8xf32>
    %493 = arith.mulf %491, %492 : vector<2x8x8xf32>
    %494 = vector.broadcast %463 : vector<1x1x8xf32> to vector<2x8x8xf32>
    %495 = arith.addf %493, %494 : vector<2x8x8xf32>
    %cst_156 = arith.constant dense<0xFF800000> : vector<2x8xf32>
    %496 = vector.multi_reduction <maximumf>, %495, %cst_156 [2] : vector<2x8x8xf32> to vector<2x8xf32>
    %497 = vector.shape_cast %496 : vector<2x8xf32> to vector<2x8x1xf32>
    %498 = vector.broadcast %497 : vector<2x8x1xf32> to vector<2x8x8xf32>
    %499 = arith.subf %495, %498 : vector<2x8x8xf32>
    %500 = math.exp %499 : vector<2x8x8xf32>
    %cst_157 = arith.constant dense<0.000000e+00> : vector<2x8xf32>
    %501 = vector.multi_reduction <add>, %500, %cst_157 [2] : vector<2x8x8xf32> to vector<2x8xf32>
    %502 = vector.shape_cast %501 : vector<2x8xf32> to vector<2x8x1xf32>
    %503 = tpu.reciprocal %502 {approx = true} : vector<2x8x1xf32> -> vector<2x8x1xf32>
    %504 = vector.broadcast %503 : vector<2x8x1xf32> to vector<2x8x8xf32>
    %505 = arith.mulf %500, %504 : vector<2x8x8xf32>
    "tpu.trace_start"() <{level = 10 : i32, message = "bqk,bkd->bqd"}> : () -> ()
    %cst_158 = arith.constant dense<0.000000e+00> : vector<2x8x8xf32>
    %506 = tpu.matmul %505, %490, %cst_158 {dimension_numbers = #tpu.dot_dimension_numbers<[2], [1], [1], [2], [0, 0, 0, 1, 1, 2], [0], [0]>} : vector<2x8x8xf32>, vector<2x8x8xf32>, vector<2x8x8xf32> -> vector<2x8x8xf32>
    "tpu.trace_stop"() : () -> ()
    %507 = vector.extract_strided_slice %487 {offsets = [0, 0, 8], sizes = [2, 8, 8], strides = [1, 1, 1]} : vector<2x8x96xf32> to vector<2x8x8xf32>
    %508 = vector.extract_strided_slice %487 {offsets = [0, 0, 40], sizes = [2, 8, 8], strides = [1, 1, 1]} : vector<2x8x96xf32> to vector<2x8x8xf32>
    %509 = vector.extract_strided_slice %487 {offsets = [0, 0, 72], sizes = [2, 8, 8], strides = [1, 1, 1]} : vector<2x8x96xf32> to vector<2x8x8xf32>
    "tpu.trace_start"() <{level = 10 : i32, message = "bqd,bkd->bqk"}> : () -> ()
    %cst_159 = arith.constant dense<0.000000e+00> : vector<2x8x8xf32>
    %510 = tpu.matmul %507, %508, %cst_159 {dimension_numbers = #tpu.dot_dimension_numbers<[2], [2], [1], [1], [0, 0, 0, 1, 1, 1], [0], [0]>} : vector<2x8x8xf32>, vector<2x8x8xf32>, vector<2x8x8xf32> -> vector<2x8x8xf32>
    "tpu.trace_stop"() : () -> ()
    %cst_160 = arith.constant 0.353553385 : f32
    %511 = vector.broadcast %cst_160 : f32 to vector<2x8x8xf32>
    %512 = arith.mulf %510, %511 : vector<2x8x8xf32>
    %513 = vector.broadcast %463 : vector<1x1x8xf32> to vector<2x8x8xf32>
    %514 = arith.addf %512, %513 : vector<2x8x8xf32>
    %cst_161 = arith.constant dense<0xFF800000> : vector<2x8xf32>
    %515 = vector.multi_reduction <maximumf>, %514, %cst_161 [2] : vector<2x8x8xf32> to vector<2x8xf32>
    %516 = vector.shape_cast %515 : vector<2x8xf32> to vector<2x8x1xf32>
    %517 = vector.broadcast %516 : vector<2x8x1xf32> to vector<2x8x8xf32>
    %518 = arith.subf %514, %517 : vector<2x8x8xf32>
    %519 = math.exp %518 : vector<2x8x8xf32>
    %cst_162 = arith.constant dense<0.000000e+00> : vector<2x8xf32>
    %520 = vector.multi_reduction <add>, %519, %cst_162 [2] : vector<2x8x8xf32> to vector<2x8xf32>
    %521 = vector.shape_cast %520 : vector<2x8xf32> to vector<2x8x1xf32>
    %522 = tpu.reciprocal %521 {approx = true} : vector<2x8x1xf32> -> vector<2x8x1xf32>
    %523 = vector.broadcast %522 : vector<2x8x1xf32> to vector<2x8x8xf32>
    %524 = arith.mulf %519, %523 : vector<2x8x8xf32>
    "tpu.trace_start"() <{level = 10 : i32, message = "bqk,bkd->bqd"}> : () -> ()
    %cst_163 = arith.constant dense<0.000000e+00> : vector<2x8x8xf32>
    %525 = tpu.matmul %524, %509, %cst_163 {dimension_numbers = #tpu.dot_dimension_numbers<[2], [1], [1], [2], [0, 0, 0, 1, 1, 2], [0], [0]>} : vector<2x8x8xf32>, vector<2x8x8xf32>, vector<2x8x8xf32> -> vector<2x8x8xf32>
    "tpu.trace_stop"() : () -> ()
    %526 = vector.extract_strided_slice %487 {offsets = [0, 0, 16], sizes = [2, 8, 8], strides = [1, 1, 1]} : vector<2x8x96xf32> to vector<2x8x8xf32>
    %527 = vector.extract_strided_slice %487 {offsets = [0, 0, 48], sizes = [2, 8, 8], strides = [1, 1, 1]} : vector<2x8x96xf32> to vector<2x8x8xf32>
    %528 = vector.extract_strided_slice %487 {offsets = [0, 0, 80], sizes = [2, 8, 8], strides = [1, 1, 1]} : vector<2x8x96xf32> to vector<2x8x8xf32>
    "tpu.trace_start"() <{level = 10 : i32, message = "bqd,bkd->bqk"}> : () -> ()
    %cst_164 = arith.constant dense<0.000000e+00> : vector<2x8x8xf32>
    %529 = tpu.matmul %526, %527, %cst_164 {dimension_numbers = #tpu.dot_dimension_numbers<[2], [2], [1], [1], [0, 0, 0, 1, 1, 1], [0], [0]>} : vector<2x8x8xf32>, vector<2x8x8xf32>, vector<2x8x8xf32> -> vector<2x8x8xf32>
    "tpu.trace_stop"() : () -> ()
    %cst_165 = arith.constant 0.353553385 : f32
    %530 = vector.broadcast %cst_165 : f32 to vector<2x8x8xf32>
    %531 = arith.mulf %529, %530 : vector<2x8x8xf32>
    %532 = vector.broadcast %463 : vector<1x1x8xf32> to vector<2x8x8xf32>
    %533 = arith.addf %531, %532 : vector<2x8x8xf32>
    %cst_166 = arith.constant dense<0xFF800000> : vector<2x8xf32>
    %534 = vector.multi_reduction <maximumf>, %533, %cst_166 [2] : vector<2x8x8xf32> to vector<2x8xf32>
    %535 = vector.shape_cast %534 : vector<2x8xf32> to vector<2x8x1xf32>
    %536 = vector.broadcast %535 : vector<2x8x1xf32> to vector<2x8x8xf32>
    %537 = arith.subf %533, %536 : vector<2x8x8xf32>
    %538 = math.exp %537 : vector<2x8x8xf32>
    %cst_167 = arith.constant dense<0.000000e+00> : vector<2x8xf32>
    %539 = vector.multi_reduction <add>, %538, %cst_167 [2] : vector<2x8x8xf32> to vector<2x8xf32>
    %540 = vector.shape_cast %539 : vector<2x8xf32> to vector<2x8x1xf32>
    %541 = tpu.reciprocal %540 {approx = true} : vector<2x8x1xf32> -> vector<2x8x1xf32>
    %542 = vector.broadcast %541 : vector<2x8x1xf32> to vector<2x8x8xf32>
    %543 = arith.mulf %538, %542 : vector<2x8x8xf32>
    "tpu.trace_start"() <{level = 10 : i32, message = "bqk,bkd->bqd"}> : () -> ()
    %cst_168 = arith.constant dense<0.000000e+00> : vector<2x8x8xf32>
    %544 = tpu.matmul %543, %528, %cst_168 {dimension_numbers = #tpu.dot_dimension_numbers<[2], [1], [1], [2], [0, 0, 0, 1, 1, 2], [0], [0]>} : vector<2x8x8xf32>, vector<2x8x8xf32>, vector<2x8x8xf32> -> vector<2x8x8xf32>
    "tpu.trace_stop"() : () -> ()
    %545 = vector.extract_strided_slice %487 {offsets = [0, 0, 24], sizes = [2, 8, 8], strides = [1, 1, 1]} : vector<2x8x96xf32> to vector<2x8x8xf32>
    %546 = vector.extract_strided_slice %487 {offsets = [0, 0, 56], sizes = [2, 8, 8], strides = [1, 1, 1]} : vector<2x8x96xf32> to vector<2x8x8xf32>
    %547 = vector.extract_strided_slice %487 {offsets = [0, 0, 88], sizes = [2, 8, 8], strides = [1, 1, 1]} : vector<2x8x96xf32> to vector<2x8x8xf32>
    "tpu.trace_start"() <{level = 10 : i32, message = "bqd,bkd->bqk"}> : () -> ()
    %cst_169 = arith.constant dense<0.000000e+00> : vector<2x8x8xf32>
    %548 = tpu.matmul %545, %546, %cst_169 {dimension_numbers = #tpu.dot_dimension_numbers<[2], [2], [1], [1], [0, 0, 0, 1, 1, 1], [0], [0]>} : vector<2x8x8xf32>, vector<2x8x8xf32>, vector<2x8x8xf32> -> vector<2x8x8xf32>
    "tpu.trace_stop"() : () -> ()
    %cst_170 = arith.constant 0.353553385 : f32
    %549 = vector.broadcast %cst_170 : f32 to vector<2x8x8xf32>
    %550 = arith.mulf %548, %549 : vector<2x8x8xf32>
    %551 = vector.broadcast %463 : vector<1x1x8xf32> to vector<2x8x8xf32>
    %552 = arith.addf %550, %551 : vector<2x8x8xf32>
    %cst_171 = arith.constant dense<0xFF800000> : vector<2x8xf32>
    %553 = vector.multi_reduction <maximumf>, %552, %cst_171 [2] : vector<2x8x8xf32> to vector<2x8xf32>
    %554 = vector.shape_cast %553 : vector<2x8xf32> to vector<2x8x1xf32>
    %555 = vector.broadcast %554 : vector<2x8x1xf32> to vector<2x8x8xf32>
    %556 = arith.subf %552, %555 : vector<2x8x8xf32>
    %557 = math.exp %556 : vector<2x8x8xf32>
    %cst_172 = arith.constant dense<0.000000e+00> : vector<2x8xf32>
    %558 = vector.multi_reduction <add>, %557, %cst_172 [2] : vector<2x8x8xf32> to vector<2x8xf32>
    %559 = vector.shape_cast %558 : vector<2x8xf32> to vector<2x8x1xf32>
    %560 = tpu.reciprocal %559 {approx = true} : vector<2x8x1xf32> -> vector<2x8x1xf32>
    %561 = vector.broadcast %560 : vector<2x8x1xf32> to vector<2x8x8xf32>
    %562 = arith.mulf %557, %561 : vector<2x8x8xf32>
    "tpu.trace_start"() <{level = 10 : i32, message = "bqk,bkd->bqd"}> : () -> ()
    %cst_173 = arith.constant dense<0.000000e+00> : vector<2x8x8xf32>
    %563 = tpu.matmul %562, %547, %cst_173 {dimension_numbers = #tpu.dot_dimension_numbers<[2], [1], [1], [2], [0, 0, 0, 1, 1, 2], [0], [0]>} : vector<2x8x8xf32>, vector<2x8x8xf32>, vector<2x8x8xf32> -> vector<2x8x8xf32>
    "tpu.trace_stop"() : () -> ()
    %564 = tpu.concatenate %506, %525, %544, %563 in 2 : vector<2x8x8xf32>, vector<2x8x8xf32>, vector<2x8x8xf32>, vector<2x8x8xf32> -> vector<2x8x32xf32>
    %565 = vector.shape_cast %564 : vector<2x8x32xf32> to vector<16x32xf32>
    %cst_174 = arith.constant dense<0.000000e+00> : vector<16x32xf32>
    %566 = tpu.matmul %565, %17, %cst_174 {dimension_numbers = #tpu.dot_dimension_numbers<[1], [0], [0], [1], [0, 0, 1, 1], [], []>} : vector<16x32xf32>, vector<32x32xf32>, vector<16x32xf32> -> vector<16x32xf32>
    %567 = vector.broadcast %9 : vector<1x32xf32> to vector<16x32xf32>
    %568 = arith.addf %566, %567 : vector<16x32xf32>
    %569 = arith.addf %483, %568 : vector<16x32xf32>
    %cst_175 = arith.constant dense<0.000000e+00> : vector<16xf32>
    %570 = vector.multi_reduction <add>, %569, %cst_175 [1] : vector<16x32xf32> to vector<16xf32>
    %571 = vector.shape_cast %570 : vector<16xf32> to vector<16x1xf32>
    %cst_176 = arith.constant 3.200000e+01 : f32
    %572 = vector.broadcast %cst_176 : f32 to vector<16x1xf32>
    %573 = arith.divf %571, %572 : vector<16x1xf32>
    %574 = vector.broadcast %573 : vector<16x1xf32> to vector<16x32xf32>
    %575 = arith.subf %569, %574 : vector<16x32xf32>
    %576 = arith.mulf %575, %575 : vector<16x32xf32>
    %cst_177 = arith.constant dense<0.000000e+00> : vector<16xf32>
    %577 = vector.multi_reduction <add>, %576, %cst_177 [1] : vector<16x32xf32> to vector<16xf32>
    %578 = vector.shape_cast %577 : vector<16xf32> to vector<16x1xf32>
    %cst_178 = arith.constant 3.200000e+01 : f32
    %579 = vector.broadcast %cst_178 : f32 to vector<16x1xf32>
    %580 = arith.divf %578, %579 : vector<16x1xf32>
    %cst_179 = arith.constant 9.99999974E-6 : f32
    %581 = vector.broadcast %cst_179 : f32 to vector<16x1xf32>
    %582 = arith.addf %580, %581 : vector<16x1xf32>
    %583 = math.rsqrt %582 : vector<16x1xf32>
    %584 = vector.broadcast %583 : vector<16x1xf32> to vector<16x32xf32>
    %585 = arith.mulf %575, %584 : vector<16x32xf32>
    %586 = vector.broadcast %4 : vector<1x32xf32> to vector<16x32xf32>
    %587 = arith.mulf %585, %586 : vector<16x32xf32>
    %588 = vector.broadcast %5 : vector<1x32xf32> to vector<16x32xf32>
    %589 = arith.addf %587, %588 : vector<16x32xf32>
    %cst_180 = arith.constant dense<0.000000e+00> : vector<16x128xf32>
    %590 = tpu.matmul %589, %19, %cst_180 {dimension_numbers = #tpu.dot_dimension_numbers<[1], [0], [0], [1], [0, 0, 1, 1], [], []>} : vector<16x32xf32>, vector<32x128xf32>, vector<16x128xf32> -> vector<16x128xf32>
    %591 = vector.broadcast %10 : vector<1x128xf32> to vector<16x128xf32>
    %592 = arith.addf %590, %591 : vector<16x128xf32>
    %cst_181 = arith.constant dense<0.000000e+00> : vector<16xf32>
    %593 = vector.multi_reduction <add>, %592, %cst_181 [1] : vector<16x128xf32> to vector<16xf32>
    %594 = vector.shape_cast %593 : vector<16xf32> to vector<16x1xf32>
    %cst_182 = arith.constant 1.280000e+02 : f32
    %595 = vector.broadcast %cst_182 : f32 to vector<16x1xf32>
    %596 = arith.divf %594, %595 : vector<16x1xf32>
    %597 = vector.broadcast %596 : vector<16x1xf32> to vector<16x128xf32>
    %598 = arith.subf %592, %597 : vector<16x128xf32>
    %599 = arith.mulf %598, %598 : vector<16x128xf32>
    %cst_183 = arith.constant dense<0.000000e+00> : vector<16xf32>
    %600 = vector.multi_reduction <add>, %599, %cst_183 [1] : vector<16x128xf32> to vector<16xf32>
    %601 = vector.shape_cast %600 : vector<16xf32> to vector<16x1xf32>
    %cst_184 = arith.constant 1.280000e+02 : f32
    %602 = vector.broadcast %cst_184 : f32 to vector<16x1xf32>
    %603 = arith.divf %601, %602 : vector<16x1xf32>
    %cst_185 = arith.constant 9.99999974E-6 : f32
    %604 = vector.broadcast %cst_185 : f32 to vector<16x1xf32>
    %605 = arith.addf %603, %604 : vector<16x1xf32>
    %606 = math.rsqrt %605 : vector<16x1xf32>
    %607 = vector.broadcast %606 : vector<16x1xf32> to vector<16x128xf32>
    %608 = arith.mulf %598, %607 : vector<16x128xf32>
    %609 = vector.broadcast %11 : vector<1x128xf32> to vector<16x128xf32>
    %610 = arith.mulf %608, %609 : vector<16x128xf32>
    %611 = vector.broadcast %12 : vector<1x128xf32> to vector<16x128xf32>
    %612 = arith.addf %610, %611 : vector<16x128xf32>
    %cst_186 = arith.constant 5.000000e-01 : f32
    %613 = vector.broadcast %cst_186 : f32 to vector<16x128xf32>
    %614 = arith.mulf %613, %612 : vector<16x128xf32>
    %cst_187 = arith.constant 0.707106769 : f32
    %615 = vector.broadcast %cst_187 : f32 to vector<16x128xf32>
    %616 = arith.mulf %612, %615 : vector<16x128xf32>
    %617 = math.erf %616 : vector<16x128xf32>
    %cst_188 = arith.constant 1.000000e+00 : f32
    %618 = vector.broadcast %cst_188 : f32 to vector<16x128xf32>
    %619 = arith.addf %618, %617 : vector<16x128xf32>
    %620 = arith.mulf %614, %619 : vector<16x128xf32>
    %cst_189 = arith.constant dense<0.000000e+00> : vector<16x32xf32>
    %621 = tpu.matmul %620, %21, %cst_189 {dimension_numbers = #tpu.dot_dimension_numbers<[1], [0], [0], [1], [0, 0, 1, 1], [], []>} : vector<16x128xf32>, vector<128x32xf32>, vector<16x32xf32> -> vector<16x32xf32>
    %622 = vector.broadcast %13 : vector<1x32xf32> to vector<16x32xf32>
    %623 = arith.addf %621, %622 : vector<16x32xf32>
    %624 = arith.addf %589, %623 : vector<16x32xf32>
    %cst_190 = arith.constant dense<0.000000e+00> : vector<16xf32>
    %625 = vector.multi_reduction <add>, %624, %cst_190 [1] : vector<16x32xf32> to vector<16xf32>
    %626 = vector.shape_cast %625 : vector<16xf32> to vector<16x1xf32>
    %cst_191 = arith.constant 3.200000e+01 : f32
    %627 = vector.broadcast %cst_191 : f32 to vector<16x1xf32>
    %628 = arith.divf %626, %627 : vector<16x1xf32>
    %629 = vector.broadcast %628 : vector<16x1xf32> to vector<16x32xf32>
    %630 = arith.subf %624, %629 : vector<16x32xf32>
    %631 = arith.mulf %630, %630 : vector<16x32xf32>
    %cst_192 = arith.constant dense<0.000000e+00> : vector<16xf32>
    %632 = vector.multi_reduction <add>, %631, %cst_192 [1] : vector<16x32xf32> to vector<16xf32>
    %633 = vector.shape_cast %632 : vector<16xf32> to vector<16x1xf32>
    %cst_193 = arith.constant 3.200000e+01 : f32
    %634 = vector.broadcast %cst_193 : f32 to vector<16x1xf32>
    %635 = arith.divf %633, %634 : vector<16x1xf32>
    %cst_194 = arith.constant 9.99999974E-6 : f32
    %636 = vector.broadcast %cst_194 : f32 to vector<16x1xf32>
    %637 = arith.addf %635, %636 : vector<16x1xf32>
    %638 = math.rsqrt %637 : vector<16x1xf32>
    %639 = vector.broadcast %638 : vector<16x1xf32> to vector<16x32xf32>
    %640 = arith.mulf %630, %639 : vector<16x32xf32>
    %641 = vector.broadcast %6 : vector<1x32xf32> to vector<16x32xf32>
    %642 = arith.mulf %640, %641 : vector<16x32xf32>
    %643 = vector.broadcast %7 : vector<1x32xf32> to vector<16x32xf32>
    %644 = arith.addf %642, %643 : vector<16x32xf32>
    %cst_195 = arith.constant dense<0.000000e+00> : vector<16xf32>
    %645 = vector.multi_reduction <add>, %644, %cst_195 [1] : vector<16x32xf32> to vector<16xf32>
    %646 = vector.shape_cast %645 : vector<16xf32> to vector<16x1xf32>
    %cst_196 = arith.constant 3.200000e+01 : f32
    %647 = vector.broadcast %cst_196 : f32 to vector<16x1xf32>
    %648 = arith.divf %646, %647 : vector<16x1xf32>
    %649 = vector.broadcast %648 : vector<16x1xf32> to vector<16x32xf32>
    %650 = arith.subf %644, %649 : vector<16x32xf32>
    %651 = arith.mulf %650, %650 : vector<16x32xf32>
    %cst_197 = arith.constant dense<0.000000e+00> : vector<16xf32>
    %652 = vector.multi_reduction <add>, %651, %cst_197 [1] : vector<16x32xf32> to vector<16xf32>
    %653 = vector.shape_cast %652 : vector<16xf32> to vector<16x1xf32>
    %cst_198 = arith.constant 3.200000e+01 : f32
    %654 = vector.broadcast %cst_198 : f32 to vector<16x1xf32>
    %655 = arith.divf %653, %654 : vector<16x1xf32>
    %cst_199 = arith.constant 9.99999974E-6 : f32
    %656 = vector.broadcast %cst_199 : f32 to vector<16x1xf32>
    %657 = arith.addf %655, %656 : vector<16x1xf32>
    %658 = math.rsqrt %657 : vector<16x1xf32>
    %659 = vector.broadcast %658 : vector<16x1xf32> to vector<16x32xf32>
    %660 = arith.mulf %650, %659 : vector<16x32xf32>
    %661 = vector.broadcast %24 : vector<1x32xf32> to vector<16x32xf32>
    %662 = arith.mulf %660, %661 : vector<16x32xf32>
    %663 = vector.broadcast %25 : vector<1x32xf32> to vector<16x32xf32>
    %664 = arith.addf %662, %663 : vector<16x32xf32>
    %cst_200 = arith.constant dense<0.000000e+00> : vector<16x96xf32>
    %665 = tpu.matmul %664, %37, %cst_200 {dimension_numbers = #tpu.dot_dimension_numbers<[1], [0], [0], [1], [0, 0, 1, 1], [], []>} : vector<16x32xf32>, vector<32x96xf32>, vector<16x96xf32> -> vector<16x96xf32>
    %666 = vector.broadcast %30 : vector<1x96xf32> to vector<16x96xf32>
    %667 = arith.addf %665, %666 : vector<16x96xf32>
    %668 = vector.shape_cast %667 : vector<16x96xf32> to vector<2x8x96xf32>
    %669 = vector.extract_strided_slice %668 {offsets = [0, 0, 0], sizes = [2, 8, 8], strides = [1, 1, 1]} : vector<2x8x96xf32> to vector<2x8x8xf32>
    %670 = vector.extract_strided_slice %668 {offsets = [0, 0, 32], sizes = [2, 8, 8], strides = [1, 1, 1]} : vector<2x8x96xf32> to vector<2x8x8xf32>
    %671 = vector.extract_strided_slice %668 {offsets = [0, 0, 64], sizes = [2, 8, 8], strides = [1, 1, 1]} : vector<2x8x96xf32> to vector<2x8x8xf32>
    "tpu.trace_start"() <{level = 10 : i32, message = "bqd,bkd->bqk"}> : () -> ()
    %cst_201 = arith.constant dense<0.000000e+00> : vector<2x8x8xf32>
    %672 = tpu.matmul %669, %670, %cst_201 {dimension_numbers = #tpu.dot_dimension_numbers<[2], [2], [1], [1], [0, 0, 0, 1, 1, 1], [0], [0]>} : vector<2x8x8xf32>, vector<2x8x8xf32>, vector<2x8x8xf32> -> vector<2x8x8xf32>
    "tpu.trace_stop"() : () -> ()
    %cst_202 = arith.constant 0.353553385 : f32
    %673 = vector.broadcast %cst_202 : f32 to vector<2x8x8xf32>
    %674 = arith.mulf %672, %673 : vector<2x8x8xf32>
    %675 = vector.broadcast %463 : vector<1x1x8xf32> to vector<2x8x8xf32>
    %676 = arith.addf %674, %675 : vector<2x8x8xf32>
    %cst_203 = arith.constant dense<0xFF800000> : vector<2x8xf32>
    %677 = vector.multi_reduction <maximumf>, %676, %cst_203 [2] : vector<2x8x8xf32> to vector<2x8xf32>
    %678 = vector.shape_cast %677 : vector<2x8xf32> to vector<2x8x1xf32>
    %679 = vector.broadcast %678 : vector<2x8x1xf32> to vector<2x8x8xf32>
    %680 = arith.subf %676, %679 : vector<2x8x8xf32>
    %681 = math.exp %680 : vector<2x8x8xf32>
    %cst_204 = arith.constant dense<0.000000e+00> : vector<2x8xf32>
    %682 = vector.multi_reduction <add>, %681, %cst_204 [2] : vector<2x8x8xf32> to vector<2x8xf32>
    %683 = vector.shape_cast %682 : vector<2x8xf32> to vector<2x8x1xf32>
    %684 = tpu.reciprocal %683 {approx = true} : vector<2x8x1xf32> -> vector<2x8x1xf32>
    %685 = vector.broadcast %684 : vector<2x8x1xf32> to vector<2x8x8xf32>
    %686 = arith.mulf %681, %685 : vector<2x8x8xf32>
    "tpu.trace_start"() <{level = 10 : i32, message = "bqk,bkd->bqd"}> : () -> ()
    %cst_205 = arith.constant dense<0.000000e+00> : vector<2x8x8xf32>
    %687 = tpu.matmul %686, %671, %cst_205 {dimension_numbers = #tpu.dot_dimension_numbers<[2], [1], [1], [2], [0, 0, 0, 1, 1, 2], [0], [0]>} : vector<2x8x8xf32>, vector<2x8x8xf32>, vector<2x8x8xf32> -> vector<2x8x8xf32>
    "tpu.trace_stop"() : () -> ()
    %688 = vector.extract_strided_slice %668 {offsets = [0, 0, 8], sizes = [2, 8, 8], strides = [1, 1, 1]} : vector<2x8x96xf32> to vector<2x8x8xf32>
    %689 = vector.extract_strided_slice %668 {offsets = [0, 0, 40], sizes = [2, 8, 8], strides = [1, 1, 1]} : vector<2x8x96xf32> to vector<2x8x8xf32>
    %690 = vector.extract_strided_slice %668 {offsets = [0, 0, 72], sizes = [2, 8, 8], strides = [1, 1, 1]} : vector<2x8x96xf32> to vector<2x8x8xf32>
    "tpu.trace_start"() <{level = 10 : i32, message = "bqd,bkd->bqk"}> : () -> ()
    %cst_206 = arith.constant dense<0.000000e+00> : vector<2x8x8xf32>
    %691 = tpu.matmul %688, %689, %cst_206 {dimension_numbers = #tpu.dot_dimension_numbers<[2], [2], [1], [1], [0, 0, 0, 1, 1, 1], [0], [0]>} : vector<2x8x8xf32>, vector<2x8x8xf32>, vector<2x8x8xf32> -> vector<2x8x8xf32>
    "tpu.trace_stop"() : () -> ()
    %cst_207 = arith.constant 0.353553385 : f32
    %692 = vector.broadcast %cst_207 : f32 to vector<2x8x8xf32>
    %693 = arith.mulf %691, %692 : vector<2x8x8xf32>
    %694 = vector.broadcast %463 : vector<1x1x8xf32> to vector<2x8x8xf32>
    %695 = arith.addf %693, %694 : vector<2x8x8xf32>
    %cst_208 = arith.constant dense<0xFF800000> : vector<2x8xf32>
    %696 = vector.multi_reduction <maximumf>, %695, %cst_208 [2] : vector<2x8x8xf32> to vector<2x8xf32>
    %697 = vector.shape_cast %696 : vector<2x8xf32> to vector<2x8x1xf32>
    %698 = vector.broadcast %697 : vector<2x8x1xf32> to vector<2x8x8xf32>
    %699 = arith.subf %695, %698 : vector<2x8x8xf32>
    %700 = math.exp %699 : vector<2x8x8xf32>
    %cst_209 = arith.constant dense<0.000000e+00> : vector<2x8xf32>
    %701 = vector.multi_reduction <add>, %700, %cst_209 [2] : vector<2x8x8xf32> to vector<2x8xf32>
    %702 = vector.shape_cast %701 : vector<2x8xf32> to vector<2x8x1xf32>
    %703 = tpu.reciprocal %702 {approx = true} : vector<2x8x1xf32> -> vector<2x8x1xf32>
    %704 = vector.broadcast %703 : vector<2x8x1xf32> to vector<2x8x8xf32>
    %705 = arith.mulf %700, %704 : vector<2x8x8xf32>
    "tpu.trace_start"() <{level = 10 : i32, message = "bqk,bkd->bqd"}> : () -> ()
    %cst_210 = arith.constant dense<0.000000e+00> : vector<2x8x8xf32>
    %706 = tpu.matmul %705, %690, %cst_210 {dimension_numbers = #tpu.dot_dimension_numbers<[2], [1], [1], [2], [0, 0, 0, 1, 1, 2], [0], [0]>} : vector<2x8x8xf32>, vector<2x8x8xf32>, vector<2x8x8xf32> -> vector<2x8x8xf32>
    "tpu.trace_stop"() : () -> ()
    %707 = vector.extract_strided_slice %668 {offsets = [0, 0, 16], sizes = [2, 8, 8], strides = [1, 1, 1]} : vector<2x8x96xf32> to vector<2x8x8xf32>
    %708 = vector.extract_strided_slice %668 {offsets = [0, 0, 48], sizes = [2, 8, 8], strides = [1, 1, 1]} : vector<2x8x96xf32> to vector<2x8x8xf32>
    %709 = vector.extract_strided_slice %668 {offsets = [0, 0, 80], sizes = [2, 8, 8], strides = [1, 1, 1]} : vector<2x8x96xf32> to vector<2x8x8xf32>
    "tpu.trace_start"() <{level = 10 : i32, message = "bqd,bkd->bqk"}> : () -> ()
    %cst_211 = arith.constant dense<0.000000e+00> : vector<2x8x8xf32>
    %710 = tpu.matmul %707, %708, %cst_211 {dimension_numbers = #tpu.dot_dimension_numbers<[2], [2], [1], [1], [0, 0, 0, 1, 1, 1], [0], [0]>} : vector<2x8x8xf32>, vector<2x8x8xf32>, vector<2x8x8xf32> -> vector<2x8x8xf32>
    "tpu.trace_stop"() : () -> ()
    %cst_212 = arith.constant 0.353553385 : f32
    %711 = vector.broadcast %cst_212 : f32 to vector<2x8x8xf32>
    %712 = arith.mulf %710, %711 : vector<2x8x8xf32>
    %713 = vector.broadcast %463 : vector<1x1x8xf32> to vector<2x8x8xf32>
    %714 = arith.addf %712, %713 : vector<2x8x8xf32>
    %cst_213 = arith.constant dense<0xFF800000> : vector<2x8xf32>
    %715 = vector.multi_reduction <maximumf>, %714, %cst_213 [2] : vector<2x8x8xf32> to vector<2x8xf32>
    %716 = vector.shape_cast %715 : vector<2x8xf32> to vector<2x8x1xf32>
    %717 = vector.broadcast %716 : vector<2x8x1xf32> to vector<2x8x8xf32>
    %718 = arith.subf %714, %717 : vector<2x8x8xf32>
    %719 = math.exp %718 : vector<2x8x8xf32>
    %cst_214 = arith.constant dense<0.000000e+00> : vector<2x8xf32>
    %720 = vector.multi_reduction <add>, %719, %cst_214 [2] : vector<2x8x8xf32> to vector<2x8xf32>
    %721 = vector.shape_cast %720 : vector<2x8xf32> to vector<2x8x1xf32>
    %722 = tpu.reciprocal %721 {approx = true} : vector<2x8x1xf32> -> vector<2x8x1xf32>
    %723 = vector.broadcast %722 : vector<2x8x1xf32> to vector<2x8x8xf32>
    %724 = arith.mulf %719, %723 : vector<2x8x8xf32>
    "tpu.trace_start"() <{level = 10 : i32, message = "bqk,bkd->bqd"}> : () -> ()
    %cst_215 = arith.constant dense<0.000000e+00> : vector<2x8x8xf32>
    %725 = tpu.matmul %724, %709, %cst_215 {dimension_numbers = #tpu.dot_dimension_numbers<[2], [1], [1], [2], [0, 0, 0, 1, 1, 2], [0], [0]>} : vector<2x8x8xf32>, vector<2x8x8xf32>, vector<2x8x8xf32> -> vector<2x8x8xf32>
    "tpu.trace_stop"() : () -> ()
    %726 = vector.extract_strided_slice %668 {offsets = [0, 0, 24], sizes = [2, 8, 8], strides = [1, 1, 1]} : vector<2x8x96xf32> to vector<2x8x8xf32>
    %727 = vector.extract_strided_slice %668 {offsets = [0, 0, 56], sizes = [2, 8, 8], strides = [1, 1, 1]} : vector<2x8x96xf32> to vector<2x8x8xf32>
    %728 = vector.extract_strided_slice %668 {offsets = [0, 0, 88], sizes = [2, 8, 8], strides = [1, 1, 1]} : vector<2x8x96xf32> to vector<2x8x8xf32>
    "tpu.trace_start"() <{level = 10 : i32, message = "bqd,bkd->bqk"}> : () -> ()
    %cst_216 = arith.constant dense<0.000000e+00> : vector<2x8x8xf32>
    %729 = tpu.matmul %726, %727, %cst_216 {dimension_numbers = #tpu.dot_dimension_numbers<[2], [2], [1], [1], [0, 0, 0, 1, 1, 1], [0], [0]>} : vector<2x8x8xf32>, vector<2x8x8xf32>, vector<2x8x8xf32> -> vector<2x8x8xf32>
    "tpu.trace_stop"() : () -> ()
    %cst_217 = arith.constant 0.353553385 : f32
    %730 = vector.broadcast %cst_217 : f32 to vector<2x8x8xf32>
    %731 = arith.mulf %729, %730 : vector<2x8x8xf32>
    %732 = vector.broadcast %463 : vector<1x1x8xf32> to vector<2x8x8xf32>
    %733 = arith.addf %731, %732 : vector<2x8x8xf32>
    %cst_218 = arith.constant dense<0xFF800000> : vector<2x8xf32>
    %734 = vector.multi_reduction <maximumf>, %733, %cst_218 [2] : vector<2x8x8xf32> to vector<2x8xf32>
    %735 = vector.shape_cast %734 : vector<2x8xf32> to vector<2x8x1xf32>
    %736 = vector.broadcast %735 : vector<2x8x1xf32> to vector<2x8x8xf32>
    %737 = arith.subf %733, %736 : vector<2x8x8xf32>
    %738 = math.exp %737 : vector<2x8x8xf32>
    %cst_219 = arith.constant dense<0.000000e+00> : vector<2x8xf32>
    %739 = vector.multi_reduction <add>, %738, %cst_219 [2] : vector<2x8x8xf32> to vector<2x8xf32>
    %740 = vector.shape_cast %739 : vector<2x8xf32> to vector<2x8x1xf32>
    %741 = tpu.reciprocal %740 {approx = true} : vector<2x8x1xf32> -> vector<2x8x1xf32>
    %742 = vector.broadcast %741 : vector<2x8x1xf32> to vector<2x8x8xf32>
    %743 = arith.mulf %738, %742 : vector<2x8x8xf32>
    "tpu.trace_start"() <{level = 10 : i32, message = "bqk,bkd->bqd"}> : () -> ()
    %cst_220 = arith.constant dense<0.000000e+00> : vector<2x8x8xf32>
    %744 = tpu.matmul %743, %728, %cst_220 {dimension_numbers = #tpu.dot_dimension_numbers<[2], [1], [1], [2], [0, 0, 0, 1, 1, 2], [0], [0]>} : vector<2x8x8xf32>, vector<2x8x8xf32>, vector<2x8x8xf32> -> vector<2x8x8xf32>
    "tpu.trace_stop"() : () -> ()
    %745 = tpu.concatenate %687, %706, %725, %744 in 2 : vector<2x8x8xf32>, vector<2x8x8xf32>, vector<2x8x8xf32>, vector<2x8x8xf32> -> vector<2x8x32xf32>
    %746 = vector.shape_cast %745 : vector<2x8x32xf32> to vector<16x32xf32>
    %cst_221 = arith.constant dense<0.000000e+00> : vector<16x32xf32>
    %747 = tpu.matmul %746, %39, %cst_221 {dimension_numbers = #tpu.dot_dimension_numbers<[1], [0], [0], [1], [0, 0, 1, 1], [], []>} : vector<16x32xf32>, vector<32x32xf32>, vector<16x32xf32> -> vector<16x32xf32>
    %748 = vector.broadcast %31 : vector<1x32xf32> to vector<16x32xf32>
    %749 = arith.addf %747, %748 : vector<16x32xf32>
    %750 = arith.addf %664, %749 : vector<16x32xf32>
    %cst_222 = arith.constant dense<0.000000e+00> : vector<16xf32>
    %751 = vector.multi_reduction <add>, %750, %cst_222 [1] : vector<16x32xf32> to vector<16xf32>
    %752 = vector.shape_cast %751 : vector<16xf32> to vector<16x1xf32>
    %cst_223 = arith.constant 3.200000e+01 : f32
    %753 = vector.broadcast %cst_223 : f32 to vector<16x1xf32>
    %754 = arith.divf %752, %753 : vector<16x1xf32>
    %755 = vector.broadcast %754 : vector<16x1xf32> to vector<16x32xf32>
    %756 = arith.subf %750, %755 : vector<16x32xf32>
    %757 = arith.mulf %756, %756 : vector<16x32xf32>
    %cst_224 = arith.constant dense<0.000000e+00> : vector<16xf32>
    %758 = vector.multi_reduction <add>, %757, %cst_224 [1] : vector<16x32xf32> to vector<16xf32>
    %759 = vector.shape_cast %758 : vector<16xf32> to vector<16x1xf32>
    %cst_225 = arith.constant 3.200000e+01 : f32
    %760 = vector.broadcast %cst_225 : f32 to vector<16x1xf32>
    %761 = arith.divf %759, %760 : vector<16x1xf32>
    %cst_226 = arith.constant 9.99999974E-6 : f32
    %762 = vector.broadcast %cst_226 : f32 to vector<16x1xf32>
    %763 = arith.addf %761, %762 : vector<16x1xf32>
    %764 = math.rsqrt %763 : vector<16x1xf32>
    %765 = vector.broadcast %764 : vector<16x1xf32> to vector<16x32xf32>
    %766 = arith.mulf %756, %765 : vector<16x32xf32>
    %767 = vector.broadcast %26 : vector<1x32xf32> to vector<16x32xf32>
    %768 = arith.mulf %766, %767 : vector<16x32xf32>
    %769 = vector.broadcast %27 : vector<1x32xf32> to vector<16x32xf32>
    %770 = arith.addf %768, %769 : vector<16x32xf32>
    %cst_227 = arith.constant dense<0.000000e+00> : vector<16x128xf32>
    %771 = tpu.matmul %770, %41, %cst_227 {dimension_numbers = #tpu.dot_dimension_numbers<[1], [0], [0], [1], [0, 0, 1, 1], [], []>} : vector<16x32xf32>, vector<32x128xf32>, vector<16x128xf32> -> vector<16x128xf32>
    %772 = vector.broadcast %32 : vector<1x128xf32> to vector<16x128xf32>
    %773 = arith.addf %771, %772 : vector<16x128xf32>
    %cst_228 = arith.constant dense<0.000000e+00> : vector<16xf32>
    %774 = vector.multi_reduction <add>, %773, %cst_228 [1] : vector<16x128xf32> to vector<16xf32>
    %775 = vector.shape_cast %774 : vector<16xf32> to vector<16x1xf32>
    %cst_229 = arith.constant 1.280000e+02 : f32
    %776 = vector.broadcast %cst_229 : f32 to vector<16x1xf32>
    %777 = arith.divf %775, %776 : vector<16x1xf32>
    %778 = vector.broadcast %777 : vector<16x1xf32> to vector<16x128xf32>
    %779 = arith.subf %773, %778 : vector<16x128xf32>
    %780 = arith.mulf %779, %779 : vector<16x128xf32>
    %cst_230 = arith.constant dense<0.000000e+00> : vector<16xf32>
    %781 = vector.multi_reduction <add>, %780, %cst_230 [1] : vector<16x128xf32> to vector<16xf32>
    %782 = vector.shape_cast %781 : vector<16xf32> to vector<16x1xf32>
    %cst_231 = arith.constant 1.280000e+02 : f32
    %783 = vector.broadcast %cst_231 : f32 to vector<16x1xf32>
    %784 = arith.divf %782, %783 : vector<16x1xf32>
    %cst_232 = arith.constant 9.99999974E-6 : f32
    %785 = vector.broadcast %cst_232 : f32 to vector<16x1xf32>
    %786 = arith.addf %784, %785 : vector<16x1xf32>
    %787 = math.rsqrt %786 : vector<16x1xf32>
    %788 = vector.broadcast %787 : vector<16x1xf32> to vector<16x128xf32>
    %789 = arith.mulf %779, %788 : vector<16x128xf32>
    %790 = vector.broadcast %33 : vector<1x128xf32> to vector<16x128xf32>
    %791 = arith.mulf %789, %790 : vector<16x128xf32>
    %792 = vector.broadcast %34 : vector<1x128xf32> to vector<16x128xf32>
    %793 = arith.addf %791, %792 : vector<16x128xf32>
    %cst_233 = arith.constant 5.000000e-01 : f32
    %794 = vector.broadcast %cst_233 : f32 to vector<16x128xf32>
    %795 = arith.mulf %794, %793 : vector<16x128xf32>
    %cst_234 = arith.constant 0.707106769 : f32
    %796 = vector.broadcast %cst_234 : f32 to vector<16x128xf32>
    %797 = arith.mulf %793, %796 : vector<16x128xf32>
    %798 = math.erf %797 : vector<16x128xf32>
    %cst_235 = arith.constant 1.000000e+00 : f32
    %799 = vector.broadcast %cst_235 : f32 to vector<16x128xf32>
    %800 = arith.addf %799, %798 : vector<16x128xf32>
    %801 = arith.mulf %795, %800 : vector<16x128xf32>
    %cst_236 = arith.constant dense<0.000000e+00> : vector<16x32xf32>
    %802 = tpu.matmul %801, %43, %cst_236 {dimension_numbers = #tpu.dot_dimension_numbers<[1], [0], [0], [1], [0, 0, 1, 1], [], []>} : vector<16x128xf32>, vector<128x32xf32>, vector<16x32xf32> -> vector<16x32xf32>
    %803 = vector.broadcast %35 : vector<1x32xf32> to vector<16x32xf32>
    %804 = arith.addf %802, %803 : vector<16x32xf32>
    %805 = arith.addf %770, %804 : vector<16x32xf32>
    %cst_237 = arith.constant dense<0.000000e+00> : vector<16xf32>
    %806 = vector.multi_reduction <add>, %805, %cst_237 [1] : vector<16x32xf32> to vector<16xf32>
    %807 = vector.shape_cast %806 : vector<16xf32> to vector<16x1xf32>
    %cst_238 = arith.constant 3.200000e+01 : f32
    %808 = vector.broadcast %cst_238 : f32 to vector<16x1xf32>
    %809 = arith.divf %807, %808 : vector<16x1xf32>
    %810 = vector.broadcast %809 : vector<16x1xf32> to vector<16x32xf32>
    %811 = arith.subf %805, %810 : vector<16x32xf32>
    %812 = arith.mulf %811, %811 : vector<16x32xf32>
    %cst_239 = arith.constant dense<0.000000e+00> : vector<16xf32>
    %813 = vector.multi_reduction <add>, %812, %cst_239 [1] : vector<16x32xf32> to vector<16xf32>
    %814 = vector.shape_cast %813 : vector<16xf32> to vector<16x1xf32>
    %cst_240 = arith.constant 3.200000e+01 : f32
    %815 = vector.broadcast %cst_240 : f32 to vector<16x1xf32>
    %816 = arith.divf %814, %815 : vector<16x1xf32>
    %cst_241 = arith.constant 9.99999974E-6 : f32
    %817 = vector.broadcast %cst_241 : f32 to vector<16x1xf32>
    %818 = arith.addf %816, %817 : vector<16x1xf32>
    %819 = math.rsqrt %818 : vector<16x1xf32>
    %820 = vector.broadcast %819 : vector<16x1xf32> to vector<16x32xf32>
    %821 = arith.mulf %811, %820 : vector<16x32xf32>
    %822 = vector.broadcast %28 : vector<1x32xf32> to vector<16x32xf32>
    %823 = arith.mulf %821, %822 : vector<16x32xf32>
    %824 = vector.broadcast %29 : vector<1x32xf32> to vector<16x32xf32>
    %825 = arith.addf %823, %824 : vector<16x32xf32>
    %826 = vector.shape_cast %825 : vector<16x32xf32> to vector<2x8x32xf32>
    %827 = vector.extract_strided_slice %826 {offsets = [0, 0, 0], sizes = [2, 1, 32], strides = [1, 1, 1]} : vector<2x8x32xf32> to vector<2x1x32xf32>
    %828 = vector.shape_cast %827 : vector<2x1x32xf32> to vector<2x32xf32>
    %cst_242 = arith.constant dense<0.000000e+00> : vector<2xf32>
    %829 = vector.multi_reduction <add>, %828, %cst_242 [1] : vector<2x32xf32> to vector<2xf32>
    %830 = vector.shape_cast %829 : vector<2xf32> to vector<2x1xf32>
    %cst_243 = arith.constant 3.200000e+01 : f32
    %831 = vector.broadcast %cst_243 : f32 to vector<2x1xf32>
    %832 = arith.divf %830, %831 : vector<2x1xf32>
    %833 = vector.broadcast %832 : vector<2x1xf32> to vector<2x32xf32>
    %834 = arith.subf %828, %833 : vector<2x32xf32>
    %835 = arith.mulf %834, %834 : vector<2x32xf32>
    %cst_244 = arith.constant dense<0.000000e+00> : vector<2xf32>
    %836 = vector.multi_reduction <add>, %835, %cst_244 [1] : vector<2x32xf32> to vector<2xf32>
    %837 = vector.shape_cast %836 : vector<2xf32> to vector<2x1xf32>
    %cst_245 = arith.constant 3.200000e+01 : f32
    %838 = vector.broadcast %cst_245 : f32 to vector<2x1xf32>
    %839 = arith.divf %837, %838 : vector<2x1xf32>
    %cst_246 = arith.constant 9.99999974E-6 : f32
    %840 = vector.broadcast %cst_246 : f32 to vector<2x1xf32>
    %841 = arith.addf %839, %840 : vector<2x1xf32>
    %842 = math.rsqrt %841 : vector<2x1xf32>
    %843 = vector.broadcast %842 : vector<2x1xf32> to vector<2x32xf32>
    %844 = arith.mulf %834, %843 : vector<2x32xf32>
    %845 = vector.broadcast %45 : vector<1x32xf32> to vector<2x32xf32>
    %846 = arith.mulf %844, %845 : vector<2x32xf32>
    %847 = vector.broadcast %46 : vector<1x32xf32> to vector<2x32xf32>
    %848 = arith.addf %846, %847 : vector<2x32xf32>
    %849 = tpu.concatenate %447, %848 in 1 : vector<2x32xf32>, vector<2x32xf32> -> vector<2x64xf32>
    %850 = vector.extract_strided_slice %44 {offsets = [2, 0], sizes = [1, 64], strides = [1, 1]} : vector<8x64xf32> to vector<1x64xf32>
    %851 = vector.extract_strided_slice %44 {offsets = [3, 0], sizes = [1, 64], strides = [1, 1]} : vector<8x64xf32> to vector<1x64xf32>
    %cst_247 = arith.constant dense<0.000000e+00> : vector<2xf32>
    %852 = vector.multi_reduction <add>, %849, %cst_247 [1] : vector<2x64xf32> to vector<2xf32>
    %853 = vector.shape_cast %852 : vector<2xf32> to vector<2x1xf32>
    %cst_248 = arith.constant 6.400000e+01 : f32
    %854 = vector.broadcast %cst_248 : f32 to vector<2x1xf32>
    %855 = arith.divf %853, %854 : vector<2x1xf32>
    %856 = vector.broadcast %855 : vector<2x1xf32> to vector<2x64xf32>
    %857 = arith.subf %849, %856 : vector<2x64xf32>
    %858 = arith.mulf %857, %857 : vector<2x64xf32>
    %cst_249 = arith.constant dense<0.000000e+00> : vector<2xf32>
    %859 = vector.multi_reduction <add>, %858, %cst_249 [1] : vector<2x64xf32> to vector<2xf32>
    %860 = vector.shape_cast %859 : vector<2xf32> to vector<2x1xf32>
    %cst_250 = arith.constant 6.400000e+01 : f32
    %861 = vector.broadcast %cst_250 : f32 to vector<2x1xf32>
    %862 = arith.divf %860, %861 : vector<2x1xf32>
    %cst_251 = arith.constant 9.99999974E-6 : f32
    %863 = vector.broadcast %cst_251 : f32 to vector<2x1xf32>
    %864 = arith.addf %862, %863 : vector<2x1xf32>
    %865 = math.rsqrt %864 : vector<2x1xf32>
    %866 = vector.broadcast %865 : vector<2x1xf32> to vector<2x64xf32>
    %867 = arith.mulf %857, %866 : vector<2x64xf32>
    %868 = vector.broadcast %850 : vector<1x64xf32> to vector<2x64xf32>
    %869 = arith.mulf %867, %868 : vector<2x64xf32>
    %870 = vector.broadcast %851 : vector<1x64xf32> to vector<2x64xf32>
    %871 = arith.addf %869, %870 : vector<2x64xf32>
    %c0_252 = arith.constant 0 : index
    %c0_253 = arith.constant 0 : index
    %872 = vector.load %arg13[%c0_252, %c0_253] : memref<64x32xf32, #tpu.memory_space<vmem>>, vector<64x32xf32>
    %cst_254 = arith.constant dense<0.000000e+00> : vector<2x32xf32>
    %873 = tpu.matmul %871, %872, %cst_254 {dimension_numbers = #tpu.dot_dimension_numbers<[1], [0], [0], [1], [0, 0, 1, 1], [], []>} : vector<2x64xf32>, vector<64x32xf32>, vector<2x32xf32> -> vector<2x32xf32>
    %874 = vector.extract_strided_slice %44 {offsets = [4, 0], sizes = [1, 32], strides = [1, 1]} : vector<8x64xf32> to vector<1x32xf32>
    %875 = vector.broadcast %874 : vector<1x32xf32> to vector<2x32xf32>
    %876 = arith.addf %873, %875 : vector<2x32xf32>
    %877 = vector.extract_strided_slice %44 {offsets = [5, 0], sizes = [1, 32], strides = [1, 1]} : vector<8x64xf32> to vector<1x32xf32>
    %878 = vector.extract_strided_slice %44 {offsets = [6, 0], sizes = [1, 32], strides = [1, 1]} : vector<8x64xf32> to vector<1x32xf32>
    %cst_255 = arith.constant dense<0.000000e+00> : vector<2xf32>
    %879 = vector.multi_reduction <add>, %876, %cst_255 [1] : vector<2x32xf32> to vector<2xf32>
    %880 = vector.shape_cast %879 : vector<2xf32> to vector<2x1xf32>
    %cst_256 = arith.constant 3.200000e+01 : f32
    %881 = vector.broadcast %cst_256 : f32 to vector<2x1xf32>
    %882 = arith.divf %880, %881 : vector<2x1xf32>
    %883 = vector.broadcast %882 : vector<2x1xf32> to vector<2x32xf32>
    %884 = arith.subf %876, %883 : vector<2x32xf32>
    %885 = arith.mulf %884, %884 : vector<2x32xf32>
    %cst_257 = arith.constant dense<0.000000e+00> : vector<2xf32>
    %886 = vector.multi_reduction <add>, %885, %cst_257 [1] : vector<2x32xf32> to vector<2xf32>
    %887 = vector.shape_cast %886 : vector<2xf32> to vector<2x1xf32>
    %cst_258 = arith.constant 3.200000e+01 : f32
    %888 = vector.broadcast %cst_258 : f32 to vector<2x1xf32>
    %889 = arith.divf %887, %888 : vector<2x1xf32>
    %cst_259 = arith.constant 9.99999974E-6 : f32
    %890 = vector.broadcast %cst_259 : f32 to vector<2x1xf32>
    %891 = arith.addf %889, %890 : vector<2x1xf32>
    %892 = math.rsqrt %891 : vector<2x1xf32>
    %893 = vector.broadcast %892 : vector<2x1xf32> to vector<2x32xf32>
    %894 = arith.mulf %884, %893 : vector<2x32xf32>
    %895 = vector.broadcast %877 : vector<1x32xf32> to vector<2x32xf32>
    %896 = arith.mulf %894, %895 : vector<2x32xf32>
    %897 = vector.broadcast %878 : vector<1x32xf32> to vector<2x32xf32>
    %898 = arith.addf %896, %897 : vector<2x32xf32>
    %c0_260 = arith.constant 0 : index
    %c0_261 = arith.constant 0 : index
    %899 = vector.load %arg14[%c0_260, %c0_261] : memref<32x7xf32, #tpu.memory_space<vmem>>, vector<32x7xf32>
    %cst_262 = arith.constant dense<0.000000e+00> : vector<2x7xf32>
    %900 = tpu.matmul %898, %899, %cst_262 {dimension_numbers = #tpu.dot_dimension_numbers<[1], [0], [0], [1], [0, 0, 1, 1], [], []>} : vector<2x32xf32>, vector<32x7xf32>, vector<2x7xf32> -> vector<2x7xf32>
    %901 = vector.extract_strided_slice %44 {offsets = [7, 0], sizes = [1, 7], strides = [1, 1]} : vector<8x64xf32> to vector<1x7xf32>
    %902 = vector.broadcast %901 : vector<1x7xf32> to vector<2x7xf32>
    %903 = arith.addf %900, %902 : vector<2x7xf32>
    %c0_263 = arith.constant 0 : index
    %c0_264 = arith.constant 0 : index
    %904 = vector.load %arg15[%c0_263, %c0_264] : memref<2x7xf32, #tpu.memory_space<vmem>>, vector<2x7xf32>
    tpu.vector_store %arg15[%c0_263, %c0_264], %903 {strides = array<i32>} : memref<2x7xf32, #tpu.memory_space<vmem>>, vector<2x7xf32>,
    return
  }
  func.func @transform_0(%arg0: i32) -> (i32, i32, i32) {
    %c0_i32 = arith.constant 0 : i32
    %c0_i32_0 = arith.constant 0 : i32
    %c0_i32_1 = arith.constant 0 : i32
    %c0_i32_2 = arith.constant 0 : i32
    return %c0_i32, %c0_i32_0, %c0_i32_1 : i32, i32, i32
  }
  func.func @transform_1(%arg0: i32) -> (i32, i32, i32) {
    %c0_i32 = arith.constant 0 : i32
    %c0_i32_0 = arith.constant 0 : i32
    %c0_i32_1 = arith.constant 0 : i32
    %c0_i32_2 = arith.constant 0 : i32
    return %c0_i32, %c0_i32_0, %c0_i32_1 : i32, i32, i32
  }
  func.func @transform_2(%arg0: i32) -> (i32, i32) {
    %c0_i32 = arith.constant 0 : i32
    %c0_i32_0 = arith.constant 0 : i32
    %c0_i32_1 = arith.constant 0 : i32
    return %c0_i32, %c0_i32_0 : i32, i32
  }
  func.func @transform_3(%arg0: i32) -> (i32, i32) {
    %c0_i32 = arith.constant 0 : i32
    %c0_i32_0 = arith.constant 0 : i32
    %c0_i32_1 = arith.constant 0 : i32
    return %c0_i32, %c0_i32_0 : i32, i32
  }
  func.func @transform_4(%arg0: i32) -> (i32, i32) {
    %c0_i32 = arith.constant 0 : i32
    %c0_i32_0 = arith.constant 0 : i32
    %c0_i32_1 = arith.constant 0 : i32
    return %c0_i32, %c0_i32_0 : i32, i32
  }
  func.func @transform_5(%arg0: i32) -> (i32, i32) {
    %c0_i32 = arith.constant 0 : i32
    %c0_i32_0 = arith.constant 0 : i32
    %c0_i32_1 = arith.constant 0 : i32
    return %c0_i32, %c0_i32_0 : i32, i32
  }
  func.func @transform_6(%arg0: i32) -> (i32, i32, i32) {
    %c0_i32 = arith.constant 0 : i32
    %c0_i32_0 = arith.constant 0 : i32
    %c0_i32_1 = arith.constant 0 : i32
    %c0_i32_2 = arith.constant 0 : i32
    return %c0_i32, %c0_i32_0, %c0_i32_1 : i32, i32, i32
  }
  func.func @transform_7(%arg0: i32) -> (i32, i32, i32) {
    %c0_i32 = arith.constant 0 : i32
    %c0_i32_0 = arith.constant 0 : i32
    %c0_i32_1 = arith.constant 0 : i32
    %c0_i32_2 = arith.constant 0 : i32
    return %c0_i32, %c0_i32_0, %c0_i32_1 : i32, i32, i32
  }
  func.func @transform_8(%arg0: i32) -> (i32, i32, i32) {
    %c0_i32 = arith.constant 0 : i32
    %c0_i32_0 = arith.constant 0 : i32
    %c0_i32_1 = arith.constant 0 : i32
    %c0_i32_2 = arith.constant 0 : i32
    return %c0_i32, %c0_i32_0, %c0_i32_1 : i32, i32, i32
  }
  func.func @transform_9(%arg0: i32) -> (i32, i32, i32) {
    %c0_i32 = arith.constant 0 : i32
    %c0_i32_0 = arith.constant 0 : i32
    %c0_i32_1 = arith.constant 0 : i32
    %c0_i32_2 = arith.constant 0 : i32
    return %c0_i32, %c0_i32_0, %c0_i32_1 : i32, i32, i32
  }
  func.func @transform_10(%arg0: i32) -> (i32, i32, i32) {
    %c0_i32 = arith.constant 0 : i32
    %c0_i32_0 = arith.constant 0 : i32
    %c0_i32_1 = arith.constant 0 : i32
    %c0_i32_2 = arith.constant 0 : i32
    return %c0_i32, %c0_i32_0, %c0_i32_1 : i32, i32, i32
  }
  func.func @transform_11(%arg0: i32) -> (i32, i32) {
    %c0_i32 = arith.constant 0 : i32
    %c0_i32_0 = arith.constant 0 : i32
    %c0_i32_1 = arith.constant 0 : i32
    return %c0_i32, %c0_i32_0 : i32, i32
  }
  func.func @transform_12(%arg0: i32) -> (i32, i32) {
    %c0_i32 = arith.constant 0 : i32
    %c0_i32_0 = arith.constant 0 : i32
    %c0_i32_1 = arith.constant 0 : i32
    return %c0_i32, %c0_i32_0 : i32, i32
  }
  func.func @transform_13(%arg0: i32) -> (i32, i32) {
    %c0_i32 = arith.constant 0 : i32
    %c0_i32_0 = arith.constant 0 : i32
    %c0_i32_1 = arith.constant 0 : i32
    return %c0_i32, %c0_i32_0 : i32, i32
  }
  func.func @transform_14(%arg0: i32) -> (i32, i32) {
    %c0_i32 = arith.constant 0 : i32
    %c0_i32_0 = arith.constant 0 : i32
    %c0_i32_1 = arith.constant 0 : i32
    return %c0_i32, %c0_i32_0 : i32, i32
  }
}

</mosaic_0001>

<bundles_post_ra>
// kernel: hvt_forward.1
= control target key start
LH: loop header
LB: loop body
LE: loop exit
PB: predicated region body
PF: predicated region fallthrough
CT: control target
= control target key end

     0   :  { %vm129_vm0 = vcmask 392192   ;;  %s15633_s0 = inlined_call_operand.vmem [shape: f32[2,24,48], index: 0, kind: input, shape index: {}]   ;;  %s15634_s1 = inlined_call_operand.vmem [shape: f32[2,8,192], index: 1, kind: input, shape index: {}]   ;;  %s15635_s2 = inlined_call_operand.vmem [shape: f32[24,32], index: 2, kind: input, shape index: {}]   ;;  %s15636_s3 = inlined_call_operand.vmem [shape: f32[8,32], index: 3, kind: input, shape index: {}]   ;;  %s15637_s4 = inlined_call_operand.vmem [shape: f32[48,32], index: 4, kind: input, shape index: {}]   ;;  %s15638_s5 = inlined_call_operand.vmem [shape: f32[192,32], index: 5, kind: input, shape index: {}]   ;;  %s15639_s6 = inlined_call_operand.vmem [shape: f32[2,32,96], index: 6, kind: input, shape index: {}]   ;;  %s15640_s7 = inlined_call_operand.vmem [shape: f32[2,32,32], index: 7, kind: input, shape index: {}]   ;;  %s15641_s8 = inlined_call_operand.vmem [shape: f32[2,32,128], index: 8, kind: input, shape index: {}]   ;;  %s15642_s9 = inlined_call_operand.vmem [shape: f32[2,128,32], index: 9, kind: input, shape index: {}]   ;;  %s15643_s10 = inlined_call_operand.vmem [shape: f32[2,12,128], index: 10, kind: input, shape index: {}]   ;;  %s15644_s11 = inlined_call_operand.vmem [shape: f32[8,64], index: 11, kind: input, shape index: {}]   ;;  %s15645_s12 = inlined_call_operand.vmem [shape: f32[64,32], index: 12, kind: input, shape index: {}]   ;;  %s15646_s13 = inlined_call_operand.vmem [shape: f32[32,7], index: 13, kind: input, shape index: {}]   ;;  %s15647_s14 = inlined_call_operand.hbm [shape: f32[2,7], index: 14, kind: output, shape index: {}]  }
   0x1   :  { %v120_v0 = vld [vmem:[%s15637_s4] sm:$0xff]  ;;  %v121_v1 = vld [vmem:[%s15637_s4 + $0x8] sm:$0xff]  ;;  %v122_v2 = vld [vmem:[%s15637_s4 + $0x10] sm:$0xff] }
   0x2   :  { %v11776_v3 = vpack.c.bf16 %v121_v1, %v120_v0  ;;  %v123_v4 = vld [vmem:[%s15637_s4 + $0x18] sm:$0xff]  ;;  %v124_v6 = vld [vmem:[%s15637_s4 + $0x20] sm:$0xff]  ;;  %v125_v7 = vld [vmem:[%s15637_s4 + $0x28] sm:$0xff] }
   0x3   :  { %v11780_v5 = vpack.c.bf16 %v123_v4, %v122_v2  ;;  %v114_v8 = vld [vmem:[%s15633_s0] sm:$0xff] }
   0x4   :  { %11777 = vmatprep.subr.bf16.mxu0 %v11776_v3  ;;  %10777 = vmatprep.mubr.msk.f32.mxu0 %vm129_vm0, %v114_v8 }
   0x5   :  { %11779 = vmatpush3.bf16.msra.mxu0 %v11776_v3 }
   0x6   :  { %19 = vsyncpa [#allocation3], 0  ;;  %11781 = vmatprep.subr.bf16.mxu0 %v11780_v5  ;;  %v11784_v9 = vpack.c.bf16 %v125_v7, %v124_v6  ;;  %v115_v10 = vld [vmem:[%s15633_s0 + $0x8] sm:$0xff]  ;;  %v116_v11 = vld [vmem:[%s15633_s0 + $0x10] sm:$0xff]  ;;  %vm253_vm1 = vcmask 261120   ;;  %s12803_s17 = smov 96  }
   0x7   :  { %v117_v12 = vld [vmem:[%s15633_s0 + $0x18] sm:$0xff]  ;;  %v118_v13 = vld [vmem:[%s15633_s0 + $0x20] sm:$0xff]  ;;  %v119_v14 = vld [vmem:[%s15633_s0 + $0x28] sm:$0xff]  ;;  %vm12804_vm2 = vmmov 0   ;;  %vm479_vm3 = vcmask 64512   ;;  %vm685_vm6 = vcmask 195584  }
   0x8   :  { %v126_v15 = vld [vmem:[%s15635_s2] sm:$0xff]  ;;  %v127_v17 = vld [vmem:[%s15635_s2 + $0x8] sm:$0xff]  ;;  %v128_v20 = vld [vmem:[%s15635_s2 + $0x10] sm:$0xff]  ;;  %s12807_s18 = smov 64   ;;  %s12808_s19 = smov 88   ;;  %vm2472_vm7 = vcmask 130048  }
   0x9   :  { %11783 = vmatpush3.bf16.msra.mxu0 %v11780_v5  ;;  %v50_v2 = vld [vmem:[%s15639_s6] sm:$0xff]  ;;  %v51_v3 = vld [vmem:[%s15639_s6 + $0x8] sm:$0xff]  ;;  %v52_v5 = vld [vmem:[%s15639_s6 + $0x10] sm:$0xff]  ;;  %s12809_s20 = smov 120   ;;  %s12810_s21 = smov 56   ;;  %vm6036_vm8 = vcmask 523264  }
   0xa   :  { %11785 = vmatprep.subr.bf16.mxu0 %v11784_v9  ;;  %v12990_v4 = vpack.c.bf16 %v51_v3, %v50_v2  ;;  %v53_v6 = vld [vmem:[%s15639_s6 + $0x18] sm:$0xff]  ;;  %vm13112_vm4 = vmpackc.low %vm479_vm3, %vm479_vm3  ;;  %s12811_s22 = smov 80   ;;  %s12812_s23 = smov 112   ;;  %vm5962_vm10 = vcmask 1041409   ;;  %vm5965_vm11 = vcmask 254976   ;;  %vm9797_vm12 = vcmask 517120  }
   0xb   :  { %v12998_v7 = vpack.c.bf16 %v53_v6, %v52_v5  ;;  %v15661_v5 = vmov 0.0   ;;  %s12813_s24 = smov 48   ;;  %s15716_s25 = smov 72   ;;  %vm10011_vm13 = vcmask 50176  }
   0xc   :  { %11789 = vmatprep.subr.bf16.mxu1 %v12990_v4  ;;  %s15650_s0 = smov 104   ;;  %s15648_s2 = smov 40  }
   0xd   :  { %11787 = vmatpush3.bf16.msra.mxu0 %v11784_v9  ;;  %11791 = vmatpush3.bf16.msra.mxu1 %v12990_v4  ;;  %s15656_s26 = smov 8   ;;  %s15654_s27 = smov 16  }
   0xe   :  { %11793 = vmatprep.subr.bf16.mxu1 %v12998_v7  ;;  %s15652_s28 = smov 24   ;;  %s15749_s16 = smov 104  }
  0x10   :  { %10778 = vmatmul.mubr.msk.f32.vlgmr.msra.gmra.mrb[0].mxu0 %vm129_vm0, %v115_v10  ;;  %v249_v10 = vlaneseq }
  0x11   :  { %10780 = vmatprep.mubr.msk.f32.mxu0 %vm129_vm0, %v116_v11  ;;  %11795 = vmatpush3.bf16.msra.mxu1 %v12998_v7 }
  0x14   :  { %10781 = vmatmul.mubr.msk.f32.gmra.mrb[2].mxu0 %vm129_vm0, %v117_v12 }
  0x15   :  { %10783 = vmatprep.mubr.msk.f32.mxu0 %vm129_vm0, %v118_v13 }
  0x18   :  { %10784 = vmatmul.mubr.msk.f32.gmra.mrb[4].mxu0 %vm129_vm0, %v119_v14 }
  0x19   :  { %10824 = vmatprep.mubr.msk.f32.mxu0 %vm12804_vm2, %v15661_v5 }
  0xe3   :  { %v10779_v16 = vpop.f32.mrb[0].mxu0 }
  0xe4   :  { %v214_v18 = vpop.f32.mrb[1].mxu0  ;;  %v244_v21 = vadd.f32 %v10779_v16, %v127_v17  ;;  %v13005_v16 = vshrl.u32 %v249_v10, 7 }
  0xe5   :  { %v243_v19 = vadd.f32 %v214_v18, %v126_v15 }
  0xe6   :  { %v257_v28 = vsel %vm253_vm1, %v244_v21, 0.0 }
  0xe7   :  { %v10782_v22 = vpop.f32.mrb[2].mxu0  ;;  %v254_v23 = vsel %vm253_vm1, %v243_v19, 0.0 }
  0xe8   :  { %255 = vadd.xlane.f32.xlu0 %v254_v23  ;;  %v224_v24 = vpop.f32.mrb[3].mxu0  ;;  %v246_v25 = vadd.f32 %v10782_v22, %v126_v15  ;;  %v13008_v23 = vsub.s32 0, %v13005_v16 }
  0xe9   :  { %v245_v26 = vadd.f32 %v224_v24, %v128_v20 }
  0xea   :  { %v263_v33 = vsel %vm253_vm1, %v246_v25, 0.0 }
  0xeb   :  { %v10785_v27 = vpop.f32.mrb[4].mxu0  ;;  %v260_v29 = vsel %vm253_vm1, %v245_v26, 0.0 }
  0xec   :  { %258 = vadd.xlane.f32.xlu0 %v257_v28  ;;  %261 = vadd.xlane.f32.xlu1 %v260_v29  ;;  %v234_v30 = vpop.f32.mrb[5].mxu0  ;;  %v248_v31 = vadd.f32 %v10785_v27, %v128_v20  ;;  %v13014_v28 = vsub.s32 1, %v13005_v16 }
  0xed   :  { %v247_v32 = vadd.f32 %v234_v30, %v127_v17 }
  0xee   :  { %v269_v35 = vsel %vm253_vm1, %v248_v31, 0.0 }
  0xef   :  { %v266_v34 = vsel %vm253_vm1, %v247_v32, 0.0 }
  0xf0   :  { %264 = vadd.xlane.f32.xlu1 %v263_v33  ;;  %267 = vadd.xlane.f32.xlu0 %v266_v34 }
  0xf4   :  { %270 = vadd.xlane.f32.xlu1 %v269_v35 }
 0x175   :  { %v256_v36 = vpop.xlane.xlu0 %255 }
 0x176   :  { %v273_v37 = vmul.f32 0.03125, %v256_v36 }
 0x178   :  { %v12954_v38 = vsub.f32 %v243_v19, %v273_v37 }
 0x179   :  { %v259_v39 = vpop.xlane.xlu0 %258  ;;  %v262_v40 = vpop.xlane.xlu1 %261 }
 0x17a   :  { %v274_v41 = vmul.f32 0.03125, %v259_v39  ;;  %v275_v42 = vmul.f32 0.03125, %v262_v40  ;;  %v285_v43 = vmul.f32 %v12954_v38, %v12954_v38 }
 0x17c   :  { %v12958_v44 = vsub.f32 %v244_v21, %v274_v41  ;;  %v12960_v45 = vsub.f32 %v245_v26, %v275_v42  ;;  %v291_v46 = vsel %vm253_vm1, %v285_v43, 0.0  ;;  %v48_v26 = vld [vmem:[%s15643_s10] sm:$0xff] }
 0x17d   :  { %v265_v47 = vpop.xlane.xlu1 %264  ;;  %292 = vadd.xlane.f32.xlu0 %v291_v46  ;;  %v268_v48 = vpop.xlane.xlu0 %267  ;;  %v13017_v30 = vrot.slane %v48_v26, %v13008_v23  ;;  %v13021_v34 = vrot.slane %v48_v26, %v13014_v28 }
 0x17e   :  { %v276_v49 = vmul.f32 0.03125, %v265_v47  ;;  %v277_v50 = vmul.f32 0.03125, %v268_v48  ;;  %v286_v51 = vmul.f32 %v12958_v44, %v12958_v44  ;;  %v287_v52 = vmul.f32 %v12960_v45, %v12960_v45 }
 0x180   :  { %v12967_v53 = vsub.f32 %v246_v25, %v276_v49  ;;  %v12969_v54 = vsub.f32 %v247_v32, %v277_v50  ;;  %v294_v55 = vsel %vm253_vm1, %v286_v51, 0.0  ;;  %v297_v56 = vsel %vm253_vm1, %v287_v52, 0.0 }
 0x181   :  { %295 = vadd.xlane.f32.xlu1 %v294_v55  ;;  %v271_v57 = vpop.xlane.xlu1 %270  ;;  %298 = vadd.xlane.f32.xlu0 %v297_v56 }
 0x182   :  { %v278_v58 = vmul.f32 0.03125, %v271_v57  ;;  %v288_v59 = vmul.f32 %v12967_v53, %v12967_v53  ;;  %v289_v60 = vmul.f32 %v12969_v54, %v12969_v54  ;;  %v13065_v57 = vsub.s32 6, %v13005_v16 }
 0x184   :  { %v12977_v61 = vsub.f32 %v248_v31, %v278_v58  ;;  %v300_v62 = vsel %vm253_vm1, %v288_v59, 0.0  ;;  %v303_v63 = vsel %vm253_vm1, %v289_v60, 0.0  ;;  %15718 = vst [vmem:[#allocation5_spill] sm:$0xff] %v13065_v57  ;;  %v15659_v58 = vmov 0.0|0.0  }
 0x185   :  { %301 = vadd.xlane.f32.xlu1 %v300_v62  ;;  %304 = vadd.xlane.f32.xlu0 %v303_v63  ;;  %v13070_v59 = vrot.slane %v48_v26, %v13065_v57 }
 0x186   :  { %v290_v0 = vmul.f32 %v12977_v61, %v12977_v61  ;;  %11796 = vmatprep.subr.bf16.mxu1 %v15659_v58  ;;  %11800 = vmatprep.subr.bf16.mxu0 %v15659_v58 }
 0x188   :  { %v306_v1 = vsel %vm253_vm1, %v290_v0, 0.0 }
 0x189   :  { %307 = vadd.xlane.f32.xlu1 %v306_v1 }
 0x20a   :  { %v293_v8 = vpop.xlane.xlu0 %292 }
 0x20b   :  { %v309_v9 = vmul.f32 0.03125, %v293_v8 }
 0x20d   :  { %v315_v11 = vadd.f32 1e-05, %v309_v9 }
 0x20e   :  { %v296_v12 = vpop.xlane.xlu1 %295  ;;  %v299_v13 = vpop.xlane.xlu0 %298 }
 0x20f   :  { %12358 = vrsqrt.f32 %v315_v11  ;;  %v310_v14 = vmul.f32 0.03125, %v296_v12  ;;  %v311_v15 = vmul.f32 0.03125, %v299_v13 }
 0x211   :  { %v316_v17 = vadd.f32 1e-05, %v310_v14  ;;  %v317_v18 = vadd.f32 1e-05, %v311_v15 }
 0x212   :  { %v302_v19 = vpop.xlane.xlu1 %301  ;;  %v305_v20 = vpop.xlane.xlu0 %304 }
 0x213   :  { %12360 = vrsqrt.f32 %v316_v17  ;;  %v312_v21 = vmul.f32 0.03125, %v302_v19  ;;  %v313_v22 = vmul.f32 0.03125, %v305_v20 }
 0x214   :  { %12362 = vrsqrt.f32 %v317_v18 }
 0x215   :  { %v318_v24 = vadd.f32 1e-05, %v312_v21  ;;  %v319_v25 = vadd.f32 1e-05, %v313_v22 }
 0x216   :  { %v308_v27 = vpop.xlane.xlu1 %307 }
 0x217   :  { %12364 = vrsqrt.f32 %v318_v24  ;;  %v314_v29 = vmul.f32 0.03125, %v308_v27  ;;  %v13151_v27 = vand.u32 127, %v249_v10 }
 0x218   :  { %12366 = vrsqrt.f32 %v319_v25 }
 0x219   :  { %v12359_v31 = vpop.eup %12358  ;;  %v320_v32 = vadd.f32 1e-05, %v314_v29  ;;  %vm251_vm5 = vcmp.lt.s32.totalorder %v13151_v27, 17  ;;  %v15658_v29 = vmov -1e+09   ;;  %vm6120_vm9 = vcmp.lt.s32.totalorder %v13151_v27, 5 }
 0x21a   :  { %v327_v33 = vmul.f32 %v12359_v31, %v12954_v38  ;;  %v13155_v31 = vsel %vm251_vm5, 0.0, %v15658_v29 }
 0x21b   :  { %12368 = vrsqrt.f32 %v320_v32 }
 0x21c   :  { %v337_v35 = vmul.f32 %v13017_v30, %v327_v33 }
 0x21d   :  { %v12361_v36 = vpop.eup %12360 }
 0x21e   :  { %v12363_v37 = vpop.eup %12362  ;;  %v13025_v39 = vadd.f32 %v13021_v34, %v337_v35  ;;  %v328_v40 = vmul.f32 %v12361_v36, %v12958_v44 }
 0x21f   :  { %v329_v41 = vmul.f32 %v12363_v37, %v12960_v45 }
 0x220   :  { %10794 = vmatprep.mubr.msk.f32.mxu1 %vm253_vm1, %v13025_v39  ;;  %v338_v38 = vmul.f32 %v13017_v30, %v328_v40 }
 0x221   :  { %v12365_v42 = vpop.eup %12364  ;;  %v339_v43 = vmul.f32 %v13017_v30, %v329_v41 }
 0x222   :  { %v12367_v46 = vpop.eup %12366  ;;  %v13034_v47 = vadd.f32 %v13021_v34, %v338_v38  ;;  %v330_v48 = vmul.f32 %v12365_v42, %v12967_v53 }
 0x223   :  { %v13038_v49 = vadd.f32 %v13021_v34, %v339_v43  ;;  %v331_v44 = vmul.f32 %v12367_v46, %v12969_v54 }
 0x224   :  { %10795 = vmatmul.mubr.msk.f32.vlgmr.msra.gmra.mrb[0].mxu1 %vm253_vm1, %v13034_v47  ;;  %v340_v45 = vmul.f32 %v13017_v30, %v330_v48 }
 0x225   :  { %v12369_v50 = vpop.eup %12368  ;;  %10797 = vmatprep.mubr.msk.f32.mxu1 %vm253_vm1, %v13038_v49  ;;  %v341_v51 = vmul.f32 %v13017_v30, %v331_v44 }
 0x226   :  { %v13048_v52 = vadd.f32 %v13021_v34, %v340_v45  ;;  %v332_v53 = vmul.f32 %v12369_v50, %v12977_v61 }
 0x227   :  { %v13052_v55 = vadd.f32 %v13021_v34, %v341_v51 }
 0x228   :  { %10798 = vmatmul.mubr.msk.f32.gmra.mrb[2].mxu1 %vm253_vm1, %v13048_v52  ;;  %v342_v54 = vmul.f32 %v13017_v30, %v332_v53 }
 0x229   :  { %10800 = vmatprep.mubr.msk.f32.mxu1 %vm253_vm1, %v13052_v55 }
 0x22a   :  { %v13060_v56 = vadd.f32 %v13021_v34, %v342_v54 }
 0x22c   :  { %10801 = vmatmul.mubr.msk.f32.gmra.mrb[4].mxu1 %vm253_vm1, %v13060_v56 }
 0x22d   :  { %10809 = vmatprep.mubr.msk.f32.mxu1 %vm12804_vm2, %v15661_v5 }
 0x2f7   :  { %v10796_v60 = vpop.f32.mrb[0].mxu1 }
 0x2f8   :  { %v13073_v61 = vadd.f32 %v10796_v60, %v13070_v59  ;;  %v441_v62 = vpop.f32.mrb[1].mxu1 }
 0x2f9   :  { %v13076_v63 = vadd.f32 %v441_v62, %v13070_v59 }
 0x2fb   :  { %v10799_v0 = vpop.f32.mrb[2].mxu1  ;;  %v13080_v1 = vpack.i.bf16 %v13073_v61, %v13076_v63 }
 0x2fc   :  { %v451_v2 = vpop.f32.mrb[3].mxu1  ;;  %v13094_v9 = vadd.f32 %v10799_v0, %v13070_v59 }
 0x2fd   :  { %v13083_v3 = vadd.f32 %v451_v2, %v13070_v59  ;;  %12199 = vrot.lane.b32.xlu0 %v13080_v1, %s12803_s17 }
 0x2ff   :  { %v10802_v6 = vpop.f32.mrb[4].mxu1  ;;  %477 = vrot.lane.b32.xlu1 %v13083_v3, %s12803_s17 }
 0x300   :  { %v461_v8 = vpop.f32.mrb[5].mxu1  ;;  %v13106_v13 = vadd.f32 %v10802_v6, %v13070_v59 }
 0x301   :  { %v13097_v11 = vadd.f32 %v461_v8, %v13070_v59 }
 0x303   :  { %v13101_v12 = vpack.i.bf16 %v13097_v11, %v13094_v9 }
 0x305   :  { %12204 = vrot.lane.b32.xlu1 %v13101_v12, %s12803_s17 }
 0x309   :  { %579 = vrot.lane.b32.xlu1 %v13106_v13, %s12803_s17 }
 0x36f   :  { %v12200_v14 = vpop.permute.xlu0 %12199 }
 0x370   :  { %v12202_v15 = vunpack.i.h.bf16 %v12200_v14  ;;  %v12201_v17 = vunpack.i.l.bf16 %v12200_v14 }
 0x371   :  { %v478_v20 = vpop.permute.xlu1 %477 }
 0x372   :  { %v11797_v19 = vpack.c.bf16 %v12202_v15, %v12201_v17 }
 0x374   :  { %11799 = vmatpush3.bf16.xpose.msk.msra.mxu1 %vm13112_vm4, %v11797_v19 }
 0x375   :  { %10807 = vmatprep.subr.mxu1 %v15661_v5 }
 0x377   :  { %v12205_v21 = vpop.permute.xlu1 %12204 }
 0x378   :  { %v12207_v22 = vunpack.i.h.bf16 %v12205_v21  ;;  %v12206_v24 = vunpack.i.l.bf16 %v12205_v21 }
 0x37a   :  { %v11801_v25 = vpack.c.bf16 %v12207_v22, %v12206_v24 }
 0x37b   :  { %v580_v26 = vpop.permute.xlu1 %579 }
 0x37c   :  { %10808 = vmatpush3.xpose.msk.msra.mxu1 %vm479_vm3, %v478_v20  ;;  %11803 = vmatpush3.bf16.xpose.msk.msra.mxu0 %vm13112_vm4, %v11801_v25 }
 0x37d   :  { %10822 = vmatprep.subr.mxu0 %v15661_v5  ;;  %11804 = vmatprep.subr.bf16.mxu1 %v15659_v58 }
 0x37f   :  { %10810 = vmatmul.mubr.msk.f32.vlgmr.msra.gmra.mrb[6].mxu1 %vm479_vm3, %v13076_v63 }
 0x380   :  { %10812 = vmatprep.mubr.msk.f32.mxu1 %vm12804_vm2, %v15661_v5 }
 0x383   :  { %10813 = vmatmul.mubr.msk.f32.gmra.mrb[8].mxu1 %vm479_vm3, %v13073_v61 }
 0x384   :  { %10823 = vmatpush3.xpose.msk.msra.mxu0 %vm479_vm3, %v580_v26  ;;  %10815 = vmatprep.mubr.msk.f32.mxu1 %vm12804_vm2, %v15661_v5 }
 0x385   :  { %11807 = vmatprep.subr.bf16.mxu0 %v15659_v58 }
 0x387   :  { %10816 = vmatmul.mubr.msk.f32.gmra.mrb[10].mxu1 %vm479_vm3, %v13083_v3  ;;  %10825 = vmatmul.mubr.msk.f32.vlgmr.msra.gmra.mrb[6].mxu0 %vm479_vm3, %v13094_v9 }
 0x388   :  { %10827 = vmatprep.mubr.msk.f32.mxu0 %vm12804_vm2, %v15661_v5  ;;  %10839 = vmatprep.mubr.msk.f32.mxu1 %vm12804_vm2, %v15661_v5 }
 0x38b   :  { %10828 = vmatmul.mubr.msk.f32.gmra.mrb[8].mxu0 %vm479_vm3, %v13097_v11 }
 0x38c   :  { %10830 = vmatprep.mubr.msk.f32.mxu0 %vm12804_vm2, %v15661_v5 }
 0x38f   :  { %10831 = vmatmul.mubr.msk.f32.gmra.mrb[10].mxu0 %vm479_vm3, %v13106_v13 }
 0x390   :  { %10854 = vmatprep.mubr.msk.f32.mxu0 %vm12804_vm2, %v15661_v5 }
 0x452   :  { %v558_v32 = vpop.f32.mrb[6].mxu1 }
 0x453   :  { %v673_v33 = vmul.f32 0.35355338, %v558_v32  ;;  %v10811_v35 = vpop.f32.mrb[7].mxu1 }
 0x455   :  { %v679_v36 = vadd.f32 %v673_v33, %v13155_v31 }
 0x456   :  { %v563_v37 = vpop.f32.mrb[8].mxu1 }
 0x457   :  { %v674_v40 = vmul.f32 0.35355338, %v563_v37  ;;  %v10814_v41 = vpop.f32.mrb[9].mxu1  ;;  %v686_v38 = vsel %vm685_vm6, %v679_v36, -inf }
 0x458   :  { %687 = vmax.xlane.f32.xlu0 %v686_v38 }
 0x459   :  { %v680_v10 = vadd.f32 %v674_v40, %v13155_v31 }
 0x45a   :  { %v568_v42 = vpop.f32.mrb[10].mxu1  ;;  %v659_v43 = vpop.f32.mrb[6].mxu0 }
 0x45b   :  { %v675_v46 = vmul.f32 0.35355338, %v568_v42  ;;  %v676_v48 = vmul.f32 0.35355338, %v659_v43  ;;  %v10817_v44 = vpop.f32.mrb[11].mxu1  ;;  %v10826_v45 = vpop.f32.mrb[7].mxu0 }
 0x45c   :  { %v689_v50 = vsel %vm685_vm6, %v680_v10, -inf }
 0x45d   :  { %690 = vmax.xlane.f32.xlu1 %v689_v50  ;;  %v681_v51 = vadd.f32 %v675_v46, %v13155_v31  ;;  %v682_v0 = vadd.f32 %v676_v48, %v13155_v31 }
 0x45e   :  { %v664_v53 = vpop.f32.mrb[8].mxu0 }
 0x45f   :  { %v677_v54 = vmul.f32 0.35355338, %v664_v53  ;;  %v10829_v60 = vpop.f32.mrb[9].mxu0  ;;  %v692_v62 = vsel %vm685_vm6, %v681_v51, -inf  ;;  %v695_v14 = vsel %vm685_vm6, %v682_v0, -inf }
 0x460   :  { %693 = vmax.xlane.f32.xlu0 %v692_v62 }
 0x461   :  { %v683_v15 = vadd.f32 %v677_v54, %v13155_v31 }
 0x462   :  { %v669_v2 = vpop.f32.mrb[10].mxu0 }
 0x463   :  { %v678_v6 = vmul.f32 0.35355338, %v669_v2  ;;  %v10832_v8 = vpop.f32.mrb[11].mxu0  ;;  %v698_v20 = vsel %vm685_vm6, %v683_v15, -inf }
 0x464   :  { %696 = vmax.xlane.f32.xlu0 %v695_v14 }
 0x465   :  { %v684_v17 = vadd.f32 %v678_v6, %v13155_v31 }
 0x467   :  { %v701_v19 = vsel %vm685_vm6, %v684_v17, -inf }
 0x468   :  { %702 = vmax.xlane.f32.xlu1 %v701_v19  ;;  %699 = vmax.xlane.f32.xlu0 %v698_v20 }
 0x47e   :  { %12209 = vrot.lane.b32.xlu0 %v13080_v1, %s12807_s18 }
 0x4e5   :  { %v688_v21 = vpop.xlane.xlu0 %687 }
 0x4e6   :  { %v704_v22 = vsub.f32 %v679_v36, %v688_v21 }
 0x4e8   :  { %v710_v24 = vmul.f32 1.442695, %v704_v22 }
 0x4ea   :  { %12370 = vpow2.f32 %v710_v24  ;;  %v691_v25 = vpop.xlane.xlu1 %690 }
 0x4eb   :  { %v705_v26 = vsub.f32 %v680_v10, %v691_v25 }
 0x4ed   :  { %v712_v32 = vmul.f32 1.442695, %v705_v26  ;;  %v694_v33 = vpop.xlane.xlu0 %693 }
 0x4ee   :  { %v706_v60 = vsub.f32 %v681_v51, %v694_v33 }
 0x4ef   :  { %12372 = vpow2.f32 %v712_v32 }
 0x4f0   :  { %v714_v2 = vmul.f32 1.442695, %v706_v60 }
 0x4f1   :  { %v697_v35 = vpop.xlane.xlu0 %696 }
 0x4f2   :  { %v707_v48 = vsub.f32 %v682_v0, %v697_v35 }
 0x4f4   :  { %v13171_v37 = vpop.eup %12370  ;;  %v716_v44 = vmul.f32 1.442695, %v707_v48 }
 0x4f5   :  { %v700_v40 = vpop.xlane.xlu0 %699  ;;  %v722_v41 = vsel %vm685_vm6, %v13171_v37, 0.0  ;;  %v703_v50 = vpop.xlane.xlu1 %702 }
 0x4f6   :  { %723 = vadd.xlane.f32.xlu0 %v722_v41  ;;  %v708_v45 = vsub.f32 %v683_v15, %v700_v40  ;;  %12374 = vpow2.f32 %v716_v44  ;;  %v709_v53 = vsub.f32 %v684_v17, %v703_v50 }
 0x4f8   :  { %v718_v54 = vmul.f32 1.442695, %v708_v45  ;;  %v720_v62 = vmul.f32 1.442695, %v709_v53 }
 0x4f9   :  { %v13175_v38 = vpop.eup %12372  ;;  %v12210_v42 = vpop.permute.xlu0 %12209 }
 0x4fa   :  { %v12212_v43 = vunpack.i.h.bf16 %v12210_v42  ;;  %v12211_v36 = vunpack.i.l.bf16 %v12210_v42  ;;  %v725_v46 = vsel %vm685_vm6, %v13175_v38, 0.0  ;;  %12376 = vpow2.f32 %v718_v54 }
 0x4fb   :  { %726 = vadd.xlane.f32.xlu1 %v725_v46  ;;  %12378 = vpow2.f32 %v720_v62 }
 0x4fc   :  { %v11805_v10 = vpack.c.bf16 %v12212_v43, %v12211_v36  ;;  %12380 = vpow2.f32 %v714_v2 }
 0x4fe   :  { %11806 = vmatpush3.bf16.msra.mxu1 %v11805_v10 }
 0x4ff   :  { %10837 = vmatprep.subr.mxu1 %v15661_v5 }
 0x500   :  { %v12375_v6 = vpop.eup %12374 }
 0x501   :  { %v731_v8 = vsel %vm685_vm6, %v12375_v6, 0.0 }
 0x504   :  { %v13193_v0 = vpop.eup %12376 }
 0x505   :  { %v734_v14 = vsel %vm685_vm6, %v13193_v0, 0.0  ;;  %v13197_v15 = vpop.eup %12378 }
 0x506   :  { %v13199_v17 = vpop.eup %12380  ;;  %v737_v51 = vsel %vm685_vm6, %v13197_v15, 0.0 }
 0x507   :  { %v728_v19 = vsel %vm685_vm6, %v13199_v17, 0.0 }
 0x50c   :  { %756 = vrot.lane.b32.xlu1 %v13083_v3, %s12807_s18  ;;  %12214 = vrot.lane.b32.xlu0 %v13080_v1, %s12808_s19 }
 0x510   :  { %12219 = vrot.lane.b32.xlu0 %v13101_v12, %s12807_s18 }
 0x514   :  { %854 = vrot.lane.b32.xlu0 %v13106_v13, %s12807_s18 }
 0x518   :  { %958 = vrot.lane.b32.xlu0 %v13083_v3, %s12808_s19 }
 0x51c   :  { %948 = vrot.lane.b32.xlu0 %v13076_v63, %s12809_s20 }
 0x530   :  { %732 = vadd.xlane.f32.xlu1 %v731_v8 }
 0x534   :  { %735 = vadd.xlane.f32.xlu1 %v734_v14 }
 0x538   :  { %738 = vadd.xlane.f32.xlu1 %v737_v51 }
 0x53b   :  { %729 = vadd.xlane.f32.xlu0 %v728_v19 }
 0x549   :  { %1052 = vrot.lane.b32.xlu1 %v13094_v9, %s12809_s20 }
 0x551   :  { %12224 = vrot.lane.b32.xlu0 %v13101_v12, %s12808_s19 }
 0x555   :  { %950 = vrot.lane.b32.xlu0 %v13073_v61, %s12809_s20 }
 0x559   :  { %952 = vrot.lane.b32.xlu0 %v13083_v3, %s12809_s20 }
 0x55d   :  { %1062 = vrot.lane.b32.xlu0 %v13106_v13, %s12808_s19 }
 0x561   :  { %1054 = vrot.lane.b32.xlu0 %v13097_v11, %s12809_s20 }
 0x565   :  { %1056 = vrot.lane.b32.xlu0 %v13106_v13, %s12809_s20 }
 0x583   :  { %v724_v20 = vpop.xlane.xlu0 %723 }
 0x584   :  { %12382 = vrcp.f32 %v724_v20 }
 0x587   :  { %v12215_v21 = vpop.permute.xlu0 %12214 }
 0x588   :  { %v727_v22 = vpop.xlane.xlu1 %726  ;;  %v12217_v35 = vunpack.i.h.bf16 %v12215_v21  ;;  %v12216_v40 = vunpack.i.l.bf16 %v12215_v21 }
 0x589   :  { %12384 = vrcp.f32 %v727_v22 }
 0x58a   :  { %v11811_v43 = vpack.c.bf16 %v12217_v35, %v12216_v40 }
 0x58b   :  { %v12220_v24 = vpop.permute.xlu0 %12219 }
 0x58c   :  { %v757_v25 = vpop.permute.xlu1 %756  ;;  %v12222_v26 = vunpack.i.h.bf16 %v12220_v24  ;;  %v12221_v32 = vunpack.i.l.bf16 %v12220_v24 }
 0x58d   :  { %10838 = vmatpush3.msra.mxu1 %v757_v25 }
 0x58e   :  { %v12383_v33 = vpop.eup %12382  ;;  %v11808_v41 = vpack.c.bf16 %v12222_v26, %v12221_v32  ;;  %11810 = vmatprep.subr.bf16.mxu1 %v15659_v58 }
 0x58f   :  { %v746_v42 = vmul.f32 %v12383_v33, %v13171_v37  ;;  %v855_v46 = vpop.permute.xlu0 %854 }
 0x590   :  { %11809 = vmatpush3.bf16.msra.mxu0 %v11808_v41 }
 0x591   :  { %10840 = vmatmul.mubr.msk.f32.vlgmr.msra.gmra.mrb[12].mxu1 %vm685_vm6, %v746_v42  ;;  %10852 = vmatprep.subr.mxu0 %v15661_v5 }
 0x592   :  { %10842 = vmatprep.mubr.msk.f32.mxu1 %vm12804_vm2, %v15661_v5 }
 0x593   :  { %v12385_v36 = vpop.eup %12384  ;;  %v959_v37 = vpop.permute.xlu0 %958 }
 0x594   :  { %11813 = vmatpush3.bf16.xpose.msk.msra.mxu1 %vm13112_vm4, %v11811_v43  ;;  %10853 = vmatpush3.msra.mxu0 %v855_v46  ;;  %v747_v10 = vmul.f32 %v12385_v36, %v13175_v38 }
 0x595   :  { %10867 = vmatprep.subr.mxu1 %v15661_v5  ;;  %11814 = vmatprep.subr.bf16.mxu0 %v15659_v58 }
 0x596   :  { %10843 = vmatmul.mubr.msk.f32.gmra.mrb[14].mxu1 %vm685_vm6, %v747_v10 }
 0x597   :  { %10845 = vmatprep.mubr.msk.f32.mxu1 %vm12804_vm2, %v15661_v5  ;;  %v949_v45 = vpop.permute.xlu0 %948 }
 0x59c   :  { %10868 = vmatpush3.xpose.msk.msra.mxu1 %vm479_vm3, %v959_v37 }
 0x59d   :  { %11818 = vmatprep.subr.bf16.mxu1 %v15659_v58 }
 0x5bd   :  { %v733_v48 = vpop.xlane.xlu1 %732 }
 0x5be   :  { %12386 = vrcp.f32 %v733_v48 }
 0x5c1   :  { %v736_v44 = vpop.xlane.xlu1 %735 }
 0x5c2   :  { %12388 = vrcp.f32 %v736_v44 }
 0x5c5   :  { %v739_v38 = vpop.xlane.xlu1 %738 }
 0x5c6   :  { %12390 = vrcp.f32 %v739_v38 }
 0x5c8   :  { %v12387_v50 = vpop.eup %12386  ;;  %v730_v53 = vpop.xlane.xlu0 %729 }
 0x5c9   :  { %v749_v54 = vmul.f32 %v12387_v50, %v12375_v6  ;;  %12392 = vrcp.f32 %v730_v53 }
 0x5cb   :  { %10855 = vmatmul.mubr.msk.f32.vlgmr.msra.gmra.mrb[12].mxu0 %vm685_vm6, %v749_v54 }
 0x5cc   :  { %v12389_v60 = vpop.eup %12388  ;;  %v12225_v62 = vpop.permute.xlu0 %12224  ;;  %10857 = vmatprep.mubr.msk.f32.mxu0 %vm12804_vm2, %v15661_v5 }
 0x5cd   :  { %v12227_v2 = vunpack.i.h.bf16 %v12225_v62  ;;  %v12226_v8 = vunpack.i.l.bf16 %v12225_v62  ;;  %v750_v14 = vmul.f32 %v12389_v60, %v13193_v0 }
 0x5cf   :  { %v11815_v51 = vpack.c.bf16 %v12227_v2, %v12226_v8  ;;  %10858 = vmatmul.mubr.msk.f32.gmra.mrb[14].mxu0 %vm685_vm6, %v750_v14 }
 0x5d0   :  { %v12391_v19 = vpop.eup %12390  ;;  %v951_v20 = vpop.permute.xlu0 %950  ;;  %10860 = vmatprep.mubr.msk.f32.mxu0 %vm12804_vm2, %v15661_v5 }
 0x5d1   :  { %11817 = vmatpush3.bf16.xpose.msk.msra.mxu0 %vm13112_vm4, %v11815_v51  ;;  %v751_v6 = vmul.f32 %v12391_v19, %v13197_v15  ;;  %v1053_v15 = vpop.permute.xlu1 %1052 }
 0x5d2   :  { %10882 = vmatprep.subr.mxu0 %v15661_v5 }
 0x5d3   :  { %v12393_v21 = vpop.eup %12392  ;;  %10861 = vmatmul.mubr.msk.f32.gmra.mrb[16].mxu0 %vm685_vm6, %v751_v6 }
 0x5d4   :  { %v953_v22 = vpop.permute.xlu0 %952  ;;  %v748_v0 = vmul.f32 %v12393_v21, %v13199_v17  ;;  %10884 = vmatprep.mubr.msk.f32.mxu0 %vm12804_vm2, %v15661_v5 }
 0x5d6   :  { %10846 = vmatmul.mubr.msk.f32.gmra.mrb[16].mxu1 %vm685_vm6, %v748_v0 }
 0x5d7   :  { %10869 = vmatprep.mubr.msk.f32.mxu1 %vm12804_vm2, %v15661_v5 }
 0x5d8   :  { %v1063_v24 = vpop.permute.xlu0 %1062 }
 0x5d9   :  { %10883 = vmatpush3.xpose.msk.msra.mxu0 %vm479_vm3, %v1063_v24 }
 0x5da   :  { %10870 = vmatmul.mubr.msk.f32.vlgmr.msra.gmra.mrb[18].mxu1 %vm479_vm3, %v949_v45  ;;  %11821 = vmatprep.subr.bf16.mxu0 %v15659_v58 }
 0x5db   :  { %10872 = vmatprep.mubr.msk.f32.mxu1 %vm12804_vm2, %v15661_v5 }
 0x5dc   :  { %10885 = vmatmul.mubr.msk.f32.vlgmr.msra.gmra.mrb[18].mxu0 %vm479_vm3, %v1053_v15  ;;  %v1055_v17 = vpop.permute.xlu0 %1054 }
 0x5dd   :  { %10887 = vmatprep.mubr.msk.f32.mxu0 %vm12804_vm2, %v15661_v5 }
 0x5de   :  { %10873 = vmatmul.mubr.msk.f32.gmra.mrb[20].mxu1 %vm479_vm3, %v951_v20 }
 0x5df   :  { %10875 = vmatprep.mubr.msk.f32.mxu1 %vm12804_vm2, %v15661_v5 }
 0x5e0   :  { %10888 = vmatmul.mubr.msk.f32.gmra.mrb[20].mxu0 %vm479_vm3, %v1055_v17  ;;  %v1057_v25 = vpop.permute.xlu0 %1056 }
 0x5e1   :  { %10890 = vmatprep.mubr.msk.f32.mxu0 %vm12804_vm2, %v15661_v5 }
 0x5e2   :  { %10876 = vmatmul.mubr.msk.f32.gmra.mrb[22].mxu1 %vm479_vm3, %v953_v22 }
 0x5e3   :  { %10899 = vmatprep.mubr.msk.f32.mxu1 %vm12804_vm2, %v15661_v5 }
 0x5e4   :  { %10891 = vmatmul.mubr.msk.f32.gmra.mrb[22].mxu0 %vm479_vm3, %v1057_v25 }
 0x5e5   :  { %10914 = vmatprep.mubr.msk.f32.mxu0 %vm12804_vm2, %v15661_v5 }
 0x664   :  { %v13273_v26 = vpop.f32.mrb[12].mxu1 }
 0x665   :  { %v10841_v32 = vpop.f32.mrb[13].mxu1 }
 0x669   :  { %v13275_v33 = vpop.f32.mrb[14].mxu1 }
 0x66a   :  { %v10844_v35 = vpop.f32.mrb[15].mxu1 }
 0x69e   :  { %v13277_v40 = vpop.f32.mrb[12].mxu0 }
 0x69f   :  { %v10856_v41 = vpop.f32.mrb[13].mxu0 }
 0x6a2   :  { %v13279_v42 = vpop.f32.mrb[14].mxu0 }
 0x6a3   :  { %v10859_v43 = vpop.f32.mrb[15].mxu0 }
 0x6a6   :  { %v13281_v36 = vpop.f32.mrb[16].mxu0 }
 0x6a7   :  { %v10862_v46 = vpop.f32.mrb[17].mxu0 }
 0x6a9   :  { %v13283_v10 = vpop.f32.mrb[16].mxu1 }
 0x6aa   :  { %v10847_v37 = vpop.f32.mrb[17].mxu1 }
 0x6ad   :  { %v1038_v48 = vpop.f32.mrb[18].mxu1 }
 0x6ae   :  { %v1156_v44 = vmul.f32 0.35355338, %v1038_v48  ;;  %v10871_v45 = vpop.f32.mrb[19].mxu1 }
 0x6af   :  { %v1142_v38 = vpop.f32.mrb[18].mxu0 }
 0x6b0   :  { %v10886_v50 = vpop.f32.mrb[19].mxu0  ;;  %v1162_v53 = vadd.f32 %v1156_v44, %v13155_v31  ;;  %v1159_v20 = vmul.f32 0.35355338, %v1142_v38 }
 0x6b1   :  { %v1043_v54 = vpop.f32.mrb[20].mxu1 }
 0x6b2   :  { %v1157_v60 = vmul.f32 0.35355338, %v1043_v54  ;;  %v10874_v62 = vpop.f32.mrb[21].mxu1  ;;  %v1168_v2 = vsel %vm685_vm6, %v1162_v53, -inf  ;;  %v1165_v32 = vadd.f32 %v1159_v20, %v13155_v31 }
 0x6b3   :  { %v1147_v8 = vpop.f32.mrb[20].mxu0  ;;  %1169 = vmax.xlane.f32.xlu0 %v1168_v2 }
 0x6b4   :  { %v10889_v14 = vpop.f32.mrb[21].mxu0  ;;  %v1163_v51 = vadd.f32 %v1157_v60, %v13155_v31  ;;  %v1160_v17 = vmul.f32 0.35355338, %v1147_v8  ;;  %v1177_v41 = vsel %vm685_vm6, %v1165_v32, -inf }
 0x6b5   :  { %v1048_v19 = vpop.f32.mrb[22].mxu1 }
 0x6b6   :  { %v1158_v6 = vmul.f32 0.35355338, %v1048_v19  ;;  %v10877_v21 = vpop.f32.mrb[23].mxu1  ;;  %v1171_v22 = vsel %vm685_vm6, %v1163_v51, -inf  ;;  %v1166_v43 = vadd.f32 %v1160_v17, %v13155_v31 }
 0x6b7   :  { %v1152_v0 = vpop.f32.mrb[22].mxu0  ;;  %1172 = vmax.xlane.f32.xlu1 %v1171_v22 }
 0x6b8   :  { %v10892_v24 = vpop.f32.mrb[23].mxu0  ;;  %v1164_v15 = vadd.f32 %v1158_v6, %v13155_v31  ;;  %v1161_v35 = vmul.f32 0.35355338, %v1152_v0  ;;  %v1180_v46 = vsel %vm685_vm6, %v1166_v43, -inf }
 0x6ba   :  { %v1174_v25 = vsel %vm685_vm6, %v1164_v15, -inf  ;;  %v1167_v37 = vadd.f32 %v1161_v35, %v13155_v31 }
 0x6bb   :  { %1175 = vmax.xlane.f32.xlu0 %v1174_v25 }
 0x6bc   :  { %v1183_v48 = vsel %vm685_vm6, %v1167_v37, -inf }
 0x6bf   :  { %1178 = vmax.xlane.f32.xlu0 %v1177_v41 }
 0x6c3   :  { %1181 = vmax.xlane.f32.xlu0 %v1180_v46 }
 0x6c7   :  { %1184 = vmax.xlane.f32.xlu0 %v1183_v48 }
 0x6dd   :  { %1238 = vrot.lane.b32.xlu0 %v13083_v3, %s12810_s21 }
 0x6e1   :  { %12234 = vrot.lane.b32.xlu0 %v13080_v1, %s12811_s22 }
 0x6e5   :  { %12239 = vrot.lane.b32.xlu0 %v13101_v12, %s12810_s21 }
 0x6e9   :  { %1336 = vrot.lane.b32.xlu0 %v13106_v13, %s12810_s21 }
 0x6ed   :  { %1440 = vrot.lane.b32.xlu0 %v13083_v3, %s12811_s22 }
 0x6f1   :  { %1430 = vrot.lane.b32.xlu0 %v13076_v63, %s12812_s23 }
 0x6f5   :  { %12244 = vrot.lane.b32.xlu0 %v13101_v12, %s12811_s22 }
 0x740   :  { %v1170_v44 = vpop.xlane.xlu0 %1169 }
 0x741   :  { %v1186_v45 = vsub.f32 %v1162_v53, %v1170_v44 }
 0x743   :  { %v1192_v38 = vmul.f32 1.442695, %v1186_v45 }
 0x744   :  { %v1173_v50 = vpop.xlane.xlu1 %1172 }
 0x745   :  { %12394 = vpow2.f32 %v1192_v38  ;;  %v1187_v54 = vsub.f32 %v1163_v51, %v1173_v50 }
 0x747   :  { %v1194_v60 = vmul.f32 1.442695, %v1187_v54 }
 0x748   :  { %v1176_v62 = vpop.xlane.xlu0 %1175 }
 0x749   :  { %12396 = vpow2.f32 %v1194_v60  ;;  %v1188_v35 = vsub.f32 %v1164_v15, %v1176_v62 }
 0x74b   :  { %v1196_v46 = vmul.f32 1.442695, %v1188_v35 }
 0x74c   :  { %v1179_v2 = vpop.xlane.xlu0 %1178 }
 0x74d   :  { %v1189_v41 = vsub.f32 %v1165_v32, %v1179_v2  ;;  %12398 = vpow2.f32 %v1196_v46 }
 0x74f   :  { %v13311_v8 = vpop.eup %12394  ;;  %v1198_v44 = vmul.f32 1.442695, %v1189_v41 }
 0x750   :  { %v1182_v14 = vpop.xlane.xlu0 %1181  ;;  %v1204_v19 = vsel %vm685_vm6, %v13311_v8, 0.0 }
 0x751   :  { %1205 = vadd.xlane.f32.xlu1 %v1204_v19  ;;  %v1190_v45 = vsub.f32 %v1166_v43, %v1182_v14  ;;  %12400 = vpow2.f32 %v1198_v44 }
 0x753   :  { %v13315_v20 = vpop.eup %12396  ;;  %v1200_v50 = vmul.f32 1.442695, %v1190_v45 }
 0x754   :  { %v1185_v6 = vpop.xlane.xlu0 %1184  ;;  %v1207_v53 = vsel %vm685_vm6, %v13315_v20, 0.0 }
 0x755   :  { %1208 = vadd.xlane.f32.xlu0 %v1207_v53  ;;  %v1191_v48 = vsub.f32 %v1167_v37, %v1185_v6 }
 0x757   :  { %v1202_v38 = vmul.f32 1.442695, %v1191_v48  ;;  %v12399_v54 = vpop.eup %12398 }
 0x758   :  { %v1239_v21 = vpop.permute.xlu0 %1238  ;;  %v1210_v19 = vsel %vm685_vm6, %v12399_v54, 0.0 }
 0x759   :  { %12402 = vpow2.f32 %v1202_v38 }
 0x75a   :  { %12404 = vpow2.f32 %v1200_v50 }
 0x75b   :  { %v12401_v60 = vpop.eup %12400 }
 0x75c   :  { %v13319_v51 = vpop.permute.xlu0 %12234  ;;  %v1213_v15 = vsel %vm685_vm6, %v12401_v60, 0.0 }
 0x75d   :  { %v12237_v46 = vunpack.i.h.bf16 %v13319_v51  ;;  %v12236_v48 = vunpack.i.l.bf16 %v13319_v51 }
 0x75f   :  { %v11825_v38 = vpack.c.bf16 %v12237_v46, %v12236_v48 }
 0x760   :  { %v12240_v22 = vpop.permute.xlu0 %12239 }
 0x761   :  { %v12242_v0 = vunpack.i.h.bf16 %v12240_v22  ;;  %v12241_v24 = vunpack.i.l.bf16 %v12240_v22 }
 0x762   :  { %12229 = vrot.lane.b32.xlu1 %v13080_v1, %s12810_s21 }
 0x763   :  { %v11822_v17 = vpack.c.bf16 %v12242_v0, %v12241_v24  ;;  %v13328_v53 = vpop.eup %12402 }
 0x764   :  { %v1337_v25 = vpop.permute.xlu0 %1336  ;;  %v1219_v32 = vsel %vm685_vm6, %v13328_v53, 0.0  ;;  %v13333_v37 = vpop.eup %12404 }
 0x765   :  { %11823 = vmatpush3.bf16.msra.mxu0 %v11822_v17  ;;  %v1216_v43 = vsel %vm685_vm6, %v13333_v37, 0.0 }
 0x766   :  { %10912 = vmatprep.subr.mxu0 %v15661_v5 }
 0x768   :  { %v1441_v62 = vpop.permute.xlu0 %1440 }
 0x769   :  { %10913 = vmatpush3.msra.mxu0 %v1337_v25 }
 0x76a   :  { %11828 = vmatprep.subr.bf16.mxu0 %v15659_v58 }
 0x76b   :  { %1432 = vrot.lane.b32.xlu0 %v13073_v61, %s12812_s23 }
 0x76c   :  { %v1431_v2 = vpop.permute.xlu0 %1430 }
 0x770   :  { %v12245_v14 = vpop.permute.xlu0 %12244 }
 0x786   :  { %1211 = vadd.xlane.f32.xlu1 %v1210_v19 }
 0x78a   :  { %1214 = vadd.xlane.f32.xlu0 %v1213_v15  ;;  %1220 = vadd.xlane.f32.xlu1 %v1219_v32  ;;  %v12247_v32 = vunpack.i.h.bf16 %v12245_v14 }
 0x78e   :  { %1217 = vadd.xlane.f32.xlu0 %v1216_v43  ;;  %v12246_v43 = vunpack.i.l.bf16 %v12245_v14 }
 0x79b   :  { %1434 = vrot.lane.b32.xlu1 %v13083_v3, %s12812_s23 }
 0x7a4   :  { %1544 = vrot.lane.b32.xlu0 %v13106_v13, %s12811_s22 }
 0x7a8   :  { %1534 = vrot.lane.b32.xlu0 %v13094_v9, %s12812_s23 }
 0x7ac   :  { %1536 = vrot.lane.b32.xlu0 %v13097_v11, %s12812_s23 }
 0x7b0   :  { %1538 = vrot.lane.b32.xlu0 %v13106_v13, %s12812_s23 }
 0x7de   :  { %v1206_v6 = vpop.xlane.xlu1 %1205 }
 0x7df   :  { %12406 = vrcp.f32 %v1206_v6 }
 0x7e2   :  { %v12230_v22 = vpop.permute.xlu1 %12229  ;;  %v1209_v0 = vpop.xlane.xlu0 %1208 }
 0x7e3   :  { %v12232_v24 = vunpack.i.h.bf16 %v12230_v22  ;;  %v12231_v17 = vunpack.i.l.bf16 %v12230_v22  ;;  %12408 = vrcp.f32 %v1209_v0  ;;  %v11829_v22 = vpack.c.bf16 %v12247_v32, %v12246_v43 }
 0x7e5   :  { %v11819_v25 = vpack.c.bf16 %v12232_v24, %v12231_v17 }
 0x7e7   :  { %11820 = vmatpush3.bf16.msra.mxu1 %v11819_v25 }
 0x7e8   :  { %10897 = vmatprep.subr.mxu1 %v15661_v5 }
 0x7e9   :  { %v12407_v35 = vpop.eup %12406 }
 0x7ea   :  { %v1228_v41 = vmul.f32 %v12407_v35, %v13311_v8  ;;  %v1433_v8 = vpop.permute.xlu0 %1432 }
 0x7eb   :  { %10898 = vmatpush3.msra.mxu1 %v1239_v21 }
 0x7ec   :  { %10900 = vmatmul.mubr.msk.f32.vlgmr.msra.gmra.mrb[24].mxu1 %vm685_vm6, %v1228_v41  ;;  %11824 = vmatprep.subr.bf16.mxu1 %v15659_v58 }
 0x7ed   :  { %v12409_v44 = vpop.eup %12408  ;;  %10902 = vmatprep.mubr.msk.f32.mxu1 %vm12804_vm2, %v15661_v5 }
 0x7ee   :  { %v1229_v45 = vmul.f32 %v12409_v44, %v13315_v20 }
 0x7f0   :  { %10903 = vmatmul.mubr.msk.f32.gmra.mrb[26].mxu1 %vm685_vm6, %v1229_v45 }
 0x7f1   :  { %10905 = vmatprep.mubr.msk.f32.mxu1 %vm12804_vm2, %v15661_v5 }
 0x7f2   :  { %11827 = vmatpush3.bf16.xpose.msk.msra.mxu1 %vm13112_vm4, %v11825_v38 }
 0x7f3   :  { %10927 = vmatprep.subr.mxu1 %v15661_v5 }
 0x7fa   :  { %10928 = vmatpush3.xpose.msk.msra.mxu1 %vm479_vm3, %v1441_v62 }
 0x7fb   :  { %11832 = vmatprep.subr.bf16.mxu1 %v15659_v58 }
 0x813   :  { %v1212_v21 = vpop.xlane.xlu1 %1211 }
 0x814   :  { %12410 = vrcp.f32 %v1212_v21 }
 0x817   :  { %v1215_v51 = vpop.xlane.xlu0 %1214  ;;  %v1221_v50 = vpop.xlane.xlu1 %1220 }
 0x818   :  { %12412 = vrcp.f32 %v1215_v51 }
 0x81b   :  { %v1218_v20 = vpop.xlane.xlu0 %1217 }
 0x81c   :  { %12414 = vrcp.f32 %v1218_v20 }
 0x81d   :  { %12416 = vrcp.f32 %v1221_v50 }
 0x81e   :  { %v12411_v19 = vpop.eup %12410 }
 0x81f   :  { %v1230_v15 = vmul.f32 %v12411_v19, %v12399_v54  ;;  %v1545_v24 = vpop.permute.xlu0 %1544 }
 0x821   :  { %10906 = vmatmul.mubr.msk.f32.gmra.mrb[28].mxu1 %vm685_vm6, %v1230_v15 }
 0x822   :  { %10929 = vmatprep.mubr.msk.f32.mxu1 %vm12804_vm2, %v15661_v5  ;;  %v12413_v62 = vpop.eup %12412 }
 0x823   :  { %v1231_v6 = vmul.f32 %v12413_v62, %v12401_v60  ;;  %v1535_v17 = vpop.permute.xlu0 %1534 }
 0x825   :  { %10930 = vmatmul.mubr.msk.f32.vlgmr.msra.gmra.mrb[30].mxu1 %vm479_vm3, %v1431_v2  ;;  %10915 = vmatmul.mubr.msk.f32.vlgmr.msra.gmra.mrb[24].mxu0 %vm685_vm6, %v1231_v6  ;;  %v1435_v2 = vpop.permute.xlu1 %1434 }
 0x826   :  { %v12415_v0 = vpop.eup %12414  ;;  %10932 = vmatprep.mubr.msk.f32.mxu1 %vm12804_vm2, %v15661_v5  ;;  %11831 = vmatpush3.bf16.xpose.msk.msra.mxu0 %vm13112_vm4, %v11829_v22 }
 0x827   :  { %10917 = vmatprep.mubr.msk.f32.mxu0 %vm12804_vm2, %v15661_v5  ;;  %v1232_v54 = vmul.f32 %v12415_v0, %v13333_v37  ;;  %10942 = vmatprep.subr.mxu0 %v15661_v5  ;;  %v12417_v60 = vpop.eup %12416  ;;  %v1537_v37 = vpop.permute.xlu0 %1536 }
 0x828   :  { %v1233_v14 = vmul.f32 %v12417_v60, %v13328_v53 }
 0x829   :  { %10933 = vmatmul.mubr.msk.f32.gmra.mrb[32].mxu1 %vm479_vm3, %v1433_v8  ;;  %10918 = vmatmul.mubr.msk.f32.gmra.mrb[26].mxu0 %vm685_vm6, %v1232_v54 }
 0x82a   :  { %10935 = vmatprep.mubr.msk.f32.mxu1 %vm12804_vm2, %v15661_v5  ;;  %10920 = vmatprep.mubr.msk.f32.mxu0 %vm12804_vm2, %v15661_v5 }
 0x82b   :  { %v1539_v53 = vpop.permute.xlu0 %1538 }
 0x82d   :  { %10936 = vmatmul.mubr.msk.f32.gmra.mrb[34].mxu1 %vm479_vm3, %v1435_v2  ;;  %10921 = vmatmul.mubr.msk.f32.gmra.mrb[28].mxu0 %vm685_vm6, %v1233_v14 }
 0x82e   :  { %10959 = vmatprep.mubr.msk.f32.mxu1 %vm12804_vm2, %v15661_v5  ;;  %10943 = vmatpush3.xpose.msk.msra.mxu0 %vm479_vm3, %v1545_v24 }
 0x82f   :  { %10944 = vmatprep.mubr.msk.f32.mxu0 %vm12804_vm2, %v15661_v5  ;;  %11835 = vmatprep.subr.bf16.mxu0 %v15659_v58 }
 0x831   :  { %10945 = vmatmul.mubr.msk.f32.vlgmr.msra.gmra.mrb[30].mxu0 %vm479_vm3, %v1535_v17 }
 0x832   :  { %10947 = vmatprep.mubr.msk.f32.mxu0 %vm12804_vm2, %v15661_v5 }
 0x835   :  { %10948 = vmatmul.mubr.msk.f32.gmra.mrb[32].mxu0 %vm479_vm3, %v1537_v37 }
 0x836   :  { %10950 = vmatprep.mubr.msk.f32.mxu0 %vm12804_vm2, %v15661_v5 }
 0x839   :  { %10951 = vmatmul.mubr.msk.f32.gmra.mrb[34].mxu0 %vm479_vm3, %v1539_v53 }
 0x83a   :  { %10974 = vmatprep.mubr.msk.f32.mxu0 %vm12804_vm2, %v15661_v5 }
 0x8bf   :  { %v13401_v25 = vpop.f32.mrb[24].mxu1 }
 0x8c0   :  { %v10901_v35 = vpop.f32.mrb[25].mxu1 }
 0x8c3   :  { %v13403_v41 = vpop.f32.mrb[26].mxu1 }
 0x8c4   :  { %v10904_v46 = vpop.f32.mrb[27].mxu1 }
 0x8f4   :  { %v13405_v48 = vpop.f32.mrb[28].mxu1 }
 0x8f5   :  { %v10907_v44 = vpop.f32.mrb[29].mxu1 }
 0x8f8   :  { %v1520_v45 = vpop.f32.mrb[30].mxu1  ;;  %v13407_v38 = vpop.f32.mrb[24].mxu0 }
 0x8f9   :  { %v1638_v8 = vmul.f32 0.35355338, %v1520_v45  ;;  %v10931_v21 = vpop.f32.mrb[31].mxu1  ;;  %v10916_v51 = vpop.f32.mrb[25].mxu0 }
 0x8fb   :  { %v1644_v20 = vadd.f32 %v1638_v8, %v13155_v31 }
 0x8fc   :  { %v1525_v50 = vpop.f32.mrb[32].mxu1  ;;  %v13410_v19 = vpop.f32.mrb[26].mxu0 }
 0x8fd   :  { %v1639_v15 = vmul.f32 0.35355338, %v1525_v50  ;;  %v10934_v32 = vpop.f32.mrb[33].mxu1  ;;  %v1650_v43 = vsel %vm685_vm6, %v1644_v20, -inf  ;;  %v10919_v62 = vpop.f32.mrb[27].mxu0 }
 0x8fe   :  { %1651 = vmax.xlane.f32.xlu1 %v1650_v43 }
 0x8ff   :  { %v1645_v6 = vadd.f32 %v1639_v15, %v13155_v31 }
 0x900   :  { %v1530_v22 = vpop.f32.mrb[34].mxu1  ;;  %v13414_v0 = vpop.f32.mrb[28].mxu0 }
 0x901   :  { %v1640_v24 = vmul.f32 0.35355338, %v1530_v22  ;;  %v10937_v54 = vpop.f32.mrb[35].mxu1  ;;  %v1653_v60 = vsel %vm685_vm6, %v1645_v6, -inf  ;;  %v10922_v2 = vpop.f32.mrb[29].mxu0 }
 0x902   :  { %1654 = vmax.xlane.f32.xlu0 %v1653_v60 }
 0x903   :  { %v1646_v14 = vadd.f32 %v1640_v24, %v13155_v31 }
 0x904   :  { %v1624_v17 = vpop.f32.mrb[30].mxu0 }
 0x905   :  { %v1656_v37 = vsel %vm685_vm6, %v1646_v14, -inf  ;;  %v1641_v53 = vmul.f32 0.35355338, %v1624_v17  ;;  %v10946_v35 = vpop.f32.mrb[31].mxu0 }
 0x906   :  { %1657 = vmax.xlane.f32.xlu0 %v1656_v37 }
 0x907   :  { %v1647_v46 = vadd.f32 %v1641_v53, %v13155_v31 }
 0x908   :  { %v1629_v44 = vpop.f32.mrb[32].mxu0 }
 0x909   :  { %v1642_v45 = vmul.f32 0.35355338, %v1629_v44  ;;  %v10949_v8 = vpop.f32.mrb[33].mxu0  ;;  %v1659_v21 = vsel %vm685_vm6, %v1647_v46, -inf }
 0x90a   :  { %1660 = vmax.xlane.f32.xlu1 %v1659_v21 }
 0x90b   :  { %v1648_v51 = vadd.f32 %v1642_v45, %v13155_v31 }
 0x90c   :  { %v1634_v50 = vpop.f32.mrb[34].mxu0 }
 0x90d   :  { %v1643_v15 = vmul.f32 0.35355338, %v1634_v50  ;;  %v10952_v32 = vpop.f32.mrb[35].mxu0  ;;  %v1662_v43 = vsel %vm685_vm6, %v1648_v51, -inf }
 0x90e   :  { %1663 = vmax.xlane.f32.xlu0 %v1662_v43 }
 0x90f   :  { %v1649_v62 = vadd.f32 %v1643_v15, %v13155_v31 }
 0x911   :  { %v1665_v22 = vsel %vm685_vm6, %v1649_v62, -inf }
 0x912   :  { %1666 = vmax.xlane.f32.xlu1 %v1665_v22 }
 0x98b   :  { %v1652_v24 = vpop.xlane.xlu1 %1651 }
 0x98c   :  { %v1668_v54 = vsub.f32 %v1644_v20, %v1652_v24 }
 0x98e   :  { %v1674_v60 = vmul.f32 1.442695, %v1668_v54 }
 0x98f   :  { %v1655_v2 = vpop.xlane.xlu0 %1654 }
 0x990   :  { %12418 = vpow2.f32 %v1674_v60  ;;  %v1669_v17 = vsub.f32 %v1645_v6, %v1655_v2 }
 0x992   :  { %v1676_v37 = vmul.f32 1.442695, %v1669_v17 }
 0x993   :  { %v1658_v53 = vpop.xlane.xlu0 %1657 }
 0x994   :  { %12420 = vpow2.f32 %v1676_v37  ;;  %v1670_v35 = vsub.f32 %v1646_v14, %v1658_v53 }
 0x996   :  { %v1678_v44 = vmul.f32 1.442695, %v1670_v35 }
 0x997   :  { %v1661_v14 = vpop.xlane.xlu1 %1660 }
 0x998   :  { %12422 = vpow2.f32 %v1678_v44  ;;  %v1671_v24 = vsub.f32 %v1647_v46, %v1661_v14 }
 0x99a   :  { %v13425_v45 = vpop.eup %12418 }
 0x99b   :  { %v1686_v8 = vsel %vm685_vm6, %v13425_v45, 0.0  ;;  %v1664_v54 = vpop.xlane.xlu0 %1663 }
 0x99c   :  { %1687 = vadd.xlane.f32.xlu0 %v1686_v8  ;;  %v1672_v60 = vsub.f32 %v1648_v51, %v1664_v54 }
 0x99e   :  { %v13429_v21 = vpop.eup %12420  ;;  %v1682_v2 = vmul.f32 1.442695, %v1672_v60 }
 0x99f   :  { %v1689_v20 = vsel %vm685_vm6, %v13429_v21, 0.0  ;;  %v1667_v15 = vpop.xlane.xlu1 %1666 }
 0x9a0   :  { %1690 = vadd.xlane.f32.xlu1 %v1689_v20  ;;  %v1673_v32 = vsub.f32 %v1649_v62, %v1667_v15 }
 0x9a2   :  { %v13433_v50 = vpop.eup %12422  ;;  %v1684_v43 = vmul.f32 1.442695, %v1673_v32 }
 0x9a3   :  { %v1692_v6 = vsel %vm685_vm6, %v13433_v50, 0.0 }
 0x9a4   :  { %1693 = vadd.xlane.f32.xlu0 %v1692_v6  ;;  %12424 = vpow2.f32 %v1684_v43 }
 0x9ae   :  { %v13457_v22 = vpop.eup %12424 }
 0x9af   :  { %v1701_v62 = vsel %vm685_vm6, %v13457_v22, 0.0 }
 0x9b1   :  { %1720 = vrot.lane.b32.xlu1 %v13083_v3, %s12813_s24 }
 0x9b5   :  { %12254 = vrot.lane.b32.xlu1 %v13080_v1, %s15716_s25 }
 0x9b9   :  { %12259 = vrot.lane.b32.xlu1 %v13101_v12, %s12813_s24 }
 0x9ba   :  { %12249 = vrot.lane.b32.xlu0 %v13080_v1, %s12813_s24 }
 0x9bd   :  { %1818 = vrot.lane.b32.xlu1 %v13106_v13, %s12813_s24 }
 0x9c1   :  { %1922 = vrot.lane.b32.xlu1 %v13083_v3, %s15716_s25 }
 0x9c5   :  { %1912 = vrot.lane.b32.xlu1 %v13076_v63, %s15650_s0  ;;  %v1680_v63 = vmul.f32 1.442695, %v1671_v24 }
 0x9c7   :  { %12426 = vpow2.f32 %v1680_v63 }
 0x9c8   :  { %12428 = vpow2.f32 %v1682_v2 }
 0x9c9   :  { %12264 = vrot.lane.b32.xlu1 %v13101_v12, %s15716_s25 }
 0x9cd   :  { %1914 = vrot.lane.b32.xlu1 %v13073_v61, %s15650_s0 }
 0x9d1   :  { %2026 = vrot.lane.b32.xlu1 %v13106_v13, %s15716_s25  ;;  %v13463_v61 = vpop.eup %12426 }
 0x9d2   :  { %v1695_v17 = vsel %vm685_vm6, %v13463_v61, 0.0  ;;  %v13467_v37 = vpop.eup %12428 }
 0x9d3   :  { %v1698_v46 = vsel %vm685_vm6, %v13467_v37, 0.0 }
 0x9d9   :  { %1702 = vadd.xlane.f32.xlu0 %v1701_v62 }
 0x9ef   :  { %1916 = vrot.lane.b32.xlu0 %v13083_v3, %s15650_s0 }
 0x9f5   :  { %1696 = vadd.xlane.f32.xlu1 %v1695_v17 }
 0x9f9   :  { %1699 = vadd.xlane.f32.xlu1 %v1698_v46 }
 0xa0a   :  { %2016 = vrot.lane.b32.xlu1 %v13094_v9, %s15650_s0 }
 0xa0e   :  { %2018 = vrot.lane.b32.xlu1 %v13097_v11, %s15650_s0 }
 0xa12   :  { %2020 = vrot.lane.b32.xlu1 %v13106_v13, %s15650_s0  ;;  %s15750_s0 = smov 40  }
 0xa29   :  { %v1688_v51 = vpop.xlane.xlu0 %1687 }
 0xa2a   :  { %12430 = vrcp.f32 %v1688_v51 }
 0xa2d   :  { %v1691_v53 = vpop.xlane.xlu1 %1690 }
 0xa2e   :  { %12432 = vrcp.f32 %v1691_v53 }
 0xa31   :  { %v1721_v35 = vpop.permute.xlu1 %1720  ;;  %v1694_v44 = vpop.xlane.xlu0 %1693 }
 0xa32   :  { %12434 = vrcp.f32 %v1694_v44 }
 0xa34   :  { %v12431_v9 = vpop.eup %12430 }
 0xa35   :  { %v12255_v8 = vpop.permute.xlu1 %12254  ;;  %v12250_v20 = vpop.permute.xlu0 %12249  ;;  %v1710_v24 = vmul.f32 %v12431_v9, %v13425_v45 }
 0xa36   :  { %v12252_v6 = vunpack.i.h.bf16 %v12250_v20  ;;  %v12251_v14 = vunpack.i.l.bf16 %v12250_v20  ;;  %v12257_v60 = vunpack.i.h.bf16 %v12255_v8  ;;  %v12256_v2 = vunpack.i.l.bf16 %v12255_v8 }
 0xa38   :  { %v11833_v15 = vpack.c.bf16 %v12252_v6, %v12251_v14  ;;  %v12433_v63 = vpop.eup %12432  ;;  %v11839_v45 = vpack.c.bf16 %v12257_v60, %v12256_v2 }
 0xa39   :  { %v12260_v32 = vpop.permute.xlu1 %12259  ;;  %v1711_v46 = vmul.f32 %v12433_v63, %v13429_v21 }
 0xa3a   :  { %v12262_v43 = vunpack.i.h.bf16 %v12260_v32  ;;  %v12261_v62 = vunpack.i.l.bf16 %v12260_v32  ;;  %11834 = vmatpush3.bf16.msra.mxu1 %v11833_v15 }
 0xa3b   :  { %10957 = vmatprep.subr.mxu1 %v15661_v5 }
 0xa3c   :  { %v11836_v11 = vpack.c.bf16 %v12262_v43, %v12261_v62  ;;  %v12435_v51 = vpop.eup %12434 }
 0xa3d   :  { %v1819_v54 = vpop.permute.xlu1 %1818  ;;  %v1712_v53 = vmul.f32 %v12435_v51, %v13433_v50 }
 0xa3e   :  { %10958 = vmatpush3.msra.mxu1 %v1721_v35  ;;  %11837 = vmatpush3.bf16.msra.mxu0 %v11836_v11 }
 0xa3f   :  { %10960 = vmatmul.mubr.msk.f32.vlgmr.msra.gmra.mrb[36].mxu1 %vm685_vm6, %v1710_v24  ;;  %10972 = vmatprep.subr.mxu0 %v15661_v5 }
 0xa40   :  { %10962 = vmatprep.mubr.msk.f32.mxu1 %vm12804_vm2, %v15661_v5  ;;  %11838 = vmatprep.subr.bf16.mxu1 %v15659_v58 }
 0xa41   :  { %v1923_v17 = vpop.permute.xlu1 %1922 }
 0xa42   :  { %10973 = vmatpush3.msra.mxu0 %v1819_v54 }
 0xa43   :  { %10963 = vmatmul.mubr.msk.f32.gmra.mrb[38].mxu1 %vm685_vm6, %v1711_v46  ;;  %11842 = vmatprep.subr.bf16.mxu0 %v15659_v58 }
 0xa44   :  { %10965 = vmatprep.mubr.msk.f32.mxu1 %vm12804_vm2, %v15661_v5 }
 0xa45   :  { %11841 = vmatpush3.bf16.xpose.msk.msra.mxu1 %vm13112_vm4, %v11839_v45  ;;  %v1913_v35 = vpop.permute.xlu1 %1912 }
 0xa46   :  { %10987 = vmatprep.subr.mxu1 %v15661_v5 }
 0xa47   :  { %10966 = vmatmul.mubr.msk.f32.gmra.mrb[40].mxu1 %vm685_vm6, %v1712_v53 }
 0xa48   :  { %10989 = vmatprep.mubr.msk.f32.mxu1 %vm12804_vm2, %v15661_v5 }
 0xa49   :  { %v12265_v21 = vpop.permute.xlu1 %12264 }
 0xa4a   :  { %v12267_v15 = vunpack.i.h.bf16 %v12265_v21  ;;  %v12266_v32 = vunpack.i.l.bf16 %v12265_v21 }
 0xa4c   :  { %v11843_v62 = vpack.c.bf16 %v12267_v15, %v12266_v32 }
 0xa4d   :  { %10988 = vmatpush3.xpose.msk.msra.mxu1 %vm479_vm3, %v1923_v17  ;;  %v1915_v44 = vpop.permute.xlu1 %1914 }
 0xa4e   :  { %11846 = vmatprep.subr.bf16.mxu1 %v15659_v58 }
 0xa50   :  { %10990 = vmatmul.mubr.msk.f32.vlgmr.msra.gmra.mrb[42].mxu1 %vm479_vm3, %v1913_v35 }
 0xa51   :  { %10992 = vmatprep.mubr.msk.f32.mxu1 %vm12804_vm2, %v15661_v5  ;;  %v2027_v20 = vpop.permute.xlu1 %2026 }
 0xa54   :  { %10993 = vmatmul.mubr.msk.f32.gmra.mrb[44].mxu1 %vm479_vm3, %v1915_v44 }
 0xa55   :  { %10995 = vmatprep.mubr.msk.f32.mxu1 %vm12804_vm2, %v15661_v5 }
 0xa66   :  { %v1703_v50 = vpop.xlane.xlu0 %1702 }
 0xa6a   :  { %v1917_v8 = vpop.permute.xlu0 %1916 }
 0xa6b   :  { %10996 = vmatmul.mubr.msk.f32.gmra.mrb[46].mxu1 %vm479_vm3, %v1917_v8 }
 0xa6c   :  { %11019 = vmatprep.mubr.msk.f32.mxu1 %vm12804_vm2, %v15661_v5 }
 0xa82   :  { %v1697_v6 = vpop.xlane.xlu1 %1696 }
 0xa83   :  { %12436 = vrcp.f32 %v1697_v6 }
 0xa86   :  { %v1700_v14 = vpop.xlane.xlu1 %1699 }
 0xa87   :  { %12438 = vrcp.f32 %v1700_v14 }
 0xa88   :  { %12440 = vrcp.f32 %v1703_v50 }
 0xa8a   :  { %v2017_v63 = vpop.permute.xlu1 %2016 }
 0xa8d   :  { %v12437_v9 = vpop.eup %12436 }
 0xa8e   :  { %v1713_v43 = vmul.f32 %v12437_v9, %v13463_v61 }
 0xa90   :  { %10975 = vmatmul.mubr.msk.f32.vlgmr.msra.gmra.mrb[36].mxu0 %vm685_vm6, %v1713_v43 }
 0xa91   :  { %v12439_v11 = vpop.eup %12438  ;;  %11845 = vmatpush3.bf16.xpose.msk.msra.mxu0 %vm13112_vm4, %v11843_v62  ;;  %10977 = vmatprep.mubr.msk.f32.mxu0 %vm12804_vm2, %v15661_v5 }
 0xa92   :  { %v1714_v24 = vmul.f32 %v12439_v11, %v13467_v37  ;;  %11002 = vmatprep.subr.mxu0 %v15661_v5  ;;  %v12441_v54 = vpop.eup %12440  ;;  %v2019_v37 = vpop.permute.xlu1 %2018 }
 0xa93   :  { %v1715_v61 = vmul.f32 %v12441_v54, %v13457_v22 }
 0xa94   :  { %10978 = vmatmul.mubr.msk.f32.gmra.mrb[38].mxu0 %vm685_vm6, %v1714_v24 }
 0xa95   :  { %10980 = vmatprep.mubr.msk.f32.mxu0 %vm12804_vm2, %v15661_v5 }
 0xa96   :  { %v2021_v22 = vpop.permute.xlu1 %2020 }
 0xa98   :  { %10981 = vmatmul.mubr.msk.f32.gmra.mrb[40].mxu0 %vm685_vm6, %v1715_v61 }
 0xa99   :  { %11003 = vmatpush3.xpose.msk.msra.mxu0 %vm479_vm3, %v2027_v20  ;;  %11004 = vmatprep.mubr.msk.f32.mxu0 %vm12804_vm2, %v15661_v5 }
 0xa9a   :  { %11849 = vmatprep.subr.bf16.mxu0 %v15659_v58 }
 0xa9c   :  { %11005 = vmatmul.mubr.msk.f32.vlgmr.msra.gmra.mrb[42].mxu0 %vm479_vm3, %v2017_v63 }
 0xa9d   :  { %11007 = vmatprep.mubr.msk.f32.mxu0 %vm12804_vm2, %v15661_v5 }
 0xaa0   :  { %11008 = vmatmul.mubr.msk.f32.gmra.mrb[44].mxu0 %vm479_vm3, %v2019_v37 }
 0xaa1   :  { %11010 = vmatprep.mubr.msk.f32.mxu0 %vm12804_vm2, %v15661_v5 }
 0xaa4   :  { %11011 = vmatmul.mubr.msk.f32.gmra.mrb[46].mxu0 %vm479_vm3, %v2021_v22 }
 0xaa5   :  { %11034 = vmatprep.mubr.msk.f32.mxu0 %vm12804_vm2, %v15661_v5 }
 0xb12   :  { %v13533_v60 = vpop.f32.mrb[36].mxu1 }
 0xb13   :  { %v10961_v2 = vpop.f32.mrb[37].mxu1 }
 0xb16   :  { %v13535_v17 = vpop.f32.mrb[38].mxu1 }
 0xb17   :  { %v10964_v46 = vpop.f32.mrb[39].mxu1 }
 0xb1a   :  { %v13537_v51 = vpop.f32.mrb[40].mxu1 }
 0xb1b   :  { %v10967_v45 = vpop.f32.mrb[41].mxu1 }
 0xb23   :  { %v2002_v53 = vpop.f32.mrb[42].mxu1 }
 0xb24   :  { %v2120_v35 = vmul.f32 0.35355338, %v2002_v53  ;;  %v10991_v21 = vpop.f32.mrb[43].mxu1 }
 0xb26   :  { %v2126_v44 = vadd.f32 %v2120_v35, %v13155_v31 }
 0xb27   :  { %v2007_v50 = vpop.f32.mrb[44].mxu1 }
 0xb28   :  { %v2121_v8 = vmul.f32 0.35355338, %v2007_v50  ;;  %v10994_v20 = vpop.f32.mrb[45].mxu1  ;;  %v2132_v6 = vsel %vm685_vm6, %v2126_v44, -inf }
 0xb29   :  { %2133 = vmax.xlane.f32.xlu1 %v2132_v6 }
 0xb2a   :  { %v2127_v14 = vadd.f32 %v2121_v8, %v13155_v31 }
 0xb2c   :  { %v2135_v15 = vsel %vm685_vm6, %v2127_v14, -inf }
 0xb2d   :  { %2136 = vmax.xlane.f32.xlu0 %v2135_v15 }
 0xb3e   :  { %v2012_v32 = vpop.f32.mrb[46].mxu1 }
 0xb3f   :  { %v2122_v9 = vmul.f32 0.35355338, %v2012_v32  ;;  %v10997_v43 = vpop.f32.mrb[47].mxu1 }
 0xb41   :  { %v2128_v62 = vadd.f32 %v2122_v9, %v13155_v31 }
 0xb43   :  { %v2138_v11 = vsel %vm685_vm6, %v2128_v62, -inf }
 0xb44   :  { %2139 = vmax.xlane.f32.xlu1 %v2138_v11 }
 0xb63   :  { %v13545_v24 = vpop.f32.mrb[36].mxu0 }
 0xb64   :  { %v10976_v54 = vpop.f32.mrb[37].mxu0 }
 0xb67   :  { %v13547_v61 = vpop.f32.mrb[38].mxu0 }
 0xb68   :  { %v10979_v63 = vpop.f32.mrb[39].mxu0 }
 0xb6b   :  { %v13549_v37 = vpop.f32.mrb[40].mxu0 }
 0xb6c   :  { %v10982_v22 = vpop.f32.mrb[41].mxu0 }
 0xb6f   :  { %v2106_v2 = vpop.f32.mrb[42].mxu0 }
 0xb70   :  { %v2123_v46 = vmul.f32 0.35355338, %v2106_v2  ;;  %v11006_v45 = vpop.f32.mrb[43].mxu0 }
 0xb72   :  { %v2129_v53 = vadd.f32 %v2123_v46, %v13155_v31 }
 0xb73   :  { %v2111_v35 = vpop.f32.mrb[44].mxu0 }
 0xb74   :  { %v2124_v21 = vmul.f32 0.35355338, %v2111_v35  ;;  %v11009_v50 = vpop.f32.mrb[45].mxu0  ;;  %v2141_v8 = vsel %vm685_vm6, %v2129_v53, -inf }
 0xb75   :  { %2142 = vmax.xlane.f32.xlu0 %v2141_v8 }
 0xb76   :  { %v2130_v20 = vadd.f32 %v2124_v21, %v13155_v31 }
 0xb77   :  { %v2116_v6 = vpop.f32.mrb[46].mxu0 }
 0xb78   :  { %v2125_v15 = vmul.f32 0.35355338, %v2116_v6  ;;  %v11012_v32 = vpop.f32.mrb[47].mxu0  ;;  %v2144_v9 = vsel %vm685_vm6, %v2130_v20, -inf }
 0xb79   :  { %2145 = vmax.xlane.f32.xlu1 %v2144_v9 }
 0xb7a   :  { %v2131_v43 = vadd.f32 %v2125_v15, %v13155_v31 }
 0xb7c   :  { %v2147_v11 = vsel %vm685_vm6, %v2131_v43, -inf }
 0xb7d   :  { %2148 = vmax.xlane.f32.xlu0 %v2147_v11 }
 0xbb6   :  { %v2134_v54 = vpop.xlane.xlu1 %2133 }
 0xbb7   :  { %v2150_v63 = vsub.f32 %v2126_v44, %v2134_v54 }
 0xbb9   :  { %v2156_v22 = vmul.f32 1.442695, %v2150_v63 }
 0xbba   :  { %v2137_v2 = vpop.xlane.xlu0 %2136 }
 0xbbb   :  { %12442 = vpow2.f32 %v2156_v22  ;;  %v2151_v46 = vsub.f32 %v2127_v14, %v2137_v2 }
 0xbbd   :  { %v2158_v45 = vmul.f32 1.442695, %v2151_v46 }
 0xbbf   :  { %12444 = vpow2.f32 %v2158_v45 }
 0xbc5   :  { %v12443_v35 = vpop.eup %12442 }
 0xbc6   :  { %v2168_v21 = vsel %vm685_vm6, %v12443_v35, 0.0 }
 0xbc7   :  { %2169 = vadd.xlane.f32.xlu1 %v2168_v21 }
 0xbc9   :  { %v12445_v50 = vpop.eup %12444 }
 0xbca   :  { %v2171_v8 = vsel %vm685_vm6, %v12445_v50, 0.0 }
 0xbcb   :  { %2172 = vadd.xlane.f32.xlu0 %v2171_v8 }
 0xbd1   :  { %v2140_v6 = vpop.xlane.xlu1 %2139 }
 0xbd2   :  { %v2152_v15 = vsub.f32 %v2128_v62, %v2140_v6 }
 0xbd4   :  { %v2160_v32 = vmul.f32 1.442695, %v2152_v15 }
 0xbd6   :  { %12446 = vpow2.f32 %v2160_v32 }
 0xbe0   :  { %v12447_v9 = vpop.eup %12446 }
 0xbe1   :  { %2202 = vrot.lane.b32.xlu0 %v13083_v3, %s15648_s2  ;;  %v2174_v44 = vsel %vm685_vm6, %v12447_v9, 0.0 }
 0xbe2   :  { %2175 = vadd.xlane.f32.xlu1 %v2174_v44 }
 0xbf3   :  { %12269 = vrot.lane.b32.xlu1 %v13080_v1, %s15648_s2 }
 0xc02   :  { %v2143_v14 = vpop.xlane.xlu0 %2142 }
 0xc03   :  { %v2153_v11 = vsub.f32 %v2129_v53, %v2143_v14 }
 0xc05   :  { %v2162_v54 = vmul.f32 1.442695, %v2153_v11 }
 0xc06   :  { %v2146_v63 = vpop.xlane.xlu1 %2145 }
 0xc07   :  { %12448 = vpow2.f32 %v2162_v54  ;;  %v2154_v22 = vsub.f32 %v2130_v20, %v2146_v63 }
 0xc09   :  { %v2164_v62 = vmul.f32 1.442695, %v2154_v22 }
 0xc0a   :  { %v2149_v2 = vpop.xlane.xlu0 %2148 }
 0xc0b   :  { %12450 = vpow2.f32 %v2164_v62  ;;  %v2155_v46 = vsub.f32 %v2131_v43, %v2149_v2 }
 0xc0d   :  { %v2166_v45 = vmul.f32 1.442695, %v2155_v46 }
 0xc0f   :  { %12452 = vpow2.f32 %v2166_v45 }
 0xc11   :  { %v12449_v21 = vpop.eup %12448 }
 0xc12   :  { %v2177_v3 = vsel %vm685_vm6, %v12449_v21, 0.0 }
 0xc13   :  { %2178 = vadd.xlane.f32.xlu0 %v2177_v3 }
 0xc15   :  { %v12451_v8 = vpop.eup %12450 }
 0xc16   :  { %v2180_v6 = vsel %vm685_vm6, %v12451_v8, 0.0 }
 0xc17   :  { %2181 = vadd.xlane.f32.xlu0 %v2180_v6 }
 0xc19   :  { %v12453_v1 = vpop.eup %12452 }
 0xc1a   :  { %v2183_v53 = vsel %vm685_vm6, %v12453_v1, 0.0 }
 0xc1b   :  { %2184 = vadd.xlane.f32.xlu1 %v2183_v53 }
 0xc2d   :  { %12274 = vrot.lane.b32.xlu0 %v13101_v12, %s15648_s2 }
 0xc31   :  { %2300 = vrot.lane.b32.xlu0 %v13106_v13, %s15648_s2  ;;  %s15751_s2 = smov 8  }
 0xc35   :  { %2400 = vrot.lane.b32.xlu0 %v13401_v25, %s15656_s26 }
 0xc39   :  { %2402 = vrot.lane.b32.xlu0 %v13403_v41, %s15656_s26 }
 0xc3d   :  { %2424 = vrot.lane.b32.xlu0 %v13533_v60, %s15654_s27 }
 0xc41   :  { %2426 = vrot.lane.b32.xlu0 %v13535_v17, %s15654_s27 }
 0xc54   :  { %v2170_v20 = vpop.xlane.xlu1 %2169 }
 0xc55   :  { %12454 = vrcp.f32 %v2170_v20 }
 0xc58   :  { %v2173_v12 = vpop.xlane.xlu0 %2172 }
 0xc59   :  { %12456 = vrcp.f32 %v2173_v12 }
 0xc5c   :  { %v2203_v14 = vpop.permute.xlu0 %2202 }
 0xc5f   :  { %v12455_v44 = vpop.eup %12454 }
 0xc60   :  { %v2192_v41 = vmul.f32 %v12455_v44, %v12443_v35 }
 0xc63   :  { %v12457_v60 = vpop.eup %12456 }
 0xc64   :  { %v2193_v17 = vmul.f32 %v12457_v60, %v12445_v50 }
 0xc6f   :  { %v2176_v43 = vpop.xlane.xlu1 %2175 }
 0xc70   :  { %12458 = vrcp.f32 %v2176_v43  ;;  %v55_v43 = vld [vmem:[%s15640_s7 + $0x8] sm:$0xff] }
 0xc73   :  { %v12270_v13 = vpop.permute.xlu1 %12269 }
 0xc74   :  { %v12272_v15 = vunpack.i.h.bf16 %v12270_v13  ;;  %v12271_v32 = vunpack.i.l.bf16 %v12270_v13 }
 0xc76   :  { %v11847_v25 = vpack.c.bf16 %v12272_v15, %v12271_v32 }
 0xc78   :  { %11848 = vmatpush3.bf16.msra.mxu1 %v11847_v25 }
 0xc79   :  { %11017 = vmatprep.subr.mxu1 %v15661_v5 }
 0xc7a   :  { %v12459_v11 = vpop.eup %12458 }
 0xc7b   :  { %v2194_v54 = vmul.f32 %v12459_v11, %v12447_v9 }
 0xc7c   :  { %11018 = vmatpush3.msra.mxu1 %v2203_v14 }
 0xc7d   :  { %11020 = vmatmul.mubr.msk.f32.vlgmr.msra.gmra.mrb[48].mxu1 %vm685_vm6, %v2192_v41 }
 0xc7e   :  { %11022 = vmatprep.mubr.msk.f32.mxu1 %vm12804_vm2, %v15661_v5 }
 0xc81   :  { %11023 = vmatmul.mubr.msk.f32.gmra.mrb[50].mxu1 %vm685_vm6, %v2193_v17 }
 0xc82   :  { %11025 = vmatprep.mubr.msk.f32.mxu1 %vm12804_vm2, %v15661_v5 }
 0xc85   :  { %11026 = vmatmul.mubr.msk.f32.gmra.mrb[52].mxu1 %vm685_vm6, %v2194_v54 }
 0xca0   :  { %v2179_v63 = vpop.xlane.xlu0 %2178 }
 0xca1   :  { %12460 = vrcp.f32 %v2179_v63 }
 0xca4   :  { %v2182_v35 = vpop.xlane.xlu0 %2181 }
 0xca5   :  { %12462 = vrcp.f32 %v2182_v35 }
 0xca8   :  { %v12275_v22 = vpop.permute.xlu0 %12274  ;;  %v2185_v62 = vpop.xlane.xlu1 %2184 }
 0xca9   :  { %v12277_v2 = vunpack.i.h.bf16 %v12275_v22  ;;  %v12276_v46 = vunpack.i.l.bf16 %v12275_v22  ;;  %12464 = vrcp.f32 %v2185_v62 }
 0xcab   :  { %v11850_v45 = vpack.c.bf16 %v12277_v2, %v12276_v46  ;;  %v12461_v50 = vpop.eup %12460 }
 0xcac   :  { %v2195_v3 = vmul.f32 %v12461_v50, %v12449_v21  ;;  %v2301_v6 = vpop.permute.xlu0 %2300  ;;  %v54_v21 = vld [vmem:[%s15640_s7] sm:$0xff] }
 0xcad   :  { %11851 = vmatpush3.bf16.msra.mxu0 %v11850_v45  ;;  %v13601_v13 = vpack.c.bf16 %v55_v43, %v54_v21 }
 0xcae   :  { %11032 = vmatprep.subr.mxu0 %v15661_v5 }
 0xcaf   :  { %v12463_v53 = vpop.eup %12462  ;;  %11853 = vmatprep.subr.bf16.mxu1 %v13601_v13 }
 0xcb0   :  { %v2196_v9 = vmul.f32 %v12463_v53, %v12451_v8  ;;  %11855 = vmatpush3.bf16.msra.mxu1 %v13601_v13  ;;  %v56_v8 = vld [vmem:[%s15640_s7 + $0x10] sm:$0xff] }
 0xcb1   :  { %11033 = vmatpush3.msra.mxu0 %v2301_v6 }
 0xcb2   :  { %11035 = vmatmul.mubr.msk.f32.vlgmr.msra.gmra.mrb[48].mxu0 %vm685_vm6, %v2195_v3 }
 0xcb3   :  { %11037 = vmatprep.mubr.msk.f32.mxu0 %vm12804_vm2, %v15661_v5  ;;  %v12465_v20 = vpop.eup %12464 }
 0xcb4   :  { %v2197_v12 = vmul.f32 %v12465_v20, %v12453_v1  ;;  %v57_v1 = vld [vmem:[%s15640_s7 + $0x18] sm:$0xff] }
 0xcb5   :  { %v13611_v15 = vpack.c.bf16 %v57_v1, %v56_v8 }
 0xcb6   :  { %11038 = vmatmul.mubr.msk.f32.gmra.mrb[50].mxu0 %vm685_vm6, %v2196_v9 }
 0xcb7   :  { %11040 = vmatprep.mubr.msk.f32.mxu0 %vm12804_vm2, %v15661_v5  ;;  %15721 = vst [vmem:[#allocation6_spill] sm:$0xff] %v13611_v15  ;;  %11857 = vmatprep.subr.bf16.mxu1 %v13611_v15 }
 0xcb8   :  { %11859 = vmatpush3.bf16.msra.mxu1 %v13611_v15 }
 0xcba   :  { %11041 = vmatmul.mubr.msk.f32.gmra.mrb[52].mxu0 %vm685_vm6, %v2197_v12 }
 0xd50   :  { %v2282_v32 = vpop.f32.mrb[48].mxu1 }
 0xd51   :  { %2448 = vrot.lane.b32.xlu0 %v2282_v32, %s15652_s28  ;;  %v11021_v25 = vpop.f32.mrb[49].mxu1 }
 0xd54   :  { %v2287_v44 = vpop.f32.mrb[50].mxu1 }
 0xd55   :  { %2404 = vrot.lane.b32.xlu0 %v13405_v48, %s15656_s26  ;;  %2450 = vrot.lane.b32.xlu1 %v2287_v44, %s15652_s28  ;;  %v11024_v41 = vpop.f32.mrb[51].mxu1 }
 0xd58   :  { %v2292_v14 = vpop.f32.mrb[52].mxu1 }
 0xd59   :  { %2406 = vrot.lane.b32.xlu0 %v13407_v38, %s15656_s26  ;;  %2452 = vrot.lane.b32.xlu1 %v2292_v14, %s15652_s28  ;;  %v11027_v60 = vpop.f32.mrb[53].mxu1 }
 0xd5d   :  { %2428 = vrot.lane.b32.xlu0 %v13537_v51, %s15654_s27  ;;  %2408 = vrot.lane.b32.xlu1 %v13410_v19, %s15656_s26  ;;  %v2401_v19 = vpop.permute.xlu0 %2400 }
 0xd5e   :  { %v2466_v35 = vsel %vm479_vm3, %v13273_v26, %v2401_v19 }
 0xd61   :  { %2430 = vrot.lane.b32.xlu0 %v13545_v24, %s15654_s27  ;;  %2432 = vrot.lane.b32.xlu1 %v13547_v61, %s15654_s27  ;;  %v2403_v24 = vpop.permute.xlu0 %2402 }
 0xd65   :  { %v2425_v61 = vpop.permute.xlu0 %2424 }
 0xd66   :  { %v2473_v22 = vsel %vm2472_vm7, %v2466_v35, %v2425_v61 }
 0xd69   :  { %v2427_v63 = vpop.permute.xlu0 %2426 }
 0xd85   :  { %v2380_v48 = vpop.f32.mrb[48].mxu0 }
 0xd86   :  { %v11036_v17 = vpop.f32.mrb[49].mxu0  ;;  %2454 = vrot.lane.b32.xlu0 %v2380_v48, %s15652_s28 }
 0xd89   :  { %v2385_v38 = vpop.f32.mrb[50].mxu0 }
 0xd8a   :  { %v11039_v11 = vpop.f32.mrb[51].mxu0  ;;  %2410 = vrot.lane.b32.xlu0 %v13414_v0, %s15656_s26  ;;  %2456 = vrot.lane.b32.xlu1 %v2385_v38, %s15652_s28  ;;  %s15752_s26 = smov 16  }
 0xd8b   :  { %v13673_v11 = vld [vmem:[%s15643_s10] sm:$0xff] }
 0xd8d   :  { %v2390_v51 = vpop.f32.mrb[52].mxu0 }
 0xd8e   :  { %v11042_v54 = vpop.f32.mrb[53].mxu0  ;;  %2434 = vrot.lane.b32.xlu0 %v13549_v37, %s15654_s27  ;;  %v2467_v37 = vsel %vm479_vm3, %v13275_v33, %v2403_v24  ;;  %s15753_s27 = smov 24  }
 0xd8f   :  { %v2474_v2 = vsel %vm2472_vm7, %v2467_v37, %v2427_v63 }
 0xd92   :  { %2458 = vrot.lane.b32.xlu0 %v2390_v51, %s15652_s28 }
 0xdc3   :  { %v2449_v0 = vpop.permute.xlu0 %2448 }
 0xdc4   :  { %v2479_v62 = vsel %vm685_vm6, %v2473_v22, %v2449_v0 }
 0xdc5   :  { %11051 = vmatprep.mubr.msk.f32.mxu1 %vm253_vm1, %v2479_v62 }
 0xdc7   :  { %v2405_v46 = vpop.permute.xlu0 %2404  ;;  %v2451_v45 = vpop.permute.xlu1 %2450 }
 0xdc8   :  { %v2480_v50 = vsel %vm685_vm6, %v2474_v2, %v2451_v45  ;;  %v2468_v26 = vsel %vm479_vm3, %v13283_v10, %v2405_v46 }
 0xdc9   :  { %11052 = vmatmul.mubr.msk.f32.vlgmr.msra.gmra.mrb[54].mxu1 %vm253_vm1, %v2480_v50 }
 0xdcb   :  { %v2407_v3 = vpop.permute.xlu0 %2406  ;;  %v2453_v53 = vpop.permute.xlu1 %2452 }
 0xdcc   :  { %v2469_v21 = vsel %vm479_vm3, %v13277_v40, %v2407_v3 }
 0xdcf   :  { %v2429_v6 = vpop.permute.xlu0 %2428  ;;  %v2409_v33 = vpop.permute.xlu1 %2408 }
 0xdd0   :  { %v2475_v9 = vsel %vm2472_vm7, %v2468_v26, %v2429_v6  ;;  %v2470_v10 = vsel %vm479_vm3, %v13279_v42, %v2409_v33  ;;  %v13668_v42 = vsub.s32 7, %v13005_v16 }
 0xdd1   :  { %v2481_v20 = vsel %vm685_vm6, %v2475_v9, %v2453_v53 }
 0xdd2   :  { %11054 = vmatprep.mubr.msk.f32.mxu1 %vm253_vm1, %v2481_v20  ;;  %v13677_v51 = vrot.slane %v13673_v11, %v13668_v42 }
 0xdd3   :  { %v2431_v12 = vpop.permute.xlu0 %2430  ;;  %v2433_v8 = vpop.permute.xlu1 %2432 }
 0xdd4   :  { %v2476_v43 = vsel %vm2472_vm7, %v2469_v21, %v2431_v12  ;;  %v2477_v25 = vsel %vm2472_vm7, %v2470_v10, %v2433_v8  ;;  %15722 = vst [vmem:[#allocation7_spill] sm:$0xff] %v13677_v51 }
 0xdf8   :  { %v2455_v1 = vpop.permute.xlu0 %2454 }
 0xdf9   :  { %v2482_v32 = vsel %vm685_vm6, %v2476_v43, %v2455_v1 }
 0xdfa   :  { %11055 = vmatmul.mubr.msk.f32.gmra.mrb[56].mxu1 %vm253_vm1, %v2482_v32 }
 0xdfc   :  { %v2411_v44 = vpop.permute.xlu0 %2410  ;;  %v2457_v41 = vpop.permute.xlu1 %2456 }
 0xdfd   :  { %v2483_v14 = vsel %vm685_vm6, %v2477_v25, %v2457_v41  ;;  %v2471_v60 = vsel %vm479_vm3, %v13281_v36, %v2411_v44  ;;  %v59_v25 = vld [vmem:[%s15641_s8 + $0x8] sm:$0xff]  ;;  %v60_v41 = vld [vmem:[%s15641_s8 + $0x10] sm:$0xff] }
 0xdfe   :  { %11057 = vmatprep.mubr.msk.f32.mxu1 %vm253_vm1, %v2483_v14  ;;  %v61_v14 = vld [vmem:[%s15641_s8 + $0x18] sm:$0xff] }
 0xe00   :  { %v2435_v40 = vpop.permute.xlu0 %2434 }
 0xe01   :  { %v2478_v48 = vsel %vm2472_vm7, %v2471_v60, %v2435_v40  ;;  %v13714_v40 = vpack.c.bf16 %v61_v14, %v60_v41 }
 0xe03   :  { %15723 = vst [vmem:[#allocation8_spill] sm:$0xff] %v13714_v40 }
 0xe04   :  { %v2459_v17 = vpop.permute.xlu0 %2458 }
 0xe05   :  { %v2484_v38 = vsel %vm685_vm6, %v2478_v48, %v2459_v17 }
 0xe06   :  { %11058 = vmatmul.mubr.msk.f32.gmra.mrb[58].mxu1 %vm253_vm1, %v2484_v38 }
 0xe9c   :  { %v11053_v36 = vpop.f32.mrb[54].mxu1 }
 0xe9d   :  { %v2579_v54 = vadd.f32 %v11053_v36, %v13677_v51  ;;  %v2573_v19 = vpop.f32.mrb[55].mxu1 }
 0xe9e   :  { %v2574_v24 = vadd.f32 %v2573_v19, %v13677_v51 }
 0xe9f   :  { %v2603_v61 = vadd.f32 %v2579_v54, %v13034_v47 }
 0xea0   :  { %v2602_v63 = vadd.f32 %v2574_v24, %v13025_v39 }
 0xea1   :  { %v2611_v35 = vsel %vm253_vm1, %v2603_v61, 0.0 }
 0xea2   :  { %2612 = vadd.xlane.f32.xlu0 %v2611_v35  ;;  %v2608_v22 = vsel %vm253_vm1, %v2602_v63, 0.0 }
 0xea3   :  { %2609 = vadd.xlane.f32.xlu1 %v2608_v22 }
 0xecd   :  { %v11056_v0 = vpop.f32.mrb[56].mxu1 }
 0xece   :  { %v2589_v62 = vadd.f32 %v11056_v0, %v13677_v51  ;;  %v2583_v37 = vpop.f32.mrb[57].mxu1 }
 0xecf   :  { %v2584_v2 = vadd.f32 %v2583_v37, %v13677_v51 }
 0xed0   :  { %v2605_v46 = vadd.f32 %v2589_v62, %v13048_v52 }
 0xed1   :  { %v2604_v45 = vadd.f32 %v2584_v2, %v13038_v49 }
 0xed2   :  { %v2617_v47 = vsel %vm253_vm1, %v2605_v46, 0.0 }
 0xed3   :  { %2618 = vadd.xlane.f32.xlu1 %v2617_v47  ;;  %v2614_v39 = vsel %vm253_vm1, %v2604_v45, 0.0 }
 0xed4   :  { %2615 = vadd.xlane.f32.xlu0 %v2614_v39 }
 0xed9   :  { %v11059_v50 = vpop.f32.mrb[58].mxu1 }
 0xeda   :  { %v2599_v3 = vadd.f32 %v11059_v50, %v13677_v51  ;;  %v2593_v26 = vpop.f32.mrb[59].mxu1 }
 0xedb   :  { %v2594_v6 = vadd.f32 %v2593_v26, %v13677_v51 }
 0xedc   :  { %v2607_v53 = vadd.f32 %v2599_v3, %v13060_v56 }
 0xedd   :  { %v2606_v9 = vadd.f32 %v2594_v6, %v13052_v55  ;;  %v58_v55 = vld [vmem:[%s15641_s8] sm:$0xff] }
 0xede   :  { %v2623_v52 = vsel %vm253_vm1, %v2607_v53, 0.0  ;;  %v13705_v44 = vpack.c.bf16 %v59_v25, %v58_v55 }
 0xedf   :  { %2624 = vadd.xlane.f32.xlu1 %v2623_v52  ;;  %v2620_v49 = vsel %vm253_vm1, %v2606_v9, 0.0 }
 0xee0   :  { %2621 = vadd.xlane.f32.xlu0 %v2620_v49  ;;  %11861 = vmatprep.subr.bf16.mxu0 %v13705_v44 }
 0xee1   :  { %11863 = vmatpush3.bf16.msra.mxu0 %v13705_v44 }
 0xee2   :  { %11865 = vmatprep.subr.bf16.mxu0 %v13714_v40 }
 0xee5   :  { %11867 = vmatpush3.bf16.msra.mxu0 %v13714_v40 }
 0xf2f   :  { %v2613_v20 = vpop.xlane.xlu0 %2612 }
 0xf30   :  { %v2627_v33 = vmul.f32 0.03125, %v2613_v20  ;;  %v2610_v12 = vpop.xlane.xlu1 %2609  ;;  %v13724_v20 = vsub.s32 2, %v13005_v16 }
 0xf31   :  { %v2626_v21 = vmul.f32 0.03125, %v2610_v12 }
 0xf32   :  { %v2633_v43 = vsub.f32 %v2603_v61, %v2627_v33 }
 0xf33   :  { %v2632_v8 = vsub.f32 %v2602_v63, %v2626_v21 }
 0xf34   :  { %v2639_v1 = vmul.f32 %v2633_v43, %v2633_v43 }
 0xf35   :  { %v2638_v32 = vmul.f32 %v2632_v8, %v2632_v8 }
 0xf36   :  { %v2647_v10 = vsel %vm253_vm1, %v2639_v1, 0.0 }
 0xf37   :  { %2648 = vadd.xlane.f32.xlu1 %v2647_v10  ;;  %v2644_v56 = vsel %vm253_vm1, %v2638_v32, 0.0 }
 0xf38   :  { %2645 = vadd.xlane.f32.xlu0 %v2644_v56 }
 0xf60   :  { %v2619_v60 = vpop.xlane.xlu1 %2618 }
 0xf61   :  { %v2629_v48 = vmul.f32 0.03125, %v2619_v60  ;;  %v2616_v17 = vpop.xlane.xlu0 %2615 }
 0xf62   :  { %v2628_v38 = vmul.f32 0.03125, %v2616_v17 }
 0xf63   :  { %v2635_v36 = vsub.f32 %v2605_v46, %v2629_v48 }
 0xf64   :  { %v2634_v54 = vsub.f32 %v2604_v45, %v2628_v38 }
 0xf65   :  { %v2641_v19 = vmul.f32 %v2635_v36, %v2635_v36 }
 0xf66   :  { %v2640_v24 = vmul.f32 %v2634_v54, %v2634_v54 }
 0xf67   :  { %v2653_v61 = vsel %vm253_vm1, %v2641_v19, 0.0 }
 0xf68   :  { %2654 = vadd.xlane.f32.xlu1 %v2653_v61  ;;  %v2650_v63 = vsel %vm253_vm1, %v2640_v24, 0.0 }
 0xf69   :  { %2651 = vadd.xlane.f32.xlu0 %v2650_v63 }
 0xf6c   :  { %v2625_v35 = vpop.xlane.xlu1 %2624 }
 0xf6d   :  { %v2631_v22 = vmul.f32 0.03125, %v2625_v35  ;;  %v2622_v0 = vpop.xlane.xlu0 %2621 }
 0xf6e   :  { %v2630_v62 = vmul.f32 0.03125, %v2622_v0 }
 0xf6f   :  { %v2637_v37 = vsub.f32 %v2607_v53, %v2631_v22  ;;  %v13727_v53 = vsub.s32 3, %v13005_v16 }
 0xf70   :  { %v2636_v2 = vsub.f32 %v2606_v9, %v2630_v62  ;;  %v13731_v9 = vrot.slane %v13673_v11, %v13724_v20 }
 0xf71   :  { %v2643_v47 = vmul.f32 %v2637_v37, %v2637_v37  ;;  %v13735_v32 = vrot.slane %v13673_v11, %v13727_v53 }
 0xf72   :  { %v2642_v39 = vmul.f32 %v2636_v2, %v2636_v2  ;;  %15724 = vst [vmem:[#allocation9_spill] sm:$0xff] %v13731_v9 }
 0xf73   :  { %v2659_v50 = vsel %vm253_vm1, %v2643_v47, 0.0  ;;  %15725 = vst [vmem:[#allocation10_spill] sm:$0xff] %v13735_v32 }
 0xf74   :  { %2660 = vadd.xlane.f32.xlu1 %v2659_v50  ;;  %v2656_v46 = vsel %vm253_vm1, %v2642_v39, 0.0 }
 0xf75   :  { %2657 = vadd.xlane.f32.xlu0 %v2656_v46 }
 0xfc4   :  { %v2649_v45 = vpop.xlane.xlu1 %2648 }
 0xfc5   :  { %v2663_v3 = vmul.f32 0.03125, %v2649_v45  ;;  %v2646_v26 = vpop.xlane.xlu0 %2645 }
 0xfc6   :  { %v2662_v6 = vmul.f32 0.03125, %v2646_v26 }
 0xfc7   :  { %v2669_v52 = vadd.f32 1e-05, %v2663_v3 }
 0xfc8   :  { %v2668_v49 = vadd.f32 1e-05, %v2662_v6 }
 0xfc9   :  { %12466 = vrsqrt.f32 %v2669_v52 }
 0xfca   :  { %12468 = vrsqrt.f32 %v2668_v49 }
 0xfd3   :  { %v12467_v33 = vpop.eup %12466 }
 0xfd4   :  { %v12469_v12 = vpop.eup %12468  ;;  %v2681_v21 = vmul.f32 %v12467_v33, %v2633_v43 }
 0xfd5   :  { %v2680_v1 = vmul.f32 %v12469_v12, %v2632_v8 }
 0xfd6   :  { %v2691_v10 = vmul.f32 %v13731_v9, %v2681_v21 }
 0xfd7   :  { %v2690_v56 = vmul.f32 %v13731_v9, %v2680_v1 }
 0xfd8   :  { %v13743_v25 = vadd.f32 %v13735_v32, %v2691_v10 }
 0xfd9   :  { %v13740_v55 = vadd.f32 %v13735_v32, %v2690_v56 }
 0xfdb   :  { %11068 = vmatprep.mubr.msk.f32.mxu0 %vm253_vm1, %v13740_v55 }
 0xfdc   :  { %11069 = vmatmul.mubr.msk.f32.vlgmr.msra.gmra.mrb[54].mxu0 %vm253_vm1, %v13743_v25 }
 0xff5   :  { %v2655_v43 = vpop.xlane.xlu1 %2654 }
 0xff6   :  { %v2665_v8 = vmul.f32 0.03125, %v2655_v43  ;;  %v2652_v41 = vpop.xlane.xlu0 %2651 }
 0xff7   :  { %v2664_v14 = vmul.f32 0.03125, %v2652_v41 }
 0xff8   :  { %v2671_v60 = vadd.f32 1e-05, %v2665_v8 }
 0xff9   :  { %v2670_v48 = vadd.f32 1e-05, %v2664_v14 }
 0xffa   :  { %12470 = vrsqrt.f32 %v2671_v60 }
 0xffb   :  { %12472 = vrsqrt.f32 %v2670_v48 }
0x1001   :  { %v2661_v17 = vpop.xlane.xlu1 %2660 }
0x1002   :  { %v2667_v38 = vmul.f32 0.03125, %v2661_v17  ;;  %v2658_v19 = vpop.xlane.xlu0 %2657 }
0x1003   :  { %v2666_v24 = vmul.f32 0.03125, %v2658_v19 }
0x1004   :  { %v12471_v61 = vpop.eup %12470  ;;  %v2673_v63 = vadd.f32 1e-05, %v2667_v38 }
0x1005   :  { %v12473_v35 = vpop.eup %12472  ;;  %v2672_v22 = vadd.f32 1e-05, %v2666_v24  ;;  %v2683_v0 = vmul.f32 %v12471_v61, %v2635_v36 }
0x1006   :  { %12474 = vrsqrt.f32 %v2673_v63  ;;  %v2682_v62 = vmul.f32 %v12473_v35, %v2634_v54 }
0x1007   :  { %12476 = vrsqrt.f32 %v2672_v22  ;;  %v2693_v47 = vmul.f32 %v13731_v9, %v2683_v0  ;;  %v62_v0 = vld [vmem:[%s15642_s9] sm:$0xff] }
0x1008   :  { %v2692_v39 = vmul.f32 %v13731_v9, %v2682_v62  ;;  %v63_v62 = vld [vmem:[%s15642_s9 + $0x8] sm:$0xff] }
0x1009   :  { %v13755_v46 = vadd.f32 %v13735_v32, %v2693_v47  ;;  %v13808_v47 = vpack.c.bf16 %v63_v62, %v62_v0  ;;  %v76_v62 = vld [vmem:[%s15642_s9 + $0x70] sm:$0xff] }
0x100a   :  { %v13752_v50 = vadd.f32 %v13735_v32, %v2692_v39  ;;  %v64_v39 = vld [vmem:[%s15642_s9 + $0x10] sm:$0xff] }
0x100b   :  { %15727 = vst [vmem:[#allocation12_spill] sm:$0xff] %v13808_v47  ;;  %11869 = vmatprep.subr.bf16.mxu1 %v13808_v47 }
0x100c   :  { %11071 = vmatprep.mubr.msk.f32.mxu0 %vm253_vm1, %v13752_v50  ;;  %11871 = vmatpush3.bf16.msra.mxu1 %v13808_v47 }
0x100d   :  { %11072 = vmatmul.mubr.msk.f32.gmra.mrb[56].mxu0 %vm253_vm1, %v13755_v46 }
0x1010   :  { %v12475_v36 = vpop.eup %12474 }
0x1011   :  { %v12477_v45 = vpop.eup %12476  ;;  %v2685_v54 = vmul.f32 %v12475_v36, %v2637_v37  ;;  %v13776_v37 = vld [vmem:[%s15643_s10 + $0x8] sm:$0xf]  ;;  %v65_v36 = vld [vmem:[%s15642_s9 + $0x18] sm:$0xff] }
0x1012   :  { %v2684_v3 = vmul.f32 %v12477_v45, %v2636_v2  ;;  %v13780_v2 = vrot.slane %v13776_v37, %v13008_v23  ;;  %v13818_v45 = vpack.c.bf16 %v65_v36, %v64_v39  ;;  %v77_v39 = vld [vmem:[%s15642_s9 + $0x78] sm:$0xff] }
0x1013   :  { %v2695_v26 = vmul.f32 %v13731_v9, %v2685_v54  ;;  %v66_v54 = vld [vmem:[%s15642_s9 + $0x20] sm:$0xff] }
0x1014   :  { %v2694_v6 = vmul.f32 %v13731_v9, %v2684_v3  ;;  %15726 = vst [vmem:[#allocation11_spill] sm:$0xff] %v13780_v2  ;;  %15728 = vst [vmem:[#allocation13_spill] sm:$0xff] %v13818_v45  ;;  %11873 = vmatprep.subr.bf16.mxu1 %v13818_v45  ;;  %v67_v3 = vld [vmem:[%s15642_s9 + $0x28] sm:$0xff] }
0x1015   :  { %v13767_v49 = vadd.f32 %v13735_v32, %v2695_v26  ;;  %11875 = vmatpush3.bf16.msra.mxu1 %v13818_v45  ;;  %v13828_v26 = vpack.c.bf16 %v67_v3, %v66_v54 }
0x1016   :  { %v13764_v52 = vadd.f32 %v13735_v32, %v2694_v6  ;;  %v68_v6 = vld [vmem:[%s15642_s9 + $0x30] sm:$0xff] }
0x1017   :  { %15729 = vst [vmem:[#allocation14_spill] sm:$0xff] %v13828_v26  ;;  %11877 = vmatprep.subr.bf16.mxu1 %v13828_v26 }
0x1018   :  { %11074 = vmatprep.mubr.msk.f32.mxu0 %vm253_vm1, %v13764_v52 }
0x1019   :  { %11075 = vmatmul.mubr.msk.f32.gmra.mrb[58].mxu0 %vm253_vm1, %v13767_v49  ;;  %11879 = vmatpush3.bf16.msra.mxu1 %v13828_v26 }
0x10af   :  { %v11070_v33 = vpop.f32.mrb[54].mxu0 }
0x10b0   :  { %v2800_v12 = vadd.f32 %v11070_v33, %v13780_v2  ;;  %v2794_v21 = vpop.f32.mrb[55].mxu0  ;;  %v69_v33 = vld [vmem:[%s15642_s9 + $0x38] sm:$0xff] }
0x10b1   :  { %v2795_v1 = vadd.f32 %v2794_v21, %v13780_v2  ;;  %v70_v21 = vld [vmem:[%s15642_s9 + $0x40] sm:$0xff] }
0x10b2   :  { %2825 = vadd.xlane.f32.xlu1 %v2800_v12 }
0x10b3   :  { %2823 = vadd.xlane.f32.xlu0 %v2795_v1 }
0x10e0   :  { %v11073_v10 = vpop.f32.mrb[56].mxu0 }
0x10e1   :  { %v2810_v56 = vadd.f32 %v11073_v10, %v13780_v2  ;;  %v2804_v43 = vpop.f32.mrb[57].mxu0 }
0x10e2   :  { %v2805_v8 = vadd.f32 %v2804_v43, %v13780_v2  ;;  %v72_v43 = vld [vmem:[%s15642_s9 + $0x50] sm:$0xff] }
0x10e3   :  { %2829 = vadd.xlane.f32.xlu1 %v2810_v56 }
0x10e4   :  { %2827 = vadd.xlane.f32.xlu0 %v2805_v8 }
0x10ec   :  { %v11076_v41 = vpop.f32.mrb[58].mxu0 }
0x10ed   :  { %v13787_v14 = vadd.f32 %v11076_v41, %v13780_v2  ;;  %v2814_v60 = vpop.f32.mrb[59].mxu0  ;;  %v73_v41 = vld [vmem:[%s15642_s9 + $0x58] sm:$0xff] }
0x10ee   :  { %v13790_v48 = vadd.f32 %v2814_v60, %v13780_v2  ;;  %v13857_v60 = vpack.c.bf16 %v73_v41, %v72_v43 }
0x10ef   :  { %2833 = vadd.xlane.f32.xlu1 %v13787_v14 }
0x10f0   :  { %2831 = vadd.xlane.f32.xlu0 %v13790_v48  ;;  %15732 = vst [vmem:[#allocation17_spill] sm:$0xff] %v13857_v60 }
0x113f   :  { %v2826_v17 = vpop.xlane.xlu1 %2825 }
0x1140   :  { %v2837_v38 = vmul.f32 0.0078125, %v2826_v17  ;;  %v2824_v19 = vpop.xlane.xlu0 %2823  ;;  %v74_v17 = vld [vmem:[%s15642_s9 + $0x60] sm:$0xff] }
0x1141   :  { %v2836_v24 = vmul.f32 0.0078125, %v2824_v19 }
0x1142   :  { %v13794_v61 = vsub.f32 %v2800_v12, %v2837_v38  ;;  %v13836_v12 = vpack.c.bf16 %v69_v33, %v68_v6  ;;  %v75_v38 = vld [vmem:[%s15642_s9 + $0x68] sm:$0xff]  ;;  %v13883_v6 = vpack.c.bf16 %v77_v39, %v76_v62 }
0x1143   :  { %v13796_v63 = vsub.f32 %v2795_v1, %v2836_v24  ;;  %v71_v1 = vld [vmem:[%s15642_s9 + $0x48] sm:$0xff] }
0x1144   :  { %v2849_v35 = vmul.f32 %v13794_v61, %v13794_v61  ;;  %15730 = vst [vmem:[#allocation15_spill] sm:$0xff] %v13836_v12  ;;  %11881 = vmatprep.subr.bf16.mxu1 %v13836_v12  ;;  %v13847_v10 = vpack.c.bf16 %v71_v1, %v70_v21  ;;  %15734 = vst [vmem:[#allocation19_spill] sm:$0xff] %v13883_v6 }
0x1145   :  { %v2848_v22 = vmul.f32 %v13796_v63, %v13796_v63  ;;  %11883 = vmatpush3.bf16.msra.mxu1 %v13836_v12 }
0x1146   :  { %2856 = vadd.xlane.f32.xlu1 %v2849_v35  ;;  %15731 = vst [vmem:[#allocation16_spill] sm:$0xff] %v13847_v10  ;;  %11885 = vmatprep.subr.bf16.mxu1 %v13847_v10 }
0x1147   :  { %2854 = vadd.xlane.f32.xlu0 %v2848_v22  ;;  %v13867_v22 = vpack.c.bf16 %v75_v38, %v74_v17 }
0x1149   :  { %11887 = vmatpush3.bf16.msra.mxu1 %v13847_v10  ;;  %15733 = vst [vmem:[#allocation18_spill] sm:$0xff] %v13867_v22 }
0x114a   :  { %11889 = vmatprep.subr.bf16.mxu1 %v13857_v60 }
0x114d   :  { %11891 = vmatpush3.bf16.msra.mxu1 %v13857_v60 }
0x114e   :  { %11893 = vmatprep.subr.bf16.mxu1 %v13867_v22 }
0x1151   :  { %11895 = vmatpush3.bf16.msra.mxu1 %v13867_v22 }
0x1152   :  { %11897 = vmatprep.subr.bf16.mxu1 %v13883_v6 }
0x1155   :  { %11899 = vmatpush3.bf16.msra.mxu1 %v13883_v6 }
0x1156   :  { %11916 = vmatprep.subr.bf16.mxu1 %v15659_v58 }
0x1170   :  { %v2830_v19 = vpop.xlane.xlu1 %2829 }
0x1171   :  { %v2839_v24 = vmul.f32 0.0078125, %v2830_v19  ;;  %v2828_v35 = vpop.xlane.xlu0 %2827 }
0x1172   :  { %v2838_v0 = vmul.f32 0.0078125, %v2828_v35 }
0x1173   :  { %v13875_v36 = vsub.f32 %v2810_v56, %v2839_v24 }
0x1174   :  { %v13877_v54 = vsub.f32 %v2805_v8, %v2838_v0 }
0x1175   :  { %v2851_v3 = vmul.f32 %v13875_v36, %v13875_v36 }
0x1176   :  { %v2850_v33 = vmul.f32 %v13877_v54, %v13877_v54 }
0x1177   :  { %2860 = vadd.xlane.f32.xlu1 %v2851_v3 }
0x1178   :  { %2858 = vadd.xlane.f32.xlu0 %v2850_v33 }
0x117c   :  { %v2834_v56 = vpop.xlane.xlu1 %2833 }
0x117d   :  { %v2841_v8 = vmul.f32 0.0078125, %v2834_v56  ;;  %v2832_v21 = vpop.xlane.xlu0 %2831  ;;  %v13908_v56 = vrot.slane %v13776_v37, %v13724_v20 }
0x117e   :  { %v2840_v1 = vmul.f32 0.0078125, %v2832_v21 }
0x117f   :  { %v13892_v43 = vsub.f32 %v13787_v14, %v2841_v8  ;;  %v13903_v14 = vrot.slane %v13776_v37, %v13014_v28  ;;  %15736 = vst [vmem:[#allocation21_spill] sm:$0xff] %v13908_v56 }
0x1180   :  { %v13895_v41 = vsub.f32 %v13790_v48, %v2840_v1 }
0x1181   :  { %v2853_v17 = vmul.f32 %v13892_v43, %v13892_v43  ;;  %15735 = vst [vmem:[#allocation20_spill] sm:$0xff] %v13903_v14 }
0x1182   :  { %v2852_v38 = vmul.f32 %v13895_v41, %v13895_v41 }
0x1183   :  { %2864 = vadd.xlane.f32.xlu1 %v2853_v17 }
0x1184   :  { %2862 = vadd.xlane.f32.xlu0 %v2852_v38 }
0x11d3   :  { %v2857_v19 = vpop.xlane.xlu1 %2856 }
0x11d4   :  { %v2867_v24 = vmul.f32 0.0078125, %v2857_v19  ;;  %v2855_v35 = vpop.xlane.xlu0 %2854 }
0x11d5   :  { %v2866_v0 = vmul.f32 0.0078125, %v2855_v35 }
0x11d6   :  { %v2873_v62 = vadd.f32 1e-05, %v2867_v24 }
0x11d7   :  { %v2872_v39 = vadd.f32 1e-05, %v2866_v0 }
0x11d8   :  { %12478 = vrsqrt.f32 %v2873_v62 }
0x11d9   :  { %12480 = vrsqrt.f32 %v2872_v39 }
0x11e2   :  { %v12479_v48 = vpop.eup %12478 }
0x11e3   :  { %v12481_v3 = vpop.eup %12480  ;;  %v2885_v33 = vmul.f32 %v12479_v48, %v13794_v61 }
0x11e4   :  { %v2884_v8 = vmul.f32 %v12481_v3, %v13796_v63 }
0x11e5   :  { %v2895_v21 = vmul.f32 %v13903_v14, %v2885_v33 }
0x11e6   :  { %v2894_v1 = vmul.f32 %v13903_v14, %v2884_v8 }
0x11e7   :  { %v2905_v17 = vadd.f32 %v13908_v56, %v2895_v21 }
0x11e8   :  { %v2904_v38 = vadd.f32 %v13908_v56, %v2894_v1 }
0x11e9   :  { %v2917_v19 = vmul.f32 0.70710677, %v2905_v17  ;;  %v2911_v48 = vmul.f32 0.5, %v2905_v17 }
0x11ea   :  { %v2916_v24 = vmul.f32 0.70710677, %v2904_v38  ;;  %v2910_v62 = vmul.f32 0.5, %v2904_v38 }
0x11eb   :  { %12482 = verf.f32 %v2917_v19 }
0x11ec   :  { %12484 = verf.f32 %v2916_v24 }
0x11f5   :  { %v12483_v35 = vpop.eup %12482 }
0x11f6   :  { %v12485_v61 = vpop.eup %12484  ;;  %v2929_v0 = vadd.f32 1.0, %v12483_v35 }
0x11f7   :  { %v2928_v39 = vadd.f32 1.0, %v12485_v61 }
0x11f8   :  { %v2935_v63 = vmul.f32 %v2929_v0, %v2911_v48 }
0x11f9   :  { %v2934_v29 = vmul.f32 %v2928_v39, %v2910_v62 }
0x11fb   :  { %11109 = vmatprep.mubr.f32.mxu1 %v2934_v29 }
0x11fc   :  { %11110 = vmatmul.mubr.f32.vlgmr.msra.gmra.mrb[60].mxu1 %v2935_v63 }
0x1204   :  { %v2861_v3 = vpop.xlane.xlu1 %2860 }
0x1205   :  { %v2869_v33 = vmul.f32 0.0078125, %v2861_v3  ;;  %v2859_v8 = vpop.xlane.xlu0 %2858 }
0x1206   :  { %v2868_v21 = vmul.f32 0.0078125, %v2859_v8 }
0x1207   :  { %v2875_v58 = vadd.f32 1e-05, %v2869_v33 }
0x1208   :  { %v2874_v1 = vadd.f32 1e-05, %v2868_v21 }
0x1209   :  { %12486 = vrsqrt.f32 %v2875_v58 }
0x120a   :  { %12488 = vrsqrt.f32 %v2874_v1 }
0x1210   :  { %v2865_v19 = vpop.xlane.xlu1 %2864 }
0x1211   :  { %v2871_v24 = vmul.f32 0.0078125, %v2865_v19  ;;  %v2863_v5 = vpop.xlane.xlu0 %2862 }
0x1212   :  { %v2870_v2 = vmul.f32 0.0078125, %v2863_v5 }
0x1213   :  { %v12487_v35 = vpop.eup %12486  ;;  %v2877_v38 = vadd.f32 1e-05, %v2871_v24 }
0x1214   :  { %v12489_v61 = vpop.eup %12488  ;;  %v2876_v17 = vadd.f32 1e-05, %v2870_v2  ;;  %v2887_v0 = vmul.f32 %v12487_v35, %v13875_v36 }
0x1215   :  { %12490 = vrsqrt.f32 %v2877_v38  ;;  %v2886_v29 = vmul.f32 %v12489_v61, %v13877_v54 }
0x1216   :  { %12492 = vrsqrt.f32 %v2876_v17  ;;  %v2897_v62 = vmul.f32 %v13903_v14, %v2887_v0 }
0x1217   :  { %v2896_v39 = vmul.f32 %v13903_v14, %v2886_v29 }
0x1218   :  { %v2907_v58 = vadd.f32 %v13908_v56, %v2897_v62 }
0x1219   :  { %v2906_v48 = vadd.f32 %v13908_v56, %v2896_v39 }
0x121a   :  { %v2919_v63 = vmul.f32 0.70710677, %v2907_v58  ;;  %v2913_v29 = vmul.f32 0.5, %v2907_v58  ;;  %v13931_v58 = vrot.slane %v13776_v37, %v13727_v53 }
0x121b   :  { %v2918_v5 = vmul.f32 0.70710677, %v2906_v48  ;;  %v2912_v17 = vmul.f32 0.5, %v2906_v48 }
0x121c   :  { %12494 = verf.f32 %v2919_v63  ;;  %15738 = vst [vmem:[#allocation22_spill] sm:$0xff] %v13931_v58 }
0x121d   :  { %12496 = verf.f32 %v2918_v5 }
0x121f   :  { %v12491_v3 = vpop.eup %12490 }
0x1220   :  { %v12493_v2 = vpop.eup %12492  ;;  %v2889_v36 = vmul.f32 %v12491_v3, %v13892_v43 }
0x1221   :  { %v2888_v33 = vmul.f32 %v12493_v2, %v13895_v41 }
0x1222   :  { %v2899_v54 = vmul.f32 %v13903_v14, %v2889_v36 }
0x1223   :  { %v2898_v8 = vmul.f32 %v13903_v14, %v2888_v33 }
0x1224   :  { %v2909_v21 = vadd.f32 %v13908_v56, %v2899_v54  ;;  %v15737_v54 = vmov 0.0  }
0x1225   :  { %v2908_v1 = vadd.f32 %v13908_v56, %v2898_v8 }
0x1226   :  { %v12495_v19 = vpop.eup %12494  ;;  %v2921_v24 = vmul.f32 0.70710677, %v2909_v21  ;;  %v2915_v2 = vmul.f32 0.5, %v2909_v21 }
0x1227   :  { %v12497_v35 = vpop.eup %12496  ;;  %v2931_v38 = vadd.f32 1.0, %v12495_v19  ;;  %v2920_v61 = vmul.f32 0.70710677, %v2908_v1  ;;  %v2914_v5 = vmul.f32 0.5, %v2908_v1 }
0x1228   :  { %v2930_v0 = vadd.f32 1.0, %v12497_v35  ;;  %12498 = verf.f32 %v2921_v24 }
0x1229   :  { %12500 = verf.f32 %v2920_v61  ;;  %v2937_v41 = vmul.f32 %v2931_v38, %v2913_v29 }
0x122a   :  { %v2936_v43 = vmul.f32 %v2930_v0, %v2912_v17 }
0x122c   :  { %11112 = vmatprep.mubr.f32.mxu1 %v2936_v43 }
0x122d   :  { %11113 = vmatmul.mubr.f32.gmra.mrb[62].mxu1 %v2937_v41 }
0x1232   :  { %v12499_v62 = vpop.eup %12498 }
0x1233   :  { %v12501_v39 = vpop.eup %12500  ;;  %v2933_v63 = vadd.f32 1.0, %v12499_v62 }
0x1234   :  { %v2932_v3 = vadd.f32 1.0, %v12501_v39 }
0x1235   :  { %v2939_v33 = vmul.f32 %v2933_v63, %v2915_v2 }
0x1236   :  { %v2938_v36 = vmul.f32 %v2932_v3, %v2914_v5 }
0x1238   :  { %11115 = vmatprep.mubr.f32.mxu1 %v2938_v36 }
0x1239   :  { %11116 = vmatmul.mubr.f32.gmra.mrb[64].mxu1 %v2939_v33 }
0x123a   :  { %11171 = vmatprep.mubr.msk.f32.mxu1 %vm12804_vm2, %v15737_v54 }
0x12cf   :  { %v11111_v48 = vpop.f32.mrb[60].mxu1 }
0x12d0   :  { %v3016_v8 = vadd.f32 %v11111_v48, %v13931_v58  ;;  %v3010_v19 = vpop.f32.mrb[61].mxu1 }
0x12d1   :  { %v3011_v24 = vadd.f32 %v3010_v19, %v13931_v58 }
0x12d2   :  { %v3040_v1 = vadd.f32 %v3016_v8, %v13743_v25 }
0x12d3   :  { %v3039_v21 = vadd.f32 %v3011_v24, %v13740_v55 }
0x12d4   :  { %v3048_v35 = vsel %vm253_vm1, %v3040_v1, 0.0 }
0x12d5   :  { %3049 = vadd.xlane.f32.xlu1 %v3048_v35  ;;  %v3045_v38 = vsel %vm253_vm1, %v3039_v21, 0.0 }
0x12d6   :  { %3046 = vadd.xlane.f32.xlu0 %v3045_v38 }
0x1300   :  { %v11114_v61 = vpop.f32.mrb[62].mxu1 }
0x1301   :  { %v3026_v37 = vadd.f32 %v11114_v61, %v13931_v58  ;;  %v3020_v17 = vpop.f32.mrb[63].mxu1 }
0x1302   :  { %v3021_v0 = vadd.f32 %v3020_v17, %v13931_v58 }
0x1303   :  { %v3042_v29 = vadd.f32 %v3026_v37, %v13755_v46 }
0x1304   :  { %v3041_v43 = vadd.f32 %v3021_v0, %v13752_v50 }
0x1305   :  { %v3054_v25 = vsel %vm253_vm1, %v3042_v29, 0.0 }
0x1306   :  { %3055 = vadd.xlane.f32.xlu1 %v3054_v25  ;;  %v3051_v55 = vsel %vm253_vm1, %v3041_v43, 0.0 }
0x1307   :  { %3052 = vadd.xlane.f32.xlu0 %v3051_v55 }
0x130c   :  { %v11117_v41 = vpop.f32.mrb[64].mxu1 }
0x130d   :  { %v3036_v62 = vadd.f32 %v11117_v41, %v13931_v58  ;;  %v3030_v39 = vpop.f32.mrb[65].mxu1 }
0x130e   :  { %v3031_v63 = vadd.f32 %v3030_v39, %v13931_v58 }
0x130f   :  { %v3044_v5 = vadd.f32 %v3036_v62, %v13767_v49 }
0x1310   :  { %v3043_v3 = vadd.f32 %v3031_v63, %v13764_v52 }
0x1311   :  { %v3060_v46 = vsel %vm253_vm1, %v3044_v5, 0.0 }
0x1312   :  { %3061 = vadd.xlane.f32.xlu1 %v3060_v46  ;;  %v3057_v50 = vsel %vm253_vm1, %v3043_v3, 0.0 }
0x1313   :  { %3058 = vadd.xlane.f32.xlu0 %v3057_v50 }
0x1362   :  { %v3050_v2 = vpop.xlane.xlu1 %3049 }
0x1363   :  { %v3064_v36 = vmul.f32 0.03125, %v3050_v2  ;;  %v3047_v33 = vpop.xlane.xlu0 %3046 }
0x1364   :  { %v3063_v48 = vmul.f32 0.03125, %v3047_v33 }
0x1365   :  { %v3070_v8 = vsub.f32 %v3040_v1, %v3064_v36 }
0x1366   :  { %v3069_v19 = vsub.f32 %v3039_v21, %v3063_v48 }
0x1367   :  { %v3076_v24 = vmul.f32 %v3070_v8, %v3070_v8 }
0x1368   :  { %v3075_v35 = vmul.f32 %v3069_v19, %v3069_v19 }
0x1369   :  { %v3084_v38 = vsel %vm253_vm1, %v3076_v24, 0.0 }
0x136a   :  { %3085 = vadd.xlane.f32.xlu1 %v3084_v38  ;;  %v3081_v49 = vsel %vm253_vm1, %v3075_v35, 0.0 }
0x136b   :  { %3082 = vadd.xlane.f32.xlu0 %v3081_v49 }
0x1393   :  { %v3056_v52 = vpop.xlane.xlu1 %3055 }
0x1394   :  { %v3066_v61 = vmul.f32 0.03125, %v3056_v52  ;;  %v3053_v37 = vpop.xlane.xlu0 %3052 }
0x1395   :  { %v3065_v17 = vmul.f32 0.03125, %v3053_v37 }
0x1396   :  { %v3072_v0 = vsub.f32 %v3042_v29, %v3066_v61  ;;  %v13958_v61 = vsub.s32 4, %v13005_v16 }
0x1397   :  { %v3071_v25 = vsub.f32 %v3041_v43, %v3065_v17 }
0x1398   :  { %v3078_v55 = vmul.f32 %v3072_v0, %v3072_v0  ;;  %15739 = vst [vmem:[#allocation23_spill] sm:$0xff] %v13958_v61 }
0x1399   :  { %v3077_v41 = vmul.f32 %v3071_v25, %v3071_v25 }
0x139a   :  { %v3090_v62 = vsel %vm253_vm1, %v3078_v55, 0.0 }
0x139b   :  { %3091 = vadd.xlane.f32.xlu1 %v3090_v62  ;;  %v3087_v1 = vsel %vm253_vm1, %v3077_v41, 0.0 }
0x139c   :  { %3088 = vadd.xlane.f32.xlu0 %v3087_v1 }
0x139f   :  { %v3062_v21 = vpop.xlane.xlu1 %3061 }
0x13a0   :  { %v3068_v39 = vmul.f32 0.03125, %v3062_v21  ;;  %v3059_v63 = vpop.xlane.xlu0 %3058 }
0x13a1   :  { %v3067_v46 = vmul.f32 0.03125, %v3059_v63 }
0x13a2   :  { %v3074_v50 = vsub.f32 %v3044_v5, %v3068_v39  ;;  %v13961_v5 = vsub.s32 5, %v13005_v16 }
0x13a3   :  { %v3073_v2 = vsub.f32 %v3043_v3, %v3067_v46  ;;  %v13965_v3 = vrot.slane %v13673_v11, %v13958_v61 }
0x13a4   :  { %v3080_v36 = vmul.f32 %v3074_v50, %v3074_v50  ;;  %15740 = vst [vmem:[#allocation24_spill] sm:$0xff] %v13961_v5  ;;  %v13969_v41 = vrot.slane %v13673_v11, %v13961_v5 }
0x13a5   :  { %v3079_v33 = vmul.f32 %v3073_v2, %v3073_v2  ;;  %15741 = vst [vmem:[#allocation25_spill] sm:$0xff] %v13965_v3 }
0x13a6   :  { %v3096_v48 = vsel %vm253_vm1, %v3080_v36, 0.0  ;;  %15742 = vst [vmem:[#allocation26_spill] sm:$0xff] %v13969_v41 }
0x13a7   :  { %3097 = vadd.xlane.f32.xlu1 %v3096_v48  ;;  %v3093_v29 = vsel %vm253_vm1, %v3079_v33, 0.0 }
0x13a8   :  { %3094 = vadd.xlane.f32.xlu0 %v3093_v29 }
0x13f7   :  { %v3086_v43 = vpop.xlane.xlu1 %3085 }
0x13f8   :  { %v3100_v24 = vmul.f32 0.03125, %v3086_v43  ;;  %v3083_v35 = vpop.xlane.xlu0 %3082 }
0x13f9   :  { %v3099_v38 = vmul.f32 0.03125, %v3083_v35 }
0x13fa   :  { %v3106_v49 = vadd.f32 1e-05, %v3100_v24 }
0x13fb   :  { %v3105_v52 = vadd.f32 1e-05, %v3099_v38 }
0x13fc   :  { %12502 = vrsqrt.f32 %v3106_v49 }
0x13fd   :  { %12504 = vrsqrt.f32 %v3105_v52 }
0x1406   :  { %v12503_v37 = vpop.eup %12502 }
0x1407   :  { %v12505_v17 = vpop.eup %12504  ;;  %v3118_v55 = vmul.f32 %v12503_v37, %v3070_v8 }
0x1408   :  { %v3117_v62 = vmul.f32 %v12505_v17, %v3069_v19 }
0x1409   :  { %v3128_v1 = vmul.f32 %v13965_v3, %v3118_v55 }
0x140a   :  { %v3127_v21 = vmul.f32 %v13965_v3, %v3117_v62 }
0x140b   :  { %v3138_v39 = vadd.f32 %v13969_v41, %v3128_v1 }
0x140c   :  { %v3137_v16 = vadd.f32 %v13969_v41, %v3127_v21 }
0x140d   :  { %v3146_v63 = vsel %vm253_vm1, %v3138_v39, 0.0 }
0x140e   :  { %3147 = vadd.xlane.f32.xlu1 %v3146_v63  ;;  %v3143_v46 = vsel %vm253_vm1, %v3137_v16, 0.0 }
0x140f   :  { %3144 = vadd.xlane.f32.xlu0 %v3143_v46 }
0x1428   :  { %v3092_v8 = vpop.xlane.xlu1 %3091 }
0x1429   :  { %v3102_v36 = vmul.f32 0.03125, %v3092_v8  ;;  %v3089_v33 = vpop.xlane.xlu0 %3088 }
0x142a   :  { %v3101_v11 = vmul.f32 0.03125, %v3089_v33 }
0x142b   :  { %v3108_v48 = vadd.f32 1e-05, %v3102_v36 }
0x142c   :  { %v3107_v19 = vadd.f32 1e-05, %v3101_v11 }
0x142d   :  { %12506 = vrsqrt.f32 %v3108_v48 }
0x142e   :  { %12508 = vrsqrt.f32 %v3107_v19 }
0x1434   :  { %v3098_v29 = vpop.xlane.xlu1 %3097 }
0x1435   :  { %v3104_v43 = vmul.f32 0.03125, %v3098_v29  ;;  %v3095_v24 = vpop.xlane.xlu0 %3094 }
0x1436   :  { %v3103_v35 = vmul.f32 0.03125, %v3095_v24 }
0x1437   :  { %v12507_v38 = vpop.eup %12506  ;;  %v3110_v49 = vadd.f32 1e-05, %v3104_v43 }
0x1438   :  { %v12509_v52 = vpop.eup %12508  ;;  %v3109_v37 = vadd.f32 1e-05, %v3103_v35  ;;  %v3120_v17 = vmul.f32 %v12507_v38, %v3072_v0 }
0x1439   :  { %12510 = vrsqrt.f32 %v3110_v49  ;;  %v3119_v55 = vmul.f32 %v12509_v52, %v3071_v25 }
0x143a   :  { %12512 = vrsqrt.f32 %v3109_v37  ;;  %v3130_v62 = vmul.f32 %v13965_v3, %v3120_v17 }
0x143b   :  { %v3129_v1 = vmul.f32 %v13965_v3, %v3119_v55 }
0x143c   :  { %v3140_v21 = vadd.f32 %v13969_v41, %v3130_v62 }
0x143d   :  { %v3139_v63 = vadd.f32 %v13969_v41, %v3129_v1  ;;  %v10029_v1 = vld [vmem:[%s15639_s6 + $0x20] sm:$0xff] }
0x143e   :  { %v3152_v46 = vsel %vm253_vm1, %v3140_v21, 0.0 }
0x143f   :  { %3153 = vadd.xlane.f32.xlu1 %v3152_v46  ;;  %v3149_v8 = vsel %vm253_vm1, %v3139_v63, 0.0  ;;  %v10030_v46 = vld [vmem:[%s15639_s6 + $0x28] sm:$0xff] }
0x1440   :  { %3150 = vadd.xlane.f32.xlu0 %v3149_v8  ;;  %v13997_v8 = vpack.c.bf16 %v10030_v46, %v10029_v1 }
0x1442   :  { %15743 = vst [vmem:[#allocation27_spill] sm:$0xff] %v13997_v8  ;;  %11901 = vmatprep.subr.bf16.mxu0 %v13997_v8 }
0x1443   :  { %v12511_v36 = vpop.eup %12510  ;;  %11903 = vmatpush3.bf16.msra.mxu0 %v13997_v8 }
0x1444   :  { %v12513_v33 = vpop.eup %12512  ;;  %v3122_v0 = vmul.f32 %v12511_v36, %v3074_v50 }
0x1445   :  { %v3121_v11 = vmul.f32 %v12513_v33, %v3073_v2  ;;  %v15745_v33 = vmov 0.0|0.0  }
0x1446   :  { %v3132_v25 = vmul.f32 %v13965_v3, %v3122_v0 }
0x1447   :  { %v3131_v48 = vmul.f32 %v13965_v3, %v3121_v11 }
0x1448   :  { %v3142_v19 = vadd.f32 %v13969_v41, %v3132_v25 }
0x1449   :  { %v3141_v29 = vadd.f32 %v13969_v41, %v3131_v48 }
0x144a   :  { %v3158_v43 = vsel %vm253_vm1, %v3142_v19, 0.0 }
0x144b   :  { %3159 = vadd.xlane.f32.xlu1 %v3158_v43  ;;  %v3155_v24 = vsel %vm253_vm1, %v3141_v29, 0.0 }
0x144c   :  { %3156 = vadd.xlane.f32.xlu0 %v3155_v24 }
0x149b   :  { %v3148_v35 = vpop.xlane.xlu1 %3147 }
0x149c   :  { %v3162_v38 = vmul.f32 0.03125, %v3148_v35  ;;  %v3145_v49 = vpop.xlane.xlu0 %3144 }
0x149d   :  { %v3161_v52 = vmul.f32 0.03125, %v3145_v49 }
0x149e   :  { %v3168_v50 = vsub.f32 %v3138_v39, %v3162_v38  ;;  %v10031_v39 = vld [vmem:[%s15639_s6 + $0x30] sm:$0xff] }
0x149f   :  { %v3167_v2 = vsub.f32 %v3137_v16, %v3161_v52  ;;  %v10032_v16 = vld [vmem:[%s15639_s6 + $0x38] sm:$0xff] }
0x14a0   :  { %v3174_v37 = vmul.f32 %v3168_v50, %v3168_v50  ;;  %v14006_v36 = vpack.c.bf16 %v10032_v16, %v10031_v39 }
0x14a1   :  { %v3173_v17 = vmul.f32 %v3167_v2, %v3167_v2 }
0x14a2   :  { %v3182_v55 = vsel %vm253_vm1, %v3174_v37, 0.0  ;;  %15744 = vst [vmem:[#allocation28_spill] sm:$0xff] %v14006_v36  ;;  %11905 = vmatprep.subr.bf16.mxu0 %v14006_v36 }
0x14a3   :  { %3183 = vadd.xlane.f32.xlu1 %v3182_v55  ;;  %v3179_v62 = vsel %vm253_vm1, %v3173_v17, 0.0  ;;  %11907 = vmatpush3.bf16.msra.mxu0 %v14006_v36 }
0x14a4   :  { %3180 = vadd.xlane.f32.xlu0 %v3179_v62  ;;  %11908 = vmatprep.subr.bf16.mxu0 %v15745_v33 }
0x14cc   :  { %v3154_v0 = vpop.xlane.xlu1 %3153 }
0x14cd   :  { %v3164_v11 = vmul.f32 0.03125, %v3154_v0  ;;  %v3151_v25 = vpop.xlane.xlu0 %3150 }
0x14ce   :  { %v3163_v48 = vmul.f32 0.03125, %v3151_v25 }
0x14cf   :  { %v3170_v43 = vsub.f32 %v3140_v21, %v3164_v11 }
0x14d0   :  { %v3169_v24 = vsub.f32 %v3139_v63, %v3163_v48 }
0x14d1   :  { %v3176_v35 = vmul.f32 %v3170_v43, %v3170_v43 }
0x14d2   :  { %v3175_v38 = vmul.f32 %v3169_v24, %v3169_v24 }
0x14d3   :  { %v3188_v49 = vsel %vm253_vm1, %v3176_v35, 0.0 }
0x14d4   :  { %3189 = vadd.xlane.f32.xlu1 %v3188_v49  ;;  %v3185_v52 = vsel %vm253_vm1, %v3175_v38, 0.0 }
0x14d5   :  { %3186 = vadd.xlane.f32.xlu0 %v3185_v52 }
0x14d8   :  { %v3160_v37 = vpop.xlane.xlu1 %3159 }
0x14d9   :  { %v3166_v17 = vmul.f32 0.03125, %v3160_v37  ;;  %v3157_v55 = vpop.xlane.xlu0 %3156 }
0x14da   :  { %v3165_v62 = vmul.f32 0.03125, %v3157_v55 }
0x14db   :  { %v3172_v1 = vsub.f32 %v3142_v19, %v3166_v17  ;;  %v10027_v19 = vld [vmem:[%s15643_s10 + $0x10] sm:$0xff] }
0x14dc   :  { %v3171_v46 = vsub.f32 %v3141_v29, %v3165_v62  ;;  %v14020_v29 = vrot.slane %v10027_v19, %v13008_v23  ;;  %v14023_v55 = vrot.slane %v10027_v19, %v13014_v28 }
0x14dd   :  { %v3178_v39 = vmul.f32 %v3172_v1, %v3172_v1 }
0x14de   :  { %v3177_v16 = vmul.f32 %v3171_v46, %v3171_v46  ;;  %15746 = vst [vmem:[#allocation29_spill] sm:$0xff] %v14020_v29  ;;  %15747 = vst [vmem:[#allocation30_spill] sm:$0xff] %v14023_v55 }
0x14df   :  { %v3194_v0 = vsel %vm253_vm1, %v3178_v39, 0.0 }
0x14e0   :  { %3195 = vadd.xlane.f32.xlu1 %v3194_v0  ;;  %v3191_v21 = vsel %vm253_vm1, %v3177_v16, 0.0 }
0x14e1   :  { %3192 = vadd.xlane.f32.xlu0 %v3191_v21 }
0x1530   :  { %v3184_v63 = vpop.xlane.xlu1 %3183 }
0x1531   :  { %v3198_v11 = vmul.f32 0.03125, %v3184_v63  ;;  %v3181_v25 = vpop.xlane.xlu0 %3180 }
0x1532   :  { %v3197_v48 = vmul.f32 0.03125, %v3181_v25 }
0x1533   :  { %v3204_v35 = vadd.f32 1e-05, %v3198_v11 }
0x1534   :  { %v3203_v38 = vadd.f32 1e-05, %v3197_v48 }
0x1535   :  { %12514 = vrsqrt.f32 %v3204_v35 }
0x1536   :  { %12516 = vrsqrt.f32 %v3203_v38 }
0x153f   :  { %v12515_v49 = vpop.eup %12514 }
0x1540   :  { %v12517_v52 = vpop.eup %12516  ;;  %v3216_v37 = vmul.f32 %v12515_v49, %v3168_v50 }
0x1541   :  { %v3215_v17 = vmul.f32 %v12517_v52, %v3167_v2 }
0x1542   :  { %v3226_v62 = vmul.f32 %v14020_v29, %v3216_v37 }
0x1543   :  { %v3225_v39 = vmul.f32 %v14020_v29, %v3215_v17 }
0x1544   :  { %v14031_v0 = vadd.f32 %v14023_v55, %v3226_v62 }
0x1545   :  { %v14028_v16 = vadd.f32 %v14023_v55, %v3225_v39 }
0x1547   :  { %11126 = vmatprep.mubr.msk.f32.mxu0 %vm253_vm1, %v14028_v16 }
0x1548   :  { %11127 = vmatmul.mubr.msk.f32.vlgmr.msra.gmra.mrb[60].mxu0 %vm253_vm1, %v14031_v0 }
0x1561   :  { %v3190_v50 = vpop.xlane.xlu1 %3189 }
0x1562   :  { %v3200_v2 = vmul.f32 0.03125, %v3190_v50  ;;  %v3187_v21 = vpop.xlane.xlu0 %3186 }
0x1563   :  { %v3199_v63 = vmul.f32 0.03125, %v3187_v21 }
0x1564   :  { %v3206_v11 = vadd.f32 1e-05, %v3200_v2 }
0x1565   :  { %v3205_v25 = vadd.f32 1e-05, %v3199_v63 }
0x1566   :  { %12518 = vrsqrt.f32 %v3206_v11 }
0x1567   :  { %12520 = vrsqrt.f32 %v3205_v25 }
0x156d   :  { %v3196_v48 = vpop.xlane.xlu1 %3195 }
0x156e   :  { %v3202_v35 = vmul.f32 0.03125, %v3196_v48  ;;  %v3193_v38 = vpop.xlane.xlu0 %3192 }
0x156f   :  { %v3201_v49 = vmul.f32 0.03125, %v3193_v38 }
0x1570   :  { %v12519_v52 = vpop.eup %12518  ;;  %v3208_v37 = vadd.f32 1e-05, %v3202_v35 }
0x1571   :  { %v12521_v17 = vpop.eup %12520  ;;  %v3207_v62 = vadd.f32 1e-05, %v3201_v49  ;;  %v3218_v39 = vmul.f32 %v12519_v52, %v3170_v43 }
0x1572   :  { %12522 = vrsqrt.f32 %v3208_v37  ;;  %v3217_v5 = vmul.f32 %v12521_v17, %v3169_v24 }
0x1573   :  { %12524 = vrsqrt.f32 %v3207_v62  ;;  %v3228_v50 = vmul.f32 %v14020_v29, %v3218_v39 }
0x1574   :  { %v3227_v21 = vmul.f32 %v14020_v29, %v3217_v5 }
0x1575   :  { %v14043_v63 = vadd.f32 %v14023_v55, %v3228_v50 }
0x1576   :  { %v14040_v2 = vadd.f32 %v14023_v55, %v3227_v21 }
0x1578   :  { %11129 = vmatprep.mubr.msk.f32.mxu0 %vm253_vm1, %v14040_v2 }
0x1579   :  { %11130 = vmatmul.mubr.msk.f32.gmra.mrb[62].mxu0 %vm253_vm1, %v14043_v63 }
0x157c   :  { %v12523_v43 = vpop.eup %12522 }
0x157d   :  { %v12525_v11 = vpop.eup %12524  ;;  %v3220_v24 = vmul.f32 %v12523_v43, %v3172_v1  ;;  %v14064_v1 = vrot.slane %v10027_v19, %v13065_v57 }
0x157e   :  { %v3219_v25 = vmul.f32 %v12525_v11, %v3171_v46 }
0x157f   :  { %v3230_v48 = vmul.f32 %v14020_v29, %v3220_v24  ;;  %15748 = vst [vmem:[#allocation31_spill] sm:$0xff] %v14064_v1 }
0x1580   :  { %v3229_v5 = vmul.f32 %v14020_v29, %v3219_v25 }
0x1581   :  { %v14055_v38 = vadd.f32 %v14023_v55, %v3230_v48 }
0x1582   :  { %v14052_v35 = vadd.f32 %v14023_v55, %v3229_v5 }
0x1584   :  { %11132 = vmatprep.mubr.msk.f32.mxu0 %vm253_vm1, %v14052_v35 }
0x1585   :  { %11133 = vmatmul.mubr.msk.f32.gmra.mrb[64].mxu0 %vm253_vm1, %v14055_v38 }
0x1586   :  { %11141 = vmatprep.mubr.msk.f32.mxu0 %vm12804_vm2, %v15737_v54 }
0x161b   :  { %v11128_v46 = vpop.f32.mrb[60].mxu0 }
0x161c   :  { %v14067_v49 = vadd.f32 %v11128_v46, %v14064_v1  ;;  %v3329_v52 = vpop.f32.mrb[61].mxu0 }
0x161d   :  { %v14070_v37 = vadd.f32 %v3329_v52, %v14064_v1 }
0x161f   :  { %v14074_v17 = vpack.i.bf16 %v14067_v49, %v14070_v37 }
0x1621   :  { %12279 = vrot.lane.b32.xlu0 %v14074_v17, %s12803_s17 }
0x164c   :  { %v11131_v62 = vpop.f32.mrb[62].mxu0 }
0x164d   :  { %v3339_v39 = vpop.f32.mrb[63].mxu0  ;;  %v14087_v11 = vadd.f32 %v11131_v62, %v14064_v1 }
0x164e   :  { %v14079_v19 = vadd.f32 %v3339_v39, %v14064_v1 }
0x1650   :  { %3365 = vrot.lane.b32.xlu1 %v14079_v19, %s12803_s17 }
0x1658   :  { %v11134_v50 = vpop.f32.mrb[64].mxu0 }
0x1659   :  { %v14084_v21 = vadd.f32 %v11134_v50, %v14064_v1  ;;  %v3349_v43 = vpop.f32.mrb[65].mxu0 }
0x165a   :  { %v14090_v24 = vadd.f32 %v3349_v43, %v14064_v1 }
0x165b   :  { %3466 = vrot.lane.b32.xlu0 %v14084_v21, %s12803_s17 }
0x165c   :  { %v14096_v25 = vpack.i.bf16 %v14090_v24, %v14087_v11 }
0x165e   :  { %12284 = vrot.lane.b32.xlu1 %v14096_v25, %s12803_s17 }
0x165f   :  { %3642 = vrot.lane.b32.xlu0 %v14079_v19, %s12807_s18 }
0x1662   :  { %12289 = vrot.lane.b32.xlu1 %v14074_v17, %s12807_s18 }
0x1663   :  { %12294 = vrot.lane.b32.xlu0 %v14074_v17, %s12808_s19 }
0x1666   :  { %3844 = vrot.lane.b32.xlu1 %v14079_v19, %s12808_s19 }
0x1693   :  { %v12280_v48 = vpop.permute.xlu0 %12279 }
0x1694   :  { %v12282_v5 = vunpack.i.h.bf16 %v12280_v48  ;;  %v12281_v46 = vunpack.i.l.bf16 %v12280_v48 }
0x1696   :  { %v11909_v52 = vpack.c.bf16 %v12282_v5, %v12281_v46 }
0x1698   :  { %11911 = vmatpush3.bf16.xpose.msk.msra.mxu0 %vm13112_vm4, %v11909_v52 }
0x1699   :  { %11139 = vmatprep.subr.mxu0 %v15737_v54 }
0x16c2   :  { %v3366_v62 = vpop.permute.xlu1 %3365 }
0x16c3   :  { %11140 = vmatpush3.xpose.msk.msra.mxu0 %vm479_vm3, %v3366_v62 }
0x16c4   :  { %11912 = vmatprep.subr.bf16.mxu0 %v15745_v33 }
0x16c6   :  { %11142 = vmatmul.mubr.msk.f32.vlgmr.msra.gmra.mrb[66].mxu0 %vm479_vm3, %v14070_v37 }
0x16c7   :  { %11144 = vmatprep.mubr.msk.f32.mxu0 %vm12804_vm2, %v15737_v54 }
0x16ca   :  { %11145 = vmatmul.mubr.msk.f32.gmra.mrb[68].mxu0 %vm479_vm3, %v14067_v49 }
0x16cb   :  { %11147 = vmatprep.mubr.msk.f32.mxu0 %vm12804_vm2, %v15737_v54 }
0x16cd   :  { %v3467_v62 = vpop.permute.xlu0 %3466 }
0x16ce   :  { %11148 = vmatmul.mubr.msk.f32.gmra.mrb[70].mxu0 %vm479_vm3, %v14079_v19 }
0x16cf   :  { %11156 = vmatprep.mubr.msk.f32.mxu0 %vm12804_vm2, %v15737_v54 }
0x16d0   :  { %v12285_v39 = vpop.permute.xlu1 %12284 }
0x16d1   :  { %v12287_v50 = vunpack.i.h.bf16 %v12285_v39  ;;  %v12286_v43 = vunpack.i.l.bf16 %v12285_v39  ;;  %v3643_v61 = vpop.permute.xlu0 %3642 }
0x16d3   :  { %v11913_v48 = vpack.c.bf16 %v12287_v50, %v12286_v43 }
0x16d4   :  { %v12290_v5 = vpop.permute.xlu1 %12289 }
0x16d5   :  { %v12292_v46 = vunpack.i.h.bf16 %v12290_v5  ;;  %v12291_v52 = vunpack.i.l.bf16 %v12290_v5  ;;  %11915 = vmatpush3.bf16.xpose.msk.msra.mxu0 %vm13112_vm4, %v11913_v48 }
0x16d6   :  { %11154 = vmatprep.subr.mxu0 %v15737_v54 }
0x16d7   :  { %v11917_v57 = vpack.c.bf16 %v12292_v46, %v12291_v52 }
0x16d9   :  { %11918 = vmatpush3.bf16.msra.mxu1 %v11917_v57 }
0x16da   :  { %11169 = vmatprep.subr.mxu1 %v15737_v54 }
0x16dd   :  { %11155 = vmatpush3.xpose.msk.msra.mxu0 %vm479_vm3, %v3467_v62  ;;  %11170 = vmatpush3.msra.mxu1 %v3643_v61 }
0x16de   :  { %11919 = vmatprep.subr.bf16.mxu0 %v15745_v33  ;;  %11922 = vmatprep.subr.bf16.mxu1 %v15745_v33 }
0x16e0   :  { %11157 = vmatmul.mubr.msk.f32.vlgmr.msra.gmra.mrb[72].mxu0 %vm479_vm3, %v14087_v11 }
0x16e1   :  { %11159 = vmatprep.mubr.msk.f32.mxu0 %vm12804_vm2, %v15737_v54 }
0x16e4   :  { %11160 = vmatmul.mubr.msk.f32.gmra.mrb[74].mxu0 %vm479_vm3, %v14090_v24 }
0x16e5   :  { %11162 = vmatprep.mubr.msk.f32.mxu0 %vm12804_vm2, %v15737_v54 }
0x16e8   :  { %11163 = vmatmul.mubr.msk.f32.gmra.mrb[76].mxu0 %vm479_vm3, %v14084_v21 }
0x16e9   :  { %11186 = vmatprep.mubr.msk.f32.mxu0 %vm12804_vm2, %v15737_v54 }
0x1799   :  { %v3445_v57 = vpop.f32.mrb[66].mxu0 }
0x179a   :  { %v3560_v61 = vmul.f32 0.35355338, %v3445_v57  ;;  %v11143_v39 = vpop.f32.mrb[67].mxu0 }
0x179c   :  { %v3566_v50 = vadd.f32 %v3560_v61, %v13155_v31 }
0x179d   :  { %v3450_v43 = vpop.f32.mrb[68].mxu0 }
0x179e   :  { %v3561_v48 = vmul.f32 0.35355338, %v3450_v43  ;;  %v11146_v5 = vpop.f32.mrb[69].mxu0  ;;  %v3572_v46 = vsel %vm685_vm6, %v3566_v50, -inf }
0x179f   :  { %3573 = vmax.xlane.f32.xlu1 %v3572_v46 }
0x17a0   :  { %v3567_v52 = vadd.f32 %v3561_v48, %v13155_v31 }
0x17a1   :  { %v3455_v62 = vpop.f32.mrb[70].mxu0 }
0x17a2   :  { %v3562_v1 = vmul.f32 0.35355338, %v3455_v62  ;;  %v11149_v55 = vpop.f32.mrb[71].mxu0  ;;  %v3575_v29 = vsel %vm685_vm6, %v3567_v52, -inf }
0x17a3   :  { %3576 = vmax.xlane.f32.xlu0 %v3575_v29 }
0x17a4   :  { %v3568_v41 = vadd.f32 %v3562_v1, %v13155_v31 }
0x17a6   :  { %v3578_v57 = vsel %vm685_vm6, %v3568_v41, -inf }
0x17a7   :  { %3579 = vmax.xlane.f32.xlu0 %v3578_v57 }
0x17b3   :  { %v3546_v61 = vpop.f32.mrb[72].mxu0 }
0x17b4   :  { %v3563_v39 = vmul.f32 0.35355338, %v3546_v61  ;;  %v11158_v43 = vpop.f32.mrb[73].mxu0  ;;  %v14162_v61 = vpop.permute.xlu1 %3844 }
0x17b6   :  { %v3569_v5 = vadd.f32 %v3563_v39, %v13155_v31  ;;  %v14164_v39 = vpop.permute.xlu0 %12294 }
0x17b7   :  { %v3551_v3 = vpop.f32.mrb[74].mxu0 }
0x17b8   :  { %v3564_v46 = vmul.f32 0.35355338, %v3551_v3  ;;  %v11161_v58 = vpop.f32.mrb[75].mxu0  ;;  %v3581_v48 = vsel %vm685_vm6, %v3569_v5, -inf }
0x17b9   :  { %3582 = vmax.xlane.f32.xlu1 %v3581_v48 }
0x17ba   :  { %v3570_v55 = vadd.f32 %v3564_v46, %v13155_v31 }
0x17bb   :  { %v3556_v62 = vpop.f32.mrb[76].mxu0 }
0x17bc   :  { %v11164_v29 = vpop.f32.mrb[77].mxu0  ;;  %v3584_v1 = vsel %vm685_vm6, %v3570_v55, -inf  ;;  %v3565_v58 = vmul.f32 0.35355338, %v3556_v62 }
0x17bd   :  { %3585 = vmax.xlane.f32.xlu0 %v3584_v1 }
0x17be   :  { %v3571_v3 = vadd.f32 %v3565_v58, %v13155_v31 }
0x17c0   :  { %v3587_v57 = vsel %vm685_vm6, %v3571_v3, -inf }
0x17ca   :  { %12299 = vrot.lane.b32.xlu1 %v14096_v25, %s12807_s18 }
0x17ce   :  { %3836 = vrot.lane.b32.xlu1 %v14067_v49, %s12809_s20 }
0x17d3   :  { %3834 = vrot.lane.b32.xlu0 %v14070_v37, %s12809_s20 }
0x17f2   :  { %3588 = vmax.xlane.f32.xlu1 %v3587_v57 }
0x182c   :  { %v3574_v43 = vpop.xlane.xlu1 %3573 }
0x182d   :  { %v3590_v46 = vsub.f32 %v3566_v50, %v3574_v43 }
0x182f   :  { %v3596_v48 = vmul.f32 1.442695, %v3590_v46 }
0x1830   :  { %v3577_v29 = vpop.xlane.xlu0 %3576 }
0x1831   :  { %12526 = vpow2.f32 %v3596_v48  ;;  %v3591_v1 = vsub.f32 %v3567_v52, %v3577_v29 }
0x1833   :  { %v3598_v56 = vmul.f32 1.442695, %v3591_v1 }
0x1834   :  { %v3580_v14 = vpop.xlane.xlu0 %3579 }
0x1835   :  { %12528 = vpow2.f32 %v3598_v56  ;;  %v3592_v36 = vsub.f32 %v3568_v41, %v3580_v14 }
0x1837   :  { %v3600_v62 = vmul.f32 1.442695, %v3592_v36 }
0x1839   :  { %12530 = vpow2.f32 %v3600_v62 }
0x183b   :  { %v12527_v58 = vpop.eup %12526 }
0x183c   :  { %v3608_v32 = vsel %vm685_vm6, %v12527_v58, 0.0 }
0x183d   :  { %3609 = vadd.xlane.f32.xlu0 %v3608_v32 }
0x183f   :  { %v14167_v57 = vpop.eup %12528 }
0x1840   :  { %v3611_v9 = vsel %vm685_vm6, %v14167_v57, 0.0 }
0x1841   :  { %3612 = vadd.xlane.f32.xlu1 %v3611_v9 }
0x1843   :  { %v14171_v50 = vpop.eup %12530 }
0x1844   :  { %v3614_v52 = vsel %vm685_vm6, %v14171_v50, 0.0 }
0x1845   :  { %3615 = vadd.xlane.f32.xlu0 %v3614_v52 }
0x1846   :  { %v3583_v56 = vpop.xlane.xlu1 %3582 }
0x1847   :  { %v3593_v9 = vsub.f32 %v3569_v5, %v3583_v56 }
0x1849   :  { %v3602_v46 = vmul.f32 1.442695, %v3593_v9 }
0x184a   :  { %v12300_v14 = vpop.permute.xlu1 %12299  ;;  %v3586_v32 = vpop.xlane.xlu0 %3585 }
0x184b   :  { %v12302_v41 = vunpack.i.h.bf16 %v12300_v14  ;;  %v12301_v36 = vunpack.i.l.bf16 %v12300_v14  ;;  %v3594_v48 = vsub.f32 %v3570_v55, %v3586_v32  ;;  %12532 = vpow2.f32 %v3602_v46 }
0x184d   :  { %v11920_v43 = vpack.c.bf16 %v12302_v41, %v12301_v36  ;;  %v3604_v29 = vmul.f32 1.442695, %v3594_v48  ;;  %v12297_v48 = vunpack.i.h.bf16 %v14164_v39 }
0x184e   :  { %v3837_v5 = vpop.permute.xlu1 %3836 }
0x184f   :  { %11921 = vmatpush3.bf16.msra.mxu0 %v11920_v43  ;;  %12534 = vpow2.f32 %v3604_v29  ;;  %v12296_v29 = vunpack.i.l.bf16 %v14164_v39 }
0x1850   :  { %11184 = vmatprep.subr.mxu0 %v15737_v54 }
0x1852   :  { %3838 = vrot.lane.b32.xlu1 %v14079_v19, %s12809_s20 }
0x1855   :  { %v14180_v1 = vpop.eup %12532 }
0x1856   :  { %v3617_v62 = vsel %vm685_vm6, %v14180_v1, 0.0 }
0x1859   :  { %v14184_v52 = vpop.eup %12534 }
0x185a   :  { %v3620_v14 = vsel %vm685_vm6, %v14184_v52, 0.0 }
0x185b   :  { %3740 = vrot.lane.b32.xlu0 %v14084_v21, %s12807_s18 }
0x1876   :  { %3618 = vadd.xlane.f32.xlu1 %v3617_v62 }
0x187a   :  { %3621 = vadd.xlane.f32.xlu0 %v3620_v14 }
0x187f   :  { %v3589_v55 = vpop.xlane.xlu1 %3588 }
0x1880   :  { %v3595_v56 = vsub.f32 %v3571_v3, %v3589_v55  ;;  %v3835_v3 = vpop.permute.xlu0 %3834 }
0x1882   :  { %v3606_v41 = vmul.f32 1.442695, %v3595_v56  ;;  %v11923_v56 = vpack.c.bf16 %v12297_v48, %v12296_v29 }
0x1884   :  { %12536 = vpow2.f32 %v3606_v41 }
0x1887   :  { %3948 = vrot.lane.b32.xlu1 %v14084_v21, %s12808_s19 }
0x188e   :  { %v14200_v36 = vpop.eup %12536 }
0x188f   :  { %v3623_v43 = vsel %vm685_vm6, %v14200_v36, 0.0 }
0x1890   :  { %12304 = vrot.lane.b32.xlu0 %v14096_v25, %s12808_s19 }
0x1894   :  { %3938 = vrot.lane.b32.xlu0 %v14087_v11, %s12809_s20 }
0x1898   :  { %3942 = vrot.lane.b32.xlu0 %v14084_v21, %s12809_s20 }
0x189c   :  { %4124 = vrot.lane.b32.xlu0 %v14079_v19, %s12810_s21 }
0x18a0   :  { %12314 = vrot.lane.b32.xlu0 %v14074_v17, %s12811_s22 }
0x18ab   :  { %3624 = vadd.xlane.f32.xlu1 %v3623_v43 }
0x18bc   :  { %3940 = vrot.lane.b32.xlu1 %v14090_v24, %s12809_s20 }
0x18c0   :  { %12309 = vrot.lane.b32.xlu1 %v14074_v17, %s12810_s21 }
0x18c4   :  { %4326 = vrot.lane.b32.xlu1 %v14079_v19, %s12811_s22 }
0x18ca   :  { %v3610_v9 = vpop.xlane.xlu0 %3609 }
0x18cb   :  { %12538 = vrcp.f32 %v3610_v9 }
0x18ce   :  { %v3613_v32 = vpop.xlane.xlu1 %3612 }
0x18cf   :  { %12540 = vrcp.f32 %v3613_v32 }
0x18d2   :  { %v3616_v46 = vpop.xlane.xlu0 %3615 }
0x18d3   :  { %12542 = vrcp.f32 %v3616_v46 }
0x18d5   :  { %v12539_v62 = vpop.eup %12538 }
0x18d6   :  { %v3632_v14 = vmul.f32 %v12539_v62, %v12527_v58  ;;  %v3741_v55 = vpop.permute.xlu0 %3740 }
0x18d7   :  { %11185 = vmatpush3.msra.mxu0 %v3741_v55 }
0x18d8   :  { %11172 = vmatmul.mubr.msk.f32.vlgmr.msra.gmra.mrb[66].mxu1 %vm685_vm6, %v3632_v14  ;;  %11926 = vmatprep.subr.bf16.mxu0 %v15745_v33 }
0x18d9   :  { %v12541_v41 = vpop.eup %12540  ;;  %11925 = vmatpush3.bf16.xpose.msk.msra.mxu1 %vm13112_vm4, %v11923_v56  ;;  %11174 = vmatprep.mubr.msk.f32.mxu1 %vm12804_vm2, %v15737_v54 }
0x18da   :  { %v3633_v43 = vmul.f32 %v12541_v41, %v14167_v57  ;;  %11199 = vmatprep.subr.mxu1 %v15737_v54  ;;  %v3839_v57 = vpop.permute.xlu1 %3838 }
0x18dc   :  { %11175 = vmatmul.mubr.msk.f32.gmra.mrb[68].mxu1 %vm685_vm6, %v3633_v43 }
0x18dd   :  { %v12543_v39 = vpop.eup %12542  ;;  %11177 = vmatprep.mubr.msk.f32.mxu1 %vm12804_vm2, %v15737_v54 }
0x18de   :  { %v3634_v58 = vmul.f32 %v12543_v39, %v14171_v50 }
0x18e0   :  { %11178 = vmatmul.mubr.msk.f32.gmra.mrb[70].mxu1 %vm685_vm6, %v3634_v58 }
0x18e1   :  { %11200 = vmatpush3.xpose.msk.msra.mxu1 %vm479_vm3, %v14162_v61  ;;  %11201 = vmatprep.mubr.msk.f32.mxu1 %vm12804_vm2, %v15737_v54 }
0x18e2   :  { %11930 = vmatprep.subr.bf16.mxu1 %v15745_v33 }
0x18e4   :  { %11202 = vmatmul.mubr.msk.f32.vlgmr.msra.gmra.mrb[72].mxu1 %vm479_vm3, %v3835_v3 }
0x18e5   :  { %11204 = vmatprep.mubr.msk.f32.mxu1 %vm12804_vm2, %v15737_v54 }
0x18e8   :  { %11205 = vmatmul.mubr.msk.f32.gmra.mrb[74].mxu1 %vm479_vm3, %v3837_v5 }
0x18e9   :  { %11207 = vmatprep.mubr.msk.f32.mxu1 %vm12804_vm2, %v15737_v54 }
0x18ec   :  { %11208 = vmatmul.mubr.msk.f32.gmra.mrb[76].mxu1 %vm479_vm3, %v3839_v57 }
0x18ed   :  { %11231 = vmatprep.mubr.msk.f32.mxu1 %vm12804_vm2, %v15737_v54 }
0x1903   :  { %v3619_v61 = vpop.xlane.xlu1 %3618 }
0x1904   :  { %12544 = vrcp.f32 %v3619_v61 }
0x1907   :  { %v3622_v50 = vpop.xlane.xlu0 %3621  ;;  %v3949_v14 = vpop.permute.xlu1 %3948 }
0x1908   :  { %12546 = vrcp.f32 %v3622_v50 }
0x190b   :  { %v12305_v9 = vpop.permute.xlu0 %12304 }
0x190c   :  { %v12307_v3 = vunpack.i.h.bf16 %v12305_v9  ;;  %v12306_v32 = vunpack.i.l.bf16 %v12305_v9 }
0x190e   :  { %v12545_v46 = vpop.eup %12544  ;;  %v11927_v48 = vpack.c.bf16 %v12307_v3, %v12306_v32 }
0x190f   :  { %v3635_v5 = vmul.f32 %v12545_v46, %v14180_v1  ;;  %v3939_v55 = vpop.permute.xlu0 %3938 }
0x1911   :  { %11187 = vmatmul.mubr.msk.f32.vlgmr.msra.gmra.mrb[78].mxu0 %vm685_vm6, %v3635_v5 }
0x1912   :  { %v12547_v29 = vpop.eup %12546  ;;  %11929 = vmatpush3.bf16.xpose.msk.msra.mxu0 %vm13112_vm4, %v11927_v48  ;;  %11189 = vmatprep.mubr.msk.f32.mxu0 %vm12804_vm2, %v15737_v54 }
0x1913   :  { %v3636_v62 = vmul.f32 %v12547_v29, %v14184_v52  ;;  %11214 = vmatprep.subr.mxu0 %v15737_v54  ;;  %v3943_v52 = vpop.permute.xlu0 %3942 }
0x1915   :  { %11190 = vmatmul.mubr.msk.f32.gmra.mrb[80].mxu0 %vm685_vm6, %v3636_v62 }
0x1916   :  { %11192 = vmatprep.mubr.msk.f32.mxu0 %vm12804_vm2, %v15737_v54 }
0x1917   :  { %v4125_v50 = vpop.permute.xlu0 %4124 }
0x191a   :  { %11215 = vmatpush3.xpose.msk.msra.mxu0 %vm479_vm3, %v3949_v14 }
0x191b   :  { %11933 = vmatprep.subr.bf16.mxu0 %v15745_v33 }
0x1938   :  { %v3625_v1 = vpop.xlane.xlu1 %3624 }
0x1939   :  { %12548 = vrcp.f32 %v3625_v1 }
0x193c   :  { %v3941_v56 = vpop.permute.xlu1 %3940 }
0x1940   :  { %v12310_v41 = vpop.permute.xlu1 %12309 }
0x1941   :  { %v12312_v43 = vunpack.i.h.bf16 %v12310_v41  ;;  %v12311_v39 = vunpack.i.l.bf16 %v12310_v41 }
0x1943   :  { %v12549_v58 = vpop.eup %12548  ;;  %v11931_v57 = vpack.c.bf16 %v12312_v43, %v12311_v39 }
0x1944   :  { %v3637_v61 = vmul.f32 %v12549_v58, %v14200_v36 }
0x1945   :  { %11932 = vmatpush3.bf16.msra.mxu1 %v11931_v57 }
0x1946   :  { %11193 = vmatmul.mubr.msk.f32.gmra.mrb[82].mxu0 %vm685_vm6, %v3637_v61  ;;  %11229 = vmatprep.subr.mxu1 %v15737_v54 }
0x1947   :  { %11216 = vmatprep.mubr.msk.f32.mxu0 %vm12804_vm2, %v15737_v54 }
0x1949   :  { %11230 = vmatpush3.msra.mxu1 %v4125_v50 }
0x194a   :  { %11217 = vmatmul.mubr.msk.f32.vlgmr.msra.gmra.mrb[84].mxu0 %vm479_vm3, %v3939_v55  ;;  %11936 = vmatprep.subr.bf16.mxu1 %v15745_v33 }
0x194b   :  { %11219 = vmatprep.mubr.msk.f32.mxu0 %vm12804_vm2, %v15737_v54 }
0x194e   :  { %11220 = vmatmul.mubr.msk.f32.gmra.mrb[86].mxu0 %vm479_vm3, %v3941_v56 }
0x194f   :  { %11222 = vmatprep.mubr.msk.f32.mxu0 %vm12804_vm2, %v15737_v54 }
0x1952   :  { %11223 = vmatmul.mubr.msk.f32.gmra.mrb[88].mxu0 %vm479_vm3, %v3943_v52 }
0x1953   :  { %11246 = vmatprep.mubr.msk.f32.mxu0 %vm12804_vm2, %v15737_v54 }
0x19ab   :  { %v14267_v36 = vpop.f32.mrb[66].mxu1 }
0x19ac   :  { %v11173_v9 = vpop.f32.mrb[67].mxu1 }
0x19af   :  { %v14269_v3 = vpop.f32.mrb[68].mxu1 }
0x19b0   :  { %v11176_v32 = vpop.f32.mrb[69].mxu1 }
0x19b3   :  { %v14271_v46 = vpop.f32.mrb[70].mxu1 }
0x19b4   :  { %v11179_v48 = vpop.f32.mrb[71].mxu1 }
0x19b7   :  { %v3924_v5 = vpop.f32.mrb[72].mxu1 }
0x19b8   :  { %v4042_v29 = vmul.f32 0.35355338, %v3924_v5  ;;  %v11203_v62 = vpop.f32.mrb[73].mxu1 }
0x19ba   :  { %v4048_v14 = vadd.f32 %v4042_v29, %v13155_v31 }
0x19bb   :  { %v3929_v1 = vpop.f32.mrb[74].mxu1 }
0x19bc   :  { %v4043_v55 = vmul.f32 0.35355338, %v3929_v1  ;;  %v11206_v56 = vpop.f32.mrb[75].mxu1  ;;  %v4054_v41 = vsel %vm685_vm6, %v4048_v14, -inf }
0x19bd   :  { %4055 = vmax.xlane.f32.xlu1 %v4054_v41 }
0x19be   :  { %v4049_v43 = vadd.f32 %v4043_v55, %v13155_v31 }
0x19bf   :  { %v3934_v39 = vpop.f32.mrb[76].mxu1 }
0x19c0   :  { %v4044_v52 = vmul.f32 0.35355338, %v3934_v39  ;;  %v11209_v58 = vpop.f32.mrb[77].mxu1  ;;  %v4057_v57 = vsel %vm685_vm6, %v4049_v43, -inf }
0x19c1   :  { %4058 = vmax.xlane.f32.xlu0 %v4057_v57 }
0x19c2   :  { %v4050_v61 = vadd.f32 %v4044_v52, %v13155_v31 }
0x19c4   :  { %v4060_v50 = vsel %vm685_vm6, %v4050_v61, -inf }
0x19c5   :  { %4061 = vmax.xlane.f32.xlu0 %v4060_v50 }
0x19e4   :  { %v14279_v9 = vpop.f32.mrb[78].mxu0 }
0x19e5   :  { %v11188_v32 = vpop.f32.mrb[79].mxu0 }
0x19e8   :  { %v14281_v48 = vpop.f32.mrb[80].mxu0 }
0x19e9   :  { %v11191_v5 = vpop.f32.mrb[81].mxu0 }
0x1a19   :  { %v14283_v29 = vpop.f32.mrb[82].mxu0 }
0x1a1a   :  { %v11194_v62 = vpop.f32.mrb[83].mxu0 }
0x1a1b   :  { %v14295_v62 = vpop.permute.xlu1 %4326 }
0x1a1d   :  { %v4028_v1 = vpop.f32.mrb[84].mxu0 }
0x1a1e   :  { %v4045_v55 = vmul.f32 0.35355338, %v4028_v1  ;;  %v11218_v56 = vpop.f32.mrb[85].mxu0  ;;  %v14297_v1 = vpop.permute.xlu0 %12314 }
0x1a20   :  { %v4051_v41 = vadd.f32 %v4045_v55, %v13155_v31 }
0x1a21   :  { %v4033_v39 = vpop.f32.mrb[86].mxu0 }
0x1a22   :  { %v4046_v58 = vmul.f32 0.35355338, %v4033_v39  ;;  %v11221_v52 = vpop.f32.mrb[87].mxu0  ;;  %v4063_v57 = vsel %vm685_vm6, %v4051_v41, -inf }
0x1a23   :  { %4064 = vmax.xlane.f32.xlu1 %v4063_v57 }
0x1a24   :  { %v4052_v50 = vadd.f32 %v4046_v58, %v13155_v31 }
0x1a25   :  { %v4038_v32 = vpop.f32.mrb[88].mxu0 }
0x1a26   :  { %v11224_v51 = vpop.f32.mrb[89].mxu0  ;;  %v4066_v5 = vsel %vm685_vm6, %v4052_v50, -inf }
0x1a27   :  { %4067 = vmax.xlane.f32.xlu0 %v4066_v5  ;;  %v4047_v5 = vmul.f32 0.35355338, %v4038_v32 }
0x1a29   :  { %v4053_v60 = vadd.f32 %v4047_v5, %v13155_v31 }
0x1a2b   :  { %v4069_v26 = vsel %vm685_vm6, %v4053_v60, -inf }
0x1a34   :  { %12319 = vrot.lane.b32.xlu1 %v14096_v25, %s12810_s21 }
0x1a38   :  { %4318 = vrot.lane.b32.xlu1 %v14067_v49, %s12812_s23 }
0x1a3d   :  { %4316 = vrot.lane.b32.xlu0 %v14070_v37, %s12812_s23 }
0x1a4a   :  { %v4056_v55 = vpop.xlane.xlu1 %4055 }
0x1a4b   :  { %v4072_v56 = vsub.f32 %v4048_v14, %v4056_v55 }
0x1a4d   :  { %v4078_v39 = vmul.f32 1.442695, %v4072_v56 }
0x1a4e   :  { %v4059_v51 = vpop.xlane.xlu0 %4058 }
0x1a4f   :  { %12550 = vpow2.f32 %v4078_v39  ;;  %v4073_v58 = vsub.f32 %v4049_v43, %v4059_v51 }
0x1a51   :  { %v4080_v52 = vmul.f32 1.442695, %v4073_v58 }
0x1a52   :  { %v4062_v57 = vpop.xlane.xlu0 %4061 }
0x1a53   :  { %12552 = vpow2.f32 %v4080_v52  ;;  %v4074_v6 = vsub.f32 %v4050_v61, %v4062_v57 }
0x1a55   :  { %v4082_v22 = vmul.f32 1.442695, %v4074_v6 }
0x1a57   :  { %12554 = vpow2.f32 %v4082_v22 }
0x1a59   :  { %v12551_v10 = vpop.eup %12550 }
0x1a5a   :  { %v4090_v12 = vsel %vm685_vm6, %v12551_v10, 0.0 }
0x1a5c   :  { %4091 = vadd.xlane.f32.xlu0 %v4090_v12  ;;  %4070 = vmax.xlane.f32.xlu1 %v4069_v26 }
0x1a5d   :  { %v12553_v14 = vpop.eup %12552 }
0x1a5e   :  { %v4093_v55 = vsel %vm685_vm6, %v12553_v14, 0.0 }
0x1a60   :  { %4094 = vadd.xlane.f32.xlu1 %v4093_v55 }
0x1a61   :  { %v12555_v43 = vpop.eup %12554 }
0x1a62   :  { %v4096_v32 = vsel %vm685_vm6, %v12555_v43, 0.0 }
0x1a63   :  { %4097 = vadd.xlane.f32.xlu0 %v4096_v32 }
0x1a71   :  { %4320 = vrot.lane.b32.xlu1 %v14079_v19, %s12812_s23 }
0x1a79   :  { %4222 = vrot.lane.b32.xlu0 %v14084_v21, %s12810_s21 }
0x1ab0   :  { %v4065_v22 = vpop.xlane.xlu1 %4064 }
0x1ab1   :  { %v4075_v6 = vsub.f32 %v4051_v41, %v4065_v22 }
0x1ab3   :  { %v4084_v61 = vmul.f32 1.442695, %v4075_v6 }
0x1ab4   :  { %v12320_v56 = vpop.permute.xlu1 %12319  ;;  %v4068_v12 = vpop.xlane.xlu0 %4067 }
0x1ab5   :  { %12556 = vpow2.f32 %v4084_v61  ;;  %v12322_v26 = vunpack.i.h.bf16 %v12320_v56  ;;  %v12321_v39 = vunpack.i.l.bf16 %v12320_v56  ;;  %v4076_v51 = vsub.f32 %v4052_v50, %v4068_v12 }
0x1ab7   :  { %v11934_v58 = vpack.c.bf16 %v12322_v26, %v12321_v39  ;;  %v4086_v52 = vmul.f32 1.442695, %v4076_v51  ;;  %v12317_v39 = vunpack.i.h.bf16 %v14297_v1  ;;  %v12316_v51 = vunpack.i.l.bf16 %v14297_v1 }
0x1ab8   :  { %v4319_v50 = vpop.permute.xlu1 %4318  ;;  %v4317_v32 = vpop.permute.xlu0 %4316 }
0x1ab9   :  { %12558 = vpow2.f32 %v4086_v52  ;;  %11935 = vmatpush3.bf16.msra.mxu0 %v11934_v58 }
0x1aba   :  { %11244 = vmatprep.subr.mxu0 %v15737_v54 }
0x1abf   :  { %v14309_v57 = vpop.eup %12556 }
0x1ac0   :  { %v4099_v5 = vsel %vm685_vm6, %v14309_v57, 0.0 }
0x1ac1   :  { %4100 = vadd.xlane.f32.xlu1 %v4099_v5 }
0x1ac3   :  { %v14313_v41 = vpop.eup %12558 }
0x1ac4   :  { %v4102_v55 = vsel %vm685_vm6, %v14313_v41, 0.0 }
0x1ac5   :  { %4103 = vadd.xlane.f32.xlu0 %v4102_v55  ;;  %v11937_v55 = vpack.c.bf16 %v12317_v39, %v12316_v51 }
0x1ad2   :  { %4430 = vrot.lane.b32.xlu1 %v14084_v21, %s12811_s22 }
0x1adb   :  { %12324 = vrot.lane.b32.xlu0 %v14096_v25, %s12811_s22 }
0x1adf   :  { %4420 = vrot.lane.b32.xlu0 %v14087_v11, %s12812_s23 }
0x1ae3   :  { %4424 = vrot.lane.b32.xlu0 %v14084_v21, %s12812_s23 }
0x1ae7   :  { %4606 = vrot.lane.b32.xlu0 %v14079_v19, %s12813_s24 }
0x1ae9   :  { %v4092_v22 = vpop.xlane.xlu0 %4091  ;;  %v4071_v6 = vpop.xlane.xlu1 %4070 }
0x1aea   :  { %12560 = vrcp.f32 %v4092_v22  ;;  %v4077_v61 = vsub.f32 %v4053_v60, %v4071_v6 }
0x1aec   :  { %v4088_v56 = vmul.f32 1.442695, %v4077_v61 }
0x1aed   :  { %v4095_v12 = vpop.xlane.xlu1 %4094 }
0x1aee   :  { %12562 = vpow2.f32 %v4088_v56 }
0x1aef   :  { %12564 = vrcp.f32 %v4095_v12 }
0x1af0   :  { %v4098_v26 = vpop.xlane.xlu0 %4097 }
0x1af1   :  { %12566 = vrcp.f32 %v4098_v26 }
0x1af4   :  { %v12561_v58 = vpop.eup %12560  ;;  %v4223_v52 = vpop.permute.xlu0 %4222 }
0x1af5   :  { %v4114_v5 = vmul.f32 %v12561_v58, %v12551_v10  ;;  %11245 = vmatpush3.msra.mxu0 %v4223_v52 }
0x1af6   :  { %11940 = vmatprep.subr.bf16.mxu0 %v15745_v33 }
0x1af7   :  { %11232 = vmatmul.mubr.msk.f32.vlgmr.msra.gmra.mrb[78].mxu1 %vm685_vm6, %v4114_v5 }
0x1af8   :  { %v12563_v60 = vpop.eup %12562  ;;  %11939 = vmatpush3.bf16.xpose.msk.msra.mxu1 %vm13112_vm4, %v11937_v55  ;;  %11234 = vmatprep.mubr.msk.f32.mxu1 %vm12804_vm2, %v15737_v54 }
0x1af9   :  { %v12565_v22 = vpop.eup %12564  ;;  %v4105_v6 = vsel %vm685_vm6, %v12563_v60, 0.0  ;;  %11259 = vmatprep.subr.mxu1 %v15737_v54 }
0x1afa   :  { %4106 = vadd.xlane.f32.xlu1 %v4105_v6  ;;  %v4115_v10 = vmul.f32 %v12565_v22, %v12553_v14  ;;  %v4321_v14 = vpop.permute.xlu1 %4320 }
0x1afb   :  { %v12567_v1 = vpop.eup %12566 }
0x1afc   :  { %11235 = vmatmul.mubr.msk.f32.gmra.mrb[80].mxu1 %vm685_vm6, %v4115_v10  ;;  %v4116_v61 = vmul.f32 %v12567_v1, %v12555_v43 }
0x1afd   :  { %11237 = vmatprep.mubr.msk.f32.mxu1 %vm12804_vm2, %v15737_v54 }
0x1b00   :  { %11238 = vmatmul.mubr.msk.f32.gmra.mrb[82].mxu1 %vm685_vm6, %v4116_v61 }
0x1b01   :  { %11260 = vmatpush3.xpose.msk.msra.mxu1 %vm479_vm3, %v14295_v62  ;;  %11261 = vmatprep.mubr.msk.f32.mxu1 %vm12804_vm2, %v15737_v54 }
0x1b02   :  { %11944 = vmatprep.subr.bf16.mxu1 %v15745_v33 }
0x1b04   :  { %11262 = vmatmul.mubr.msk.f32.vlgmr.msra.gmra.mrb[84].mxu1 %vm479_vm3, %v4317_v32 }
0x1b05   :  { %11264 = vmatprep.mubr.msk.f32.mxu1 %vm12804_vm2, %v15737_v54 }
0x1b08   :  { %11265 = vmatmul.mubr.msk.f32.gmra.mrb[86].mxu1 %vm479_vm3, %v4319_v50 }
0x1b09   :  { %11267 = vmatprep.mubr.msk.f32.mxu1 %vm12804_vm2, %v15737_v54 }
0x1b0b   :  { %4422 = vrot.lane.b32.xlu1 %v14090_v24, %s12812_s23 }
0x1b0c   :  { %11268 = vmatmul.mubr.msk.f32.gmra.mrb[88].mxu1 %vm479_vm3, %v4321_v14 }
0x1b0d   :  { %11291 = vmatprep.mubr.msk.f32.mxu1 %vm12804_vm2, %v15737_v54 }
0x1b0f   :  { %12329 = vrot.lane.b32.xlu1 %v14074_v17, %s12813_s24 }
0x1b4e   :  { %v4101_v62 = vpop.xlane.xlu1 %4100 }
0x1b4f   :  { %12568 = vrcp.f32 %v4101_v62 }
0x1b52   :  { %v4104_v43 = vpop.xlane.xlu0 %4103  ;;  %v4431_v52 = vpop.permute.xlu1 %4430 }
0x1b53   :  { %12570 = vrcp.f32 %v4104_v43 }
0x1b56   :  { %v12325_v50 = vpop.permute.xlu0 %12324 }
0x1b57   :  { %v12327_v32 = vunpack.i.h.bf16 %v12325_v50  ;;  %v12326_v56 = vunpack.i.l.bf16 %v12325_v50 }
0x1b59   :  { %v12569_v12 = vpop.eup %12568  ;;  %v11941_v26 = vpack.c.bf16 %v12327_v32, %v12326_v56 }
0x1b5a   :  { %v4117_v39 = vmul.f32 %v12569_v12, %v14309_v57  ;;  %v4421_v5 = vpop.permute.xlu0 %4420 }
0x1b5c   :  { %11247 = vmatmul.mubr.msk.f32.vlgmr.msra.gmra.mrb[90].mxu0 %vm685_vm6, %v4117_v39 }
0x1b5d   :  { %v12571_v51 = vpop.eup %12570  ;;  %11943 = vmatpush3.bf16.xpose.msk.msra.mxu0 %vm13112_vm4, %v11941_v26  ;;  %11249 = vmatprep.mubr.msk.f32.mxu0 %vm12804_vm2, %v15737_v54 }
0x1b5e   :  { %v4118_v58 = vmul.f32 %v12571_v51, %v14313_v41  ;;  %11274 = vmatprep.subr.mxu0 %v15737_v54  ;;  %v4425_v41 = vpop.permute.xlu0 %4424 }
0x1b60   :  { %11250 = vmatmul.mubr.msk.f32.gmra.mrb[92].mxu0 %vm685_vm6, %v4118_v58 }
0x1b61   :  { %11252 = vmatprep.mubr.msk.f32.mxu0 %vm12804_vm2, %v15737_v54 }
0x1b62   :  { %v4607_v62 = vpop.permute.xlu0 %4606 }
0x1b65   :  { %11275 = vmatpush3.xpose.msk.msra.mxu0 %vm479_vm3, %v4431_v52 }
0x1b66   :  { %11947 = vmatprep.subr.bf16.mxu0 %v15745_v33 }
0x1b87   :  { %v4107_v57 = vpop.xlane.xlu1 %4106 }
0x1b88   :  { %12572 = vrcp.f32 %v4107_v57 }
0x1b8b   :  { %v4423_v55 = vpop.permute.xlu1 %4422 }
0x1b8f   :  { %v12330_v22 = vpop.permute.xlu1 %12329 }
0x1b90   :  { %v12332_v6 = vunpack.i.h.bf16 %v12330_v22  ;;  %v12331_v10 = vunpack.i.l.bf16 %v12330_v22 }
0x1b92   :  { %v12573_v1 = vpop.eup %12572  ;;  %v11945_v61 = vpack.c.bf16 %v12332_v6, %v12331_v10 }
0x1b93   :  { %v4119_v14 = vmul.f32 %v12573_v1, %v12563_v60 }
0x1b94   :  { %11946 = vmatpush3.bf16.msra.mxu1 %v11945_v61 }
0x1b95   :  { %11253 = vmatmul.mubr.msk.f32.gmra.mrb[94].mxu0 %vm685_vm6, %v4119_v14  ;;  %11289 = vmatprep.subr.mxu1 %v15737_v54 }
0x1b96   :  { %11276 = vmatprep.mubr.msk.f32.mxu0 %vm12804_vm2, %v15737_v54 }
0x1b98   :  { %11290 = vmatpush3.msra.mxu1 %v4607_v62 }
0x1b99   :  { %11277 = vmatmul.mubr.msk.f32.vlgmr.msra.gmra.mrb[96].mxu0 %vm479_vm3, %v4421_v5  ;;  %11950 = vmatprep.subr.bf16.mxu1 %v15745_v33 }
0x1b9a   :  { %11279 = vmatprep.mubr.msk.f32.mxu0 %vm12804_vm2, %v15737_v54 }
0x1b9d   :  { %11280 = vmatmul.mubr.msk.f32.gmra.mrb[98].mxu0 %vm479_vm3, %v4423_v55 }
0x1b9e   :  { %11282 = vmatprep.mubr.msk.f32.mxu0 %vm12804_vm2, %v15737_v54 }
0x1ba1   :  { %11283 = vmatmul.mubr.msk.f32.gmra.mrb[100].mxu0 %vm479_vm3, %v4425_v41 }
0x1ba2   :  { %11306 = vmatprep.mubr.msk.f32.mxu0 %vm12804_vm2, %v15737_v54 }
0x1bca   :  { %v14386_v60 = vpop.f32.mrb[78].mxu1 }
0x1bcb   :  { %v11233_v43 = vpop.f32.mrb[79].mxu1 }
0x1bcf   :  { %v14388_v50 = vpop.f32.mrb[80].mxu1 }
0x1bd0   :  { %v11236_v32 = vpop.f32.mrb[81].mxu1 }
0x1bd3   :  { %v14390_v56 = vpop.f32.mrb[82].mxu1 }
0x1bd4   :  { %v11239_v12 = vpop.f32.mrb[83].mxu1 }
0x1bd7   :  { %v4406_v26 = vpop.f32.mrb[84].mxu1 }
0x1bd8   :  { %v4524_v39 = vmul.f32 0.35355338, %v4406_v26  ;;  %v11263_v51 = vpop.f32.mrb[85].mxu1 }
0x1bda   :  { %v4530_v58 = vadd.f32 %v4524_v39, %v13155_v31 }
0x1bdb   :  { %v4411_v52 = vpop.f32.mrb[86].mxu1 }
0x1bdc   :  { %v4525_v57 = vmul.f32 0.35355338, %v4411_v52  ;;  %v11266_v5 = vpop.f32.mrb[87].mxu1  ;;  %v4536_v55 = vsel %vm685_vm6, %v4530_v58, -inf }
0x1bdd   :  { %4537 = vmax.xlane.f32.xlu1 %v4536_v55 }
0x1bde   :  { %v4531_v22 = vadd.f32 %v4525_v57, %v13155_v31 }
0x1bdf   :  { %v4416_v6 = vpop.f32.mrb[88].mxu1 }
0x1be0   :  { %v4526_v10 = vmul.f32 0.35355338, %v4416_v6  ;;  %v11269_v41 = vpop.f32.mrb[89].mxu1  ;;  %v4539_v1 = vsel %vm685_vm6, %v4531_v22, -inf }
0x1be1   :  { %4540 = vmax.xlane.f32.xlu0 %v4539_v1 }
0x1be2   :  { %v4532_v61 = vadd.f32 %v4526_v10, %v13155_v31 }
0x1be4   :  { %v4542_v14 = vsel %vm685_vm6, %v4532_v61, -inf }
0x1be5   :  { %4543 = vmax.xlane.f32.xlu0 %v4542_v14 }
0x1c2f   :  { %v14398_v62 = vpop.f32.mrb[90].mxu0 }
0x1c30   :  { %v11248_v43 = vpop.f32.mrb[91].mxu0 }
0x1c33   :  { %v14400_v32 = vpop.f32.mrb[92].mxu0 }
0x1c34   :  { %v11251_v12 = vpop.f32.mrb[93].mxu0 }
0x1c68   :  { %v14402_v26 = vpop.f32.mrb[94].mxu0 }
0x1c69   :  { %v11254_v39 = vpop.f32.mrb[95].mxu0 }
0x1c6c   :  { %v4510_v51 = vpop.f32.mrb[96].mxu0 }
0x1c6d   :  { %v4527_v52 = vmul.f32 0.35355338, %v4510_v51  ;;  %v11278_v57 = vpop.f32.mrb[97].mxu0  ;;  %v4538_v51 = vpop.xlane.xlu1 %4537 }
0x1c6e   :  { %v4541_v39 = vpop.xlane.xlu0 %4540 }
0x1c6f   :  { %v4533_v5 = vadd.f32 %v4527_v52, %v13155_v31  ;;  %v4554_v52 = vsub.f32 %v4530_v58, %v4538_v51  ;;  %v4555_v57 = vsub.f32 %v4531_v22, %v4541_v39 }
0x1c70   :  { %v4515_v55 = vpop.f32.mrb[98].mxu0 }
0x1c71   :  { %v4528_v6 = vmul.f32 0.35355338, %v4515_v55  ;;  %v11281_v10 = vpop.f32.mrb[99].mxu0  ;;  %v4545_v41 = vsel %vm685_vm6, %v4533_v5, -inf }
0x1c72   :  { %4546 = vmax.xlane.f32.xlu1 %v4545_v41  ;;  %v4544_v55 = vpop.xlane.xlu0 %4543  ;;  %v4560_v10 = vmul.f32 1.442695, %v4554_v52  ;;  %v4562_v41 = vmul.f32 1.442695, %v4555_v57 }
0x1c73   :  { %v4534_v1 = vadd.f32 %v4528_v6, %v13155_v31  ;;  %v4556_v45 = vsub.f32 %v4532_v61, %v4544_v55 }
0x1c74   :  { %v4520_v14 = vpop.f32.mrb[100].mxu0  ;;  %12574 = vpow2.f32 %v4560_v10 }
0x1c75   :  { %v11284_v43 = vpop.f32.mrb[101].mxu0  ;;  %v4548_v12 = vsel %vm685_vm6, %v4534_v1, -inf  ;;  %12576 = vpow2.f32 %v4562_v41  ;;  %v4564_v6 = vmul.f32 1.442695, %v4556_v45 }
0x1c76   :  { %4549 = vmax.xlane.f32.xlu0 %v4548_v12  ;;  %v4529_v43 = vmul.f32 0.35355338, %v4520_v14 }
0x1c77   :  { %12578 = vpow2.f32 %v4564_v6 }
0x1c78   :  { %v4535_v12 = vadd.f32 %v4529_v43, %v13155_v31 }
0x1c7a   :  { %v4551_v47 = vsel %vm685_vm6, %v4535_v12, -inf }
0x1c7e   :  { %v12575_v8 = vpop.eup %12574 }
0x1c7f   :  { %v12577_v40 = vpop.eup %12576  ;;  %v4572_v15 = vsel %vm685_vm6, %v12575_v8, 0.0 }
0x1c80   :  { %v4575_v58 = vsel %vm685_vm6, %v12577_v40, 0.0 }
0x1c81   :  { %v14416_v22 = vpop.eup %12578 }
0x1c82   :  { %v4578_v45 = vsel %vm685_vm6, %v14416_v22, 0.0 }
0x1c83   :  { %4808 = vrot.lane.b32.xlu1 %v14079_v19, %s15716_s25 }
0x1c8c   :  { %12334 = vrot.lane.b32.xlu0 %v14074_v17, %s15716_s25 }
0x1ca7   :  { %4552 = vmax.xlane.f32.xlu1 %v4551_v47 }
0x1cab   :  { %4573 = vadd.xlane.f32.xlu0 %v4572_v15  ;;  %4576 = vadd.xlane.f32.xlu1 %v4575_v58 }
0x1caf   :  { %4579 = vadd.xlane.f32.xlu0 %v4578_v45 }
0x1cbc   :  { %12339 = vrot.lane.b32.xlu1 %v14096_v25, %s12813_s24 }
0x1cc0   :  { %4800 = vrot.lane.b32.xlu1 %v14067_v49, %s15749_s16 }
0x1cc5   :  { %4798 = vrot.lane.b32.xlu0 %v14070_v37, %s15749_s16 }
0x1cff   :  { %v4547_v47 = vpop.xlane.xlu1 %4546 }
0x1d00   :  { %v4557_v61 = vsub.f32 %v4533_v5, %v4547_v47 }
0x1d02   :  { %v4566_v14 = vmul.f32 1.442695, %v4557_v61 }
0x1d03   :  { %v4550_v39 = vpop.xlane.xlu0 %4549  ;;  %v4809_v37 = vpop.permute.xlu1 %4808 }
0x1d04   :  { %12580 = vpow2.f32 %v4566_v14  ;;  %v4558_v15 = vsub.f32 %v4534_v1, %v4550_v39 }
0x1d06   :  { %v4568_v51 = vmul.f32 1.442695, %v4558_v15 }
0x1d07   :  { %v12335_v5 = vpop.permute.xlu0 %12334 }
0x1d08   :  { %12582 = vpow2.f32 %v4568_v51  ;;  %v12337_v14 = vunpack.i.h.bf16 %v12335_v5  ;;  %v12336_v39 = vunpack.i.l.bf16 %v12335_v5 }
0x1d0e   :  { %v14426_v52 = vpop.eup %12580 }
0x1d0f   :  { %v4581_v57 = vsel %vm685_vm6, %v14426_v52, 0.0 }
0x1d10   :  { %4582 = vadd.xlane.f32.xlu1 %v4581_v57 }
0x1d12   :  { %v14430_v55 = vpop.eup %12582 }
0x1d13   :  { %v4584_v49 = vsel %vm685_vm6, %v14430_v55, 0.0 }
0x1d14   :  { %4585 = vadd.xlane.f32.xlu0 %v4584_v49  ;;  %v11951_v49 = vpack.c.bf16 %v12337_v14, %v12336_v39 }
0x1d21   :  { %12344 = vrot.lane.b32.xlu1 %v14096_v25, %s15716_s25 }
0x1d25   :  { %4902 = vrot.lane.b32.xlu1 %v14087_v11, %s15749_s16 }
0x1d2a   :  { %4704 = vrot.lane.b32.xlu0 %v14084_v21, %s12813_s24 }
0x1d2e   :  { %4912 = vrot.lane.b32.xlu0 %v14084_v21, %s15716_s25 }
0x1d32   :  { %4802 = vrot.lane.b32.xlu0 %v14079_v19, %s15749_s16 }
0x1d34   :  { %v4553_v1 = vpop.xlane.xlu1 %4552 }
0x1d35   :  { %v4559_v10 = vsub.f32 %v4535_v12, %v4553_v1 }
0x1d36   :  { %4906 = vrot.lane.b32.xlu0 %v14084_v21, %s15749_s16 }
0x1d37   :  { %v4570_v41 = vmul.f32 1.442695, %v4559_v10 }
0x1d38   :  { %v4574_v6 = vpop.xlane.xlu0 %4573  ;;  %v4577_v43 = vpop.xlane.xlu1 %4576 }
0x1d39   :  { %12584 = vrcp.f32 %v4574_v6 }
0x1d3a   :  { %12586 = vpow2.f32 %v4570_v41 }
0x1d3b   :  { %12588 = vrcp.f32 %v4577_v43 }
0x1d3c   :  { %v12340_v11 = vpop.permute.xlu1 %12339  ;;  %v4580_v58 = vpop.xlane.xlu0 %4579 }
0x1d3d   :  { %v12342_v45 = vunpack.i.h.bf16 %v12340_v11  ;;  %v12341_v47 = vunpack.i.l.bf16 %v12340_v11  ;;  %12590 = vrcp.f32 %v4580_v58 }
0x1d3f   :  { %v11948_v61 = vpack.c.bf16 %v12342_v45, %v12341_v47 }
0x1d40   :  { %v4801_v41 = vpop.permute.xlu1 %4800 }
0x1d41   :  { %11949 = vmatpush3.bf16.msra.mxu0 %v11948_v61 }
0x1d42   :  { %11304 = vmatprep.subr.mxu0 %v15737_v54 }
0x1d43   :  { %v12585_v12 = vpop.eup %12584 }
0x1d44   :  { %v12587_v15 = vpop.eup %12586  ;;  %v4596_v51 = vmul.f32 %v12585_v12, %v12575_v8 }
0x1d45   :  { %v12589_v57 = vpop.eup %12588  ;;  %v4587_v1 = vsel %vm685_vm6, %v12587_v15, 0.0 }
0x1d46   :  { %11292 = vmatmul.mubr.msk.f32.vlgmr.msra.gmra.mrb[90].mxu1 %vm685_vm6, %v4596_v51  ;;  %v4597_v10 = vmul.f32 %v12589_v57, %v12577_v40  ;;  %v4799_v40 = vpop.permute.xlu0 %4798 }
0x1d47   :  { %11953 = vmatpush3.bf16.xpose.msk.msra.mxu1 %vm13112_vm4, %v11951_v49  ;;  %11294 = vmatprep.mubr.msk.f32.mxu1 %vm12804_vm2, %v15737_v54  ;;  %v12591_v5 = vpop.eup %12590 }
0x1d48   :  { %11319 = vmatprep.subr.mxu1 %v15737_v54  ;;  %v4598_v8 = vmul.f32 %v12591_v5, %v14416_v22 }
0x1d49   :  { %4588 = vadd.xlane.f32.xlu1 %v4587_v1 }
0x1d4a   :  { %11295 = vmatmul.mubr.msk.f32.gmra.mrb[92].mxu1 %vm685_vm6, %v4597_v10 }
0x1d4b   :  { %11297 = vmatprep.mubr.msk.f32.mxu1 %vm12804_vm2, %v15737_v54 }
0x1d4e   :  { %11298 = vmatmul.mubr.msk.f32.gmra.mrb[94].mxu1 %vm685_vm6, %v4598_v8 }
0x1d4f   :  { %11320 = vmatpush3.xpose.msk.msra.mxu1 %vm479_vm3, %v4809_v37  ;;  %11321 = vmatprep.mubr.msk.f32.mxu1 %vm12804_vm2, %v15737_v54 }
0x1d50   :  { %11958 = vmatprep.subr.bf16.mxu1 %v15745_v33 }
0x1d52   :  { %11322 = vmatmul.mubr.msk.f32.vlgmr.msra.gmra.mrb[96].mxu1 %vm479_vm3, %v4799_v40 }
0x1d53   :  { %11324 = vmatprep.mubr.msk.f32.mxu1 %vm12804_vm2, %v15737_v54 }
0x1d56   :  { %11325 = vmatmul.mubr.msk.f32.gmra.mrb[98].mxu1 %vm479_vm3, %v4801_v41 }
0x1d57   :  { %11327 = vmatprep.mubr.msk.f32.mxu1 %vm12804_vm2, %v15737_v54 }
0x1d5a   :  { %4904 = vrot.lane.b32.xlu1 %v14090_v24, %s15749_s16 }
0x1d9d   :  { %v4583_v22 = vpop.xlane.xlu1 %4582 }
0x1d9e   :  { %12592 = vrcp.f32 %v4583_v22 }
0x1da1   :  { %v4586_v37 = vpop.xlane.xlu0 %4585  ;;  %v12345_v6 = vpop.permute.xlu1 %12344 }
0x1da2   :  { %12594 = vrcp.f32 %v4586_v37  ;;  %v12347_v11 = vunpack.i.h.bf16 %v12345_v6  ;;  %v12346_v58 = vunpack.i.l.bf16 %v12345_v6 }
0x1da4   :  { %v11955_v14 = vpack.c.bf16 %v12347_v11, %v12346_v58 }
0x1da5   :  { %v4705_v43 = vpop.permute.xlu0 %4704  ;;  %v4903_v18 = vpop.permute.xlu1 %4902 }
0x1da6   :  { %11305 = vmatpush3.msra.mxu0 %v4705_v43 }
0x1da7   :  { %11954 = vmatprep.subr.bf16.mxu0 %v15745_v33 }
0x1da8   :  { %v12593_v45 = vpop.eup %12592 }
0x1da9   :  { %v4599_v47 = vmul.f32 %v12593_v45, %v14426_v52  ;;  %v4913_v61 = vpop.permute.xlu0 %4912 }
0x1dab   :  { %11307 = vmatmul.mubr.msk.f32.vlgmr.msra.gmra.mrb[102].mxu0 %vm685_vm6, %v4599_v47 }
0x1dac   :  { %v12595_v39 = vpop.eup %12594  ;;  %11309 = vmatprep.mubr.msk.f32.mxu0 %vm12804_vm2, %v15737_v54 }
0x1dad   :  { %v4803_v24 = vpop.permute.xlu0 %4802  ;;  %11957 = vmatpush3.bf16.xpose.msk.msra.mxu0 %vm13112_vm4, %v11955_v14  ;;  %v4600_v12 = vmul.f32 %v12595_v39, %v14430_v55 }
0x1dae   :  { %11328 = vmatmul.mubr.msk.f32.gmra.mrb[100].mxu1 %vm479_vm3, %v4803_v24  ;;  %11334 = vmatprep.subr.mxu0 %v15737_v54 }
0x1daf   :  { %11310 = vmatmul.mubr.msk.f32.gmra.mrb[104].mxu0 %vm685_vm6, %v4600_v12  ;;  %11351 = vmatprep.mubr.msk.f32.mxu1 %vm12804_vm2, %v15737_v54 }
0x1db0   :  { %11312 = vmatprep.mubr.msk.f32.mxu0 %vm12804_vm2, %v15737_v54 }
0x1db1   :  { %v4907_v49 = vpop.permute.xlu0 %4906 }
0x1db5   :  { %11335 = vmatpush3.xpose.msk.msra.mxu0 %vm479_vm3, %v4913_v61 }
0x1db6   :  { %11961 = vmatprep.subr.bf16.mxu0 %v15745_v33 }
0x1dd6   :  { %v4589_v52 = vpop.xlane.xlu1 %4588 }
0x1dd7   :  { %12596 = vrcp.f32 %v4589_v52 }
0x1dda   :  { %v4905_v57 = vpop.permute.xlu1 %4904 }
0x1de1   :  { %v12597_v55 = vpop.eup %12596 }
0x1de2   :  { %v4601_v51 = vmul.f32 %v12597_v55, %v12587_v15 }
0x1de4   :  { %11313 = vmatmul.mubr.msk.f32.gmra.mrb[106].mxu0 %vm685_vm6, %v4601_v51 }
0x1de5   :  { %11336 = vmatprep.mubr.msk.f32.mxu0 %vm12804_vm2, %v15737_v54 }
0x1de8   :  { %11337 = vmatmul.mubr.msk.f32.vlgmr.msra.gmra.mrb[108].mxu0 %vm479_vm3, %v4903_v18 }
0x1de9   :  { %11339 = vmatprep.mubr.msk.f32.mxu0 %vm12804_vm2, %v15737_v54 }
0x1dec   :  { %11340 = vmatmul.mubr.msk.f32.gmra.mrb[110].mxu0 %vm479_vm3, %v4905_v57 }
0x1ded   :  { %11342 = vmatprep.mubr.msk.f32.mxu0 %vm12804_vm2, %v15737_v54 }
0x1df0   :  { %11343 = vmatmul.mubr.msk.f32.gmra.mrb[112].mxu0 %vm479_vm3, %v4907_v49 }
0x1df1   :  { %11366 = vmatprep.mubr.msk.f32.mxu0 %vm12804_vm2, %v15737_v54 }
0x1e19   :  { %v14500_v15 = vpop.f32.mrb[90].mxu1 }
0x1e1a   :  { %v11293_v1 = vpop.f32.mrb[91].mxu1 }
0x1e1d   :  { %v14502_v10 = vpop.f32.mrb[92].mxu1 }
0x1e1e   :  { %v11296_v5 = vpop.f32.mrb[93].mxu1 }
0x1e21   :  { %v14504_v8 = vpop.f32.mrb[94].mxu1 }
0x1e22   :  { %v11299_v40 = vpop.f32.mrb[95].mxu1 }
0x1e25   :  { %v4888_v41 = vpop.f32.mrb[96].mxu1 }
0x1e26   :  { %v5006_v22 = vmul.f32 0.35355338, %v4888_v41  ;;  %v11323_v37 = vpop.f32.mrb[97].mxu1 }
0x1e28   :  { %v5012_v6 = vadd.f32 %v5006_v22, %v13155_v31 }
0x1e29   :  { %v4893_v43 = vpop.f32.mrb[98].mxu1 }
0x1e2a   :  { %v5007_v11 = vmul.f32 0.35355338, %v4893_v43  ;;  %v11326_v58 = vpop.f32.mrb[99].mxu1  ;;  %v5018_v45 = vsel %vm685_vm6, %v5012_v6, -inf }
0x1e2b   :  { %5019 = vmax.xlane.f32.xlu1 %v5018_v45 }
0x1e2c   :  { %v5013_v47 = vadd.f32 %v5007_v11, %v13155_v31 }
0x1e2e   :  { %v5021_v61 = vsel %vm685_vm6, %v5013_v47, -inf }
0x1e2f   :  { %5022 = vmax.xlane.f32.xlu0 %v5021_v61 }
0x1e7e   :  { %v14510_v14 = vpop.f32.mrb[102].mxu0 }
0x1e7f   :  { %v11308_v39 = vpop.f32.mrb[103].mxu0 }
0x1e81   :  { %v4898_v24 = vpop.f32.mrb[100].mxu1 }
0x1e82   :  { %v5008_v12 = vmul.f32 0.35355338, %v4898_v24  ;;  %v14512_v18 = vpop.f32.mrb[104].mxu0  ;;  %v11329_v52 = vpop.f32.mrb[101].mxu1 }
0x1e83   :  { %v11311_v55 = vpop.f32.mrb[105].mxu0 }
0x1e84   :  { %v5014_v51 = vadd.f32 %v5008_v12, %v13155_v31 }
0x1e86   :  { %v5024_v57 = vsel %vm685_vm6, %v5014_v51, -inf }
0x1e87   :  { %5025 = vmax.xlane.f32.xlu1 %v5024_v57 }
0x1eb7   :  { %v14516_v49 = vpop.f32.mrb[106].mxu0 }
0x1eb8   :  { %v11314_v1 = vpop.f32.mrb[107].mxu0  ;;  %v5020_v5 = vpop.xlane.xlu1 %5019 }
0x1eb9   :  { %v5036_v40 = vsub.f32 %v5012_v6, %v5020_v5 }
0x1ebb   :  { %v4992_v41 = vpop.f32.mrb[108].mxu0  ;;  %v5042_v22 = vmul.f32 1.442695, %v5036_v40 }
0x1ebc   :  { %v5009_v37 = vmul.f32 0.35355338, %v4992_v41  ;;  %v11338_v43 = vpop.f32.mrb[109].mxu0  ;;  %v5023_v11 = vpop.xlane.xlu0 %5022 }
0x1ebd   :  { %12598 = vpow2.f32 %v5042_v22  ;;  %v5037_v45 = vsub.f32 %v5013_v47, %v5023_v11 }
0x1ebe   :  { %v5015_v58 = vadd.f32 %v5009_v37, %v13155_v31 }
0x1ebf   :  { %v4997_v61 = vpop.f32.mrb[110].mxu0  ;;  %v5044_v39 = vmul.f32 1.442695, %v5037_v45 }
0x1ec0   :  { %v5010_v24 = vmul.f32 0.35355338, %v4997_v61  ;;  %v11341_v12 = vpop.f32.mrb[111].mxu0  ;;  %v5027_v52 = vsel %vm685_vm6, %v5015_v58, -inf }
0x1ec1   :  { %5028 = vmax.xlane.f32.xlu0 %v5027_v52  ;;  %12600 = vpow2.f32 %v5044_v39 }
0x1ec2   :  { %v5016_v55 = vadd.f32 %v5010_v24, %v13155_v31 }
0x1ec3   :  { %v5002_v6 = vpop.f32.mrb[112].mxu0 }
0x1ec4   :  { %v5011_v57 = vmul.f32 0.35355338, %v5002_v6  ;;  %v11344_v1 = vpop.f32.mrb[113].mxu0  ;;  %v5030_v5 = vsel %vm685_vm6, %v5016_v55, -inf }
0x1ec5   :  { %5031 = vmax.xlane.f32.xlu0 %v5030_v5 }
0x1ec6   :  { %v5017_v40 = vadd.f32 %v5011_v57, %v13155_v31 }
0x1ec7   :  { %v12599_v41 = vpop.eup %12598 }
0x1ec8   :  { %v5033_v47 = vsel %vm685_vm6, %v5017_v40, -inf  ;;  %v5054_v22 = vsel %vm685_vm6, %v12599_v41, 0.0 }
0x1ec9   :  { %5034 = vmax.xlane.f32.xlu1 %v5033_v47  ;;  %5055 = vadd.xlane.f32.xlu0 %v5054_v22 }
0x1ecb   :  { %v12601_v37 = vpop.eup %12600 }
0x1ecc   :  { %v5057_v43 = vsel %vm685_vm6, %v12601_v37, 0.0 }
0x1ecd   :  { %5058 = vadd.xlane.f32.xlu1 %v5057_v43 }
0x1ede   :  { %5088 = vrot.lane.b32.xlu1 %v14079_v19, %s15750_s0 }
0x1edf   :  { %12349 = vrot.lane.b32.xlu0 %v14074_v17, %s15750_s0 }
0x1f14   :  { %v5026_v11 = vpop.xlane.xlu1 %5025 }
0x1f15   :  { %v5038_v45 = vsub.f32 %v5014_v51, %v5026_v11 }
0x1f17   :  { %v5046_v31 = vmul.f32 1.442695, %v5038_v45 }
0x1f19   :  { %12602 = vpow2.f32 %v5046_v31 }
0x1f23   :  { %v12603_v61 = vpop.eup %12602 }
0x1f24   :  { %v5060_v39 = vsel %vm685_vm6, %v12603_v61, 0.0 }
0x1f25   :  { %5061 = vadd.xlane.f32.xlu0 %v5060_v39 }
0x1f4e   :  { %v5029_v24 = vpop.xlane.xlu0 %5028 }
0x1f4f   :  { %v5039_v12 = vsub.f32 %v5015_v58, %v5029_v24 }
0x1f51   :  { %v5048_v52 = vmul.f32 1.442695, %v5039_v12 }
0x1f52   :  { %v5032_v6 = vpop.xlane.xlu0 %5031 }
0x1f53   :  { %12604 = vpow2.f32 %v5048_v52  ;;  %v5040_v57 = vsub.f32 %v5016_v55, %v5032_v6 }
0x1f55   :  { %v5050_v1 = vmul.f32 1.442695, %v5040_v57 }
0x1f56   :  { %v5035_v5 = vpop.xlane.xlu1 %5034  ;;  %v5056_v19 = vpop.xlane.xlu0 %5055 }
0x1f57   :  { %12606 = vpow2.f32 %v5050_v1  ;;  %v5041_v47 = vsub.f32 %v5017_v40, %v5035_v5 }
0x1f58   :  { %12608 = vrcp.f32 %v5056_v19 }
0x1f59   :  { %v5052_v17 = vmul.f32 1.442695, %v5041_v47 }
0x1f5a   :  { %v12350_v51 = vpop.permute.xlu0 %12349  ;;  %v5059_v22 = vpop.xlane.xlu1 %5058 }
0x1f5b   :  { %12610 = vpow2.f32 %v5052_v17  ;;  %v12352_v43 = vunpack.i.h.bf16 %v12350_v51  ;;  %v12351_v11 = vunpack.i.l.bf16 %v12350_v51 }
0x1f5c   :  { %12612 = vrcp.f32 %v5059_v22 }
0x1f5d   :  { %v12605_v45 = vpop.eup %12604  ;;  %v11959_v31 = vpack.c.bf16 %v12352_v43, %v12351_v11 }
0x1f5e   :  { %v5063_v58 = vsel %vm685_vm6, %v12605_v45, 0.0  ;;  %v5089_v12 = vpop.permute.xlu1 %5088 }
0x1f5f   :  { %5064 = vadd.xlane.f32.xlu1 %v5063_v58  ;;  %11960 = vmatpush3.bf16.msra.mxu1 %v11959_v31  ;;  %v10034_v31 = vld [vmem:[%s15640_s7 + $0x28] sm:$0xff] }
0x1f60   :  { %11349 = vmatprep.subr.mxu1 %v15737_v54 }
0x1f61   :  { %v12607_v55 = vpop.eup %12606 }
0x1f62   :  { %v12609_v39 = vpop.eup %12608  ;;  %v5066_v40 = vsel %vm685_vm6, %v12607_v55, 0.0 }
0x1f63   :  { %v5078_v24 = vmul.f32 %v12609_v39, %v12599_v41  ;;  %5067 = vadd.xlane.f32.xlu1 %v5066_v40  ;;  %11350 = vmatpush3.msra.mxu1 %v5089_v12  ;;  %v10036_v39 = vld [vmem:[%s15640_s7 + $0x38] sm:$0xff] }
0x1f65   :  { %v12611_v52 = vpop.eup %12610  ;;  %11352 = vmatmul.mubr.msk.f32.vlgmr.msra.gmra.mrb[102].mxu1 %vm685_vm6, %v5078_v24 }
0x1f66   :  { %v12613_v6 = vpop.eup %12612  ;;  %v5069_v57 = vsel %vm685_vm6, %v12611_v52, 0.0  ;;  %11354 = vmatprep.mubr.msk.f32.mxu1 %vm12804_vm2, %v15737_v54 }
0x1f67   :  { %5070 = vadd.xlane.f32.xlu0 %v5069_v57  ;;  %v5079_v1 = vmul.f32 %v12613_v6, %v12601_v37 }
0x1f69   :  { %11355 = vmatmul.mubr.msk.f32.gmra.mrb[104].mxu1 %vm685_vm6, %v5079_v1 }
0x1f6a   :  { %11357 = vmatprep.mubr.msk.f32.mxu1 %vm12804_vm2, %v15737_v54 }
0x1f74   :  { %5186 = vrot.lane.b32.xlu1 %v14084_v21, %s15750_s0 }
0x1f78   :  { %5286 = vrot.lane.b32.xlu1 %v14386_v60, %s15751_s2 }
0x1f7c   :  { %5310 = vrot.lane.b32.xlu1 %v14500_v15, %s15752_s26 }
0x1f7d   :  { %12354 = vrot.lane.b32.xlu0 %v14096_v25, %s15750_s0 }
0x1f81   :  { %5288 = vrot.lane.b32.xlu0 %v14388_v50, %s15751_s2 }
0x1f85   :  { %5312 = vrot.lane.b32.xlu0 %v14502_v10, %s15752_s26 }
0x1fb2   :  { %v5062_v41 = vpop.xlane.xlu0 %5061 }
0x1fb3   :  { %12614 = vrcp.f32 %v5062_v41 }
0x1fbd   :  { %v12615_v37 = vpop.eup %12614 }
0x1fbe   :  { %v5080_v5 = vmul.f32 %v12615_v37, %v12603_v61 }
0x1fc0   :  { %11358 = vmatmul.mubr.msk.f32.gmra.mrb[106].mxu1 %vm685_vm6, %v5080_v5 }
0x1fec   :  { %v5065_v21 = vpop.xlane.xlu1 %5064 }
0x1fed   :  { %12616 = vrcp.f32 %v5065_v21 }
0x1ff0   :  { %v5068_v60 = vpop.xlane.xlu1 %5067 }
0x1ff1   :  { %12618 = vrcp.f32 %v5068_v60 }
0x1ff4   :  { %v5071_v19 = vpop.xlane.xlu0 %5070  ;;  %v5187_v51 = vpop.permute.xlu1 %5186 }
0x1ff5   :  { %12620 = vrcp.f32 %v5071_v19 }
0x1ff7   :  { %v12617_v50 = vpop.eup %12616 }
0x1ff8   :  { %v12355_v15 = vpop.permute.xlu0 %12354  ;;  %v5081_v10 = vmul.f32 %v12617_v50, %v12605_v45  ;;  %v10033_v45 = vld [vmem:[%s15640_s7 + $0x20] sm:$0xff] }
0x1ff9   :  { %v12357_v47 = vunpack.i.h.bf16 %v12355_v15  ;;  %v12356_v25 = vunpack.i.l.bf16 %v12355_v15  ;;  %v14568_v58 = vpack.c.bf16 %v10034_v31, %v10033_v45 }
0x1ffb   :  { %v11962_v17 = vpack.c.bf16 %v12357_v47, %v12356_v25  ;;  %v12619_v22 = vpop.eup %12618  ;;  %11965 = vmatprep.subr.bf16.mxu1 %v14568_v58 }
0x1ffc   :  { %v5082_v61 = vmul.f32 %v12619_v22, %v12607_v55  ;;  %11967 = vmatpush3.bf16.msra.mxu1 %v14568_v58  ;;  %v10035_v55 = vld [vmem:[%s15640_s7 + $0x30] sm:$0xff]  ;;  %v5289_v57 = vpop.permute.xlu0 %5288 }
0x1ffd   :  { %11963 = vmatpush3.bf16.msra.mxu0 %v11962_v17  ;;  %v14578_v40 = vpack.c.bf16 %v10036_v39, %v10035_v55 }
0x1ffe   :  { %11364 = vmatprep.subr.mxu0 %v15737_v54 }
0x1fff   :  { %v12621_v43 = vpop.eup %12620  ;;  %11969 = vmatprep.subr.bf16.mxu1 %v14578_v40 }
0x2000   :  { %v5083_v11 = vmul.f32 %v12621_v43, %v12611_v52  ;;  %11971 = vmatpush3.bf16.msra.mxu1 %v14578_v40  ;;  %v5313_v41 = vpop.permute.xlu0 %5312 }
0x2001   :  { %11365 = vmatpush3.msra.mxu0 %v5187_v51 }
0x2002   :  { %11367 = vmatmul.mubr.msk.f32.vlgmr.msra.gmra.mrb[114].mxu0 %vm685_vm6, %v5081_v10 }
0x2003   :  { %11369 = vmatprep.mubr.msk.f32.mxu0 %vm12804_vm2, %v15737_v54 }
0x2006   :  { %11370 = vmatmul.mubr.msk.f32.gmra.mrb[116].mxu0 %vm685_vm6, %v5082_v61 }
0x2007   :  { %11372 = vmatprep.mubr.msk.f32.mxu0 %vm12804_vm2, %v15737_v54 }
0x200a   :  { %11373 = vmatmul.mubr.msk.f32.gmra.mrb[118].mxu0 %vm685_vm6, %v5083_v11 }
0x2038   :  { %v5168_v24 = vpop.f32.mrb[102].mxu1 }
0x2039   :  { %5334 = vrot.lane.b32.xlu1 %v5168_v24, %s15753_s27  ;;  %v11353_v12 = vpop.f32.mrb[103].mxu1 }
0x203c   :  { %v5173_v52 = vpop.f32.mrb[104].mxu1 }
0x203d   :  { %5290 = vrot.lane.b32.xlu1 %v14390_v56, %s15751_s2  ;;  %5336 = vrot.lane.b32.xlu0 %v5173_v52, %s15753_s27  ;;  %v11356_v6 = vpop.f32.mrb[105].mxu1 }
0x2041   :  { %5314 = vrot.lane.b32.xlu1 %v14504_v8, %s15752_s26  ;;  %5292 = vrot.lane.b32.xlu0 %v14398_v62, %s15751_s2  ;;  %v5287_v62 = vpop.permute.xlu1 %5286 }
0x2045   :  { %5294 = vrot.lane.b32.xlu1 %v14400_v32, %s15751_s2  ;;  %5316 = vrot.lane.b32.xlu0 %v14510_v14, %s15752_s26  ;;  %v5311_v1 = vpop.permute.xlu1 %5310  ;;  %v5352_v32 = vsel %vm479_vm3, %v14267_v36, %v5287_v62 }
0x2046   :  { %v5358_v14 = vsel %vm2472_vm7, %v5352_v32, %v5311_v1 }
0x2049   :  { %5318 = vrot.lane.b32.xlu1 %v14512_v18, %s15752_s26  ;;  %5296 = vrot.lane.b32.xlu0 %v14402_v26, %s15751_s2  ;;  %v5353_v26 = vsel %vm479_vm3, %v14269_v3, %v5289_v57 }
0x204d   :  { %5320 = vrot.lane.b32.xlu0 %v14516_v49, %s15752_s26  ;;  %v5359_v49 = vsel %vm2472_vm7, %v5353_v26, %v5313_v41 }
0x2093   :  { %v5178_v56 = vpop.f32.mrb[106].mxu1 }
0x2094   :  { %5338 = vrot.lane.b32.xlu1 %v5178_v56, %s15753_s27  ;;  %v11359_v8 = vpop.f32.mrb[107].mxu1 }
0x20ab   :  { %v5335_v18 = vpop.permute.xlu1 %5334 }
0x20ac   :  { %v5364_v37 = vsel %vm685_vm6, %v5358_v14, %v5335_v18 }
0x20ad   :  { %11383 = vmatprep.mubr.msk.f32.mxu1 %vm253_vm1, %v5364_v37 }
0x20af   :  { %v5337_v5 = vpop.permute.xlu0 %5336  ;;  %v5291_v3 = vpop.permute.xlu1 %5290 }
0x20b0   :  { %v5365_v21 = vsel %vm685_vm6, %v5359_v49, %v5337_v5  ;;  %v5354_v51 = vsel %vm479_vm3, %v14271_v46, %v5291_v3 }
0x20b1   :  { %11384 = vmatmul.mubr.msk.f32.vlgmr.msra.gmra.mrb[108].mxu1 %vm253_vm1, %v5365_v21 }
0x20b3   :  { %v5315_v17 = vpop.permute.xlu1 %5314  ;;  %v5293_v11 = vpop.permute.xlu0 %5292 }
0x20b4   :  { %v5360_v22 = vsel %vm2472_vm7, %v5354_v51, %v5315_v17  ;;  %v5355_v39 = vsel %vm479_vm3, %v14279_v9, %v5293_v11 }
0x20b7   :  { %v5295_v50 = vpop.permute.xlu1 %5294  ;;  %v5317_v45 = vpop.permute.xlu0 %5316 }
0x20b8   :  { %v5361_v24 = vsel %vm2472_vm7, %v5355_v39, %v5317_v45  ;;  %v5356_v46 = vsel %vm479_vm3, %v14281_v48, %v5295_v50  ;;  %v14637_v48 = vld [vmem:[%s15643_s10 + $0x10] sm:$0xff] }
0x20b9   :  { %v14641_v32 = vrot.slane %v14637_v48, %v13668_v42 }
0x20bb   :  { %v5319_v10 = vpop.permute.xlu1 %5318  ;;  %v5297_v31 = vpop.permute.xlu0 %5296 }
0x20bc   :  { %v5362_v6 = vsel %vm2472_vm7, %v5356_v46, %v5319_v10  ;;  %v5357_v9 = vsel %vm479_vm3, %v14283_v29, %v5297_v31  ;;  %v10039_v46 = vld [vmem:[%s15641_s8 + $0x30] sm:$0xff] }
0x20bf   :  { %v5321_v55 = vpop.permute.xlu0 %5320 }
0x20c0   :  { %v5363_v62 = vsel %vm2472_vm7, %v5357_v9, %v5321_v55 }
0x20d5   :  { %v5266_v60 = vpop.f32.mrb[114].mxu0 }
0x20d6   :  { %5340 = vrot.lane.b32.xlu0 %v5266_v60, %s15753_s27  ;;  %v11368_v36 = vpop.f32.mrb[115].mxu0 }
0x20d9   :  { %v5271_v19 = vpop.f32.mrb[116].mxu0 }
0x20da   :  { %5342 = vrot.lane.b32.xlu1 %v5271_v19, %s15753_s27  ;;  %v11371_v15 = vpop.f32.mrb[117].mxu0 }
0x20dd   :  { %v5276_v47 = vpop.f32.mrb[118].mxu0 }
0x20de   :  { %5344 = vrot.lane.b32.xlu0 %v5276_v47, %s15753_s27  ;;  %v11374_v25 = vpop.f32.mrb[119].mxu0 }
0x2106   :  { %v5339_v61 = vpop.permute.xlu1 %5338 }
0x2107   :  { %v5366_v43 = vsel %vm685_vm6, %v5360_v22, %v5339_v61 }
0x2108   :  { %11386 = vmatprep.mubr.msk.f32.mxu1 %vm253_vm1, %v5366_v43 }
0x2148   :  { %v5341_v12 = vpop.permute.xlu0 %5340 }
0x2149   :  { %v5367_v52 = vsel %vm685_vm6, %v5361_v24, %v5341_v12 }
0x214a   :  { %11387 = vmatmul.mubr.msk.f32.gmra.mrb[110].mxu1 %vm253_vm1, %v5367_v52 }
0x214c   :  { %v5343_v56 = vpop.permute.xlu1 %5342 }
0x214d   :  { %v5368_v8 = vsel %vm685_vm6, %v5362_v6, %v5343_v56  ;;  %v10040_v6 = vld [vmem:[%s15641_s8 + $0x38] sm:$0xff] }
0x214e   :  { %11389 = vmatprep.mubr.msk.f32.mxu1 %vm253_vm1, %v5368_v8  ;;  %v14682_v56 = vpack.c.bf16 %v10040_v6, %v10039_v46  ;;  %v6015_v46 = vld [vmem:[%s15638_s5 + $0x20] sm:$0xff]  ;;  %v6016_v6 = vld [vmem:[%s15638_s5 + $0x28] sm:$0xff] }
0x2150   :  { %v5345_v57 = vpop.permute.xlu0 %5344 }
0x2151   :  { %v5369_v1 = vsel %vm685_vm6, %v5363_v62, %v5345_v57 }
0x2152   :  { %11390 = vmatmul.mubr.msk.f32.gmra.mrb[112].mxu1 %vm253_vm1, %v5369_v1 }
0x2184   :  { %v11385_v14 = vpop.f32.mrb[108].mxu1 }
0x2185   :  { %v5464_v41 = vadd.f32 %v11385_v14, %v14641_v32  ;;  %v5458_v29 = vpop.f32.mrb[109].mxu1 }
0x2186   :  { %v5459_v18 = vadd.f32 %v5458_v29, %v14641_v32 }
0x2187   :  { %v5488_v37 = vadd.f32 %v5464_v41, %v14031_v0 }
0x2188   :  { %v5487_v26 = vadd.f32 %v5459_v18, %v14028_v16 }
0x2189   :  { %v5496_v49 = vsel %vm253_vm1, %v5488_v37, 0.0 }
0x218a   :  { %5497 = vadd.xlane.f32.xlu0 %v5496_v49  ;;  %v5493_v5 = vsel %vm253_vm1, %v5487_v26, 0.0 }
0x218b   :  { %5494 = vadd.xlane.f32.xlu1 %v5493_v5 }
0x2217   :  { %v5498_v19 = vpop.xlane.xlu0 %5497 }
0x2218   :  { %v5495_v47 = vpop.xlane.xlu1 %5494  ;;  %v5512_v3 = vmul.f32 0.03125, %v5498_v19 }
0x2219   :  { %v5511_v17 = vmul.f32 0.03125, %v5495_v47 }
0x221a   :  { %v14655_v51 = vsub.f32 %v5488_v37, %v5512_v3 }
0x221b   :  { %v5517_v43 = vsub.f32 %v5487_v26, %v5511_v17 }
0x221c   :  { %v5524_v31 = vmul.f32 %v14655_v51, %v14655_v51 }
0x221d   :  { %v11388_v21 = vpop.f32.mrb[110].mxu1  ;;  %v5523_v39 = vmul.f32 %v5517_v43, %v5517_v43 }
0x221e   :  { %v5474_v60 = vadd.f32 %v11388_v21, %v14641_v32  ;;  %v5468_v36 = vpop.f32.mrb[111].mxu1  ;;  %v5532_v24 = vsel %vm253_vm1, %v5524_v31, 0.0 }
0x221f   :  { %v5469_v15 = vadd.f32 %v5468_v36, %v14641_v32  ;;  %v5529_v12 = vsel %vm253_vm1, %v5523_v39, 0.0  ;;  %v6012_v39 = vld [vmem:[%s15638_s5 + $0x8] sm:$0xff] }
0x2220   :  { %v5490_v25 = vadd.f32 %v5474_v60, %v14043_v63 }
0x2221   :  { %v5489_v0 = vadd.f32 %v5469_v15, %v14040_v2 }
0x2222   :  { %v5502_v16 = vsel %vm253_vm1, %v5490_v25, 0.0 }
0x2223   :  { %5503 = vadd.xlane.f32.xlu1 %v5502_v16  ;;  %v5499_v50 = vsel %vm253_vm1, %v5489_v0, 0.0 }
0x2224   :  { %5500 = vadd.xlane.f32.xlu0 %v5499_v50 }
0x2225   :  { %v11391_v10 = vpop.f32.mrb[112].mxu1 }
0x2226   :  { %v5484_v22 = vadd.f32 %v11391_v10, %v14641_v32  ;;  %v5478_v61 = vpop.f32.mrb[113].mxu1 }
0x2227   :  { %v5479_v11 = vadd.f32 %v5478_v61, %v14641_v32 }
0x2228   :  { %v5492_v63 = vadd.f32 %v5484_v22, %v14055_v38  ;;  %v10038_v38 = vld [vmem:[%s15641_s8 + $0x28] sm:$0xff]  ;;  %v14710_v22 = vrot.slane %v14637_v48, %v13724_v20 }
0x2229   :  { %v5491_v2 = vadd.f32 %v5479_v11, %v14052_v35  ;;  %v10037_v35 = vld [vmem:[%s15641_s8 + $0x20] sm:$0xff] }
0x222a   :  { %v5508_v45 = vsel %vm253_vm1, %v5492_v63, 0.0  ;;  %v14673_v52 = vpack.c.bf16 %v10038_v38, %v10037_v35  ;;  %v6014_v35 = vld [vmem:[%s15638_s5 + $0x18] sm:$0xff] }
0x222b   :  { %5509 = vadd.xlane.f32.xlu1 %v5508_v45  ;;  %v5505_v55 = vsel %vm253_vm1, %v5491_v2, 0.0  ;;  %v14715_v45 = vrot.slane %v14637_v48, %v13727_v53  ;;  %v6013_v48 = vld [vmem:[%s15638_s5 + $0x10] sm:$0xff] }
0x222c   :  { %5506 = vadd.xlane.f32.xlu0 %v5505_v55  ;;  %11973 = vmatprep.subr.bf16.mxu0 %v14673_v52  ;;  %v6011_v55 = vld [vmem:[%s15638_s5] sm:$0xff]  ;;  %v12016_v38 = vpack.c.bf16 %v6014_v35, %v6013_v48 }
0x222d   :  { %11975 = vmatpush3.bf16.msra.mxu0 %v14673_v52 }
0x222e   :  { %11977 = vmatprep.subr.bf16.mxu0 %v14682_v56 }
0x222f   :  { %5533 = vadd.xlane.f32.xlu1 %v5532_v24 }
0x2230   :  { %5530 = vadd.xlane.f32.xlu0 %v5529_v12 }
0x2231   :  { %11979 = vmatpush3.bf16.msra.mxu0 %v14682_v56 }
0x2232   :  { %12012 = vmatprep.subr.bf16.mxu0 %v15745_v33 }
0x22b0   :  { %v5504_v8 = vpop.xlane.xlu1 %5503 }
0x22b1   :  { %v5514_v9 = vmul.f32 0.03125, %v5504_v8  ;;  %v5501_v62 = vpop.xlane.xlu0 %5500  ;;  %v12019_v8 = vpack.c.bf16 %v6016_v6, %v6015_v46 }
0x22b2   :  { %v5513_v57 = vmul.f32 0.03125, %v5501_v62  ;;  %v6018_v62 = vld [vmem:[%s15638_s5 + $0x38] sm:$0xff] }
0x22b3   :  { %v14688_v1 = vsub.f32 %v5490_v25, %v5514_v9  ;;  %v6017_v9 = vld [vmem:[%s15638_s5 + $0x30] sm:$0xff] }
0x22b4   :  { %v14690_v14 = vsub.f32 %v5489_v0, %v5513_v57  ;;  %v12022_v57 = vpack.c.bf16 %v6018_v62, %v6017_v9 }
0x22b5   :  { %v5526_v41 = vmul.f32 %v14688_v1, %v14688_v1 }
0x22b6   :  { %v5525_v29 = vmul.f32 %v14690_v14, %v14690_v14 }
0x22b7   :  { %v5538_v18 = vsel %vm253_vm1, %v5526_v41, 0.0  ;;  %v6019_v41 = vld [vmem:[%s15638_s5 + $0x40] sm:$0xff] }
0x22b8   :  { %v5510_v37 = vpop.xlane.xlu1 %5509  ;;  %5539 = vadd.xlane.f32.xlu1 %v5538_v18  ;;  %v5535_v26 = vsel %vm253_vm1, %v5525_v29, 0.0  ;;  %v6020_v29 = vld [vmem:[%s15638_s5 + $0x48] sm:$0xff] }
0x22b9   :  { %v5516_v49 = vmul.f32 0.03125, %v5510_v37  ;;  %5536 = vadd.xlane.f32.xlu0 %v5535_v26  ;;  %v5507_v5 = vpop.xlane.xlu0 %5506  ;;  %v12025_v18 = vpack.c.bf16 %v6020_v29, %v6019_v41  ;;  %v6021_v37 = vld [vmem:[%s15638_s5 + $0x50] sm:$0xff]  ;;  %v6022_v26 = vld [vmem:[%s15638_s5 + $0x58] sm:$0xff] }
0x22ba   :  { %v5515_v21 = vmul.f32 0.03125, %v5507_v5  ;;  %v6023_v5 = vld [vmem:[%s15638_s5 + $0x60] sm:$0xff] }
0x22bb   :  { %v14698_v60 = vsub.f32 %v5492_v63, %v5516_v49  ;;  %v12028_v49 = vpack.c.bf16 %v6022_v26, %v6021_v37 }
0x22bc   :  { %v14700_v36 = vsub.f32 %v5491_v2, %v5515_v21  ;;  %v5534_v19 = vpop.xlane.xlu1 %5533  ;;  %v6024_v21 = vld [vmem:[%s15638_s5 + $0x68] sm:$0xff] }
0x22bd   :  { %v5548_v15 = vmul.f32 0.03125, %v5534_v19  ;;  %v5531_v47 = vpop.xlane.xlu0 %5530  ;;  %v5528_v25 = vmul.f32 %v14698_v60, %v14698_v60  ;;  %v12031_v19 = vpack.c.bf16 %v6024_v21, %v6023_v5 }
0x22be   :  { %v5547_v0 = vmul.f32 0.03125, %v5531_v47  ;;  %v5527_v3 = vmul.f32 %v14700_v36, %v14700_v36  ;;  %v6026_v47 = vld [vmem:[%s15638_s5 + $0x78] sm:$0xff] }
0x22bf   :  { %v5554_v16 = vadd.f32 1e-05, %v5548_v15  ;;  %v5544_v17 = vsel %vm253_vm1, %v5528_v25, 0.0  ;;  %v6025_v15 = vld [vmem:[%s15638_s5 + $0x70] sm:$0xff] }
0x22c0   :  { %v5553_v50 = vadd.f32 1e-05, %v5547_v0  ;;  %5545 = vadd.xlane.f32.xlu1 %v5544_v17  ;;  %v5541_v10 = vsel %vm253_vm1, %v5527_v3, 0.0  ;;  %v12034_v25 = vpack.c.bf16 %v6026_v47, %v6025_v15  ;;  %v6027_v0 = vld [vmem:[%s15638_s5 + $0x80] sm:$0xff]  ;;  %v6028_v3 = vld [vmem:[%s15638_s5 + $0x88] sm:$0xff]  ;;  %v6029_v17 = vld [vmem:[%s15638_s5 + $0x90] sm:$0xff] }
0x22c1   :  { %12622 = vrsqrt.f32 %v5554_v16  ;;  %5542 = vadd.xlane.f32.xlu0 %v5541_v10  ;;  %v12037_v16 = vpack.c.bf16 %v6028_v3, %v6027_v0  ;;  %v6008_v3 = vld [vmem:[%s15634_s1 + $0x8] sm:$0xff] }
0x22c2   :  { %12624 = vrsqrt.f32 %v5553_v50  ;;  %v6030_v50 = vld [vmem:[%s15638_s5 + $0x98] sm:$0xff] }
0x22c3   :  { %v12040_v10 = vpack.c.bf16 %v6030_v50, %v6029_v17  ;;  %v14848_v17 = vld [vmem:[%s15643_s10 + $0x18] sm:$0xf] }
0x22c4   :  { %v14852_v50 = vrot.slane %v14848_v17, %v13008_v23 }
0x22cb   :  { %v12623_v61 = vpop.eup %12622 }
0x22cc   :  { %v12625_v11 = vpop.eup %12624  ;;  %v5566_v63 = vmul.f32 %v12623_v61, %v14655_v51  ;;  %v12013_v51 = vpack.c.bf16 %v6012_v39, %v6011_v55  ;;  %v6031_v61 = vld [vmem:[%s15638_s5 + $0xa0] sm:$0xff] }
0x22cd   :  { %v5565_v2 = vmul.f32 %v12625_v11, %v5517_v43  ;;  %v6032_v11 = vld [vmem:[%s15638_s5 + $0xa8] sm:$0xff] }
0x22ce   :  { %v5576_v31 = vmul.f32 %v14710_v22, %v5566_v63  ;;  %v12043_v63 = vpack.c.bf16 %v6032_v11, %v6031_v61 }
0x22cf   :  { %v5575_v24 = vmul.f32 %v14710_v22, %v5565_v2  ;;  %v6033_v2 = vld [vmem:[%s15638_s5 + $0xb0] sm:$0xff] }
0x22d0   :  { %v5586_v43 = vadd.f32 %v14715_v45, %v5576_v31  ;;  %v6034_v31 = vld [vmem:[%s15638_s5 + $0xb8] sm:$0xff] }
0x22d1   :  { %v14726_v12 = vadd.f32 %v14715_v45, %v5575_v24  ;;  %v12046_v55 = vpack.c.bf16 %v6034_v31, %v6033_v2 }
0x22d3   :  { %11400 = vmatprep.mubr.msk.f32.mxu0 %vm253_vm1, %v14726_v12 }
0x22d4   :  { %11401 = vmatmul.mubr.msk.f32.vlgmr.msra.gmra.mrb[120].mxu0 %vm253_vm1, %v5586_v43 }
0x22d5   :  { %12014 = vmatpush1.bf16.msra.mxu0 %v12013_v51 }
0x22d6   :  { %12015 = vmatprep.subr.bf16.mxu0 %v15745_v33 }
0x22d9   :  { %12017 = vmatpush1.bf16.msra.mxu0 %v12016_v38 }
0x22da   :  { %12018 = vmatprep.subr.bf16.mxu0 %v15745_v33 }
0x22dd   :  { %12020 = vmatpush1.bf16.msra.mxu0 %v12019_v8 }
0x22de   :  { %12021 = vmatprep.subr.bf16.mxu0 %v15745_v33 }
0x22e1   :  { %12023 = vmatpush1.bf16.msra.mxu0 %v12022_v57 }
0x22e2   :  { %12024 = vmatprep.subr.bf16.mxu0 %v15745_v33 }
0x22e5   :  { %12026 = vmatpush1.bf16.msra.mxu0 %v12025_v18 }
0x22e6   :  { %12027 = vmatprep.subr.bf16.mxu0 %v15745_v33 }
0x22e9   :  { %12029 = vmatpush1.bf16.msra.mxu0 %v12028_v49 }
0x22ea   :  { %12030 = vmatprep.subr.bf16.mxu0 %v15745_v33 }
0x22ed   :  { %12032 = vmatpush1.bf16.msra.mxu0 %v12031_v19 }
0x22ee   :  { %12033 = vmatprep.subr.bf16.mxu0 %v15745_v33 }
0x22f1   :  { %12035 = vmatpush1.bf16.msra.mxu0 %v12034_v25 }
0x22f2   :  { %12036 = vmatprep.subr.bf16.mxu0 %v15745_v33 }
0x22f5   :  { %12038 = vmatpush1.bf16.msra.mxu0 %v12037_v16  ;;  %v6009_v16 = vld [vmem:[%s15634_s1 + $0x10] sm:$0xff] }
0x22f6   :  { %12039 = vmatprep.subr.bf16.mxu0 %v15745_v33 }
0x22f9   :  { %12041 = vmatpush1.bf16.msra.mxu0 %v12040_v10 }
0x22fa   :  { %12042 = vmatprep.subr.bf16.mxu0 %v15745_v33 }
0x22fd   :  { %12044 = vmatpush1.bf16.msra.mxu0 %v12043_v63 }
0x22fe   :  { %12045 = vmatprep.subr.bf16.mxu0 %v15745_v33 }
0x2301   :  { %12047 = vmatpush1.bf16.msra.mxu0 %v12046_v55 }
0x2302   :  { %11491 = vmatprep.subr.mxu0 %v15737_v54 }
0x2345   :  { %v5540_v39 = vpop.xlane.xlu1 %5539 }
0x2346   :  { %v5550_v24 = vmul.f32 0.03125, %v5540_v39  ;;  %v5537_v51 = vpop.xlane.xlu0 %5536 }
0x2347   :  { %v5549_v43 = vmul.f32 0.03125, %v5537_v51 }
0x2348   :  { %v5556_v48 = vadd.f32 1e-05, %v5550_v24 }
0x2349   :  { %v5555_v35 = vadd.f32 1e-05, %v5549_v43 }
0x234a   :  { %12626 = vrsqrt.f32 %v5556_v48 }
0x234b   :  { %12628 = vrsqrt.f32 %v5555_v35 }
0x234d   :  { %v5546_v38 = vpop.xlane.xlu1 %5545 }
0x234e   :  { %v5552_v46 = vmul.f32 0.03125, %v5546_v38  ;;  %v5543_v6 = vpop.xlane.xlu0 %5542 }
0x234f   :  { %v5551_v8 = vmul.f32 0.03125, %v5543_v6 }
0x2350   :  { %v5558_v9 = vadd.f32 1e-05, %v5552_v46  ;;  %v6035_v46 = vld [vmem:[%s15636_s3] sm:$0xff] }
0x2351   :  { %v5557_v62 = vadd.f32 1e-05, %v5551_v8 }
0x2352   :  { %12630 = vrsqrt.f32 %v5558_v9 }
0x2353   :  { %12632 = vrsqrt.f32 %v5557_v62 }
0x2354   :  { %v12627_v57 = vpop.eup %12626 }
0x2355   :  { %v12629_v41 = vpop.eup %12628  ;;  %v5568_v29 = vmul.f32 %v12627_v57, %v14688_v1 }
0x2356   :  { %v5567_v18 = vmul.f32 %v12629_v41, %v14690_v14 }
0x2357   :  { %v5578_v37 = vmul.f32 %v14710_v22, %v5568_v29 }
0x2358   :  { %v5577_v26 = vmul.f32 %v14710_v22, %v5567_v18 }
0x2359   :  { %v14816_v5 = vadd.f32 %v14715_v45, %v5578_v37 }
0x235a   :  { %v5587_v49 = vadd.f32 %v14715_v45, %v5577_v26 }
0x235c   :  { %v12631_v21 = vpop.eup %12630  ;;  %11403 = vmatprep.mubr.msk.f32.mxu0 %vm253_vm1, %v5587_v49 }
0x235d   :  { %v12633_v19 = vpop.eup %12632  ;;  %11404 = vmatmul.mubr.msk.f32.gmra.mrb[122].mxu0 %vm253_vm1, %v14816_v5  ;;  %v5570_v1 = vmul.f32 %v12631_v21, %v14698_v60  ;;  %v6007_v60 = vld [vmem:[%s15634_s1] sm:$0xff] }
0x235e   :  { %v5569_v14 = vmul.f32 %v12633_v19, %v14700_v36  ;;  %v6010_v36 = vld [vmem:[%s15634_s1 + $0x18] sm:$0xff] }
0x235f   :  { %v5580_v15 = vmul.f32 %v14710_v22, %v5570_v1 }
0x2360   :  { %v5579_v47 = vmul.f32 %v14710_v22, %v5569_v14  ;;  %v10041_v14 = vld [vmem:[%s15642_s9 + $0x80] sm:$0xff] }
0x2361   :  { %v5590_v0 = vadd.f32 %v14715_v45, %v5580_v15  ;;  %v10042_v15 = vld [vmem:[%s15642_s9 + $0x88] sm:$0xff] }
0x2362   :  { %v5589_v25 = vadd.f32 %v14715_v45, %v5579_v47  ;;  %v14897_v47 = vpack.c.bf16 %v10042_v15, %v10041_v14 }
0x2364   :  { %11406 = vmatprep.mubr.msk.f32.mxu0 %vm253_vm1, %v5589_v25  ;;  %11981 = vmatprep.subr.bf16.mxu1 %v14897_v47  ;;  %v10043_v25 = vld [vmem:[%s15642_s9 + $0x90] sm:$0xff] }
0x2365   :  { %11407 = vmatmul.mubr.msk.f32.gmra.mrb[124].mxu0 %vm253_vm1, %v5590_v0  ;;  %11983 = vmatpush3.bf16.msra.mxu1 %v14897_v47  ;;  %v10044_v0 = vld [vmem:[%s15642_s9 + $0x98] sm:$0xff] }
0x2366   :  { %10243 = vmatprep.mubr.msk.f32.mxu0 %vm6036_vm8, %v6008_v3  ;;  %v14907_v3 = vpack.c.bf16 %v10044_v0, %v10043_v25 }
0x2368   :  { %11985 = vmatprep.subr.bf16.mxu1 %v14907_v3 }
0x2369   :  { %6108 = vmatmul.mubr.f32.vlgmr.msra.gmra.mrb[126].mxu0 %v6007_v60  ;;  %11987 = vmatpush3.bf16.msra.mxu1 %v14907_v3  ;;  %v10045_v60 = vld [vmem:[%s15642_s9 + $0xa0] sm:$0xff] }
0x236a   :  { %10244 = vmatprep.mubr.msk.f32.mxu0 %vm6036_vm8, %v6010_v36  ;;  %v10046_v36 = vld [vmem:[%s15642_s9 + $0xa8] sm:$0xff] }
0x236d   :  { %6113 = vmatmul.mubr.f32.gmra.mrb[128].mxu0 %v6009_v16  ;;  %v14917_v16 = vpack.c.bf16 %v10046_v36, %v10045_v60 }
0x236e   :  { %11493 = vmatprep.mubr.msk.f32.mxu0 %vm12804_vm2, %v15737_v54 }
0x236f   :  { %11989 = vmatprep.subr.bf16.mxu1 %v14917_v16 }
0x2370   :  { %11991 = vmatpush3.bf16.msra.mxu1 %v14917_v16 }
0x23a7   :  { %v11402_v10 = vpop.f32.mrb[120].mxu0 }
0x23a8   :  { %v5685_v61 = vadd.f32 %v11402_v10, %v14852_v50  ;;  %v5679_v11 = vpop.f32.mrb[121].mxu0  ;;  %v10047_v10 = vld [vmem:[%s15642_s9 + $0xb0] sm:$0xff] }
0x23a9   :  { %v5680_v63 = vadd.f32 %v5679_v11, %v14852_v50  ;;  %v10049_v11 = vld [vmem:[%s15642_s9 + $0xc0] sm:$0xff] }
0x23aa   :  { %5710 = vadd.xlane.f32.xlu1 %v5685_v61 }
0x23ab   :  { %5708 = vadd.xlane.f32.xlu0 %v5680_v63 }
0x2430   :  { %v11405_v2 = vpop.f32.mrb[122].mxu0 }
0x2431   :  { %v14857_v31 = vadd.f32 %v11405_v2, %v14852_v50  ;;  %v5689_v55 = vpop.f32.mrb[123].mxu0  ;;  %v10050_v2 = vld [vmem:[%s15642_s9 + $0xc8] sm:$0xff] }
0x2432   :  { %v14860_v39 = vadd.f32 %v5689_v55, %v14852_v50  ;;  %v14935_v55 = vpack.c.bf16 %v10050_v2, %v10049_v11 }
0x2433   :  { %5714 = vadd.xlane.f32.xlu1 %v14857_v31 }
0x2434   :  { %5712 = vadd.xlane.f32.xlu0 %v14860_v39 }
0x2437   :  { %v5711_v6 = vpop.xlane.xlu1 %5710 }
0x2438   :  { %v11408_v24 = vpop.f32.mrb[124].mxu0  ;;  %v5709_v51 = vpop.xlane.xlu0 %5708  ;;  %v5721_v57 = vmul.f32 0.0078125, %v5711_v6 }
0x2439   :  { %v14865_v43 = vadd.f32 %v11408_v24, %v14852_v50  ;;  %v5699_v48 = vpop.f32.mrb[125].mxu0  ;;  %v5720_v35 = vmul.f32 0.0078125, %v5709_v51  ;;  %v10051_v24 = vld [vmem:[%s15642_s9 + $0xd0] sm:$0xff]  ;;  %v10052_v51 = vld [vmem:[%s15642_s9 + $0xd8] sm:$0xff] }
0x243a   :  { %v14868_v38 = vadd.f32 %v5699_v48, %v14852_v50  ;;  %v14883_v49 = vsub.f32 %v5685_v61, %v5721_v57  ;;  %v10048_v61 = vld [vmem:[%s15642_s9 + $0xb8] sm:$0xff]  ;;  %v14946_v48 = vpack.c.bf16 %v10052_v51, %v10051_v24 }
0x243b   :  { %5718 = vadd.xlane.f32.xlu1 %v14865_v43  ;;  %v14877_v41 = vsub.f32 %v5680_v63, %v5720_v35  ;;  %v14930_v63 = vpack.c.bf16 %v10048_v61, %v10047_v10  ;;  %v10053_v35 = vld [vmem:[%s15642_s9 + $0xe0] sm:$0xff] }
0x243c   :  { %v6109_v8 = vpop.f32.mrb[126].mxu0  ;;  %5716 = vadd.xlane.f32.xlu0 %v14868_v38  ;;  %v5733_v1 = vmul.f32 %v14883_v49, %v14883_v49 }
0x243d   :  { %v14875_v9 = vadd.f32 %v6109_v8, %v6035_v46  ;;  %v6111_v62 = vpop.f32.mrb[127].mxu0  ;;  %v5732_v21 = vmul.f32 %v14877_v41, %v14877_v41  ;;  %11993 = vmatprep.subr.bf16.mxu1 %v14930_v63  ;;  %v10055_v8 = vld [vmem:[%s15642_s9 + $0xf0] sm:$0xff] }
0x243e   :  { %11995 = vmatpush3.bf16.msra.mxu1 %v14930_v63  ;;  %v10056_v62 = vld [vmem:[%s15642_s9 + $0xf8] sm:$0xff] }
0x243f   :  { %v6122_v29 = vsel %vm253_vm1, %v14875_v9, 0.0  ;;  %11997 = vmatprep.subr.bf16.mxu1 %v14935_v55  ;;  %v14966_v57 = vpack.c.bf16 %v10056_v62, %v10055_v8 }
0x2440   :  { %v6114_v18 = vpop.f32.mrb[128].mxu0  ;;  %6123 = vadd.xlane.f32.xlu0 %v6122_v29 }
0x2441   :  { %v14881_v37 = vadd.f32 %v6114_v18, %v6035_v46  ;;  %v6116_v26 = vpop.f32.mrb[129].mxu0  ;;  %v10054_v46 = vld [vmem:[%s15642_s9 + $0xe8] sm:$0xff]  ;;  %s15755_s9 = smov 72  }
0x2442   :  { %11999 = vmatpush3.bf16.msra.mxu1 %v14935_v55  ;;  %v14956_v6 = vpack.c.bf16 %v10054_v46, %v10053_v35 }
0x2443   :  { %v6125_v19 = vsel %vm253_vm1, %v14881_v37, 0.0  ;;  %12001 = vmatprep.subr.bf16.mxu1 %v14946_v48 }
0x2444   :  { %6126 = vadd.xlane.f32.xlu1 %v6125_v19  ;;  %5738 = vadd.xlane.f32.xlu0 %v5732_v21 }
0x2446   :  { %12003 = vmatpush3.bf16.msra.mxu1 %v14946_v48 }
0x2447   :  { %12005 = vmatprep.subr.bf16.mxu1 %v14956_v6 }
0x2448   :  { %5740 = vadd.xlane.f32.xlu1 %v5733_v1 }
0x244a   :  { %12007 = vmatpush3.bf16.msra.mxu1 %v14956_v6 }
0x244b   :  { %12009 = vmatprep.subr.bf16.mxu1 %v14966_v57 }
0x244e   :  { %12011 = vmatpush3.bf16.msra.mxu1 %v14966_v57 }
0x244f   :  { %12049 = vmatprep.subr.bf16.mxu1 %v12990_v4 }
0x24c0   :  { %v5715_v29 = vpop.xlane.xlu1 %5714 }
0x24c1   :  { %v5723_v18 = vmul.f32 0.0078125, %v5715_v29  ;;  %v5713_v26 = vpop.xlane.xlu0 %5712 }
0x24c2   :  { %v5722_v21 = vmul.f32 0.0078125, %v5713_v26 }
0x24c3   :  { %v14973_v19 = vsub.f32 %v14857_v31, %v5723_v18 }
0x24c4   :  { %v14976_v1 = vsub.f32 %v14860_v39, %v5722_v21 }
0x24c5   :  { %v5735_v14 = vmul.f32 %v14973_v19, %v14973_v19 }
0x24c6   :  { %v5734_v15 = vmul.f32 %v14976_v1, %v14976_v1 }
0x24c7   :  { %5744 = vadd.xlane.f32.xlu1 %v5735_v14 }
0x24c8   :  { %v5719_v25 = vpop.xlane.xlu1 %5718  ;;  %5742 = vadd.xlane.f32.xlu0 %v5734_v15  ;;  %v15006_v15 = vrot.slane %v14848_v17, %v13014_v28 }
0x24c9   :  { %v5725_v0 = vmul.f32 0.0078125, %v5719_v25  ;;  %v5717_v60 = vpop.xlane.xlu0 %5716 }
0x24ca   :  { %v5724_v36 = vmul.f32 0.0078125, %v5717_v60 }
0x24cb   :  { %v14983_v10 = vsub.f32 %v14865_v43, %v5725_v0  ;;  %v15011_v0 = vrot.slane %v14848_v17, %v13724_v20 }
0x24cc   :  { %v14986_v31 = vsub.f32 %v14868_v38, %v5724_v36 }
0x24cd   :  { %v6124_v39 = vpop.xlane.xlu0 %6123  ;;  %v5737_v61 = vmul.f32 %v14983_v10, %v14983_v10 }
0x24ce   :  { %v6128_v11 = vmul.f32 0.03125, %v6124_v39  ;;  %v5736_v2 = vmul.f32 %v14986_v31, %v14986_v31 }
0x24cf   :  { %5748 = vadd.xlane.f32.xlu1 %v5737_v61 }
0x24d0   :  { %v14993_v24 = vsub.f32 %v14875_v9, %v6128_v11  ;;  %5746 = vadd.xlane.f32.xlu0 %v5736_v2 }
0x24d1   :  { %v6127_v51 = vpop.xlane.xlu1 %6126  ;;  %v5739_v35 = vpop.xlane.xlu0 %5738 }
0x24d2   :  { %v6129_v43 = vmul.f32 0.03125, %v6127_v51  ;;  %v5750_v46 = vmul.f32 0.0078125, %v5739_v35  ;;  %v6132_v38 = vmul.f32 %v14993_v24, %v14993_v24 }
0x24d4   :  { %v14998_v8 = vsub.f32 %v14881_v37, %v6129_v43  ;;  %v5756_v62 = vadd.f32 1e-05, %v5750_v46  ;;  %v6134_v29 = vsel %vm253_vm1, %v6132_v38, 0.0 }
0x24d5   :  { %v5741_v18 = vpop.xlane.xlu1 %5740  ;;  %6135 = vadd.xlane.f32.xlu0 %v6134_v29 }
0x24d6   :  { %12634 = vrsqrt.f32 %v5756_v62  ;;  %v5751_v26 = vmul.f32 0.0078125, %v5741_v18  ;;  %v6133_v9 = vmul.f32 %v14998_v8, %v14998_v8 }
0x24d8   :  { %v5757_v21 = vadd.f32 1e-05, %v5751_v26  ;;  %v6137_v14 = vsel %vm253_vm1, %v6133_v9, 0.0 }
0x24d9   :  { %6138 = vadd.xlane.f32.xlu1 %v6137_v14 }
0x24da   :  { %12636 = vrsqrt.f32 %v5757_v21 }
0x24e0   :  { %v12635_v37 = vpop.eup %12634 }
0x24e1   :  { %v5768_v25 = vmul.f32 %v12635_v37, %v14877_v41 }
0x24e3   :  { %v5778_v60 = vmul.f32 %v15006_v15, %v5768_v25 }
0x24e4   :  { %v12637_v36 = vpop.eup %12636 }
0x24e5   :  { %v5769_v39 = vmul.f32 %v12637_v36, %v14883_v49  ;;  %v5788_v61 = vadd.f32 %v15011_v0, %v5778_v60 }
0x24e7   :  { %v5779_v11 = vmul.f32 %v15006_v15, %v5769_v39  ;;  %v5800_v2 = vmul.f32 0.70710677, %v5788_v61  ;;  %v5794_v43 = vmul.f32 0.5, %v5788_v61 }
0x24e9   :  { %12638 = verf.f32 %v5800_v2  ;;  %v5789_v51 = vadd.f32 %v15011_v0, %v5779_v11 }
0x24eb   :  { %v5801_v35 = vmul.f32 0.70710677, %v5789_v51  ;;  %v5795_v62 = vmul.f32 0.5, %v5789_v51 }
0x24ed   :  { %12640 = verf.f32 %v5801_v35 }
0x24f3   :  { %v12639_v41 = vpop.eup %12638 }
0x24f4   :  { %v5812_v46 = vadd.f32 1.0, %v12639_v41 }
0x24f6   :  { %v5818_v17 = vmul.f32 %v5812_v46, %v5794_v43 }
0x24f7   :  { %v12641_v38 = vpop.eup %12640 }
0x24f8   :  { %11441 = vmatprep.mubr.f32.mxu1 %v5818_v17  ;;  %v5813_v29 = vadd.f32 1.0, %v12641_v38 }
0x24fa   :  { %v5819_v18 = vmul.f32 %v5813_v29, %v5795_v62 }
0x24fc   :  { %11442 = vmatmul.mubr.f32.vlgmr.msra.gmra.mrb[114].mxu1 %v5819_v18 }
0x24fd   :  { %12051 = vmatpush3.bf16.msra.mxu1 %v12990_v4 }
0x24fe   :  { %12053 = vmatprep.subr.bf16.mxu1 %v12998_v7 }
0x2501   :  { %12055 = vmatpush3.bf16.msra.mxu1 %v12998_v7 }
0x2502   :  { %11461 = vmatprep.subr.mxu1 %v15737_v54 }
0x2554   :  { %v5745_v49 = vpop.xlane.xlu1 %5744 }
0x2555   :  { %v5753_v26 = vmul.f32 0.0078125, %v5745_v49  ;;  %v5743_v9 = vpop.xlane.xlu0 %5742 }
0x2556   :  { %v5752_v21 = vmul.f32 0.0078125, %v5743_v9 }
0x2557   :  { %v5759_v14 = vadd.f32 1e-05, %v5753_v26 }
0x2558   :  { %v5758_v37 = vadd.f32 1e-05, %v5752_v21 }
0x2559   :  { %12642 = vrsqrt.f32 %v5759_v14 }
0x255a   :  { %12644 = vrsqrt.f32 %v5758_v37 }
0x255c   :  { %v5749_v25 = vpop.xlane.xlu1 %5748 }
0x255d   :  { %v5755_v60 = vmul.f32 0.0078125, %v5749_v25  ;;  %v5747_v36 = vpop.xlane.xlu0 %5746 }
0x255e   :  { %v5754_v39 = vmul.f32 0.0078125, %v5747_v36 }
0x255f   :  { %v5761_v61 = vadd.f32 1e-05, %v5755_v60 }
0x2560   :  { %v5760_v4 = vadd.f32 1e-05, %v5754_v39 }
0x2561   :  { %12646 = vrsqrt.f32 %v5761_v61 }
0x2562   :  { %12648 = vrsqrt.f32 %v5760_v4  ;;  %v6136_v2 = vpop.xlane.xlu0 %6135 }
0x2563   :  { %v12643_v11 = vpop.eup %12642  ;;  %v6140_v43 = vmul.f32 0.03125, %v6136_v2 }
0x2564   :  { %v12645_v7 = vpop.eup %12644  ;;  %v5771_v51 = vmul.f32 %v12643_v11, %v14973_v19 }
0x2565   :  { %v5770_v35 = vmul.f32 %v12645_v7, %v14976_v1  ;;  %v6142_v26 = vadd.f32 1e-05, %v6140_v43 }
0x2566   :  { %v5781_v41 = vmul.f32 %v15006_v15, %v5771_v51  ;;  %v6139_v46 = vpop.xlane.xlu1 %6138 }
0x2567   :  { %v5780_v17 = vmul.f32 %v15006_v15, %v5770_v35  ;;  %v6141_v29 = vmul.f32 0.03125, %v6139_v46 }
0x2568   :  { %v5791_v38 = vadd.f32 %v15011_v0, %v5781_v41 }
0x2569   :  { %v5790_v62 = vadd.f32 %v15011_v0, %v5780_v17  ;;  %v6143_v14 = vadd.f32 1e-05, %v6141_v29 }
0x256a   :  { %v5803_v18 = vmul.f32 0.70710677, %v5791_v38  ;;  %v5797_v51 = vmul.f32 0.5, %v5791_v38 }
0x256b   :  { %v12647_v49 = vpop.eup %12646  ;;  %v5802_v9 = vmul.f32 0.70710677, %v5790_v62  ;;  %v5796_v7 = vmul.f32 0.5, %v5790_v62 }
0x256c   :  { %v12649_v21 = vpop.eup %12648  ;;  %12650 = verf.f32 %v5803_v18  ;;  %v5773_v19 = vmul.f32 %v12647_v49, %v14983_v10 }
0x256d   :  { %12652 = verf.f32 %v5802_v9  ;;  %v5772_v1 = vmul.f32 %v12649_v21, %v14986_v31 }
0x256e   :  { %v5783_v37 = vmul.f32 %v15006_v15, %v5773_v19  ;;  %12654 = vrsqrt.f32 %v6142_v26 }
0x256f   :  { %v5782_v25 = vmul.f32 %v15006_v15, %v5772_v1  ;;  %12656 = vrsqrt.f32 %v6143_v14 }
0x2570   :  { %v5793_v60 = vadd.f32 %v15011_v0, %v5783_v37 }
0x2571   :  { %v5792_v36 = vadd.f32 %v15011_v0, %v5782_v25 }
0x2572   :  { %v5805_v39 = vmul.f32 0.70710677, %v5793_v60  ;;  %v5799_v62 = vmul.f32 0.5, %v5793_v60 }
0x2573   :  { %v5804_v61 = vmul.f32 0.70710677, %v5792_v36  ;;  %v5798_v26 = vmul.f32 0.5, %v5792_v36 }
0x2574   :  { %12658 = verf.f32 %v5805_v39 }
0x2575   :  { %12660 = verf.f32 %v5804_v61 }
0x2576   :  { %v12651_v4 = vpop.eup %12650 }
0x2577   :  { %v12653_v10 = vpop.eup %12652  ;;  %v5815_v11 = vadd.f32 1.0, %v12651_v4 }
0x2578   :  { %v5814_v31 = vadd.f32 1.0, %v12653_v10  ;;  %v12655_v2 = vpop.eup %12654 }
0x2579   :  { %v5821_v41 = vmul.f32 %v5815_v11, %v5797_v51  ;;  %v12657_v43 = vpop.eup %12656  ;;  %v6146_v46 = vmul.f32 %v12655_v2, %v14993_v24 }
0x257a   :  { %v5820_v35 = vmul.f32 %v5814_v31, %v5796_v7  ;;  %v6147_v18 = vmul.f32 %v12657_v43, %v14998_v8 }
0x257b   :  { %v6148_v21 = vmul.f32 %v6146_v46, %v13017_v30 }
0x257c   :  { %11444 = vmatprep.mubr.f32.mxu1 %v5820_v35  ;;  %v6149_v38 = vmul.f32 %v6147_v18, %v13017_v30 }
0x257d   :  { %11445 = vmatmul.mubr.f32.gmra.mrb[116].mxu1 %v5821_v41  ;;  %v15039_v14 = vadd.f32 %v6148_v21, %v13021_v34 }
0x257e   :  { %v12659_v17 = vpop.eup %12658  ;;  %v15044_v24 = vadd.f32 %v6149_v38, %v13021_v34 }
0x257f   :  { %v12661_v29 = vpop.eup %12660  ;;  %v5817_v49 = vadd.f32 1.0, %v12659_v17 }
0x2580   :  { %v5816_v9 = vadd.f32 1.0, %v12661_v29 }
0x2581   :  { %v5823_v1 = vmul.f32 %v5817_v49, %v5799_v62 }
0x2582   :  { %v5822_v19 = vmul.f32 %v5816_v9, %v5798_v26 }
0x2584   :  { %11447 = vmatprep.mubr.f32.mxu1 %v5822_v19 }
0x2585   :  { %11448 = vmatmul.mubr.f32.gmra.mrb[118].mxu1 %v5823_v1 }
0x2586   :  { %11458 = vmatprep.mubr.msk.f32.mxu1 %vm253_vm1, %v15039_v14 }
0x2589   :  { %11459 = vmatmul.mubr.msk.f32.vlgmr.msra.gmra.mrb[120].mxu1 %vm253_vm1, %v15044_v24 }
0x258a   :  { %11463 = vmatprep.mubr.msk.f32.mxu1 %vm12804_vm2, %v15737_v54 }
0x25cf   :  { %v11443_v8 = vpop.f32.mrb[114].mxu1 }
0x25d0   :  { %v15050_v30 = vpop.f32.mrb[115].mxu1 }
0x2650   :  { %v15052_v37 = vpop.f32.mrb[116].mxu1 }
0x2651   :  { %v5903_v25 = vpop.f32.mrb[117].mxu1 }
0x2658   :  { %v11449_v60 = vpop.f32.mrb[118].mxu1 }
0x2659   :  { %v5912_v36 = vpop.f32.mrb[119].mxu1 }
0x265c   :  { %v11460_v39 = vpop.f32.mrb[120].mxu1 }
0x265d   :  { %v15055_v61 = vadd.f32 %v11460_v39, %v13070_v59  ;;  %v6224_v34 = vpop.f32.mrb[121].mxu1 }
0x265e   :  { %v15058_v4 = vadd.f32 %v6224_v34, %v13070_v59  ;;  %v15754_v59 = vmov -1e+09  }
0x265f   :  { %6311 = vrot.lane.b32.xlu1 %v15055_v61, %s12803_s17  ;;  %v15078_v7 = vsel %vm6120_vm9, 0.0, %v15754_v59 }
0x2660   :  { %6234 = vrot.lane.b32.xlu0 %v15058_v4, %s12803_s17 }
0x26d1   :  { %v6312_v11 = vpop.permute.xlu1 %6311 }
0x26d2   :  { %v6235_v10 = vpop.permute.xlu0 %6234 }
0x26d3   :  { %11462 = vmatpush3.xpose.msk.msra.mxu1 %vm479_vm3, %v6235_v10 }
0x26d4   :  { %11466 = vmatprep.subr.mxu1 %v15737_v54 }
0x26d6   :  { %11464 = vmatmul.mubr.msk.f32.vlgmr.msra.gmra.mrb[122].mxu1 %vm479_vm3, %v15058_v4 }
0x26d7   :  { %11467 = vmatpush3.xpose.msk.msra.mxu1 %vm479_vm3, %v6312_v11  ;;  %11468 = vmatprep.mubr.msk.f32.mxu1 %vm12804_vm2, %v15737_v54 }
0x26d8   :  { %11471 = vmatprep.subr.mxu1 %v15737_v54 }
0x26da   :  { %11469 = vmatmul.mubr.msk.f32.vlgmr.msra.gmra.mrb[124].mxu1 %vm479_vm3, %v15055_v61 }
0x26db   :  { %11473 = vmatprep.mubr.msk.f32.mxu1 %vm12804_vm2, %v15737_v54 }
0x27a9   :  { %v6306_v31 = vpop.f32.mrb[122].mxu1 }
0x27aa   :  { %v6387_v2 = vmul.f32 0.35355338, %v6306_v31  ;;  %v11465_v51 = vpop.f32.mrb[123].mxu1 }
0x27ac   :  { %v6389_v35 = vadd.f32 %v6387_v2, %v15078_v7 }
0x27ad   :  { %v6383_v41 = vpop.f32.mrb[124].mxu1 }
0x27ae   :  { %v6388_v43 = vmul.f32 0.35355338, %v6383_v41  ;;  %v11470_v46 = vpop.f32.mrb[125].mxu1  ;;  %v6391_v17 = vsel %vm479_vm3, %v6389_v35, -inf }
0x27af   :  { %6392 = vmax.xlane.f32.xlu1 %v6391_v17 }
0x27b0   :  { %v6390_v29 = vadd.f32 %v6388_v43, %v15078_v7 }
0x27b2   :  { %v6394_v18 = vsel %vm479_vm3, %v6390_v29, -inf }
0x27b3   :  { %6395 = vmax.xlane.f32.xlu0 %v6394_v18 }
0x27c0   :  { %6489 = vrot.lane.b32.xlu1 %v15055_v61, %s12807_s18 }
0x27c4   :  { %6567 = vrot.lane.b32.xlu1 %v15058_v4, %s12808_s19 }
0x283c   :  { %v6393_v27 = vpop.xlane.xlu1 %6392 }
0x283d   :  { %v6397_v49 = vsub.f32 %v6389_v35, %v6393_v27 }
0x283f   :  { %v6399_v26 = vmul.f32 1.442695, %v6397_v49 }
0x2840   :  { %v6396_v9 = vpop.xlane.xlu0 %6395  ;;  %v6490_v25 = vpop.permute.xlu1 %6489 }
0x2841   :  { %12662 = vpow2.f32 %v6399_v26  ;;  %v6398_v21 = vsub.f32 %v6390_v29, %v6396_v9 }
0x2843   :  { %v6401_v62 = vmul.f32 1.442695, %v6398_v21 }
0x2844   :  { %v6568_v60 = vpop.permute.xlu1 %6567 }
0x2845   :  { %12664 = vpow2.f32 %v6401_v62 }
0x284b   :  { %v12663_v19 = vpop.eup %12662 }
0x284c   :  { %v6403_v38 = vsel %vm479_vm3, %v12663_v19, 0.0 }
0x284d   :  { %6404 = vadd.xlane.f32.xlu0 %v6403_v38 }
0x284f   :  { %v12665_v1 = vpop.eup %12664 }
0x2850   :  { %v6406_v8 = vsel %vm479_vm3, %v12665_v1, 0.0 }
0x2851   :  { %6407 = vadd.xlane.f32.xlu1 %v6406_v8 }
0x2862   :  { %6645 = vrot.lane.b32.xlu1 %v15055_v61, %s12808_s19 }
0x2863   :  { %6413 = vrot.lane.b32.xlu0 %v15058_v4, %s12807_s18 }
0x2867   :  { %6565 = vrot.lane.b32.xlu0 %v15058_v4, %s12809_s20 }
0x286b   :  { %6643 = vrot.lane.b32.xlu0 %v15055_v61, %s12809_s20 }
0x28da   :  { %v6405_v36 = vpop.xlane.xlu0 %6404 }
0x28db   :  { %12666 = vrcp.f32 %v6405_v36 }
0x28de   :  { %v6408_v39 = vpop.xlane.xlu1 %6407  ;;  %v6414_v34 = vpop.permute.xlu0 %6413 }
0x28df   :  { %12668 = vrcp.f32 %v6408_v39  ;;  %11472 = vmatpush3.msra.mxu1 %v6414_v34 }
0x28e0   :  { %11476 = vmatprep.subr.mxu1 %v15737_v54 }
0x28e2   :  { %v6566_v2 = vpop.permute.xlu0 %6565  ;;  %v6646_v51 = vpop.permute.xlu1 %6645 }
0x28e5   :  { %v12667_v10 = vpop.eup %12666 }
0x28e6   :  { %v6411_v11 = vmul.f32 %v12667_v10, %v12663_v19  ;;  %v6644_v35 = vpop.permute.xlu0 %6643 }
0x28e8   :  { %11474 = vmatmul.mubr.msk.f32.vlgmr.msra.gmra.mrb[126].mxu1 %vm479_vm3, %v6411_v11 }
0x28e9   :  { %v12669_v59 = vpop.eup %12668  ;;  %11477 = vmatpush3.msra.mxu1 %v6490_v25  ;;  %11478 = vmatprep.mubr.msk.f32.mxu1 %vm12804_vm2, %v15737_v54 }
0x28ea   :  { %v6412_v31 = vmul.f32 %v12669_v59, %v12665_v1  ;;  %11481 = vmatprep.subr.mxu1 %v15737_v54 }
0x28ec   :  { %11479 = vmatmul.mubr.msk.f32.vlgmr.msra.gmra.mrb[128].mxu1 %vm479_vm3, %v6412_v31 }
0x28ed   :  { %11483 = vmatprep.mubr.msk.f32.mxu1 %vm12804_vm2, %v15737_v54 }
0x28f0   :  { %11482 = vmatpush3.xpose.msk.msra.mxu1 %vm479_vm3, %v6568_v60 }
0x28f1   :  { %11486 = vmatprep.subr.mxu1 %v15737_v54 }
0x28f3   :  { %11484 = vmatmul.mubr.msk.f32.vlgmr.msra.gmra.mrb[130].mxu1 %vm479_vm3, %v6566_v2 }
0x28f4   :  { %11487 = vmatpush3.xpose.msk.msra.mxu1 %vm479_vm3, %v6646_v51  ;;  %11488 = vmatprep.mubr.msk.f32.mxu1 %vm12804_vm2, %v15737_v54 }
0x28f5   :  { %11496 = vmatprep.subr.mxu1 %v15737_v54 }
0x28f7   :  { %11489 = vmatmul.mubr.msk.f32.vlgmr.msra.gmra.mrb[132].mxu1 %vm479_vm3, %v6644_v35 }
0x28f8   :  { %11498 = vmatprep.mubr.msk.f32.mxu1 %vm12804_vm2, %v15737_v54 }
0x29bb   :  { %v15116_v41 = vpop.f32.mrb[126].mxu1 }
0x29bc   :  { %v11475_v43 = vpop.f32.mrb[127].mxu1 }
0x29bf   :  { %v15118_v46 = vpop.f32.mrb[128].mxu1 }
0x29c0   :  { %v11480_v17 = vpop.f32.mrb[129].mxu1 }
0x29c6   :  { %v6639_v29 = vpop.f32.mrb[130].mxu1 }
0x29c7   :  { %v6721_v18 = vmul.f32 0.35355338, %v6639_v29  ;;  %v11485_v27 = vpop.f32.mrb[131].mxu1 }
0x29c9   :  { %v6723_v49 = vadd.f32 %v6721_v18, %v15078_v7 }
0x29ca   :  { %v6717_v26 = vpop.f32.mrb[132].mxu1 }
0x29cb   :  { %v6722_v9 = vmul.f32 0.35355338, %v6717_v26  ;;  %v11490_v21 = vpop.f32.mrb[133].mxu1  ;;  %v6725_v62 = vsel %vm479_vm3, %v6723_v49, -inf }
0x29cc   :  { %6726 = vmax.xlane.f32.xlu1 %v6725_v62 }
0x29cd   :  { %v6724_v19 = vadd.f32 %v6722_v9, %v15078_v7 }
0x29cf   :  { %v6728_v38 = vsel %vm479_vm3, %v6724_v19, -inf }
0x29d0   :  { %6729 = vmax.xlane.f32.xlu0 %v6728_v38 }
0x29dd   :  { %6823 = vrot.lane.b32.xlu1 %v15055_v61, %s12810_s21 }
0x29e1   :  { %6901 = vrot.lane.b32.xlu1 %v15058_v4, %s12811_s22 }
0x29e6   :  { %6747 = vrot.lane.b32.xlu0 %v15058_v4, %s12810_s21 }
0x2a59   :  { %v6727_v1 = vpop.xlane.xlu1 %6726 }
0x2a5a   :  { %v6731_v8 = vsub.f32 %v6723_v49, %v6727_v1 }
0x2a5c   :  { %v6733_v25 = vmul.f32 1.442695, %v6731_v8 }
0x2a5d   :  { %v6824_v60 = vpop.permute.xlu1 %6823  ;;  %v6730_v36 = vpop.xlane.xlu0 %6729 }
0x2a5e   :  { %12670 = vpow2.f32 %v6733_v25  ;;  %v6732_v39 = vsub.f32 %v6724_v19, %v6730_v36  ;;  %11497 = vmatpush3.msra.mxu1 %v6824_v60 }
0x2a5f   :  { %11506 = vmatprep.subr.mxu1 %v15737_v54 }
0x2a60   :  { %v6735_v34 = vmul.f32 1.442695, %v6732_v39 }
0x2a61   :  { %v6748_v10 = vpop.permute.xlu0 %6747  ;;  %v6902_v51 = vpop.permute.xlu1 %6901 }
0x2a62   :  { %12672 = vpow2.f32 %v6735_v34  ;;  %11492 = vmatpush3.msra.mxu0 %v6748_v10 }
0x2a63   :  { %11501 = vmatprep.subr.mxu0 %v15737_v54 }
0x2a68   :  { %v12671_v11 = vpop.eup %12670 }
0x2a69   :  { %v6737_v59 = vsel %vm479_vm3, %v12671_v11, 0.0 }
0x2a6a   :  { %6738 = vadd.xlane.f32.xlu0 %v6737_v59 }
0x2a6c   :  { %v12673_v31 = vpop.eup %12672 }
0x2a6d   :  { %v6740_v2 = vsel %vm479_vm3, %v12673_v31, 0.0 }
0x2a6e   :  { %6741 = vadd.xlane.f32.xlu1 %v6740_v2 }
0x2a7f   :  { %6899 = vrot.lane.b32.xlu1 %v15058_v4, %s12812_s23 }
0x2a80   :  { %6979 = vrot.lane.b32.xlu0 %v15055_v61, %s12811_s22 }
0x2a84   :  { %6977 = vrot.lane.b32.xlu0 %v15055_v61, %s12812_s23 }
0x2af7   :  { %v6739_v35 = vpop.xlane.xlu0 %6738 }
0x2af8   :  { %12674 = vrcp.f32 %v6739_v35 }
0x2afb   :  { %v6742_v43 = vpop.xlane.xlu1 %6741  ;;  %v6980_v27 = vpop.permute.xlu0 %6979 }
0x2afc   :  { %12676 = vrcp.f32 %v6742_v43 }
0x2aff   :  { %v6900_v26 = vpop.permute.xlu1 %6899  ;;  %v6978_v9 = vpop.permute.xlu0 %6977 }
0x2b02   :  { %v12675_v17 = vpop.eup %12674 }
0x2b03   :  { %v6745_v29 = vmul.f32 %v12675_v17, %v12671_v11 }
0x2b05   :  { %11494 = vmatmul.mubr.msk.f32.vlgmr.msra.gmra.mrb[130].mxu0 %vm479_vm3, %v6745_v29 }
0x2b06   :  { %v12677_v18 = vpop.eup %12676  ;;  %11502 = vmatpush3.xpose.msk.msra.mxu0 %vm479_vm3, %v6902_v51  ;;  %11503 = vmatprep.mubr.msk.f32.mxu0 %vm12804_vm2, %v15737_v54 }
0x2b07   :  { %v6746_v49 = vmul.f32 %v12677_v18, %v12673_v31  ;;  %11511 = vmatprep.subr.mxu0 %v15737_v54 }
0x2b09   :  { %11499 = vmatmul.mubr.msk.f32.vlgmr.msra.gmra.mrb[134].mxu1 %vm479_vm3, %v6746_v49  ;;  %11504 = vmatmul.mubr.msk.f32.vlgmr.msra.gmra.mrb[132].mxu0 %vm479_vm3, %v6900_v26 }
0x2b0a   :  { %11507 = vmatpush3.xpose.msk.msra.mxu1 %vm479_vm3, %v6980_v27  ;;  %11508 = vmatprep.mubr.msk.f32.mxu1 %vm12804_vm2, %v15737_v54 }
0x2b0b   :  { %11516 = vmatprep.subr.mxu1 %v15737_v54  ;;  %11513 = vmatprep.mubr.msk.f32.mxu0 %vm12804_vm2, %v15737_v54 }
0x2b0d   :  { %11509 = vmatmul.mubr.msk.f32.vlgmr.msra.gmra.mrb[136].mxu1 %vm479_vm3, %v6978_v9 }
0x2b0e   :  { %11518 = vmatprep.mubr.msk.f32.mxu1 %vm12804_vm2, %v15737_v54 }
0x2bd8   :  { %v15156_v21 = vpop.f32.mrb[130].mxu0 }
0x2bd9   :  { %v11495_v62 = vpop.f32.mrb[131].mxu0 }
0x2bdc   :  { %v15158_v19 = vpop.f32.mrb[134].mxu1  ;;  %v6973_v38 = vpop.f32.mrb[132].mxu0 }
0x2bdd   :  { %v7055_v1 = vmul.f32 0.35355338, %v6973_v38  ;;  %v11500_v8 = vpop.f32.mrb[135].mxu1  ;;  %v11505_v25 = vpop.f32.mrb[133].mxu0 }
0x2bdf   :  { %v7057_v60 = vadd.f32 %v7055_v1, %v15078_v7 }
0x2be0   :  { %v7051_v36 = vpop.f32.mrb[136].mxu1 }
0x2be1   :  { %v7056_v39 = vmul.f32 0.35355338, %v7051_v36  ;;  %v11510_v34 = vpop.f32.mrb[137].mxu1  ;;  %v7059_v10 = vsel %vm479_vm3, %v7057_v60, -inf }
0x2be2   :  { %7060 = vmax.xlane.f32.xlu1 %v7059_v10 }
0x2be3   :  { %v7058_v11 = vadd.f32 %v7056_v39, %v15078_v7 }
0x2be5   :  { %v7062_v59 = vsel %vm479_vm3, %v7058_v11, -inf }
0x2be6   :  { %7063 = vmax.xlane.f32.xlu0 %v7062_v59 }
0x2bf3   :  { %7157 = vrot.lane.b32.xlu1 %v15055_v61, %s12813_s24 }
0x2bf7   :  { %7235 = vrot.lane.b32.xlu1 %v15058_v4, %s15755_s9 }
0x2bfc   :  { %7081 = vrot.lane.b32.xlu0 %v15058_v4, %s12813_s24 }
0x2c6f   :  { %v7061_v31 = vpop.xlane.xlu1 %7060 }
0x2c70   :  { %v7065_v2 = vsub.f32 %v7057_v60, %v7061_v31 }
0x2c72   :  { %v7067_v51 = vmul.f32 1.442695, %v7065_v2 }
0x2c73   :  { %v7158_v35 = vpop.permute.xlu1 %7157  ;;  %v7064_v43 = vpop.xlane.xlu0 %7063 }
0x2c74   :  { %12678 = vpow2.f32 %v7067_v51  ;;  %v7066_v17 = vsub.f32 %v7058_v11, %v7064_v43  ;;  %11517 = vmatpush3.msra.mxu1 %v7158_v35 }
0x2c75   :  { %11526 = vmatprep.subr.mxu1 %v15737_v54 }
0x2c76   :  { %v7069_v29 = vmul.f32 1.442695, %v7066_v17 }
0x2c77   :  { %v7082_v18 = vpop.permute.xlu0 %7081  ;;  %v7236_v62 = vpop.permute.xlu1 %7235 }
0x2c78   :  { %12680 = vpow2.f32 %v7069_v29  ;;  %11512 = vmatpush3.msra.mxu0 %v7082_v18 }
0x2c79   :  { %11521 = vmatprep.subr.mxu0 %v15737_v54 }
0x2c7e   :  { %v12679_v27 = vpop.eup %12678 }
0x2c7f   :  { %v7071_v49 = vsel %vm479_vm3, %v12679_v27, 0.0 }
0x2c80   :  { %7072 = vadd.xlane.f32.xlu0 %v7071_v49 }
0x2c82   :  { %v12681_v26 = vpop.eup %12680 }
0x2c83   :  { %v7074_v9 = vsel %vm479_vm3, %v12681_v26, 0.0 }
0x2c84   :  { %7075 = vadd.xlane.f32.xlu1 %v7074_v9 }
0x2c95   :  { %7233 = vrot.lane.b32.xlu1 %v15058_v4, %s15749_s16 }
0x2c96   :  { %7313 = vrot.lane.b32.xlu0 %v15055_v61, %s15755_s9 }
0x2c9a   :  { %7311 = vrot.lane.b32.xlu0 %v15055_v61, %s15749_s16 }
0x2d0d   :  { %v7073_v38 = vpop.xlane.xlu0 %7072 }
0x2d0e   :  { %12682 = vrcp.f32 %v7073_v38 }
0x2d11   :  { %v7076_v1 = vpop.xlane.xlu1 %7075  ;;  %v7314_v36 = vpop.permute.xlu0 %7313 }
0x2d12   :  { %12684 = vrcp.f32 %v7076_v1 }
0x2d15   :  { %v7234_v34 = vpop.permute.xlu1 %7233  ;;  %v7312_v10 = vpop.permute.xlu0 %7311 }
0x2d18   :  { %v12683_v8 = vpop.eup %12682 }
0x2d19   :  { %v7079_v25 = vmul.f32 %v12683_v8, %v12679_v27 }
0x2d1b   :  { %11514 = vmatmul.mubr.msk.f32.vlgmr.msra.gmra.mrb[134].mxu0 %vm479_vm3, %v7079_v25 }
0x2d1c   :  { %v12685_v60 = vpop.eup %12684  ;;  %11522 = vmatpush3.xpose.msk.msra.mxu0 %vm479_vm3, %v7236_v62  ;;  %11523 = vmatprep.mubr.msk.f32.mxu0 %vm12804_vm2, %v15737_v54 }
0x2d1d   :  { %v7080_v39 = vmul.f32 %v12685_v60, %v12681_v26  ;;  %11531 = vmatprep.subr.mxu0 %v15737_v54 }
0x2d1f   :  { %11519 = vmatmul.mubr.msk.f32.vlgmr.msra.gmra.mrb[138].mxu1 %vm479_vm3, %v7080_v39  ;;  %11524 = vmatmul.mubr.msk.f32.vlgmr.msra.gmra.mrb[136].mxu0 %vm479_vm3, %v7234_v34 }
0x2d20   :  { %11527 = vmatpush3.xpose.msk.msra.mxu1 %vm479_vm3, %v7314_v36  ;;  %11528 = vmatprep.mubr.msk.f32.mxu1 %vm12804_vm2, %v15737_v54 }
0x2d21   :  { %11536 = vmatprep.subr.mxu1 %v15737_v54  ;;  %11533 = vmatprep.mubr.msk.f32.mxu0 %vm12804_vm2, %v15737_v54 }
0x2d23   :  { %11529 = vmatmul.mubr.msk.f32.vlgmr.msra.gmra.mrb[140].mxu1 %vm479_vm3, %v7312_v10 }
0x2d24   :  { %11538 = vmatprep.mubr.msk.f32.mxu1 %vm12804_vm2, %v15737_v54 }
0x2dee   :  { %v7153_v11 = vpop.f32.mrb[134].mxu0 }
0x2def   :  { %v11515_v59 = vpop.f32.mrb[135].mxu0 }
0x2df2   :  { %v7229_v31 = vpop.f32.mrb[138].mxu1  ;;  %v7307_v2 = vpop.f32.mrb[136].mxu0 }
0x2df3   :  { %v7389_v51 = vmul.f32 0.35355338, %v7307_v2  ;;  %v11520_v35 = vpop.f32.mrb[139].mxu1  ;;  %v11525_v43 = vpop.f32.mrb[137].mxu0 }
0x2df4   :  { %v15757_v35 = vld [vmem:[#allocation8_spill] sm:$0xff] }
0x2df5   :  { %v7391_v17 = vadd.f32 %v7389_v51, %v15078_v7  ;;  %v15758_v43 = vld [vmem:[#allocation12_spill] sm:$0xff] }
0x2df6   :  { %v7385_v29 = vpop.f32.mrb[140].mxu1 }
0x2df7   :  { %v7390_v18 = vmul.f32 0.35355338, %v7385_v29  ;;  %v11530_v27 = vpop.f32.mrb[141].mxu1  ;;  %v7393_v49 = vsel %vm479_vm3, %v7391_v17, -inf }
0x2df8   :  { %7394 = vmax.xlane.f32.xlu1 %v7393_v49 }
0x2df9   :  { %v7392_v26 = vadd.f32 %v7390_v18, %v15078_v7 }
0x2dfb   :  { %v7396_v9 = vsel %vm479_vm3, %v7392_v26, -inf }
0x2dfc   :  { %7397 = vmax.xlane.f32.xlu0 %v7396_v9 }
0x2e85   :  { %v7395_v62 = vpop.xlane.xlu1 %7394 }
0x2e86   :  { %v7399_v38 = vsub.f32 %v7391_v17, %v7395_v62  ;;  %v15759_v17 = vld [vmem:[#allocation27_spill] sm:$0xff] }
0x2e88   :  { %v7401_v1 = vmul.f32 1.442695, %v7399_v38 }
0x2e89   :  { %v7398_v8 = vpop.xlane.xlu0 %7397 }
0x2e8a   :  { %12686 = vpow2.f32 %v7401_v1  ;;  %v7400_v25 = vsub.f32 %v7392_v26, %v7398_v8 }
0x2e8c   :  { %v7403_v60 = vmul.f32 1.442695, %v7400_v25 }
0x2e8e   :  { %12688 = vpow2.f32 %v7403_v60 }
0x2e94   :  { %v12687_v36 = vpop.eup %12686 }
0x2e95   :  { %v7405_v39 = vsel %vm479_vm3, %v12687_v36, 0.0 }
0x2e96   :  { %7406 = vadd.xlane.f32.xlu0 %v7405_v39 }
0x2e98   :  { %v12689_v34 = vpop.eup %12688 }
0x2e99   :  { %v7408_v10 = vsel %vm479_vm3, %v12689_v34, 0.0 }
0x2e9a   :  { %7409 = vadd.xlane.f32.xlu1 %v7408_v10  ;;  %v15762_v10 = vld [vmem:[#allocation15_spill] sm:$0xff] }
0x2eab   :  { %7491 = vrot.lane.b32.xlu1 %v15055_v61, %s15750_s0 }
0x2eac   :  { %7415 = vrot.lane.b32.xlu0 %v15058_v4, %s15750_s0 }
0x2eaf   :  { %7569 = vrot.lane.b32.xlu1 %v15156_v21, %s15751_s2 }
0x2eb0   :  { %7571 = vrot.lane.b32.xlu0 %v15158_v19, %s15751_s2 }
0x2eb3   :  { %7577 = vrot.lane.b32.xlu1 %v7153_v11, %s15752_s26 }
0x2eb4   :  { %7579 = vrot.lane.b32.xlu0 %v7229_v31, %s15752_s26  ;;  %v15756_v31 = vld [vmem:[#allocation6_spill] sm:$0xff] }
0x2f23   :  { %v7407_v59 = vpop.xlane.xlu0 %7406 }
0x2f24   :  { %12690 = vrcp.f32 %v7407_v59  ;;  %v15764_v59 = vld [vmem:[#allocation17_spill] sm:$0xff] }
0x2f27   :  { %v7410_v2 = vpop.xlane.xlu1 %7409  ;;  %v7416_v51 = vpop.permute.xlu0 %7415 }
0x2f28   :  { %12692 = vrcp.f32 %v7410_v2  ;;  %11532 = vmatpush3.msra.mxu0 %v7416_v51  ;;  %v15765_v2 = vld [vmem:[#allocation18_spill] sm:$0xff]  ;;  %v15766_v51 = vld [vmem:[#allocation19_spill] sm:$0xff] }
0x2f29   :  { %12057 = vmatprep.subr.bf16.mxu0 %v13601_v13 }
0x2f2b   :  { %v7492_v61 = vpop.permute.xlu1 %7491  ;;  %v7572_v26 = vpop.permute.xlu0 %7571 }
0x2f2c   :  { %11537 = vmatpush3.msra.mxu1 %v7492_v61  ;;  %v7592_v25 = vsel %vm479_vm3, %v15118_v46, %v7572_v26  ;;  %v15763_v46 = vld [vmem:[#allocation16_spill] sm:$0xff] }
0x2f2d   :  { %12065 = vmatprep.subr.bf16.mxu1 %v13705_v44 }
0x2f2e   :  { %v12691_v4 = vpop.eup %12690 }
0x2f2f   :  { %v7413_v21 = vmul.f32 %v12691_v4, %v12687_v36  ;;  %v7570_v49 = vpop.permute.xlu1 %7569  ;;  %v7580_v62 = vpop.permute.xlu0 %7579  ;;  %v15767_v4 = vld [vmem:[#allocation7_spill] sm:$0xff] }
0x2f30   :  { %v7594_v60 = vsel %vm2472_vm7, %v7592_v25, %v7580_v62 }
0x2f31   :  { %11534 = vmatmul.mubr.msk.f32.vlgmr.msra.gmra.mrb[138].mxu0 %vm479_vm3, %v7413_v21 }
0x2f32   :  { %v12693_v19 = vpop.eup %12692  ;;  %12059 = vmatpush3.bf16.msra.mxu0 %v13601_v13 }
0x2f33   :  { %v7414_v11 = vmul.f32 %v12693_v19, %v12689_v34  ;;  %12061 = vmatprep.subr.bf16.mxu0 %v15756_v31  ;;  %v7578_v9 = vpop.permute.xlu1 %7577  ;;  %v15761_v34 = vld [vmem:[#allocation14_spill] sm:$0xff] }
0x2f35   :  { %11539 = vmatmul.mubr.msk.f32.vlgmr.msra.gmra.mrb[142].mxu1 %vm479_vm3, %v7414_v11 }
0x2f36   :  { %12063 = vmatpush3.bf16.msra.mxu0 %v15756_v31  ;;  %12067 = vmatpush3.bf16.msra.mxu1 %v13705_v44  ;;  %v7591_v44 = vsel %vm479_vm3, %v15116_v41, %v7570_v49  ;;  %v15760_v41 = vld [vmem:[#allocation13_spill] sm:$0xff] }
0x2f37   :  { %12069 = vmatprep.subr.bf16.mxu1 %v15757_v35  ;;  %12073 = vmatprep.subr.bf16.mxu0 %v15758_v43  ;;  %v7593_v38 = vsel %vm2472_vm7, %v7591_v44, %v7578_v9 }
0x2f3a   :  { %12071 = vmatpush3.bf16.msra.mxu1 %v15757_v35 }
0x2f3b   :  { %12105 = vmatprep.subr.bf16.mxu1 %v15759_v17 }
0x3004   :  { %v7487_v29 = vpop.f32.mrb[138].mxu0 }
0x3005   :  { %7585 = vrot.lane.b32.xlu1 %v7487_v29, %s15753_s27  ;;  %v11535_v13 = vpop.f32.mrb[139].mxu0 }
0x3008   :  { %v7563_v18 = vpop.f32.mrb[142].mxu1 }
0x3009   :  { %7587 = vrot.lane.b32.xlu0 %v7563_v18, %s15753_s27  ;;  %v11540_v27 = vpop.f32.mrb[143].mxu1 }
0x3077   :  { %v7586_v1 = vpop.permute.xlu1 %7585 }
0x3078   :  { %v7595_v8 = vsel %vm685_vm6, %v7593_v38, %v7586_v1 }
0x3079   :  { %11549 = vmatprep.mubr.msk.f32.mxu0 %vm253_vm1, %v7595_v8 }
0x307b   :  { %v7588_v36 = vpop.permute.xlu0 %7587 }
0x307c   :  { %v7596_v39 = vsel %vm685_vm6, %v7594_v60, %v7588_v36 }
0x307d   :  { %11550 = vmatmul.mubr.msk.f32.vlgmr.msra.gmra.mrb[140].mxu0 %vm253_vm1, %v7596_v39 }
0x307e   :  { %12075 = vmatpush3.bf16.msra.mxu0 %v15758_v43 }
0x307f   :  { %12077 = vmatprep.subr.bf16.mxu0 %v15760_v41 }
0x3082   :  { %12079 = vmatpush3.bf16.msra.mxu0 %v15760_v41 }
0x3083   :  { %12081 = vmatprep.subr.bf16.mxu0 %v15761_v34 }
0x3086   :  { %12083 = vmatpush3.bf16.msra.mxu0 %v15761_v34 }
0x3087   :  { %12085 = vmatprep.subr.bf16.mxu0 %v15762_v10 }
0x308a   :  { %12087 = vmatpush3.bf16.msra.mxu0 %v15762_v10 }
0x308b   :  { %12089 = vmatprep.subr.bf16.mxu0 %v15763_v46 }
0x308e   :  { %12091 = vmatpush3.bf16.msra.mxu0 %v15763_v46  ;;  %v15768_v46 = vld [vmem:[#allocation9_spill] sm:$0xff] }
0x308f   :  { %12093 = vmatprep.subr.bf16.mxu0 %v15764_v59 }
0x3092   :  { %12095 = vmatpush3.bf16.msra.mxu0 %v15764_v59 }
0x3093   :  { %12097 = vmatprep.subr.bf16.mxu0 %v15765_v2 }
0x3096   :  { %12099 = vmatpush3.bf16.msra.mxu0 %v15765_v2 }
0x3097   :  { %12101 = vmatprep.subr.bf16.mxu0 %v15766_v51 }
0x309a   :  { %12103 = vmatpush3.bf16.msra.mxu0 %v15766_v51  ;;  %v15769_v51 = vld [vmem:[#allocation10_spill] sm:$0xff] }
0x309b   :  { %11639 = vmatprep.subr.mxu0 %v15737_v54 }
0x3150   :  { %v11551_v61 = vpop.f32.mrb[140].mxu0 }
0x3151   :  { %v7675_v21 = vadd.f32 %v11551_v61, %v15767_v4  ;;  %v7669_v19 = vpop.f32.mrb[141].mxu0 }
0x3152   :  { %v7670_v11 = vadd.f32 %v7669_v19, %v15767_v4 }
0x3153   :  { %v7679_v31 = vadd.f32 %v7675_v21, %v15044_v24  ;;  %v15770_v21 = vld [vmem:[#allocation28_spill] sm:$0xff] }
0x3154   :  { %v7678_v35 = vadd.f32 %v7670_v11, %v15039_v14  ;;  %v15771_v11 = vld [vmem:[#allocation11_spill] sm:$0xff] }
0x3155   :  { %v7683_v43 = vsel %vm253_vm1, %v7679_v31, 0.0 }
0x3156   :  { %7684 = vadd.xlane.f32.xlu0 %v7683_v43  ;;  %v7680_v29 = vsel %vm253_vm1, %v7678_v35, 0.0 }
0x3157   :  { %7681 = vadd.xlane.f32.xlu1 %v7680_v29 }
0x31e3   :  { %v7685_v13 = vpop.xlane.xlu0 %7684 }
0x31e4   :  { %v7687_v18 = vmul.f32 0.03125, %v7685_v13  ;;  %v7682_v27 = vpop.xlane.xlu1 %7681 }
0x31e5   :  { %v7686_v49 = vmul.f32 0.03125, %v7682_v27 }
0x31e6   :  { %v7689_v26 = vsub.f32 %v7679_v31, %v7687_v18 }
0x31e7   :  { %v7688_v9 = vsub.f32 %v7678_v35, %v7686_v49 }
0x31e8   :  { %v7691_v44 = vmul.f32 %v7689_v26, %v7689_v26 }
0x31e9   :  { %v7690_v62 = vmul.f32 %v7688_v9, %v7688_v9 }
0x31ea   :  { %v7695_v38 = vsel %vm253_vm1, %v7691_v44, 0.0 }
0x31eb   :  { %7696 = vadd.xlane.f32.xlu1 %v7695_v38  ;;  %v7692_v24 = vsel %vm253_vm1, %v7690_v62, 0.0 }
0x31ec   :  { %7693 = vadd.xlane.f32.xlu0 %v7692_v24 }
0x3278   :  { %v7697_v14 = vpop.xlane.xlu1 %7696 }
0x3279   :  { %v7699_v1 = vmul.f32 0.03125, %v7697_v14  ;;  %v7694_v8 = vpop.xlane.xlu0 %7693 }
0x327a   :  { %v7698_v25 = vmul.f32 0.03125, %v7694_v8 }
0x327b   :  { %v7701_v60 = vadd.f32 1e-05, %v7699_v1 }
0x327c   :  { %v7700_v36 = vadd.f32 1e-05, %v7698_v25 }
0x327d   :  { %12694 = vrsqrt.f32 %v7701_v60 }
0x327e   :  { %12696 = vrsqrt.f32 %v7700_v36 }
0x3287   :  { %v12695_v39 = vpop.eup %12694 }
0x3288   :  { %v12697_v41 = vpop.eup %12696  ;;  %v7705_v34 = vmul.f32 %v12695_v39, %v7689_v26  ;;  %v15772_v39 = vld [vmem:[#allocation20_spill] sm:$0xff] }
0x3289   :  { %v7704_v10 = vmul.f32 %v12697_v41, %v7688_v9 }
0x328a   :  { %v7707_v59 = vmul.f32 %v7705_v34, %v15768_v46 }
0x328b   :  { %v7706_v2 = vmul.f32 %v7704_v10, %v15768_v46  ;;  %v15773_v10 = vld [vmem:[#allocation21_spill] sm:$0xff] }
0x328c   :  { %v7709_v4 = vadd.f32 %v7707_v59, %v15769_v51 }
0x328d   :  { %v7708_v61 = vadd.f32 %v7706_v2, %v15769_v51 }
0x328f   :  { %11560 = vmatprep.mubr.msk.f32.mxu1 %vm253_vm1, %v7708_v61 }
0x3290   :  { %11561 = vmatmul.mubr.msk.f32.vlgmr.msra.gmra.mrb[144].mxu1 %vm253_vm1, %v7709_v4 }
0x3291   :  { %12107 = vmatpush3.bf16.msra.mxu1 %v15759_v17 }
0x3292   :  { %12109 = vmatprep.subr.bf16.mxu1 %v15770_v21 }
0x3295   :  { %12111 = vmatpush3.bf16.msra.mxu1 %v15770_v21 }
0x3296   :  { %11609 = vmatprep.subr.mxu1 %v15737_v54 }
0x3363   :  { %v11562_v19 = vpop.f32.mrb[144].mxu1 }
0x3364   :  { %v7788_v31 = vadd.f32 %v11562_v19, %v15771_v11  ;;  %v7782_v35 = vpop.f32.mrb[145].mxu1 }
0x3365   :  { %v7783_v43 = vadd.f32 %v7782_v35, %v15771_v11 }
0x3366   :  { %7793 = vadd.xlane.f32.xlu1 %v7788_v31 }
0x3367   :  { %7791 = vadd.xlane.f32.xlu0 %v7783_v43 }
0x33f3   :  { %v7794_v29 = vpop.xlane.xlu1 %7793 }
0x33f4   :  { %v7796_v13 = vmul.f32 0.0078125, %v7794_v29  ;;  %v7792_v18 = vpop.xlane.xlu0 %7791 }
0x33f5   :  { %v7795_v27 = vmul.f32 0.0078125, %v7792_v18 }
0x33f6   :  { %v7798_v49 = vsub.f32 %v7788_v31, %v7796_v13 }
0x33f7   :  { %v7797_v17 = vsub.f32 %v7783_v43, %v7795_v27  ;;  %v15774_v27 = vld [vmem:[#allocation22_spill] sm:$0xff] }
0x33f8   :  { %v7800_v26 = vmul.f32 %v7798_v49, %v7798_v49 }
0x33f9   :  { %v7799_v9 = vmul.f32 %v7797_v17, %v7797_v17 }
0x33fa   :  { %7803 = vadd.xlane.f32.xlu1 %v7800_v26 }
0x33fb   :  { %7801 = vadd.xlane.f32.xlu0 %v7799_v9 }
0x3487   :  { %v7804_v44 = vpop.xlane.xlu1 %7803 }
0x3488   :  { %v7806_v62 = vmul.f32 0.0078125, %v7804_v44  ;;  %v7802_v38 = vpop.xlane.xlu0 %7801 }
0x3489   :  { %v7805_v24 = vmul.f32 0.0078125, %v7802_v38 }
0x348a   :  { %v7808_v14 = vadd.f32 1e-05, %v7806_v62 }
0x348b   :  { %v7807_v1 = vadd.f32 1e-05, %v7805_v24 }
0x348c   :  { %12698 = vrsqrt.f32 %v7808_v14 }
0x348d   :  { %12700 = vrsqrt.f32 %v7807_v1 }
0x3496   :  { %v12699_v8 = vpop.eup %12698 }
0x3497   :  { %v12701_v25 = vpop.eup %12700  ;;  %v7812_v60 = vmul.f32 %v12699_v8, %v7798_v49 }
0x3498   :  { %v7811_v36 = vmul.f32 %v12701_v25, %v7797_v17 }
0x3499   :  { %v7814_v41 = vmul.f32 %v7812_v60, %v15772_v39 }
0x349a   :  { %v7813_v34 = vmul.f32 %v7811_v36, %v15772_v39 }
0x349b   :  { %v7816_v46 = vadd.f32 %v7814_v41, %v15773_v10 }
0x349c   :  { %v7815_v59 = vadd.f32 %v7813_v34, %v15773_v10 }
0x349d   :  { %v7820_v2 = vmul.f32 0.70710677, %v7816_v46  ;;  %v7818_v43 = vmul.f32 0.5, %v7816_v46 }
0x349e   :  { %v7819_v51 = vmul.f32 0.70710677, %v7815_v59  ;;  %v7817_v31 = vmul.f32 0.5, %v7815_v59 }
0x349f   :  { %12702 = verf.f32 %v7820_v2 }
0x34a0   :  { %12704 = verf.f32 %v7819_v51 }
0x34a9   :  { %v12703_v21 = vpop.eup %12702 }
0x34aa   :  { %v12705_v19 = vpop.eup %12704  ;;  %v7824_v11 = vadd.f32 1.0, %v12703_v21 }
0x34ab   :  { %v7823_v35 = vadd.f32 1.0, %v12705_v19 }
0x34ac   :  { %v7826_v13 = vmul.f32 %v7824_v11, %v7818_v43 }
0x34ad   :  { %v7825_v29 = vmul.f32 %v7823_v35, %v7817_v31  ;;  %v15775_v31 = vld [vmem:[#allocation25_spill] sm:$0xff] }
0x34af   :  { %11595 = vmatprep.mubr.f32.mxu0 %v7825_v29  ;;  %v15776_v29 = vld [vmem:[#allocation26_spill] sm:$0xff] }
0x34b0   :  { %11596 = vmatmul.mubr.f32.vlgmr.msra.gmra.mrb[142].mxu0 %v7826_v13 }
0x34b1   :  { %11641 = vmatprep.mubr.msk.f32.mxu0 %vm12804_vm2, %v15737_v54 }
0x3583   :  { %v11597_v18 = vpop.f32.mrb[142].mxu0 }
0x3584   :  { %v7899_v49 = vadd.f32 %v11597_v18, %v15774_v27  ;;  %v7893_v17 = vpop.f32.mrb[143].mxu0 }
0x3585   :  { %v7894_v26 = vadd.f32 %v7893_v17, %v15774_v27 }
0x3586   :  { %v7903_v9 = vadd.f32 %v7899_v49, %v7709_v4 }
0x3587   :  { %v7902_v44 = vadd.f32 %v7894_v26, %v7708_v61 }
0x3588   :  { %v7907_v62 = vsel %vm253_vm1, %v7903_v9, 0.0 }
0x3589   :  { %7908 = vadd.xlane.f32.xlu1 %v7907_v62  ;;  %v7904_v38 = vsel %vm253_vm1, %v7902_v44, 0.0 }
0x358a   :  { %7905 = vadd.xlane.f32.xlu0 %v7904_v38 }
0x3616   :  { %v7909_v24 = vpop.xlane.xlu1 %7908 }
0x3617   :  { %v7911_v14 = vmul.f32 0.03125, %v7909_v24  ;;  %v7906_v1 = vpop.xlane.xlu0 %7905 }
0x3618   :  { %v7910_v8 = vmul.f32 0.03125, %v7906_v1 }
0x3619   :  { %v7913_v25 = vsub.f32 %v7903_v9, %v7911_v14 }
0x361a   :  { %v7912_v60 = vsub.f32 %v7902_v44, %v7910_v8 }
0x361b   :  { %v7915_v36 = vmul.f32 %v7913_v25, %v7913_v25 }
0x361c   :  { %v7914_v39 = vmul.f32 %v7912_v60, %v7912_v60 }
0x361d   :  { %v7919_v41 = vsel %vm253_vm1, %v7915_v36, 0.0 }
0x361e   :  { %7920 = vadd.xlane.f32.xlu1 %v7919_v41  ;;  %v7916_v4 = vsel %vm253_vm1, %v7914_v39, 0.0 }
0x361f   :  { %7917 = vadd.xlane.f32.xlu0 %v7916_v4 }
0x36ab   :  { %v7921_v61 = vpop.xlane.xlu1 %7920 }
0x36ac   :  { %v7923_v34 = vmul.f32 0.03125, %v7921_v61  ;;  %v7918_v10 = vpop.xlane.xlu0 %7917 }
0x36ad   :  { %v7922_v46 = vmul.f32 0.03125, %v7918_v10 }
0x36ae   :  { %v7925_v59 = vadd.f32 1e-05, %v7923_v34 }
0x36af   :  { %v7924_v2 = vadd.f32 1e-05, %v7922_v46 }
0x36b0   :  { %12706 = vrsqrt.f32 %v7925_v59  ;;  %v15777_v59 = vld [vmem:[#allocation29_spill] sm:$0xff] }
0x36b1   :  { %12708 = vrsqrt.f32 %v7924_v2 }
0x36ba   :  { %v12707_v51 = vpop.eup %12706 }
0x36bb   :  { %v12709_v21 = vpop.eup %12708  ;;  %v7929_v19 = vmul.f32 %v12707_v51, %v7913_v25 }
0x36bc   :  { %v7928_v11 = vmul.f32 %v12709_v21, %v7912_v60  ;;  %v15778_v21 = vld [vmem:[#allocation30_spill] sm:$0xff] }
0x36bd   :  { %v7931_v35 = vmul.f32 %v7929_v19, %v15775_v31 }
0x36be   :  { %v7930_v43 = vmul.f32 %v7928_v11, %v15775_v31 }
0x36bf   :  { %v7933_v13 = vadd.f32 %v7931_v35, %v15776_v29  ;;  %v15779_v35 = vld [vmem:[#allocation31_spill] sm:$0xff] }
0x36c0   :  { %v7932_v18 = vadd.f32 %v7930_v43, %v15776_v29 }
0x36c1   :  { %v7937_v27 = vsel %vm253_vm1, %v7933_v13, 0.0 }
0x36c2   :  { %7938 = vadd.xlane.f32.xlu1 %v7937_v27  ;;  %v7934_v49 = vsel %vm253_vm1, %v7932_v18, 0.0 }
0x36c3   :  { %7935 = vadd.xlane.f32.xlu0 %v7934_v49 }
0x374f   :  { %v7939_v17 = vpop.xlane.xlu1 %7938 }
0x3750   :  { %v7941_v26 = vmul.f32 0.03125, %v7939_v17  ;;  %v7936_v9 = vpop.xlane.xlu0 %7935 }
0x3751   :  { %v7940_v44 = vmul.f32 0.03125, %v7936_v9 }
0x3752   :  { %v7943_v62 = vsub.f32 %v7933_v13, %v7941_v26 }
0x3753   :  { %v7942_v38 = vsub.f32 %v7932_v18, %v7940_v44 }
0x3754   :  { %v7945_v24 = vmul.f32 %v7943_v62, %v7943_v62 }
0x3755   :  { %v7944_v14 = vmul.f32 %v7942_v38, %v7942_v38 }
0x3756   :  { %v7949_v1 = vsel %vm253_vm1, %v7945_v24, 0.0 }
0x3757   :  { %7950 = vadd.xlane.f32.xlu1 %v7949_v1  ;;  %v7946_v8 = vsel %vm253_vm1, %v7944_v14, 0.0 }
0x3758   :  { %7947 = vadd.xlane.f32.xlu0 %v7946_v8 }
0x37e4   :  { %v7951_v25 = vpop.xlane.xlu1 %7950 }
0x37e5   :  { %v7953_v60 = vmul.f32 0.03125, %v7951_v25  ;;  %v7948_v36 = vpop.xlane.xlu0 %7947 }
0x37e6   :  { %v7952_v39 = vmul.f32 0.03125, %v7948_v36 }
0x37e7   :  { %v7955_v41 = vadd.f32 1e-05, %v7953_v60 }
0x37e8   :  { %v7954_v4 = vadd.f32 1e-05, %v7952_v39 }
0x37e9   :  { %12710 = vrsqrt.f32 %v7955_v41 }
0x37ea   :  { %12712 = vrsqrt.f32 %v7954_v4 }
0x37f3   :  { %v12711_v61 = vpop.eup %12710 }
0x37f4   :  { %v12713_v34 = vpop.eup %12712  ;;  %v7959_v10 = vmul.f32 %v12711_v61, %v7943_v62 }
0x37f5   :  { %v7958_v46 = vmul.f32 %v12713_v34, %v7942_v38 }
0x37f6   :  { %v7961_v2 = vmul.f32 %v7959_v10, %v15777_v59 }
0x37f7   :  { %v7960_v51 = vmul.f32 %v7958_v46, %v15777_v59 }
0x37f8   :  { %v15298_v11 = vadd.f32 %v7961_v2, %v15778_v21 }
0x37f9   :  { %v15295_v19 = vadd.f32 %v7960_v51, %v15778_v21 }
0x37fb   :  { %11606 = vmatprep.mubr.msk.f32.mxu1 %vm253_vm1, %v15295_v19 }
0x37fc   :  { %11607 = vmatmul.mubr.msk.f32.vlgmr.msra.gmra.mrb[146].mxu1 %vm253_vm1, %v15298_v11 }
0x37fd   :  { %11611 = vmatprep.mubr.msk.f32.mxu1 %vm12804_vm2, %v15737_v54 }
0x38cf   :  { %v11608_v31 = vpop.f32.mrb[146].mxu1 }
0x38d0   :  { %v15307_v43 = vadd.f32 %v11608_v31, %v15779_v35  ;;  %v8036_v29 = vpop.f32.mrb[147].mxu1 }
0x38d1   :  { %v15310_v13 = vadd.f32 %v8036_v29, %v15779_v35 }
0x38d2   :  { %8123 = vrot.lane.b32.xlu1 %v15307_v43, %s12803_s17 }
0x38d3   :  { %8046 = vrot.lane.b32.xlu0 %v15310_v13, %s12803_s17 }
0x3944   :  { %v8124_v27 = vpop.permute.xlu1 %8123 }
0x3945   :  { %v8047_v18 = vpop.permute.xlu0 %8046 }
0x3946   :  { %11610 = vmatpush3.xpose.msk.msra.mxu1 %vm479_vm3, %v8047_v18 }
0x3947   :  { %11614 = vmatprep.subr.mxu1 %v15737_v54 }
0x3949   :  { %11612 = vmatmul.mubr.msk.f32.vlgmr.msra.gmra.mrb[148].mxu1 %vm479_vm3, %v15310_v13 }
0x394a   :  { %11615 = vmatpush3.xpose.msk.msra.mxu1 %vm479_vm3, %v8124_v27  ;;  %11616 = vmatprep.mubr.msk.f32.mxu1 %vm12804_vm2, %v15737_v54 }
0x394b   :  { %11619 = vmatprep.subr.mxu1 %v15737_v54 }
0x394d   :  { %11617 = vmatmul.mubr.msk.f32.vlgmr.msra.gmra.mrb[150].mxu1 %vm479_vm3, %v15307_v43 }
0x394e   :  { %11621 = vmatprep.mubr.msk.f32.mxu1 %vm12804_vm2, %v15737_v54 }
0x3a1c   :  { %v8118_v49 = vpop.f32.mrb[148].mxu1 }
0x3a1d   :  { %v8199_v17 = vmul.f32 0.35355338, %v8118_v49  ;;  %v11613_v26 = vpop.f32.mrb[149].mxu1 }
0x3a1f   :  { %v8201_v9 = vadd.f32 %v8199_v17, %v15078_v7 }
0x3a20   :  { %v8195_v44 = vpop.f32.mrb[150].mxu1 }
0x3a21   :  { %v8200_v62 = vmul.f32 0.35355338, %v8195_v44  ;;  %v11618_v38 = vpop.f32.mrb[151].mxu1  ;;  %v8203_v24 = vsel %vm479_vm3, %v8201_v9, -inf }
0x3a22   :  { %8204 = vmax.xlane.f32.xlu1 %v8203_v24 }
0x3a23   :  { %v8202_v14 = vadd.f32 %v8200_v62, %v15078_v7 }
0x3a25   :  { %v8206_v1 = vsel %vm479_vm3, %v8202_v14, -inf }
0x3a26   :  { %8207 = vmax.xlane.f32.xlu0 %v8206_v1 }
0x3a33   :  { %8301 = vrot.lane.b32.xlu1 %v15307_v43, %s12807_s18 }
0x3a37   :  { %8379 = vrot.lane.b32.xlu1 %v15310_v13, %s12808_s19 }
0x3aaf   :  { %v8205_v8 = vpop.xlane.xlu1 %8204 }
0x3ab0   :  { %v8209_v25 = vsub.f32 %v8201_v9, %v8205_v8 }
0x3ab2   :  { %v8211_v60 = vmul.f32 1.442695, %v8209_v25 }
0x3ab3   :  { %v8208_v36 = vpop.xlane.xlu0 %8207  ;;  %v8302_v46 = vpop.permute.xlu1 %8301 }
0x3ab4   :  { %12714 = vpow2.f32 %v8211_v60  ;;  %v8210_v39 = vsub.f32 %v8202_v14, %v8208_v36 }
0x3ab6   :  { %v8213_v41 = vmul.f32 1.442695, %v8210_v39 }
0x3ab7   :  { %v8380_v59 = vpop.permute.xlu1 %8379 }
0x3ab8   :  { %12716 = vpow2.f32 %v8213_v41 }
0x3abe   :  { %v12715_v4 = vpop.eup %12714 }
0x3abf   :  { %v8215_v61 = vsel %vm479_vm3, %v12715_v4, 0.0 }
0x3ac0   :  { %8216 = vadd.xlane.f32.xlu0 %v8215_v61 }
0x3ac2   :  { %v12717_v34 = vpop.eup %12716 }
0x3ac3   :  { %v8218_v10 = vsel %vm479_vm3, %v12717_v34, 0.0 }
0x3ac4   :  { %8219 = vadd.xlane.f32.xlu1 %v8218_v10 }
0x3ad5   :  { %8457 = vrot.lane.b32.xlu1 %v15307_v43, %s12808_s19 }
0x3ad6   :  { %8225 = vrot.lane.b32.xlu0 %v15310_v13, %s12807_s18 }
0x3ada   :  { %8377 = vrot.lane.b32.xlu0 %v15310_v13, %s12809_s20 }
0x3ade   :  { %8455 = vrot.lane.b32.xlu0 %v15307_v43, %s12809_s20 }
0x3b4d   :  { %v8217_v2 = vpop.xlane.xlu0 %8216 }
0x3b4e   :  { %12718 = vrcp.f32 %v8217_v2 }
0x3b51   :  { %v8220_v51 = vpop.xlane.xlu1 %8219  ;;  %v8226_v21 = vpop.permute.xlu0 %8225 }
0x3b52   :  { %12720 = vrcp.f32 %v8220_v51  ;;  %11620 = vmatpush3.msra.mxu1 %v8226_v21 }
0x3b53   :  { %11624 = vmatprep.subr.mxu1 %v15737_v54 }
0x3b55   :  { %v8378_v27 = vpop.permute.xlu0 %8377  ;;  %v8458_v49 = vpop.permute.xlu1 %8457 }
0x3b58   :  { %v12719_v31 = vpop.eup %12718 }
0x3b59   :  { %v8223_v35 = vmul.f32 %v12719_v31, %v12715_v4  ;;  %v8456_v17 = vpop.permute.xlu0 %8455 }
0x3b5b   :  { %11622 = vmatmul.mubr.msk.f32.vlgmr.msra.gmra.mrb[152].mxu1 %vm479_vm3, %v8223_v35 }
0x3b5c   :  { %v12721_v29 = vpop.eup %12720  ;;  %11625 = vmatpush3.msra.mxu1 %v8302_v46  ;;  %11626 = vmatprep.mubr.msk.f32.mxu1 %vm12804_vm2, %v15737_v54 }
0x3b5d   :  { %v8224_v18 = vmul.f32 %v12721_v29, %v12717_v34  ;;  %11629 = vmatprep.subr.mxu1 %v15737_v54 }
0x3b5f   :  { %11627 = vmatmul.mubr.msk.f32.vlgmr.msra.gmra.mrb[154].mxu1 %vm479_vm3, %v8224_v18 }
0x3b60   :  { %11631 = vmatprep.mubr.msk.f32.mxu1 %vm12804_vm2, %v15737_v54 }
0x3b63   :  { %11630 = vmatpush3.xpose.msk.msra.mxu1 %vm479_vm3, %v8380_v59 }
0x3b64   :  { %11634 = vmatprep.subr.mxu1 %v15737_v54 }
0x3b66   :  { %11632 = vmatmul.mubr.msk.f32.vlgmr.msra.gmra.mrb[156].mxu1 %vm479_vm3, %v8378_v27 }
0x3b67   :  { %11635 = vmatpush3.xpose.msk.msra.mxu1 %vm479_vm3, %v8458_v49  ;;  %11636 = vmatprep.mubr.msk.f32.mxu1 %vm12804_vm2, %v15737_v54 }
0x3b68   :  { %11644 = vmatprep.subr.mxu1 %v15737_v54 }
0x3b6a   :  { %11637 = vmatmul.mubr.msk.f32.vlgmr.msra.gmra.mrb[158].mxu1 %vm479_vm3, %v8456_v17 }
0x3b6b   :  { %11646 = vmatprep.mubr.msk.f32.mxu1 %vm12804_vm2, %v15737_v54 }
0x3c2e   :  { %v15364_v26 = vpop.f32.mrb[152].mxu1 }
0x3c2f   :  { %v11623_v9 = vpop.f32.mrb[153].mxu1 }
0x3c32   :  { %v15366_v44 = vpop.f32.mrb[154].mxu1 }
0x3c33   :  { %v11628_v62 = vpop.f32.mrb[155].mxu1 }
0x3c39   :  { %v8451_v38 = vpop.f32.mrb[156].mxu1 }
0x3c3a   :  { %v8533_v24 = vmul.f32 0.35355338, %v8451_v38  ;;  %v11633_v14 = vpop.f32.mrb[157].mxu1 }
0x3c3c   :  { %v8535_v1 = vadd.f32 %v8533_v24, %v15078_v7 }
0x3c3d   :  { %v8529_v8 = vpop.f32.mrb[158].mxu1 }
0x3c3e   :  { %v8534_v25 = vmul.f32 0.35355338, %v8529_v8  ;;  %v11638_v60 = vpop.f32.mrb[159].mxu1  ;;  %v8537_v36 = vsel %vm479_vm3, %v8535_v1, -inf }
0x3c3f   :  { %8538 = vmax.xlane.f32.xlu1 %v8537_v36 }
0x3c40   :  { %v8536_v39 = vadd.f32 %v8534_v25, %v15078_v7 }
0x3c42   :  { %v8540_v41 = vsel %vm479_vm3, %v8536_v39, -inf }
0x3c43   :  { %8541 = vmax.xlane.f32.xlu0 %v8540_v41 }
0x3c50   :  { %8635 = vrot.lane.b32.xlu1 %v15307_v43, %s12810_s21 }
0x3c54   :  { %8713 = vrot.lane.b32.xlu1 %v15310_v13, %s12811_s22 }
0x3c59   :  { %8559 = vrot.lane.b32.xlu0 %v15310_v13, %s12810_s21 }
0x3ccc   :  { %v8539_v4 = vpop.xlane.xlu1 %8538 }
0x3ccd   :  { %v8543_v61 = vsub.f32 %v8535_v1, %v8539_v4 }
0x3ccf   :  { %v8545_v34 = vmul.f32 1.442695, %v8543_v61 }
0x3cd0   :  { %v8636_v10 = vpop.permute.xlu1 %8635  ;;  %v8542_v46 = vpop.xlane.xlu0 %8541 }
0x3cd1   :  { %12722 = vpow2.f32 %v8545_v34  ;;  %v8544_v59 = vsub.f32 %v8536_v39, %v8542_v46  ;;  %11645 = vmatpush3.msra.mxu1 %v8636_v10 }
0x3cd2   :  { %11654 = vmatprep.subr.mxu1 %v15737_v54 }
0x3cd3   :  { %v8547_v2 = vmul.f32 1.442695, %v8544_v59 }
0x3cd4   :  { %v8560_v51 = vpop.permute.xlu0 %8559  ;;  %v8714_v18 = vpop.permute.xlu1 %8713 }
0x3cd5   :  { %12724 = vpow2.f32 %v8547_v2  ;;  %11640 = vmatpush3.msra.mxu0 %v8560_v51 }
0x3cd6   :  { %11649 = vmatprep.subr.mxu0 %v15737_v54 }
0x3cdb   :  { %v12723_v21 = vpop.eup %12722 }
0x3cdc   :  { %v8549_v31 = vsel %vm479_vm3, %v12723_v21, 0.0 }
0x3cdd   :  { %8550 = vadd.xlane.f32.xlu0 %v8549_v31 }
0x3cdf   :  { %v12725_v35 = vpop.eup %12724 }
0x3ce0   :  { %v8552_v29 = vsel %vm479_vm3, %v12725_v35, 0.0 }
0x3ce1   :  { %8553 = vadd.xlane.f32.xlu1 %v8552_v29 }
0x3cf2   :  { %8711 = vrot.lane.b32.xlu1 %v15310_v13, %s12812_s23 }
0x3cf3   :  { %8791 = vrot.lane.b32.xlu0 %v15307_v43, %s12811_s22 }
0x3cf7   :  { %8789 = vrot.lane.b32.xlu0 %v15307_v43, %s12812_s23 }
0x3d6a   :  { %v8551_v27 = vpop.xlane.xlu0 %8550 }
0x3d6b   :  { %12726 = vrcp.f32 %v8551_v27 }
0x3d6e   :  { %v8554_v49 = vpop.xlane.xlu1 %8553  ;;  %v8792_v38 = vpop.permute.xlu0 %8791 }
0x3d6f   :  { %12728 = vrcp.f32 %v8554_v49 }
0x3d72   :  { %v8712_v14 = vpop.permute.xlu1 %8711  ;;  %v8790_v1 = vpop.permute.xlu0 %8789 }
0x3d75   :  { %v12727_v17 = vpop.eup %12726 }
0x3d76   :  { %v8557_v9 = vmul.f32 %v12727_v17, %v12723_v21 }
0x3d78   :  { %11642 = vmatmul.mubr.msk.f32.vlgmr.msra.gmra.mrb[144].mxu0 %vm479_vm3, %v8557_v9 }
0x3d79   :  { %v12729_v62 = vpop.eup %12728  ;;  %11650 = vmatpush3.xpose.msk.msra.mxu0 %vm479_vm3, %v8714_v18  ;;  %11651 = vmatprep.mubr.msk.f32.mxu0 %vm12804_vm2, %v15737_v54 }
0x3d7a   :  { %v8558_v24 = vmul.f32 %v12729_v62, %v12725_v35  ;;  %11659 = vmatprep.subr.mxu0 %v15737_v54 }
0x3d7c   :  { %11647 = vmatmul.mubr.msk.f32.vlgmr.msra.gmra.mrb[160].mxu1 %vm479_vm3, %v8558_v24  ;;  %11652 = vmatmul.mubr.msk.f32.vlgmr.msra.gmra.mrb[146].mxu0 %vm479_vm3, %v8712_v14 }
0x3d7d   :  { %11655 = vmatpush3.xpose.msk.msra.mxu1 %vm479_vm3, %v8792_v38  ;;  %11656 = vmatprep.mubr.msk.f32.mxu1 %vm12804_vm2, %v15737_v54 }
0x3d7e   :  { %11664 = vmatprep.subr.mxu1 %v15737_v54  ;;  %11661 = vmatprep.mubr.msk.f32.mxu0 %vm12804_vm2, %v15737_v54 }
0x3d80   :  { %11657 = vmatmul.mubr.msk.f32.vlgmr.msra.gmra.mrb[162].mxu1 %vm479_vm3, %v8790_v1 }
0x3d81   :  { %11666 = vmatprep.mubr.msk.f32.mxu1 %vm12804_vm2, %v15737_v54 }
0x3e4b   :  { %v15404_v8 = vpop.f32.mrb[144].mxu0 }
0x3e4c   :  { %v11643_v25 = vpop.f32.mrb[145].mxu0 }
0x3e4f   :  { %v15406_v60 = vpop.f32.mrb[160].mxu1  ;;  %v8785_v36 = vpop.f32.mrb[146].mxu0 }
0x3e50   :  { %v8867_v39 = vmul.f32 0.35355338, %v8785_v36  ;;  %v11648_v41 = vpop.f32.mrb[161].mxu1  ;;  %v11653_v4 = vpop.f32.mrb[147].mxu0 }
0x3e52   :  { %v8869_v61 = vadd.f32 %v8867_v39, %v15078_v7 }
0x3e53   :  { %v8863_v34 = vpop.f32.mrb[162].mxu1 }
0x3e54   :  { %v8868_v10 = vmul.f32 0.35355338, %v8863_v34  ;;  %v11658_v46 = vpop.f32.mrb[163].mxu1  ;;  %v8871_v59 = vsel %vm479_vm3, %v8869_v61, -inf }
0x3e55   :  { %8872 = vmax.xlane.f32.xlu1 %v8871_v59 }
0x3e56   :  { %v8870_v2 = vadd.f32 %v8868_v10, %v15078_v7 }
0x3e58   :  { %v8874_v51 = vsel %vm479_vm3, %v8870_v2, -inf }
0x3e59   :  { %8875 = vmax.xlane.f32.xlu0 %v8874_v51 }
0x3e66   :  { %8969 = vrot.lane.b32.xlu1 %v15307_v43, %s12813_s24 }
0x3e6a   :  { %9047 = vrot.lane.b32.xlu1 %v15310_v13, %s15755_s9 }
0x3e6f   :  { %8893 = vrot.lane.b32.xlu0 %v15310_v13, %s12813_s24 }
0x3ee2   :  { %v8873_v21 = vpop.xlane.xlu1 %8872 }
0x3ee3   :  { %v8877_v31 = vsub.f32 %v8869_v61, %v8873_v21 }
0x3ee5   :  { %v8879_v35 = vmul.f32 1.442695, %v8877_v31 }
0x3ee6   :  { %v8970_v29 = vpop.permute.xlu1 %8969  ;;  %v8876_v18 = vpop.xlane.xlu0 %8875 }
0x3ee7   :  { %12730 = vpow2.f32 %v8879_v35  ;;  %v8878_v27 = vsub.f32 %v8870_v2, %v8876_v18  ;;  %11665 = vmatpush3.msra.mxu1 %v8970_v29 }
0x3ee8   :  { %11674 = vmatprep.subr.mxu1 %v15737_v54 }
0x3ee9   :  { %v8881_v49 = vmul.f32 1.442695, %v8878_v27 }
0x3eea   :  { %v8894_v17 = vpop.permute.xlu0 %8893  ;;  %v9048_v14 = vpop.permute.xlu1 %9047 }
0x3eeb   :  { %12732 = vpow2.f32 %v8881_v49  ;;  %11660 = vmatpush3.msra.mxu0 %v8894_v17 }
0x3eec   :  { %11669 = vmatprep.subr.mxu0 %v15737_v54 }
0x3ef1   :  { %v12731_v9 = vpop.eup %12730 }
0x3ef2   :  { %v8883_v62 = vsel %vm479_vm3, %v12731_v9, 0.0 }
0x3ef3   :  { %8884 = vadd.xlane.f32.xlu0 %v8883_v62 }
0x3ef5   :  { %v12733_v38 = vpop.eup %12732 }
0x3ef6   :  { %v8886_v24 = vsel %vm479_vm3, %v12733_v38, 0.0 }
0x3ef7   :  { %8887 = vadd.xlane.f32.xlu1 %v8886_v24 }
0x3f08   :  { %9045 = vrot.lane.b32.xlu1 %v15310_v13, %s15749_s16 }
0x3f09   :  { %9125 = vrot.lane.b32.xlu0 %v15307_v43, %s15755_s9 }
0x3f0d   :  { %9123 = vrot.lane.b32.xlu0 %v15307_v43, %s15749_s16 }
0x3f80   :  { %v8885_v1 = vpop.xlane.xlu0 %8884 }
0x3f81   :  { %12734 = vrcp.f32 %v8885_v1 }
0x3f84   :  { %v8888_v25 = vpop.xlane.xlu1 %8887  ;;  %v9126_v4 = vpop.permute.xlu0 %9125 }
0x3f85   :  { %12736 = vrcp.f32 %v8888_v25 }
0x3f88   :  { %v9046_v34 = vpop.permute.xlu1 %9045  ;;  %v9124_v10 = vpop.permute.xlu0 %9123 }
0x3f8b   :  { %v12735_v36 = vpop.eup %12734 }
0x3f8c   :  { %v8891_v39 = vmul.f32 %v12735_v36, %v12731_v9 }
0x3f8e   :  { %11662 = vmatmul.mubr.msk.f32.vlgmr.msra.gmra.mrb[148].mxu0 %vm479_vm3, %v8891_v39 }
0x3f8f   :  { %v12737_v41 = vpop.eup %12736  ;;  %11670 = vmatpush3.xpose.msk.msra.mxu0 %vm479_vm3, %v9048_v14  ;;  %11671 = vmatprep.mubr.msk.f32.mxu0 %vm12804_vm2, %v15737_v54 }
0x3f90   :  { %v8892_v61 = vmul.f32 %v12737_v41, %v12733_v38  ;;  %11679 = vmatprep.subr.mxu0 %v15737_v54 }
0x3f92   :  { %11667 = vmatmul.mubr.msk.f32.vlgmr.msra.gmra.mrb[164].mxu1 %vm479_vm3, %v8892_v61  ;;  %11672 = vmatmul.mubr.msk.f32.vlgmr.msra.gmra.mrb[150].mxu0 %vm479_vm3, %v9046_v34 }
0x3f93   :  { %11675 = vmatpush3.xpose.msk.msra.mxu1 %vm479_vm3, %v9126_v4  ;;  %11676 = vmatprep.mubr.msk.f32.mxu1 %vm12804_vm2, %v15737_v54 }
0x3f94   :  { %11684 = vmatprep.subr.mxu1 %v15737_v54  ;;  %11681 = vmatprep.mubr.msk.f32.mxu0 %vm12804_vm2, %v15737_v54 }
0x3f96   :  { %11677 = vmatmul.mubr.msk.f32.vlgmr.msra.gmra.mrb[166].mxu1 %vm479_vm3, %v9124_v10 }
0x3f97   :  { %11686 = vmatprep.mubr.msk.f32.mxu1 %vm12804_vm2, %v15737_v54 }
0x4061   :  { %v8965_v46 = vpop.f32.mrb[148].mxu0 }
0x4062   :  { %v11663_v59 = vpop.f32.mrb[149].mxu0 }
0x4065   :  { %v9041_v2 = vpop.f32.mrb[164].mxu1  ;;  %v9119_v51 = vpop.f32.mrb[150].mxu0 }
0x4066   :  { %v9201_v21 = vmul.f32 0.35355338, %v9119_v51  ;;  %v11668_v31 = vpop.f32.mrb[165].mxu1  ;;  %v11673_v35 = vpop.f32.mrb[151].mxu0 }
0x4068   :  { %v9203_v29 = vadd.f32 %v9201_v21, %v15078_v7 }
0x4069   :  { %v9197_v18 = vpop.f32.mrb[166].mxu1 }
0x406a   :  { %v9202_v27 = vmul.f32 0.35355338, %v9197_v18  ;;  %v11678_v49 = vpop.f32.mrb[167].mxu1  ;;  %v9205_v17 = vsel %vm479_vm3, %v9203_v29, -inf }
0x406b   :  { %9206 = vmax.xlane.f32.xlu1 %v9205_v17 }
0x406c   :  { %v9204_v9 = vadd.f32 %v9202_v27, %v15078_v7 }
0x406e   :  { %v9208_v62 = vsel %vm479_vm3, %v9204_v9, -inf }
0x406f   :  { %9209 = vmax.xlane.f32.xlu0 %v9208_v62 }
0x40f8   :  { %v9207_v38 = vpop.xlane.xlu1 %9206 }
0x40f9   :  { %v9211_v24 = vsub.f32 %v9203_v29, %v9207_v38 }
0x40fb   :  { %v9213_v14 = vmul.f32 1.442695, %v9211_v24 }
0x40fc   :  { %v9210_v1 = vpop.xlane.xlu0 %9209 }
0x40fd   :  { %12738 = vpow2.f32 %v9213_v14  ;;  %v9212_v25 = vsub.f32 %v9204_v9, %v9210_v1 }
0x40ff   :  { %v9215_v36 = vmul.f32 1.442695, %v9212_v25 }
0x4101   :  { %12740 = vpow2.f32 %v9215_v36 }
0x4107   :  { %v12739_v39 = vpop.eup %12738 }
0x4108   :  { %v9217_v41 = vsel %vm479_vm3, %v12739_v39, 0.0 }
0x4109   :  { %9218 = vadd.xlane.f32.xlu0 %v9217_v41 }
0x410b   :  { %v12741_v4 = vpop.eup %12740 }
0x410c   :  { %v9220_v61 = vsel %vm479_vm3, %v12741_v4, 0.0 }
0x410d   :  { %9221 = vadd.xlane.f32.xlu1 %v9220_v61 }
0x411e   :  { %9303 = vrot.lane.b32.xlu1 %v15307_v43, %s15750_s0 }
0x411f   :  { %9227 = vrot.lane.b32.xlu0 %v15310_v13, %s15750_s0 }
0x4122   :  { %9381 = vrot.lane.b32.xlu1 %v15404_v8, %s15751_s2 }
0x4123   :  { %9383 = vrot.lane.b32.xlu0 %v15406_v60, %s15751_s2 }
0x4126   :  { %9389 = vrot.lane.b32.xlu1 %v8965_v46, %s15752_s26 }
0x4127   :  { %9391 = vrot.lane.b32.xlu0 %v9041_v2, %s15752_s26 }
0x4196   :  { %v9219_v7 = vpop.xlane.xlu0 %9218 }
0x4197   :  { %12742 = vrcp.f32 %v9219_v7 }
0x419a   :  { %v9222_v34 = vpop.xlane.xlu1 %9221  ;;  %v9228_v10 = vpop.permute.xlu0 %9227 }
0x419b   :  { %12744 = vrcp.f32 %v9222_v34  ;;  %11680 = vmatpush3.msra.mxu0 %v9228_v10 }
0x419c   :  { %12113 = vmatprep.subr.bf16.mxu0 %v14568_v58 }
0x419e   :  { %v9304_v43 = vpop.permute.xlu1 %9303 }
0x419f   :  { %11685 = vmatpush3.msra.mxu1 %v9304_v43 }
0x41a0   :  { %12121 = vmatprep.subr.bf16.mxu1 %v14673_v52 }
0x41a1   :  { %v12743_v13 = vpop.eup %12742 }
0x41a2   :  { %v9225_v8 = vmul.f32 %v12743_v13, %v12739_v39  ;;  %v9382_v21 = vpop.permute.xlu1 %9381 }
0x41a4   :  { %11682 = vmatmul.mubr.msk.f32.vlgmr.msra.gmra.mrb[152].mxu0 %vm479_vm3, %v9225_v8 }
0x41a5   :  { %v12745_v60 = vpop.eup %12744  ;;  %12115 = vmatpush3.bf16.msra.mxu0 %v14568_v58 }
0x41a6   :  { %v9226_v46 = vmul.f32 %v12745_v60, %v12741_v4  ;;  %12117 = vmatprep.subr.bf16.mxu0 %v14578_v40  ;;  %v9390_v31 = vpop.permute.xlu1 %9389 }
0x41a8   :  { %11687 = vmatmul.mubr.msk.f32.vlgmr.msra.gmra.mrb[168].mxu1 %vm479_vm3, %v9226_v46 }
0x41a9   :  { %12119 = vmatpush3.bf16.msra.mxu0 %v14578_v40  ;;  %12123 = vmatpush3.bf16.msra.mxu1 %v14673_v52  ;;  %v9384_v40 = vpop.permute.xlu0 %9383  ;;  %v9403_v52 = vsel %vm479_vm3, %v15364_v26, %v9382_v21 }
0x41aa   :  { %12125 = vmatprep.subr.bf16.mxu1 %v14682_v56  ;;  %12129 = vmatprep.subr.bf16.mxu0 %v14897_v47  ;;  %v9405_v29 = vsel %vm2472_vm7, %v9403_v52, %v9390_v31  ;;  %v9404_v27 = vsel %vm479_vm3, %v15366_v44, %v9384_v40 }
0x41ad   :  { %12127 = vmatpush3.bf16.msra.mxu1 %v14682_v56  ;;  %v9392_v35 = vpop.permute.xlu0 %9391 }
0x41ae   :  { %12160 = vmatprep.subr.bf16.mxu1 %v15745_v33  ;;  %v9406_v49 = vsel %vm2472_vm7, %v9404_v27, %v9392_v35 }
0x4277   :  { %v9299_v59 = vpop.f32.mrb[152].mxu0 }
0x4278   :  { %9397 = vrot.lane.b32.xlu1 %v9299_v59, %s15753_s27  ;;  %v11683_v58 = vpop.f32.mrb[153].mxu0 }
0x427b   :  { %v9375_v2 = vpop.f32.mrb[168].mxu1 }
0x427c   :  { %9399 = vrot.lane.b32.xlu0 %v9375_v2, %s15753_s27  ;;  %v11688_v51 = vpop.f32.mrb[169].mxu1 }
0x42ea   :  { %v9398_v56 = vpop.permute.xlu1 %9397 }
0x42eb   :  { %v9407_v18 = vsel %vm685_vm6, %v9405_v29, %v9398_v56 }
0x42ec   :  { %11697 = vmatprep.mubr.msk.f32.mxu0 %vm253_vm1, %v9407_v18 }
0x42ee   :  { %v9400_v17 = vpop.permute.xlu0 %9399 }
0x42ef   :  { %v9408_v9 = vsel %vm685_vm6, %v9406_v49, %v9400_v17 }
0x42f0   :  { %11698 = vmatmul.mubr.msk.f32.vlgmr.msra.gmra.mrb[154].mxu0 %vm253_vm1, %v9408_v9 }
0x42f1   :  { %12131 = vmatpush3.bf16.msra.mxu0 %v14897_v47 }
0x42f2   :  { %12133 = vmatprep.subr.bf16.mxu0 %v14907_v3 }
0x42f5   :  { %12135 = vmatpush3.bf16.msra.mxu0 %v14907_v3 }
0x42f6   :  { %12137 = vmatprep.subr.bf16.mxu0 %v14917_v16 }
0x42f9   :  { %12139 = vmatpush3.bf16.msra.mxu0 %v14917_v16 }
0x42fa   :  { %12141 = vmatprep.subr.bf16.mxu0 %v14930_v63 }
0x42fd   :  { %12143 = vmatpush3.bf16.msra.mxu0 %v14930_v63 }
0x42fe   :  { %12145 = vmatprep.subr.bf16.mxu0 %v14935_v55 }
0x4301   :  { %12147 = vmatpush3.bf16.msra.mxu0 %v14935_v55 }
0x4302   :  { %12149 = vmatprep.subr.bf16.mxu0 %v14946_v48 }
0x4305   :  { %12151 = vmatpush3.bf16.msra.mxu0 %v14946_v48 }
0x4306   :  { %12153 = vmatprep.subr.bf16.mxu0 %v14956_v6 }
0x4309   :  { %12155 = vmatpush3.bf16.msra.mxu0 %v14956_v6 }
0x430a   :  { %12157 = vmatprep.subr.bf16.mxu0 %v14966_v57 }
0x430d   :  { %12159 = vmatpush3.bf16.msra.mxu0 %v14966_v57 }
0x43c3   :  { %v11699_v47 = vpop.f32.mrb[154].mxu0 }
0x43c4   :  { %v9487_v3 = vadd.f32 %v11699_v47, %v14641_v32  ;;  %v9481_v16 = vpop.f32.mrb[155].mxu0 }
0x43c5   :  { %v9482_v63 = vadd.f32 %v9481_v16, %v14641_v32 }
0x43c6   :  { %v9491_v55 = vadd.f32 %v9487_v3, %v15298_v11 }
0x43c7   :  { %v9490_v26 = vadd.f32 %v9482_v63, %v15295_v19 }
0x43c8   :  { %v9495_v48 = vsel %vm253_vm1, %v9491_v55, 0.0 }
0x43c9   :  { %9496 = vadd.xlane.f32.xlu0 %v9495_v48  ;;  %v9492_v44 = vsel %vm253_vm1, %v9490_v26, 0.0 }
0x43ca   :  { %9493 = vadd.xlane.f32.xlu1 %v9492_v44 }
0x4456   :  { %v9497_v6 = vpop.xlane.xlu0 %9496 }
0x4457   :  { %v9499_v62 = vmul.f32 0.03125, %v9497_v6  ;;  %v9494_v38 = vpop.xlane.xlu1 %9493 }
0x4458   :  { %v9498_v57 = vmul.f32 0.03125, %v9494_v38 }
0x4459   :  { %v9501_v24 = vsub.f32 %v9491_v55, %v9499_v62 }
0x445a   :  { %v9500_v14 = vsub.f32 %v9490_v26, %v9498_v57 }
0x445b   :  { %v9503_v1 = vmul.f32 %v9501_v24, %v9501_v24 }
0x445c   :  { %v9502_v25 = vmul.f32 %v9500_v14, %v9500_v14 }
0x445d   :  { %v9507_v32 = vsel %vm253_vm1, %v9503_v1, 0.0 }
0x445e   :  { %9508 = vadd.xlane.f32.xlu1 %v9507_v32  ;;  %v9504_v11 = vsel %vm253_vm1, %v9502_v25, 0.0 }
0x445f   :  { %9505 = vadd.xlane.f32.xlu0 %v9504_v11 }
0x44eb   :  { %v9509_v19 = vpop.xlane.xlu1 %9508 }
0x44ec   :  { %v9511_v36 = vmul.f32 0.03125, %v9509_v19  ;;  %v9506_v39 = vpop.xlane.xlu0 %9505 }
0x44ed   :  { %v9510_v41 = vmul.f32 0.03125, %v9506_v39 }
0x44ee   :  { %v9513_v4 = vadd.f32 1e-05, %v9511_v36 }
0x44ef   :  { %v9512_v61 = vadd.f32 1e-05, %v9510_v41 }
0x44f0   :  { %12746 = vrsqrt.f32 %v9513_v4 }
0x44f1   :  { %12748 = vrsqrt.f32 %v9512_v61 }
0x44fa   :  { %v12747_v7 = vpop.eup %12746 }
0x44fb   :  { %v12749_v34 = vpop.eup %12748  ;;  %v9517_v10 = vmul.f32 %v12747_v7, %v9501_v24 }
0x44fc   :  { %v9516_v43 = vmul.f32 %v12749_v34, %v9500_v14 }
0x44fd   :  { %v9519_v13 = vmul.f32 %v9517_v10, %v14710_v22 }
0x44fe   :  { %v9518_v8 = vmul.f32 %v9516_v43, %v14710_v22 }
0x44ff   :  { %v9521_v46 = vadd.f32 %v9519_v13, %v14715_v45 }
0x4500   :  { %v9520_v60 = vadd.f32 %v9518_v8, %v14715_v45 }
0x4502   :  { %11708 = vmatprep.mubr.msk.f32.mxu1 %vm253_vm1, %v9520_v60 }
0x4503   :  { %11709 = vmatmul.mubr.msk.f32.vlgmr.msra.gmra.mrb[170].mxu1 %vm253_vm1, %v9521_v46 }
0x4504   :  { %11762 = vmatprep.mubr.msk.f32.mxu1 %vm12804_vm2, %v15737_v54 }
0x45d6   :  { %v11710_v59 = vpop.f32.mrb[170].mxu1 }
0x45d7   :  { %v9600_v58 = vadd.f32 %v11710_v59, %v14852_v50  ;;  %v9594_v2 = vpop.f32.mrb[171].mxu1 }
0x45d8   :  { %v9595_v51 = vadd.f32 %v9594_v2, %v14852_v50 }
0x45d9   :  { %9605 = vadd.xlane.f32.xlu1 %v9600_v58 }
0x45da   :  { %9603 = vadd.xlane.f32.xlu0 %v9595_v51 }
0x4666   :  { %v9606_v22 = vpop.xlane.xlu1 %9605 }
0x4667   :  { %v9608_v21 = vmul.f32 0.0078125, %v9606_v22  ;;  %v9604_v40 = vpop.xlane.xlu0 %9603 }
0x4668   :  { %v9607_v31 = vmul.f32 0.0078125, %v9604_v40 }
0x4669   :  { %v9610_v45 = vsub.f32 %v9600_v58, %v9608_v21 }
0x466a   :  { %v9609_v52 = vsub.f32 %v9595_v51, %v9607_v31 }
0x466b   :  { %v9612_v35 = vmul.f32 %v9610_v45, %v9610_v45 }
0x466c   :  { %v9611_v29 = vmul.f32 %v9609_v52, %v9609_v52 }
0x466d   :  { %9615 = vadd.xlane.f32.xlu1 %v9612_v35 }
0x466e   :  { %9613 = vadd.xlane.f32.xlu0 %v9611_v29 }
0x46fa   :  { %v9616_v56 = vpop.xlane.xlu1 %9615 }
0x46fb   :  { %v9618_v18 = vmul.f32 0.0078125, %v9616_v56  ;;  %v9614_v27 = vpop.xlane.xlu0 %9613 }
0x46fc   :  { %v9617_v49 = vmul.f32 0.0078125, %v9614_v27 }
0x46fd   :  { %v9620_v17 = vadd.f32 1e-05, %v9618_v18 }
0x46fe   :  { %v9619_v9 = vadd.f32 1e-05, %v9617_v49 }
0x46ff   :  { %12750 = vrsqrt.f32 %v9620_v17 }
0x4700   :  { %12752 = vrsqrt.f32 %v9619_v9 }
0x4709   :  { %v12751_v50 = vpop.eup %12750 }
0x470a   :  { %v12753_v47 = vpop.eup %12752  ;;  %v9624_v3 = vmul.f32 %v12751_v50, %v9610_v45 }
0x470b   :  { %v9623_v16 = vmul.f32 %v12753_v47, %v9609_v52 }
0x470c   :  { %v9626_v63 = vmul.f32 %v9624_v3, %v15006_v15 }
0x470d   :  { %v9625_v55 = vmul.f32 %v9623_v16, %v15006_v15  ;;  %v12776_v15 = vld [vmem:[%s15643_s10 + $0x18] sm:$0xf] }
0x470e   :  { %v9628_v26 = vadd.f32 %v9626_v63, %v15011_v0 }
0x470f   :  { %v9627_v48 = vadd.f32 %v9625_v55, %v15011_v0  ;;  %v5827_v0 = vrot.slane %v12776_v15, %v13727_v53 }
0x4710   :  { %v9632_v44 = vmul.f32 0.70710677, %v9628_v26  ;;  %v9630_v1 = vmul.f32 0.5, %v9628_v26 }
0x4711   :  { %v9631_v6 = vmul.f32 0.70710677, %v9627_v48  ;;  %v9629_v24 = vmul.f32 0.5, %v9627_v48  ;;  %v5908_v19 = vadd.f32 %v15052_v37, %v5827_v0  ;;  %v5895_v41 = vadd.f32 %v15050_v30, %v5827_v0 }
0x4712   :  { %12754 = verf.f32 %v9632_v44 }
0x4713   :  { %12756 = verf.f32 %v9631_v6  ;;  %v5920_v34 = vadd.f32 %v5908_v19, %v14816_v5  ;;  %v5919_v43 = vadd.f32 %v5895_v41, %v14726_v12  ;;  %v12777_v6 = vld [vmem:[%s15643_s10 + $0x10] sm:$0xff] }
0x4715   :  { %v5924_v8 = vsel %vm253_vm1, %v5920_v34, 0.0  ;;  %v5921_v37 = vsel %vm253_vm1, %v5919_v43, 0.0 }
0x471c   :  { %v12755_v62 = vpop.eup %12754 }
0x471d   :  { %v12757_v38 = vpop.eup %12756  ;;  %v9636_v57 = vadd.f32 1.0, %v12755_v62  ;;  %v15780_v62 = vld [vmem:[#allocation23_spill] sm:$0xff] }
0x471e   :  { %v9635_v14 = vadd.f32 1.0, %v12757_v38  ;;  %v5950_v38 = vrot.slane %v12777_v6, %v15780_v62 }
0x471f   :  { %v9638_v32 = vmul.f32 %v9636_v57, %v9630_v1  ;;  %v15781_v1 = vld [vmem:[#allocation24_spill] sm:$0xff] }
0x4720   :  { %v9637_v25 = vmul.f32 %v9635_v14, %v9629_v24 }
0x4722   :  { %11743 = vmatprep.mubr.f32.mxu0 %v9637_v25  ;;  %v5956_v25 = vrot.slane %v12777_v6, %v15781_v1 }
0x4723   :  { %11744 = vmatmul.mubr.f32.vlgmr.msra.gmra.mrb[156].mxu0 %v9638_v32 }
0x47f6   :  { %v11745_v11 = vpop.f32.mrb[156].mxu0 }
0x47f7   :  { %v9711_v36 = vadd.f32 %v11745_v11, %v5827_v0  ;;  %v9705_v39 = vpop.f32.mrb[157].mxu0 }
0x47f8   :  { %v9706_v4 = vadd.f32 %v9705_v39, %v5827_v0 }
0x47f9   :  { %v9715_v61 = vadd.f32 %v9711_v36, %v9521_v46 }
0x47fa   :  { %v9714_v7 = vadd.f32 %v9706_v4, %v9520_v60 }
0x47fb   :  { %v9719_v10 = vsel %vm253_vm1, %v9715_v61, 0.0 }
0x47fc   :  { %9720 = vadd.xlane.f32.xlu0 %v9719_v10  ;;  %v9716_v13 = vsel %vm253_vm1, %v9714_v7, 0.0 }
0x47fd   :  { %9717 = vadd.xlane.f32.xlu1 %v9716_v13 }
0x4800   :  { %5925 = vadd.xlane.f32.xlu0 %v5924_v8 }
0x4801   :  { %5922 = vadd.xlane.f32.xlu1 %v5921_v37 }
0x4889   :  { %v9721_v30 = vpop.xlane.xlu0 %9720 }
0x488a   :  { %v9723_v59 = vmul.f32 0.03125, %v9721_v30  ;;  %v9718_v46 = vpop.xlane.xlu1 %9717 }
0x488b   :  { %v9722_v60 = vmul.f32 0.03125, %v9718_v46 }
0x488c   :  { %v9725_v58 = vsub.f32 %v9715_v61, %v9723_v59 }
0x488d   :  { %v9724_v5 = vsub.f32 %v9714_v7, %v9722_v60  ;;  %v5926_v2 = vpop.xlane.xlu0 %5925 }
0x488e   :  { %v5928_v51 = vmul.f32 0.03125, %v5926_v2  ;;  %v5923_v22 = vpop.xlane.xlu1 %5922  ;;  %v9727_v12 = vmul.f32 %v9725_v58, %v9725_v58 }
0x488f   :  { %v5927_v21 = vmul.f32 0.03125, %v5923_v22  ;;  %v9726_v40 = vmul.f32 %v9724_v5, %v9724_v5 }
0x4890   :  { %v5930_v31 = vsub.f32 %v5920_v34, %v5928_v51  ;;  %v9731_v45 = vsel %vm253_vm1, %v9727_v12, 0.0 }
0x4891   :  { %v5929_v52 = vsub.f32 %v5919_v43, %v5927_v21  ;;  %9732 = vadd.xlane.f32.xlu0 %v9731_v45  ;;  %v9728_v35 = vsel %vm253_vm1, %v9726_v40, 0.0 }
0x4892   :  { %9729 = vadd.xlane.f32.xlu1 %v9728_v35  ;;  %v5932_v29 = vmul.f32 %v5930_v31, %v5930_v31 }
0x4893   :  { %v5931_v56 = vmul.f32 %v5929_v52, %v5929_v52 }
0x4894   :  { %v5936_v18 = vsel %vm253_vm1, %v5932_v29, 0.0 }
0x4895   :  { %5937 = vadd.xlane.f32.xlu0 %v5936_v18  ;;  %v5933_v27 = vsel %vm253_vm1, %v5931_v56, 0.0 }
0x4896   :  { %5934 = vadd.xlane.f32.xlu1 %v5933_v27 }
0x491e   :  { %v9733_v49 = vpop.xlane.xlu0 %9732 }
0x491f   :  { %v9735_v17 = vmul.f32 0.03125, %v9733_v49  ;;  %v9730_v9 = vpop.xlane.xlu1 %9729 }
0x4920   :  { %v9734_v50 = vmul.f32 0.03125, %v9730_v9 }
0x4921   :  { %v9737_v47 = vadd.f32 1e-05, %v9735_v17 }
0x4922   :  { %v9736_v3 = vadd.f32 1e-05, %v9734_v50  ;;  %v5938_v16 = vpop.xlane.xlu0 %5937 }
0x4923   :  { %12758 = vrsqrt.f32 %v9737_v47  ;;  %v5940_v63 = vmul.f32 0.03125, %v5938_v16  ;;  %v5935_v55 = vpop.xlane.xlu1 %5934 }
0x4924   :  { %12760 = vrsqrt.f32 %v9736_v3  ;;  %v5939_v26 = vmul.f32 0.03125, %v5935_v55  ;;  %v15553_v55 = vld [vmem:[%s15644_s11] sm:$0xff]  ;;  %s12820_s11 = smov 32  }
0x4925   :  { %v5942_v48 = vadd.f32 1e-05, %v5940_v63 }
0x4926   :  { %v5941_v44 = vadd.f32 1e-05, %v5939_v26 }
0x4927   :  { %12762 = vrsqrt.f32 %v5942_v48 }
0x4928   :  { %12764 = vrsqrt.f32 %v5941_v44  ;;  %v5998_v44 = vrot.slane %v15553_v55, %v13008_v23 }
0x492d   :  { %v12759_v57 = vpop.eup %12758 }
0x492e   :  { %v12761_v24 = vpop.eup %12760  ;;  %v9741_v14 = vmul.f32 %v12759_v57, %v9725_v58 }
0x492f   :  { %v9740_v32 = vmul.f32 %v12761_v24, %v9724_v5  ;;  %v6004_v24 = vrot.slane %v15553_v55, %v13014_v28 }
0x4930   :  { %v9743_v15 = vmul.f32 %v9741_v14, %v5950_v38 }
0x4931   :  { %v12763_v0 = vpop.eup %12762  ;;  %v9742_v11 = vmul.f32 %v9740_v32, %v5950_v38 }
0x4932   :  { %v12765_v19 = vpop.eup %12764  ;;  %v5946_v36 = vmul.f32 %v12763_v0, %v5930_v31  ;;  %v9745_v39 = vadd.f32 %v9743_v15, %v5956_v25 }
0x4933   :  { %v9744_v41 = vadd.f32 %v9742_v11, %v5956_v25  ;;  %v5945_v4 = vmul.f32 %v12765_v19, %v5929_v52 }
0x4934   :  { %v9748_v61 = vrot.slane %v9745_v39, 7  ;;  %v5952_v7 = vmul.f32 %v5950_v38, %v5946_v36 }
0x4935   :  { %v5951_v34 = vmul.f32 %v5950_v38, %v5945_v4 }
0x4936   :  { %v9749_v10 = vsel %vm5962_vm10, %v9748_v61, %v9744_v41  ;;  %v5958_v43 = vadd.f32 %v5956_v25, %v5952_v7 }
0x4937   :  { %v9751_v13 = vsel %vm5965_vm11, %v9749_v10, 0.0  ;;  %v5957_v8 = vadd.f32 %v5956_v25, %v5951_v34 }
0x4938   :  { %9752 = vadd.xlane.f32.xlu0 %v9751_v13  ;;  %v5961_v37 = vrot.slane %v5958_v43, 7 }
0x493a   :  { %v5963_v30 = vsel %vm5962_vm10, %v5961_v37, %v5957_v8 }
0x493b   :  { %v5966_v59 = vsel %vm5965_vm11, %v5963_v30, 0.0 }
0x493c   :  { %5967 = vadd.xlane.f32.xlu1 %v5966_v59 }
0x49c5   :  { %v9753_v46 = vpop.xlane.xlu0 %9752 }
0x49c6   :  { %v9754_v60 = vmul.f32 0.03125, %v9753_v46  ;;  %v9822_v46 = vld [vmem:[%s15645_s12] sm:$0xff] }
0x49c8   :  { %v9756_v58 = vrot.slane %v9754_v60, 1  ;;  %v9759_v2 = vsub.f32 %v9744_v41, %v9754_v60  ;;  %v9823_v60 = vld [vmem:[%s15645_s12 + $0x8] sm:$0xff] }
0x49c9   :  { %v5968_v5 = vpop.xlane.xlu1 %5967 }
0x49ca   :  { %v9760_v51 = vsub.f32 %v9745_v39, %v9756_v58  ;;  %v5969_v22 = vmul.f32 0.03125, %v5968_v5  ;;  %v9761_v40 = vmul.f32 %v9759_v2, %v9759_v2  ;;  %v12161_v58 = vpack.c.bf16 %v9823_v60, %v9822_v46  ;;  %v9824_v5 = vld [vmem:[%s15645_s12 + $0x10] sm:$0xff] }
0x49cc   :  { %v9762_v12 = vmul.f32 %v9760_v51, %v9760_v51  ;;  %v5971_v21 = vrot.slane %v5969_v22, 1  ;;  %v5974_v45 = vsub.f32 %v5957_v8, %v5969_v22  ;;  %12162 = vmatpush3.bf16.msra.mxu1 %v12161_v58  ;;  %v9826_v22 = vld [vmem:[%s15645_s12 + $0x20] sm:$0xff] }
0x49cd   :  { %12163 = vmatprep.subr.bf16.mxu1 %v15745_v33 }
0x49ce   :  { %v9765_v31 = vrot.slane %v9762_v12, 7  ;;  %v5975_v52 = vsub.f32 %v5958_v43, %v5971_v21  ;;  %v5976_v18 = vmul.f32 %v5974_v45, %v5974_v45  ;;  %v9827_v12 = vld [vmem:[%s15645_s12 + $0x28] sm:$0xff] }
0x49cf   :  { %v12167_v21 = vpack.c.bf16 %v9827_v12, %v9826_v22 }
0x49d0   :  { %v5977_v35 = vmul.f32 %v5975_v52, %v5975_v52  ;;  %v9766_v29 = vsel %vm5962_vm10, %v9765_v31, %v9761_v40  ;;  %v9828_v40 = vld [vmem:[%s15645_s12 + $0x30] sm:$0xff]  ;;  %v9829_v31 = vld [vmem:[%s15645_s12 + $0x38] sm:$0xff] }
0x49d1   :  { %v9768_v56 = vsel %vm5965_vm11, %v9766_v29, 0.0 }
0x49d2   :  { %v5980_v27 = vrot.slane %v5977_v35, 7  ;;  %9769 = vadd.xlane.f32.xlu0 %v9768_v56  ;;  %v9815_v56 = vrot.slane %v15553_v55, %v13724_v20 }
0x49d4   :  { %v5981_v49 = vsel %vm5962_vm10, %v5980_v27, %v5976_v18 }
0x49d5   :  { %v5983_v17 = vsel %vm5965_vm11, %v5981_v49, 0.0  ;;  %v9820_v49 = vrot.slane %v15553_v55, %v13727_v53 }
0x49d6   :  { %5984 = vadd.xlane.f32.xlu1 %v5983_v17 }
0x4a5f   :  { %v9770_v9 = vpop.xlane.xlu0 %9769 }
0x4a60   :  { %v9771_v50 = vmul.f32 0.03125, %v9770_v9 }
0x4a62   :  { %v9772_v47 = vadd.f32 1e-05, %v9771_v50  ;;  %v9833_v50 = vrot.slane %v15553_v55, %v15780_v62  ;;  %v9931_v62 = vld [vmem:[%s15646_s13 + $0x8] sm:$0xff] }
0x4a63   :  { %v5985_v3 = vpop.xlane.xlu1 %5984 }
0x4a64   :  { %12766 = vrsqrt.f32 %v9772_v47  ;;  %v5986_v16 = vmul.f32 0.03125, %v5985_v3 }
0x4a66   :  { %v5987_v63 = vadd.f32 1e-05, %v5986_v16 }
0x4a68   :  { %12768 = vrsqrt.f32 %v5987_v63 }
0x4a6e   :  { %v12767_v26 = vpop.eup %12766 }
0x4a6f   :  { %v9775_v48 = vrot.slane %v12767_v26, 1  ;;  %v9778_v6 = vmul.f32 %v12767_v26, %v9759_v2  ;;  %v9825_v2 = vld [vmem:[%s15645_s12 + $0x18] sm:$0xff] }
0x4a71   :  { %v9779_v38 = vmul.f32 %v9775_v48, %v9760_v51  ;;  %v9780_v25 = vmul.f32 %v9778_v6, %v5998_v44  ;;  %v12164_v51 = vpack.c.bf16 %v9825_v2, %v9824_v5 }
0x4a72   :  { %v12769_v57 = vpop.eup %12768 }
0x4a73   :  { %v5990_v14 = vrot.slane %v12769_v57, 1  ;;  %v9781_v32 = vmul.f32 %v9779_v38, %v5998_v44  ;;  %v5993_v15 = vmul.f32 %v12769_v57, %v5974_v45  ;;  %v9782_v36 = vadd.f32 %v9780_v25, %v6004_v24  ;;  %12165 = vmatpush3.bf16.msra.mxu1 %v12164_v51  ;;  %v9932_v38 = vld [vmem:[%s15646_s13 + $0x10] sm:$0xff]  ;;  %v9933_v57 = vld [vmem:[%s15646_s13 + $0x18] sm:$0xff] }
0x4a74   :  { %12166 = vmatprep.subr.bf16.mxu1 %v15745_v33  ;;  %v12170_v45 = vpack.c.bf16 %v9829_v31, %v9828_v40 }
0x4a75   :  { %v9783_v0 = vadd.f32 %v9781_v32, %v6004_v24  ;;  %v5994_v11 = vmul.f32 %v5990_v14, %v5975_v52  ;;  %v5999_v19 = vmul.f32 %v5998_v44, %v5993_v15  ;;  %v9923_v15 = vrot.slane %v15553_v55, %v15781_v1 }
0x4a77   :  { %v9791_v39 = vrot.slane %v9783_v0, 7  ;;  %v6000_v41 = vmul.f32 %v5998_v44, %v5994_v11  ;;  %v6005_v4 = vadd.f32 %v6004_v24, %v5999_v19  ;;  %12168 = vmatpush3.bf16.msra.mxu1 %v12167_v21 }
0x4a78   :  { %12169 = vmatprep.subr.bf16.mxu1 %v15745_v33 }
0x4a79   :  { %v9792_v61 = vsel %vm5962_vm10, %v9791_v39, %v9782_v36  ;;  %v6006_v23 = vadd.f32 %v6004_v24, %v6000_v41  ;;  %v12176_v24 = vpack.c.bf16 %v9933_v57, %v9932_v38  ;;  %v9937_v41 = vrot.slane %v15553_v55, %v13668_v42 }
0x4a7a   :  { %9793 = vrot.lane.b32.xlu0 %v9792_v61, %s12820_s11 }
0x4a7b   :  { %v9786_v7 = vrot.slane %v6006_v23, 7  ;;  %12171 = vmatpush3.bf16.msra.mxu1 %v12170_v45 }
0x4a7c   :  { %12172 = vmatprep.subr.bf16.mxu1 %v15745_v33 }
0x4a7d   :  { %v9787_v34 = vsel %vm5962_vm10, %v9786_v7, %v6005_v4 }
0x4aec   :  { %v9794_v28 = vpop.permute.xlu0 %9793 }
0x4aed   :  { %v9796_v10 = vsel %vm253_vm1, %v9787_v34, %v9794_v28 }
0x4aee   :  { %v9798_v43 = vsel %vm9797_vm12, %v9796_v10, 0.0 }
0x4aef   :  { %9799 = vadd.xlane.f32.xlu1 %v9798_v43 }
0x4b7c   :  { %v9800_v13 = vpop.xlane.xlu1 %9799 }
0x4b7d   :  { %v9802_v8 = vmul.f32 0.015625, %v9800_v13 }
0x4b7f   :  { %v9803_v37 = vsub.f32 %v9796_v10, %v9802_v8 }
0x4b81   :  { %v9804_v30 = vmul.f32 %v9803_v37, %v9803_v37 }
0x4b83   :  { %v9805_v59 = vsel %vm9797_vm12, %v9804_v30, 0.0 }
0x4b84   :  { %9806 = vadd.xlane.f32.xlu1 %v9805_v59 }
0x4c11   :  { %v9807_v52 = vpop.xlane.xlu1 %9806 }
0x4c12   :  { %v9808_v35 = vmul.f32 0.015625, %v9807_v52 }
0x4c14   :  { %v9809_v29 = vadd.f32 1e-05, %v9808_v35 }
0x4c16   :  { %12770 = vrsqrt.f32 %v9809_v29 }
0x4c20   :  { %v12771_v18 = vpop.eup %12770 }
0x4c21   :  { %v9811_v27 = vmul.f32 %v12771_v18, %v9803_v37 }
0x4c23   :  { %v9816_v17 = vmul.f32 %v9815_v56, %v9811_v27 }
0x4c25   :  { %v9821_v9 = vadd.f32 %v9820_v49, %v9816_v17 }
0x4c27   :  { %11763 = vmatmul.mubr.msk.f32.vlgmr.msra.gmra.mrb[172].mxu1 %vm6036_vm8, %v9821_v9 }
0x4c28   :  { %11773 = vmatprep.mubr.msk.f32.mxu1 %vm12804_vm2, %v15737_v54  ;;  %v9930_v54 = vld [vmem:[%s15646_s13] sm:$0xff]  ;;  %s12821_s13 = smov [#allocation2]  }
0x4c29   :  { %v12173_v6 = vpack.c.bf16 %v9931_v62, %v9930_v54  ;;  %s10019_s19 = sshll.u32 %s12821_s13, 4  ;;  %s10020_s19 = int_to_ptr.vmem [resolvable:$true] %s10019_s19 }
0x4c2a   :  { %s12778_s20 = scalar_lea.vmem %s10020_s19, 32  ;;  %p12783_p1 = scmp.lt.s32.totalorder %s10020_s19, %s10020_s19 }
0x4c2b   :  { %12174 = vmatpush3.bf16.msra.mxu1 %v12173_v6  ;;  %p12779_p0 = scmp.ne.s32.totalorder %s10020_s19, %s12778_s20  ;;  %p12784_p2 = scmp.lt.s32.totalorder %s12778_s20, %s12778_s20 }
0x4c2c   :  { %12175 = vmatprep.subr.bf16.mxu1 %v15745_v33  ;;  %v15782_v33 = vld [vmem:[#allocation5_spill] sm:$0xff] }
0x4c2d   :  { %v9928_v19 = vrot.slane %v15553_v55, %v15782_v33  ;;  %p12785_p3 = por %p12784_p2, %p12783_p1 }
0x4c2f   :  { %12177 = vmatpush3.bf16.msra.mxu1 %v12176_v24  ;;  %p12786_p4 = pnand %p12785_p3, %p12779_p0 }
0x4cfa   :  { %v9903_v47 = vpop.f32.mrb[172].mxu1 }
0x4cfb   :  { %v9904_v3 = vadd.f32 %v9903_v47, %v9833_v50  ;;  %v11764_v16 = vpop.f32.mrb[173].mxu1 }
0x4cfd   :  { %v9907_v20 = vsel %vm5965_vm11, %v9904_v3, 0.0 }
0x4cfe   :  { %9908 = vadd.xlane.f32.xlu1 %v9907_v20 }
0x4d8b   :  { %v9909_v63 = vpop.xlane.xlu1 %9908 }
0x4d8c   :  { %v9910_v26 = vmul.f32 0.03125, %v9909_v63 }
0x4d8e   :  { %v9911_v48 = vsub.f32 %v9904_v3, %v9910_v26 }
0x4d90   :  { %v9912_v53 = vmul.f32 %v9911_v48, %v9911_v48 }
0x4d92   :  { %v9913_v44 = vsel %vm5965_vm11, %v9912_v53, 0.0 }
0x4d93   :  { %9914 = vadd.xlane.f32.xlu1 %v9913_v44 }
0x4e20   :  { %v9915_v14 = vpop.xlane.xlu1 %9914 }
0x4e21   :  { %v9916_v25 = vmul.f32 0.03125, %v9915_v14 }
0x4e23   :  { %v9917_v32 = vadd.f32 1e-05, %v9916_v25 }
0x4e25   :  { %12772 = vrsqrt.f32 %v9917_v32 }
0x4e2f   :  { %v12773_v0 = vpop.eup %12772 }
0x4e30   :  { %v9919_v11 = vmul.f32 %v12773_v0, %v9911_v48 }
0x4e32   :  { %v9924_v36 = vmul.f32 %v9923_v15, %v9919_v11 }
0x4e34   :  { %v9929_v39 = vadd.f32 %v9928_v19, %v9924_v36 }
0x4e36   :  { %11774 = vmatmul.mubr.msk.f32.vlgmr.msra.gmra.mrb[174].mxu1 %vm253_vm1, %v9929_v39 }
0x4f09   :  { %v10007_v4 = vpop.f32.mrb[174].mxu1 }
0x4f0a   :  { %v10008_v61 = vadd.f32 %v10007_v4, %v9937_v41  ;;  %v11775_v23 = vpop.f32.mrb[175].mxu1 }
0x4f0c   :  { %10012 = vst.msk [vmem:[#allocation2] sm:$0x3] %vm10011_vm13, %v10008_v61 }
0x4f0d   :  { %12789 = shalt.err (!%p12786_p4)
}
0x4f0e   :  { %s12790_s11 = scalar_lea.hbm %s15647_s14, 32 }
0x4f0f   :  { %p12791_p5 = scmp.ne.s32.totalorder %s15647_s14, %s12790_s11  ;;  %p12794_p6 = scmp.lt.u32.totalorder %s12790_s11, %s15647_s14 }
0x4f11   :  { %p12796_p7 = pnand %p12794_p6, %p12791_p5 }
0x4f13   :  { %12799 = shalt.err (!%p12796_p7)
}
0x4f14   :  { %10022 = dma.vmem_to_hbm [thread:$0]  %s10020_s19, 32, %s15647_s14, [#allocation3]  }
0x4f15   :  { %12800 = dma.done.wait [#allocation3], 32  }
0x4f16   :  { %12801 = vsyncadd [#allocation3], 4294967264 }
0x4f17   :  { %10026 = vsyncpa [#allocation3], 1 }

</bundles_post_ra>
